<compile_context>
chip_gen: v6e
topology: v6e:2x2x1
jax: 0.10.0
libtpu: 0.0.40
codegen_flags: <defaults>
</compile_context>

<pallas_src>
import jax
import jax.numpy as jnp
from jax.experimental import pallas as pl
from jax.experimental.pallas import tpu as pltpu

EPS = 1e-5


# ----------------------------- in-kernel helpers -------------------------------

def _conv3x3_im2col(x_ref, w_ref, xsh_ref):
    """3x3 / stride 1 / pad 1 conv of one image as a single im2col matmul.

    x_ref  : (1, H, W, Cin)   bf16 input block
    w_ref  : (9*Cin, Cout)    bf16 weights, rows ordered (dy, dx, cin)
    xsh_ref: (H+2, W, 3*Cin)  bf16 dx-shifted halo scratch; rows 0 / H+1 must already
                              be zero (zeroed once per pallas_call, never rewritten).
    returns: (H*W, Cout)      f32 conv output

    Layout: xsh[r, w, dx*Cin:(dx+1)*Cin] == xpad[r, w+dx, :] (xpad = zero-padded image),
    so the three dy taps are free leading-dim slices and the three dx taps are already
    lane-concatenated -> 3 column shifts instead of 9 sublane-shifted tap slices.
    """
    _, H, W, Cin = x_ref.shape
    x = x_ref[0]                                                  # (H, W, Cin) bf16
    zcol = jnp.zeros((H, 1, Cin), x.dtype)
    # All three scratch stores are lane/sublane aligned; the +-1 column shift is done
    # on the value (cheap XLU/relayout), and the zero halo columns are written explicitly.
    xsh_ref[1:H + 1, :, 0:Cin] = jnp.concatenate([zcol, x[:, :W - 1, :]], axis=1)        # dx=0
    xsh_ref[1:H + 1, :, Cin:2 * Cin] = x                                                 # dx=1
    xsh_ref[1:H + 1, :, 2 * Cin:3 * Cin] = jnp.concatenate([x[:, 1:, :], zcol], axis=1)  # dx=2
    # Three free leading-dim dy slices, lane-concatenated -> one K = 9*Cin matmul.
    patches = jnp.concatenate(
        [xsh_ref[0:H], xsh_ref[1:H + 1], xsh_ref[2:H + 2]], axis=-1)
    return jnp.dot(patches.reshape(H * W, 9 * Cin), w_ref[...],
                   preferred_element_type=jnp.float32)


def _phase0_conv_and_stats(x_ref, w_ref, stats_ref, conv_ref, xsh_ref, n):
    """Phase 0: conv this image once, cache conv output (bf16) + per-image stats (f32)."""
    conv = _conv3x3_im2col(x_ref, w_ref, xsh_ref)                 # (H*W, Cout) f32
    inv_hw = 1.0 / conv.shape[0]
    m1 = jnp.sum(conv, axis=0, keepdims=True) * inv_hw            # E[x]    (1, Cout)
    m2 = jnp.sum(conv * conv, axis=0, keepdims=True) * inv_hw     # E[x^2]  (1, Cout)
    stats_ref[n] = jnp.concatenate([m1, m2], axis=0)              # (2, Cout)
    conv_ref[n] = conv.astype(conv_ref.dtype)


def _dson_from_cache(conv_ref, stats_ref, g_ref, b_ref, mw_ref, vw_ref, n):
    """Phase 1: IN/BN mixture + per-domain affine, entirely from the VMEM caches."""
    conv = conv_ref[n].astype(jnp.float32)                        # (H*W, Cout)
    st_in = stats_ref[n]                                          # this image's IN stats
    st_bn = jnp.mean(stats_ref[...], axis=0)                      # batch stats = mean over images
    mean_in, sq_in = st_in[0:1, :], st_in[1:2, :]
    mean_bn, sq_bn = st_bn[0:1, :], st_bn[1:2, :]
    var_in = jnp.maximum(sq_in - mean_in * mean_in, 0.0)          # clamp: E[x^2]-E[x]^2 >= 0
    var_bn = jnp.maximum(sq_bn - mean_bn * mean_bn, 0.0)
    mean = mw_ref[0] * mean_in + mw_ref[1] * mean_bn
    var = vw_ref[0] * var_in + vw_ref[1] * var_bn
    xh = (conv - mean) * jax.lax.rsqrt(var + EPS)
    return xh * g_ref[...] + b_ref[...]


# ------------------------------- fused kernels ----------------------------------

def conv_dson_relu_kernel(x_ref, w_ref, g_ref, b_ref, mw_ref, vw_ref,
                          o_ref, stats_ref, conv_ref, xsh_ref):
    phase, n = pl.program_id(0), pl.program_id(1)

    @pl.when((phase == 0) & (n == 0))
    def _():
        xsh_ref[...] = jnp.zeros_like(xsh_ref)   # one-time zero; halo border persists

    @pl.when(phase == 0)
    def _():
        _phase0_conv_and_stats(x_ref, w_ref, stats_ref, conv_ref, xsh_ref, n)

    @pl.when(phase == 1)
    def _():
        y = jnp.maximum(
            _dson_from_cache(conv_ref, stats_ref, g_ref, b_ref, mw_ref, vw_ref, n), 0.0)
        o_ref[...] = y.reshape(o_ref.shape).astype(o_ref.dtype)


def conv_dson_add_relu_kernel(x_ref, res_ref, w_ref, g_ref, b_ref, mw_ref, vw_ref,
                              o_ref, stats_ref, conv_ref, xsh_ref):
    phase, n = pl.program_id(0), pl.program_id(1)

    @pl.when((phase == 0) & (n == 0))
    def _():
        xsh_ref[...] = jnp.zeros_like(xsh_ref)

    @pl.when(phase == 0)
    def _():
        _phase0_conv_and_stats(x_ref, w_ref, stats_ref, conv_ref, xsh_ref, n)

    @pl.when(phase == 1)
    def _():
        y = _dson_from_cache(conv_ref, stats_ref, g_ref, b_ref, mw_ref, vw_ref, n)
        res = res_ref[0].astype(jnp.float32).reshape(y.shape)
        y = jnp.maximum(y + res, 0.0)
        o_ref[...] = y.reshape(o_ref.shape).astype(o_ref.dtype)


# ------------------------------- pallas wrapper ----------------------------------

def _fused_conv_dson(kernel, x, w, gamma, beta, mw, vw, *,
                     residual=None, out_dtype=jnp.bfloat16):
    """conv3x3 + DSON (+ residual) + ReLU, tiled per image over a (phase, image) grid."""
    N, H, W, Cin = x.shape
    Cout = w.shape[-1]
    # x is consumed only in phase 0 (conv output cached in VMEM): pin the last block
    # during phase 1 -> N fetches instead of 2N.
    x_map = lambda p, n: ((1 - p) * n + p * (N - 1), 0, 0, 0)
    # residual is consumed only in phase 1: pin block 0 during phase 0 -> N fetches.
    res_map = lambda p, n: (p * n, 0, 0, 0)
    rep = lambda p, n: (0, 0)
    # Output: phase 0 pins block 0 (never written, stays resident); phase 1 visits block n.
    # Each block's visits are contiguous -> every block is DMA'd to HBM exactly once.
    out_map = lambda p, n: (p * n, 0, 0, 0)

    in_specs = [pl.BlockSpec((1, H, W, Cin), x_map)]
    args = [x]
    if residual is not None:
        in_specs.append(pl.BlockSpec((1, H, W, Cout), res_map))
        args.append(residual)
    in_specs += [
        pl.BlockSpec((9 * Cin, Cout), rep),                    # weights (resident in VMEM)
        pl.BlockSpec((1, Cout), rep),                          # gamma
        pl.BlockSpec((1, Cout), rep),                          # beta
        pl.BlockSpec(memory_space=pltpu.MemorySpace.SMEM),     # mean mixture weights (2,)
        pl.BlockSpec(memory_space=pltpu.MemorySpace.SMEM),     # var mixture weights  (2,)
    ]
    args += [w, gamma, beta, mw, vw]

    return pl.pallas_call(
        kernel,
        out_shape=jax.ShapeDtypeStruct((N, H, W, Cout), out_dtype),
        grid=(2, N),                                           # (phase, image)
        in_specs=in_specs,
        out_specs=pl.BlockSpec((1, H, W, Cout), out_map),
        scratch_shapes=[
            pltpu.VMEM((N, 2, Cout), jnp.float32),             # per-image E[x]/E[x^2] cache
            pltpu.VMEM((N, H * W, Cout), jnp.bfloat16),        # per-image conv output cache
            pltpu.VMEM((H + 2, W, 3 * Cin), jnp.bfloat16),     # dx-shifted halo scratch
        ],
        compiler_params=pltpu.CompilerParams(
            # Caches are carried across both grid axes -> sequential order on one TC.
            dimension_semantics=("arbitrary", "arbitrary"),
            vmem_limit_bytes=32 * 1024 * 1024),
    )(*args)


# ----------------------------- BasicBlock forward --------------------------------

def init_basic_block_params(key, inplanes, planes, num_domains=3):
    ks = jax.random.split(key, 10)
    p = {}
    p["conv1_w"] = 0.1 * jax.random.normal(ks[0], (3, 3, inplanes, planes), jnp.float32)
    p["conv2_w"] = 0.1 * jax.random.normal(ks[1], (3, 3, planes, planes), jnp.float32)
    p["bn1_gamma"] = 1.0 + 0.1 * jax.random.normal(ks[2], (num_domains, planes), jnp.float32)
    p["bn1_beta"] = 0.1 * jax.random.normal(ks[3], (num_domains, planes), jnp.float32)
    p["bn1_mean_w"] = jax.random.normal(ks[4], (num_domains, 2), jnp.float32)
    p["bn1_var_w"] = jax.random.normal(ks[5], (num_domains, 2), jnp.float32)
    p["bn2_gamma"] = 1.0 + 0.1 * jax.random.normal(ks[6], (num_domains, planes), jnp.float32)
    p["bn2_beta"] = 0.1 * jax.random.normal(ks[7], (num_domains, planes), jnp.float32)
    p["bn2_mean_w"] = jax.random.normal(ks[8], (num_domains, 2), jnp.float32)
    p["bn2_var_w"] = jax.random.normal(ks[9], (num_domains, 2), jnp.float32)
    return p


def _domain_params(params, prefix, d):
    g = jnp.take(params[prefix + "_gamma"], d, axis=0).reshape(1, -1)
    b = jnp.take(params[prefix + "_beta"], d, axis=0).reshape(1, -1)
    mw = jax.nn.softmax(jnp.take(params[prefix + "_mean_w"], d, axis=0))
    vw = jax.nn.softmax(jnp.take(params[prefix + "_var_w"], d, axis=0))
    return g, b, mw, vw


def basic_block_forward(x_nchw, domain_label, params):
    """BasicBlock.forward(x, domain_label) — stride=1, downsample=None."""
    x = jnp.transpose(x_nchw, (0, 2, 3, 1))                      # NCHW -> NHWC
    N, H, W, Cin = x.shape
    Cout = params["conv1_w"].shape[-1]
    d = domain_label[0]
    g1, b1, mw1, vw1 = _domain_params(params, "bn1", d)
    g2, b2, mw2, vw2 = _domain_params(params, "bn2", d)

    # bf16 HBM storage for conv operands / residual / inter-stage / final activation.
    x_bf = x.astype(jnp.bfloat16)
    w1 = params["conv1_w"].reshape(9 * Cin, Cout).astype(jnp.bfloat16)
    w2 = params["conv2_w"].reshape(9 * Cout, Cout).astype(jnp.bfloat16)

    out1 = _fused_conv_dson(conv_dson_relu_kernel, x_bf, w1,      # conv1 + bn1 + relu
                            g1, b1, mw1, vw1, out_dtype=jnp.bfloat16)
    out2 = _fused_conv_dson(conv_dson_add_relu_kernel, out1, w2,  # conv2 + bn2 + add + relu
                            g2, b2, mw2, vw2, residual=x_bf, out_dtype=jnp.bfloat16)
    # bf16 output + bf16 layout transpose halve the final HBM traffic.
    return jnp.transpose(out2, (0, 3, 1, 2))                     # NHWC -> NCHW


# ------------------------------ pure-JAX reference -------------------------------

def _conv_ref(x, w):
    return jax.lax.conv_general_dilated(
        x, w, window_strides=(1, 1), padding="SAME",
        dimension_numbers=("NHWC", "HWIO", "NHWC"))


def _dson_ref(x, gamma, beta, mw, vw):
    mean_in = jnp.mean(x, axis=(1, 2), keepdims=True)
    var_in = jnp.mean(x * x, axis=(1, 2), keepdims=True) - mean_in ** 2
    mean_bn = jnp.mean(x, axis=(0, 1, 2), keepdims=True)
    var_bn = jnp.mean(x * x, axis=(0, 1, 2), keepdims=True) - mean_bn ** 2
    mean = mw[0] * mean_in + mw[1] * mean_bn
    var = vw[0] * var_in + vw[1] * var_bn
    return (x - mean) / jnp.sqrt(var + EPS) * gamma + beta


def reference_forward(x_nchw, domain_label, params):
    # f32 reference computed from the same bf16-quantized inputs/weights the kernels use,
    # so the remaining discrepancy is the kernels' bf16 conv-cache / inter-stage / output storage.
    x = jnp.transpose(x_nchw, (0, 2, 3, 1)).astype(jnp.bfloat16).astype(jnp.float32)
    w1 = params["conv1_w"].astype(jnp.bfloat16).astype(jnp.float32)
    w2 = params["conv2_w"].astype(jnp.bfloat16).astype(jnp.float32)
    d = domain_label[0]
    g1, b1, mw1, vw1 = _domain_params(params, "bn1", d)
    g2, b2, mw2, vw2 = _domain_params(params, "bn2", d)
    residual = x
    out = _conv_ref(x, w1)
    out = jnp.maximum(_dson_ref(out, g1, b1, mw1, vw1), 0.0)
    out = _conv_ref(out, w2)
    out = jnp.maximum(_dson_ref(out, g2, b2, mw2, vw2) + residual, 0.0)
    return jnp.transpose(out, (0, 3, 1, 2))


# ------------------------------------ main ----------------------------------------

if __name__ == "__main__":
    key = jax.random.PRNGKey(0)
    kx, kp = jax.random.split(key)

    # stride=1 / downsample=None => inplanes == planes.  C=128 keeps the channel
    # (lane) dimension dense and gives the im2col matmul a real K (= 9*128 = 1152).
    N, C, H, W = 2, 128, 16, 16
    num_domains = 3

    x = jax.random.normal(kx, (N, C, H, W), jnp.float32)
    domain_label = jnp.array([1, 1], dtype=jnp.int32)
    params = init_basic_block_params(kp, C, C, num_domains)

    fwd = jax.jit(basic_block_forward)
    out = jax.block_until_ready(fwd(x, domain_label, params)).astype(jnp.float32)
    assert out.shape == (N, C, H, W)

    ref = reference_forward(x, domain_label, params)
    # bf16 storage at three points (conv cache, inter-stage activation, final output)
    # bounds the discrepancy; use a combined abs/rel tolerance.
    abs_err = jnp.abs(out - ref)
    ok = bool(jnp.all(abs_err <= 5e-2 + 2.5e-2 * jnp.abs(ref)))
    assert ok, f"max abs error vs reference: {float(jnp.max(abs_err))}"

    print("KERNEL_OK")
</pallas_src>

<mosaic_0001>
module attributes {stable_mosaic.version = 11 : i64} {
  func.func @conv_dson_relu_kernel(%arg0: i32, %arg1: i32, %arg2: memref<1x16x16x128xbf16, #tpu.memory_space<vmem>>, %arg3: memref<1152x128xbf16, #tpu.memory_space<vmem>>, %arg4: memref<1x128xf32, #tpu.memory_space<vmem>>, %arg5: memref<1x128xf32, #tpu.memory_space<vmem>>, %arg6: memref<2xf32, #tpu.memory_space<smem>>, %arg7: memref<2xf32, #tpu.memory_space<smem>>, %arg8: memref<1x16x16x128xbf16, #tpu.memory_space<vmem>>, %arg9: memref<2x2x128xf32, #tpu.memory_space<vmem>>, %arg10: memref<2x256x128xbf16, #tpu.memory_space<vmem>>, %arg11: memref<18x16x384xbf16, #tpu.memory_space<vmem>>) attributes {dimension_semantics = [#tpu.dimension_semantics<arbitrary>, #tpu.dimension_semantics<arbitrary>], iteration_bounds = array<i64: 2, 2>, scalar_prefetch = 0 : i64, scratch_operands = 3 : i64, tpu.core_type = #tpu.core_type<tc>, window_params = [{transform_indices = @transform_0, window_bounds = array<i64: 1, 16, 16, 128>}, {pipeline_mode = #tpu.pipeline_mode<synchronous>, transform_indices = @transform_1, window_bounds = array<i64: 1152, 128>}, {pipeline_mode = #tpu.pipeline_mode<synchronous>, transform_indices = @transform_2, window_bounds = array<i64: 1, 128>}, {pipeline_mode = #tpu.pipeline_mode<synchronous>, transform_indices = @transform_3, window_bounds = array<i64: 1, 128>}, {transform_indices = @transform_4, window_bounds = array<i64: 2>}, {transform_indices = @transform_5, window_bounds = array<i64: 2>}, {transform_indices = @transform_6, window_bounds = array<i64: 1, 16, 16, 128>}]} {
    %c0_i32 = arith.constant 0 : i32
    %0 = arith.cmpi eq, %arg0, %c0_i32 : i32
    %c0_i32_0 = arith.constant 0 : i32
    %1 = arith.cmpi eq, %arg1, %c0_i32_0 : i32
    %2 = arith.andi %0, %1 : i1
    %3 = arith.extui %2 : i1 to i32
    %c0_i32_1 = arith.constant 0 : i32
    %4 = arith.cmpi ne, %3, %c0_i32_1 : i32
    scf.if %4 {
      %cst = arith.constant 0.000000e+00 : bf16
      %11 = vector.broadcast %cst : bf16 to vector<18x16x384xbf16>
      %c0 = arith.constant 0 : index
      %c0_5 = arith.constant 0 : index
      %c0_6 = arith.constant 0 : index
      %12 = vector.load %arg11[%c0, %c0_5, %c0_6] : memref<18x16x384xbf16, #tpu.memory_space<vmem>>, vector<18x16x384xbf16>
      tpu.vector_store %arg11[%c0, %c0_5, %c0_6], %11 {strides = array<i32>} : memref<18x16x384xbf16, #tpu.memory_space<vmem>>, vector<18x16x384xbf16>,
    } else {
    }
    %c0_i32_2 = arith.constant 0 : i32
    %5 = arith.cmpi eq, %arg0, %c0_i32_2 : i32
    %6 = arith.extui %5 : i1 to i32
    %c0_i32_3 = arith.constant 0 : i32
    %7 = arith.cmpi ne, %6, %c0_i32_3 : i32
    scf.if %7 {
      %c0 = arith.constant 0 : index
      %c0_5 = arith.constant 0 : index
      %c0_6 = arith.constant 0 : index
      %c0_7 = arith.constant 0 : index
      %11 = vector.load %arg2[%c0, %c0_5, %c0_6, %c0_7] : memref<1x16x16x128xbf16, #tpu.memory_space<vmem>>, vector<1x16x16x128xbf16>
      %12 = vector.shape_cast %11 : vector<1x16x16x128xbf16> to vector<16x16x128xbf16>
      %cst = arith.constant 0.000000e+00 : bf16
      %13 = vector.broadcast %cst : bf16 to vector<16x1x128xbf16>
      %14 = vector.extract_strided_slice %12 {offsets = [0, 0, 0], sizes = [16, 15, 128], strides = [1, 1, 1]} : vector<16x16x128xbf16> to vector<16x15x128xbf16>
      %15 = tpu.concatenate %13, %14 in 1 : vector<16x1x128xbf16>, vector<16x15x128xbf16> -> vector<16x16x128xbf16>
      %c1 = arith.constant 1 : index
      %c0_8 = arith.constant 0 : index
      %c0_9 = arith.constant 0 : index
      %16 = vector.load %arg11[%c1, %c0_8, %c0_9] : memref<18x16x384xbf16, #tpu.memory_space<vmem>>, vector<16x16x128xbf16>
      tpu.vector_store %arg11[%c1, %c0_8, %c0_9], %15 {strides = array<i32>} : memref<18x16x384xbf16, #tpu.memory_space<vmem>>, vector<16x16x128xbf16>,
      %c1_10 = arith.constant 1 : index
      %c0_11 = arith.constant 0 : index
      %c128 = arith.constant 128 : index
      %17 = vector.load %arg11[%c1_10, %c0_11, %c128] : memref<18x16x384xbf16, #tpu.memory_space<vmem>>, vector<16x16x128xbf16>
      tpu.vector_store %arg11[%c1_10, %c0_11, %c128], %12 {strides = array<i32>} : memref<18x16x384xbf16, #tpu.memory_space<vmem>>, vector<16x16x128xbf16>,
      %18 = vector.extract_strided_slice %12 {offsets = [0, 1, 0], sizes = [16, 15, 128], strides = [1, 1, 1]} : vector<16x16x128xbf16> to vector<16x15x128xbf16>
      %19 = tpu.concatenate %18, %13 in 1 : vector<16x15x128xbf16>, vector<16x1x128xbf16> -> vector<16x16x128xbf16>
      %c1_12 = arith.constant 1 : index
      %c0_13 = arith.constant 0 : index
      %c256 = arith.constant 256 : index
      %20 = vector.load %arg11[%c1_12, %c0_13, %c256] : memref<18x16x384xbf16, #tpu.memory_space<vmem>>, vector<16x16x128xbf16>
      tpu.vector_store %arg11[%c1_12, %c0_13, %c256], %19 {strides = array<i32>} : memref<18x16x384xbf16, #tpu.memory_space<vmem>>, vector<16x16x128xbf16>,
      %c0_14 = arith.constant 0 : index
      %c0_15 = arith.constant 0 : index
      %c0_16 = arith.constant 0 : index
      %21 = vector.load %arg11[%c0_14, %c0_15, %c0_16] : memref<18x16x384xbf16, #tpu.memory_space<vmem>>, vector<16x16x384xbf16>
      %c1_17 = arith.constant 1 : index
      %c0_18 = arith.constant 0 : index
      %c0_19 = arith.constant 0 : index
      %22 = vector.load %arg11[%c1_17, %c0_18, %c0_19] : memref<18x16x384xbf16, #tpu.memory_space<vmem>>, vector<16x16x384xbf16>
      %c2 = arith.constant 2 : index
      %c0_20 = arith.constant 0 : index
      %c0_21 = arith.constant 0 : index
      %23 = vector.load %arg11[%c2, %c0_20, %c0_21] : memref<18x16x384xbf16, #tpu.memory_space<vmem>>, vector<16x16x384xbf16>
      %24 = tpu.concatenate %21, %22, %23 in 2 : vector<16x16x384xbf16>, vector<16x16x384xbf16>, vector<16x16x384xbf16> -> vector<16x16x1152xbf16>
      %25 = vector.shape_cast %24 : vector<16x16x1152xbf16> to vector<256x1152xbf16>
      %c0_22 = arith.constant 0 : index
      %c0_23 = arith.constant 0 : index
      %26 = vector.load %arg3[%c0_22, %c0_23] : memref<1152x128xbf16, #tpu.memory_space<vmem>>, vector<1152x128xbf16>
      %cst_24 = arith.constant dense<0.000000e+00> : vector<256x128xf32>
      %27 = tpu.matmul %25, %26, %cst_24 {dimension_numbers = #tpu.dot_dimension_numbers<[1], [0], [0], [1], [0, 0, 1, 1], [], []>} : vector<256x1152xbf16>, vector<1152x128xbf16>, vector<256x128xf32> -> vector<256x128xf32>
      %cst_25 = arith.constant dense<0.000000e+00> : vector<128xf32>
      %28 = vector.multi_reduction <add>, %27, %cst_25 [0] : vector<256x128xf32> to vector<128xf32>
      %29 = vector.shape_cast %28 : vector<128xf32> to vector<1x128xf32>
      %cst_26 = arith.constant 3.906250e-03 : f32
      %30 = vector.broadcast %cst_26 : f32 to vector<1x128xf32>
      %31 = arith.mulf %29, %30 : vector<1x128xf32>
      %32 = arith.mulf %27, %27 : vector<256x128xf32>
      %cst_27 = arith.constant dense<0.000000e+00> : vector<128xf32>
      %33 = vector.multi_reduction <add>, %32, %cst_27 [0] : vector<256x128xf32> to vector<128xf32>
      %34 = vector.shape_cast %33 : vector<128xf32> to vector<1x128xf32>
      %cst_28 = arith.constant 3.906250e-03 : f32
      %35 = vector.broadcast %cst_28 : f32 to vector<1x128xf32>
      %36 = arith.mulf %34, %35 : vector<1x128xf32>
      %37 = tpu.concatenate %31, %36 in 0 : vector<1x128xf32>, vector<1x128xf32> -> vector<2x128xf32>
      %38 = arith.index_cast %arg1 : i32 to index
      %c0_29 = arith.constant 0 : index
      %c0_30 = arith.constant 0 : index
      %39 = vector.load %arg9[%38, %c0_29, %c0_30] : memref<2x2x128xf32, #tpu.memory_space<vmem>>, vector<1x2x128xf32>
      %40 = vector.shape_cast %39 : vector<1x2x128xf32> to vector<2x128xf32>
      %41 = vector.shape_cast %37 : vector<2x128xf32> to vector<1x2x128xf32>
      tpu.vector_store %arg9[%38, %c0_29, %c0_30], %41 {strides = array<i32>} : memref<2x2x128xf32, #tpu.memory_space<vmem>>, vector<1x2x128xf32>,
      %42 = arith.truncf %27 : vector<256x128xf32> to vector<256x128xbf16>
      %43 = arith.index_cast %arg1 : i32 to index
      %c0_31 = arith.constant 0 : index
      %c0_32 = arith.constant 0 : index
      %44 = vector.load %arg10[%43, %c0_31, %c0_32] : memref<2x256x128xbf16, #tpu.memory_space<vmem>>, vector<1x256x128xbf16>
      %45 = vector.shape_cast %44 : vector<1x256x128xbf16> to vector<256x128xbf16>
      %46 = vector.shape_cast %42 : vector<256x128xbf16> to vector<1x256x128xbf16>
      tpu.vector_store %arg10[%43, %c0_31, %c0_32], %46 {strides = array<i32>} : memref<2x256x128xbf16, #tpu.memory_space<vmem>>, vector<1x256x128xbf16>,
    } else {
    }
    %c1_i32 = arith.constant 1 : i32
    %8 = arith.cmpi eq, %arg0, %c1_i32 : i32
    %9 = arith.extui %8 : i1 to i32
    %c0_i32_4 = arith.constant 0 : i32
    %10 = arith.cmpi ne, %9, %c0_i32_4 : i32
    scf.if %10 {
      %11 = arith.index_cast %arg1 : i32 to index
      %c0 = arith.constant 0 : index
      %c0_5 = arith.constant 0 : index
      %12 = vector.load %arg10[%11, %c0, %c0_5] : memref<2x256x128xbf16, #tpu.memory_space<vmem>>, vector<1x256x128xbf16>
      %13 = vector.shape_cast %12 : vector<1x256x128xbf16> to vector<256x128xbf16>
      %14 = arith.extf %13 : vector<256x128xbf16> to vector<256x128xf32>
      %15 = arith.index_cast %arg1 : i32 to index
      %c0_6 = arith.constant 0 : index
      %c0_7 = arith.constant 0 : index
      %16 = vector.load %arg9[%15, %c0_6, %c0_7] : memref<2x2x128xf32, #tpu.memory_space<vmem>>, vector<1x2x128xf32>
      %17 = vector.shape_cast %16 : vector<1x2x128xf32> to vector<2x128xf32>
      %c0_8 = arith.constant 0 : index
      %c0_9 = arith.constant 0 : index
      %c0_10 = arith.constant 0 : index
      %18 = vector.load %arg9[%c0_8, %c0_9, %c0_10] : memref<2x2x128xf32, #tpu.memory_space<vmem>>, vector<2x2x128xf32>
      %cst = arith.constant dense<0.000000e+00> : vector<2x128xf32>
      %19 = vector.multi_reduction <add>, %18, %cst [0] : vector<2x2x128xf32> to vector<2x128xf32>
      %cst_11 = arith.constant 2.000000e+00 : f32
      %20 = vector.broadcast %cst_11 : f32 to vector<2x128xf32>
      %21 = arith.divf %19, %20 : vector<2x128xf32>
      %22 = vector.extract_strided_slice %17 {offsets = [0, 0], sizes = [1, 128], strides = [1, 1]} : vector<2x128xf32> to vector<1x128xf32>
      %23 = vector.extract_strided_slice %17 {offsets = [1, 0], sizes = [1, 128], strides = [1, 1]} : vector<2x128xf32> to vector<1x128xf32>
      %24 = vector.extract_strided_slice %21 {offsets = [0, 0], sizes = [1, 128], strides = [1, 1]} : vector<2x128xf32> to vector<1x128xf32>
      %25 = vector.extract_strided_slice %21 {offsets = [1, 0], sizes = [1, 128], strides = [1, 1]} : vector<2x128xf32> to vector<1x128xf32>
      %26 = arith.mulf %22, %22 : vector<1x128xf32>
      %27 = arith.subf %23, %26 : vector<1x128xf32>
      %cst_12 = arith.constant 0.000000e+00 : f32
      %28 = vector.broadcast %cst_12 : f32 to vector<1x128xf32>
      %29 = arith.maximumf %27, %28 : vector<1x128xf32>
      %30 = arith.mulf %24, %24 : vector<1x128xf32>
      %31 = arith.subf %25, %30 : vector<1x128xf32>
      %cst_13 = arith.constant 0.000000e+00 : f32
      %32 = vector.broadcast %cst_13 : f32 to vector<1x128xf32>
      %33 = arith.maximumf %31, %32 : vector<1x128xf32>
      %c0_14 = arith.constant 0 : index
      %34 = memref.load %arg6[%c0_14] : memref<2xf32, #tpu.memory_space<smem>>
      %35 = vector.broadcast %34 : f32 to vector<1x128xf32>
      %36 = arith.mulf %35, %22 : vector<1x128xf32>
      %c1 = arith.constant 1 : index
      %37 = memref.load %arg6[%c1] : memref<2xf32, #tpu.memory_space<smem>>
      %38 = vector.broadcast %37 : f32 to vector<1x128xf32>
      %39 = arith.mulf %38, %24 : vector<1x128xf32>
      %40 = arith.addf %36, %39 : vector<1x128xf32>
      %c0_15 = arith.constant 0 : index
      %41 = memref.load %arg7[%c0_15] : memref<2xf32, #tpu.memory_space<smem>>
      %42 = vector.broadcast %41 : f32 to vector<1x128xf32>
      %43 = arith.mulf %42, %29 : vector<1x128xf32>
      %c1_16 = arith.constant 1 : index
      %44 = memref.load %arg7[%c1_16] : memref<2xf32, #tpu.memory_space<smem>>
      %45 = vector.broadcast %44 : f32 to vector<1x128xf32>
      %46 = arith.mulf %45, %33 : vector<1x128xf32>
      %47 = arith.addf %43, %46 : vector<1x128xf32>
      %48 = vector.broadcast %40 : vector<1x128xf32> to vector<256x128xf32>
      %49 = arith.subf %14, %48 : vector<256x128xf32>
      %cst_17 = arith.constant 9.99999974E-6 : f32
      %50 = vector.broadcast %cst_17 : f32 to vector<1x128xf32>
      %51 = arith.addf %47, %50 : vector<1x128xf32>
      %52 = math.rsqrt %51 : vector<1x128xf32>
      %53 = vector.broadcast %52 : vector<1x128xf32> to vector<256x128xf32>
      %54 = arith.mulf %49, %53 : vector<256x128xf32>
      %c0_18 = arith.constant 0 : index
      %c0_19 = arith.constant 0 : index
      %55 = vector.load %arg4[%c0_18, %c0_19] : memref<1x128xf32, #tpu.memory_space<vmem>>, vector<1x128xf32>
      %56 = vector.broadcast %55 : vector<1x128xf32> to vector<256x128xf32>
      %57 = arith.mulf %54, %56 : vector<256x128xf32>
      %c0_20 = arith.constant 0 : index
      %c0_21 = arith.constant 0 : index
      %58 = vector.load %arg5[%c0_20, %c0_21] : memref<1x128xf32, #tpu.memory_space<vmem>>, vector<1x128xf32>
      %59 = vector.broadcast %58 : vector<1x128xf32> to vector<256x128xf32>
      %60 = arith.addf %57, %59 : vector<256x128xf32>
      %cst_22 = arith.constant 0.000000e+00 : f32
      %61 = vector.broadcast %cst_22 : f32 to vector<256x128xf32>
      %62 = arith.maximumf %60, %61 : vector<256x128xf32>
      %63 = vector.shape_cast %62 : vector<256x128xf32> to vector<1x16x16x128xf32>
      %64 = arith.truncf %63 : vector<1x16x16x128xf32> to vector<1x16x16x128xbf16>
      %c0_23 = arith.constant 0 : index
      %c0_24 = arith.constant 0 : index
      %c0_25 = arith.constant 0 : index
      %c0_26 = arith.constant 0 : index
      %65 = vector.load %arg8[%c0_23, %c0_24, %c0_25, %c0_26] : memref<1x16x16x128xbf16, #tpu.memory_space<vmem>>, vector<1x16x16x128xbf16>
      tpu.vector_store %arg8[%c0_23, %c0_24, %c0_25, %c0_26], %64 {strides = array<i32>} : memref<1x16x16x128xbf16, #tpu.memory_space<vmem>>, vector<1x16x16x128xbf16>,
    } else {
    }
    return
  }
  func.func @transform_0(%arg0: i32, %arg1: i32) -> (i32, i32, i32, i32) {
    %c1_i32 = arith.constant 1 : i32
    %0 = arith.subi %c1_i32, %arg0 : i32
    %1 = arith.muli %0, %arg1 : i32
    %c1_i32_0 = arith.constant 1 : i32
    %2 = arith.muli %arg0, %c1_i32_0 : i32
    %3 = arith.addi %1, %2 : i32
    %c0_i32 = arith.constant 0 : i32
    %c0_i32_1 = arith.constant 0 : i32
    %c0_i32_2 = arith.constant 0 : i32
    %c0_i32_3 = arith.constant 0 : i32
    return %3, %c0_i32, %c0_i32_1, %c0_i32_2 : i32, i32, i32, i32
  }
  func.func @transform_1(%arg0: i32, %arg1: i32) -> (i32, i32) {
    %c0_i32 = arith.constant 0 : i32
    %c0_i32_0 = arith.constant 0 : i32
    %c0_i32_1 = arith.constant 0 : i32
    return %c0_i32, %c0_i32_0 : i32, i32
  }
  func.func @transform_2(%arg0: i32, %arg1: i32) -> (i32, i32) {
    %c0_i32 = arith.constant 0 : i32
    %c0_i32_0 = arith.constant 0 : i32
    %c0_i32_1 = arith.constant 0 : i32
    return %c0_i32, %c0_i32_0 : i32, i32
  }
  func.func @transform_3(%arg0: i32, %arg1: i32) -> (i32, i32) {
    %c0_i32 = arith.constant 0 : i32
    %c0_i32_0 = arith.constant 0 : i32
    %c0_i32_1 = arith.constant 0 : i32
    return %c0_i32, %c0_i32_0 : i32, i32
  }
  func.func @transform_4(%arg0: i32, %arg1: i32) -> i32 {
    %c0_i32 = arith.constant 0 : i32
    %c0_i32_0 = arith.constant 0 : i32
    return %c0_i32 : i32
  }
  func.func @transform_5(%arg0: i32, %arg1: i32) -> i32 {
    %c0_i32 = arith.constant 0 : i32
    %c0_i32_0 = arith.constant 0 : i32
    return %c0_i32 : i32
  }
  func.func @transform_6(%arg0: i32, %arg1: i32) -> (i32, i32, i32, i32) {
    %0 = arith.muli %arg0, %arg1 : i32
    %c0_i32 = arith.constant 0 : i32
    %c0_i32_0 = arith.constant 0 : i32
    %c0_i32_1 = arith.constant 0 : i32
    %c0_i32_2 = arith.constant 0 : i32
    return %0, %c0_i32, %c0_i32_0, %c0_i32_1 : i32, i32, i32, i32
  }
}

module attributes {stable_mosaic.version = 11 : i64} {
  func.func @conv_dson_add_relu_kernel(%arg0: i32, %arg1: i32, %arg2: memref<1x16x16x128xbf16, #tpu.memory_space<vmem>>, %arg3: memref<1x16x16x128xbf16, #tpu.memory_space<vmem>>, %arg4: memref<1152x128xbf16, #tpu.memory_space<vmem>>, %arg5: memref<1x128xf32, #tpu.memory_space<vmem>>, %arg6: memref<1x128xf32, #tpu.memory_space<vmem>>, %arg7: memref<2xf32, #tpu.memory_space<smem>>, %arg8: memref<2xf32, #tpu.memory_space<smem>>, %arg9: memref<1x16x16x128xbf16, #tpu.memory_space<vmem>>, %arg10: memref<2x2x128xf32, #tpu.memory_space<vmem>>, %arg11: memref<2x256x128xbf16, #tpu.memory_space<vmem>>, %arg12: memref<18x16x384xbf16, #tpu.memory_space<vmem>>) attributes {dimension_semantics = [#tpu.dimension_semantics<arbitrary>, #tpu.dimension_semantics<arbitrary>], iteration_bounds = array<i64: 2, 2>, scalar_prefetch = 0 : i64, scratch_operands = 3 : i64, tpu.core_type = #tpu.core_type<tc>, window_params = [{transform_indices = @transform_0, window_bounds = array<i64: 1, 16, 16, 128>}, {transform_indices = @transform_1, window_bounds = array<i64: 1, 16, 16, 128>}, {pipeline_mode = #tpu.pipeline_mode<synchronous>, transform_indices = @transform_2, window_bounds = array<i64: 1152, 128>}, {pipeline_mode = #tpu.pipeline_mode<synchronous>, transform_indices = @transform_3, window_bounds = array<i64: 1, 128>}, {pipeline_mode = #tpu.pipeline_mode<synchronous>, transform_indices = @transform_4, window_bounds = array<i64: 1, 128>}, {transform_indices = @transform_5, window_bounds = array<i64: 2>}, {transform_indices = @transform_6, window_bounds = array<i64: 2>}, {transform_indices = @transform_7, window_bounds = array<i64: 1, 16, 16, 128>}]} {
    %c0_i32 = arith.constant 0 : i32
    %0 = arith.cmpi eq, %arg0, %c0_i32 : i32
    %c0_i32_0 = arith.constant 0 : i32
    %1 = arith.cmpi eq, %arg1, %c0_i32_0 : i32
    %2 = arith.andi %0, %1 : i1
    %3 = arith.extui %2 : i1 to i32
    %c0_i32_1 = arith.constant 0 : i32
    %4 = arith.cmpi ne, %3, %c0_i32_1 : i32
    scf.if %4 {
      %cst = arith.constant 0.000000e+00 : bf16
      %11 = vector.broadcast %cst : bf16 to vector<18x16x384xbf16>
      %c0 = arith.constant 0 : index
      %c0_5 = arith.constant 0 : index
      %c0_6 = arith.constant 0 : index
      %12 = vector.load %arg12[%c0, %c0_5, %c0_6] : memref<18x16x384xbf16, #tpu.memory_space<vmem>>, vector<18x16x384xbf16>
      tpu.vector_store %arg12[%c0, %c0_5, %c0_6], %11 {strides = array<i32>} : memref<18x16x384xbf16, #tpu.memory_space<vmem>>, vector<18x16x384xbf16>,
    } else {
    }
    %c0_i32_2 = arith.constant 0 : i32
    %5 = arith.cmpi eq, %arg0, %c0_i32_2 : i32
    %6 = arith.extui %5 : i1 to i32
    %c0_i32_3 = arith.constant 0 : i32
    %7 = arith.cmpi ne, %6, %c0_i32_3 : i32
    scf.if %7 {
      %c0 = arith.constant 0 : index
      %c0_5 = arith.constant 0 : index
      %c0_6 = arith.constant 0 : index
      %c0_7 = arith.constant 0 : index
      %11 = vector.load %arg2[%c0, %c0_5, %c0_6, %c0_7] : memref<1x16x16x128xbf16, #tpu.memory_space<vmem>>, vector<1x16x16x128xbf16>
      %12 = vector.shape_cast %11 : vector<1x16x16x128xbf16> to vector<16x16x128xbf16>
      %cst = arith.constant 0.000000e+00 : bf16
      %13 = vector.broadcast %cst : bf16 to vector<16x1x128xbf16>
      %14 = vector.extract_strided_slice %12 {offsets = [0, 0, 0], sizes = [16, 15, 128], strides = [1, 1, 1]} : vector<16x16x128xbf16> to vector<16x15x128xbf16>
      %15 = tpu.concatenate %13, %14 in 1 : vector<16x1x128xbf16>, vector<16x15x128xbf16> -> vector<16x16x128xbf16>
      %c1 = arith.constant 1 : index
      %c0_8 = arith.constant 0 : index
      %c0_9 = arith.constant 0 : index
      %16 = vector.load %arg12[%c1, %c0_8, %c0_9] : memref<18x16x384xbf16, #tpu.memory_space<vmem>>, vector<16x16x128xbf16>
      tpu.vector_store %arg12[%c1, %c0_8, %c0_9], %15 {strides = array<i32>} : memref<18x16x384xbf16, #tpu.memory_space<vmem>>, vector<16x16x128xbf16>,
      %c1_10 = arith.constant 1 : index
      %c0_11 = arith.constant 0 : index
      %c128 = arith.constant 128 : index
      %17 = vector.load %arg12[%c1_10, %c0_11, %c128] : memref<18x16x384xbf16, #tpu.memory_space<vmem>>, vector<16x16x128xbf16>
      tpu.vector_store %arg12[%c1_10, %c0_11, %c128], %12 {strides = array<i32>} : memref<18x16x384xbf16, #tpu.memory_space<vmem>>, vector<16x16x128xbf16>,
      %18 = vector.extract_strided_slice %12 {offsets = [0, 1, 0], sizes = [16, 15, 128], strides = [1, 1, 1]} : vector<16x16x128xbf16> to vector<16x15x128xbf16>
      %19 = tpu.concatenate %18, %13 in 1 : vector<16x15x128xbf16>, vector<16x1x128xbf16> -> vector<16x16x128xbf16>
      %c1_12 = arith.constant 1 : index
      %c0_13 = arith.constant 0 : index
      %c256 = arith.constant 256 : index
      %20 = vector.load %arg12[%c1_12, %c0_13, %c256] : memref<18x16x384xbf16, #tpu.memory_space<vmem>>, vector<16x16x128xbf16>
      tpu.vector_store %arg12[%c1_12, %c0_13, %c256], %19 {strides = array<i32>} : memref<18x16x384xbf16, #tpu.memory_space<vmem>>, vector<16x16x128xbf16>,
      %c0_14 = arith.constant 0 : index
      %c0_15 = arith.constant 0 : index
      %c0_16 = arith.constant 0 : index
      %21 = vector.load %arg12[%c0_14, %c0_15, %c0_16] : memref<18x16x384xbf16, #tpu.memory_space<vmem>>, vector<16x16x384xbf16>
      %c1_17 = arith.constant 1 : index
      %c0_18 = arith.constant 0 : index
      %c0_19 = arith.constant 0 : index
      %22 = vector.load %arg12[%c1_17, %c0_18, %c0_19] : memref<18x16x384xbf16, #tpu.memory_space<vmem>>, vector<16x16x384xbf16>
      %c2 = arith.constant 2 : index
      %c0_20 = arith.constant 0 : index
      %c0_21 = arith.constant 0 : index
      %23 = vector.load %arg12[%c2, %c0_20, %c0_21] : memref<18x16x384xbf16, #tpu.memory_space<vmem>>, vector<16x16x384xbf16>
      %24 = tpu.concatenate %21, %22, %23 in 2 : vector<16x16x384xbf16>, vector<16x16x384xbf16>, vector<16x16x384xbf16> -> vector<16x16x1152xbf16>
      %25 = vector.shape_cast %24 : vector<16x16x1152xbf16> to vector<256x1152xbf16>
      %c0_22 = arith.constant 0 : index
      %c0_23 = arith.constant 0 : index
      %26 = vector.load %arg4[%c0_22, %c0_23] : memref<1152x128xbf16, #tpu.memory_space<vmem>>, vector<1152x128xbf16>
      %cst_24 = arith.constant dense<0.000000e+00> : vector<256x128xf32>
      %27 = tpu.matmul %25, %26, %cst_24 {dimension_numbers = #tpu.dot_dimension_numbers<[1], [0], [0], [1], [0, 0, 1, 1], [], []>} : vector<256x1152xbf16>, vector<1152x128xbf16>, vector<256x128xf32> -> vector<256x128xf32>
      %cst_25 = arith.constant dense<0.000000e+00> : vector<128xf32>
      %28 = vector.multi_reduction <add>, %27, %cst_25 [0] : vector<256x128xf32> to vector<128xf32>
      %29 = vector.shape_cast %28 : vector<128xf32> to vector<1x128xf32>
      %cst_26 = arith.constant 3.906250e-03 : f32
      %30 = vector.broadcast %cst_26 : f32 to vector<1x128xf32>
      %31 = arith.mulf %29, %30 : vector<1x128xf32>
      %32 = arith.mulf %27, %27 : vector<256x128xf32>
      %cst_27 = arith.constant dense<0.000000e+00> : vector<128xf32>
      %33 = vector.multi_reduction <add>, %32, %cst_27 [0] : vector<256x128xf32> to vector<128xf32>
      %34 = vector.shape_cast %33 : vector<128xf32> to vector<1x128xf32>
      %cst_28 = arith.constant 3.906250e-03 : f32
      %35 = vector.broadcast %cst_28 : f32 to vector<1x128xf32>
      %36 = arith.mulf %34, %35 : vector<1x128xf32>
      %37 = tpu.concatenate %31, %36 in 0 : vector<1x128xf32>, vector<1x128xf32> -> vector<2x128xf32>
      %38 = arith.index_cast %arg1 : i32 to index
      %c0_29 = arith.constant 0 : index
      %c0_30 = arith.constant 0 : index
      %39 = vector.load %arg10[%38, %c0_29, %c0_30] : memref<2x2x128xf32, #tpu.memory_space<vmem>>, vector<1x2x128xf32>
      %40 = vector.shape_cast %39 : vector<1x2x128xf32> to vector<2x128xf32>
      %41 = vector.shape_cast %37 : vector<2x128xf32> to vector<1x2x128xf32>
      tpu.vector_store %arg10[%38, %c0_29, %c0_30], %41 {strides = array<i32>} : memref<2x2x128xf32, #tpu.memory_space<vmem>>, vector<1x2x128xf32>,
      %42 = arith.truncf %27 : vector<256x128xf32> to vector<256x128xbf16>
      %43 = arith.index_cast %arg1 : i32 to index
      %c0_31 = arith.constant 0 : index
      %c0_32 = arith.constant 0 : index
      %44 = vector.load %arg11[%43, %c0_31, %c0_32] : memref<2x256x128xbf16, #tpu.memory_space<vmem>>, vector<1x256x128xbf16>
      %45 = vector.shape_cast %44 : vector<1x256x128xbf16> to vector<256x128xbf16>
      %46 = vector.shape_cast %42 : vector<256x128xbf16> to vector<1x256x128xbf16>
      tpu.vector_store %arg11[%43, %c0_31, %c0_32], %46 {strides = array<i32>} : memref<2x256x128xbf16, #tpu.memory_space<vmem>>, vector<1x256x128xbf16>,
    } else {
    }
    %c1_i32 = arith.constant 1 : i32
    %8 = arith.cmpi eq, %arg0, %c1_i32 : i32
    %9 = arith.extui %8 : i1 to i32
    %c0_i32_4 = arith.constant 0 : i32
    %10 = arith.cmpi ne, %9, %c0_i32_4 : i32
    scf.if %10 {
      %11 = arith.index_cast %arg1 : i32 to index
      %c0 = arith.constant 0 : index
      %c0_5 = arith.constant 0 : index
      %12 = vector.load %arg11[%11, %c0, %c0_5] : memref<2x256x128xbf16, #tpu.memory_space<vmem>>, vector<1x256x128xbf16>
      %13 = vector.shape_cast %12 : vector<1x256x128xbf16> to vector<256x128xbf16>
      %14 = arith.extf %13 : vector<256x128xbf16> to vector<256x128xf32>
      %15 = arith.index_cast %arg1 : i32 to index
      %c0_6 = arith.constant 0 : index
      %c0_7 = arith.constant 0 : index
      %16 = vector.load %arg10[%15, %c0_6, %c0_7] : memref<2x2x128xf32, #tpu.memory_space<vmem>>, vector<1x2x128xf32>
      %17 = vector.shape_cast %16 : vector<1x2x128xf32> to vector<2x128xf32>
      %c0_8 = arith.constant 0 : index
      %c0_9 = arith.constant 0 : index
      %c0_10 = arith.constant 0 : index
      %18 = vector.load %arg10[%c0_8, %c0_9, %c0_10] : memref<2x2x128xf32, #tpu.memory_space<vmem>>, vector<2x2x128xf32>
      %cst = arith.constant dense<0.000000e+00> : vector<2x128xf32>
      %19 = vector.multi_reduction <add>, %18, %cst [0] : vector<2x2x128xf32> to vector<2x128xf32>
      %cst_11 = arith.constant 2.000000e+00 : f32
      %20 = vector.broadcast %cst_11 : f32 to vector<2x128xf32>
      %21 = arith.divf %19, %20 : vector<2x128xf32>
      %22 = vector.extract_strided_slice %17 {offsets = [0, 0], sizes = [1, 128], strides = [1, 1]} : vector<2x128xf32> to vector<1x128xf32>
      %23 = vector.extract_strided_slice %17 {offsets = [1, 0], sizes = [1, 128], strides = [1, 1]} : vector<2x128xf32> to vector<1x128xf32>
      %24 = vector.extract_strided_slice %21 {offsets = [0, 0], sizes = [1, 128], strides = [1, 1]} : vector<2x128xf32> to vector<1x128xf32>
      %25 = vector.extract_strided_slice %21 {offsets = [1, 0], sizes = [1, 128], strides = [1, 1]} : vector<2x128xf32> to vector<1x128xf32>
      %26 = arith.mulf %22, %22 : vector<1x128xf32>
      %27 = arith.subf %23, %26 : vector<1x128xf32>
      %cst_12 = arith.constant 0.000000e+00 : f32
      %28 = vector.broadcast %cst_12 : f32 to vector<1x128xf32>
      %29 = arith.maximumf %27, %28 : vector<1x128xf32>
      %30 = arith.mulf %24, %24 : vector<1x128xf32>
      %31 = arith.subf %25, %30 : vector<1x128xf32>
      %cst_13 = arith.constant 0.000000e+00 : f32
      %32 = vector.broadcast %cst_13 : f32 to vector<1x128xf32>
      %33 = arith.maximumf %31, %32 : vector<1x128xf32>
      %c0_14 = arith.constant 0 : index
      %34 = memref.load %arg7[%c0_14] : memref<2xf32, #tpu.memory_space<smem>>
      %35 = vector.broadcast %34 : f32 to vector<1x128xf32>
      %36 = arith.mulf %35, %22 : vector<1x128xf32>
      %c1 = arith.constant 1 : index
      %37 = memref.load %arg7[%c1] : memref<2xf32, #tpu.memory_space<smem>>
      %38 = vector.broadcast %37 : f32 to vector<1x128xf32>
      %39 = arith.mulf %38, %24 : vector<1x128xf32>
      %40 = arith.addf %36, %39 : vector<1x128xf32>
      %c0_15 = arith.constant 0 : index
      %41 = memref.load %arg8[%c0_15] : memref<2xf32, #tpu.memory_space<smem>>
      %42 = vector.broadcast %41 : f32 to vector<1x128xf32>
      %43 = arith.mulf %42, %29 : vector<1x128xf32>
      %c1_16 = arith.constant 1 : index
      %44 = memref.load %arg8[%c1_16] : memref<2xf32, #tpu.memory_space<smem>>
      %45 = vector.broadcast %44 : f32 to vector<1x128xf32>
      %46 = arith.mulf %45, %33 : vector<1x128xf32>
      %47 = arith.addf %43, %46 : vector<1x128xf32>
      %48 = vector.broadcast %40 : vector<1x128xf32> to vector<256x128xf32>
      %49 = arith.subf %14, %48 : vector<256x128xf32>
      %cst_17 = arith.constant 9.99999974E-6 : f32
      %50 = vector.broadcast %cst_17 : f32 to vector<1x128xf32>
      %51 = arith.addf %47, %50 : vector<1x128xf32>
      %52 = math.rsqrt %51 : vector<1x128xf32>
      %53 = vector.broadcast %52 : vector<1x128xf32> to vector<256x128xf32>
      %54 = arith.mulf %49, %53 : vector<256x128xf32>
      %c0_18 = arith.constant 0 : index
      %c0_19 = arith.constant 0 : index
      %55 = vector.load %arg5[%c0_18, %c0_19] : memref<1x128xf32, #tpu.memory_space<vmem>>, vector<1x128xf32>
      %56 = vector.broadcast %55 : vector<1x128xf32> to vector<256x128xf32>
      %57 = arith.mulf %54, %56 : vector<256x128xf32>
      %c0_20 = arith.constant 0 : index
      %c0_21 = arith.constant 0 : index
      %58 = vector.load %arg6[%c0_20, %c0_21] : memref<1x128xf32, #tpu.memory_space<vmem>>, vector<1x128xf32>
      %59 = vector.broadcast %58 : vector<1x128xf32> to vector<256x128xf32>
      %60 = arith.addf %57, %59 : vector<256x128xf32>
      %c0_22 = arith.constant 0 : index
      %c0_23 = arith.constant 0 : index
      %c0_24 = arith.constant 0 : index
      %c0_25 = arith.constant 0 : index
      %61 = vector.load %arg3[%c0_22, %c0_23, %c0_24, %c0_25] : memref<1x16x16x128xbf16, #tpu.memory_space<vmem>>, vector<1x16x16x128xbf16>
      %62 = vector.shape_cast %61 : vector<1x16x16x128xbf16> to vector<16x16x128xbf16>
      %63 = arith.extf %62 : vector<16x16x128xbf16> to vector<16x16x128xf32>
      %64 = vector.shape_cast %63 : vector<16x16x128xf32> to vector<256x128xf32>
      %65 = arith.addf %60, %64 : vector<256x128xf32>
      %cst_26 = arith.constant 0.000000e+00 : f32
      %66 = vector.broadcast %cst_26 : f32 to vector<256x128xf32>
      %67 = arith.maximumf %65, %66 : vector<256x128xf32>
      %68 = vector.shape_cast %67 : vector<256x128xf32> to vector<1x16x16x128xf32>
      %69 = arith.truncf %68 : vector<1x16x16x128xf32> to vector<1x16x16x128xbf16>
      %c0_27 = arith.constant 0 : index
      %c0_28 = arith.constant 0 : index
      %c0_29 = arith.constant 0 : index
      %c0_30 = arith.constant 0 : index
      %70 = vector.load %arg9[%c0_27, %c0_28, %c0_29, %c0_30] : memref<1x16x16x128xbf16, #tpu.memory_space<vmem>>, vector<1x16x16x128xbf16>
      tpu.vector_store %arg9[%c0_27, %c0_28, %c0_29, %c0_30], %69 {strides = array<i32>} : memref<1x16x16x128xbf16, #tpu.memory_space<vmem>>, vector<1x16x16x128xbf16>,
    } else {
    }
    return
  }
  func.func @transform_0(%arg0: i32, %arg1: i32) -> (i32, i32, i32, i32) {
    %c1_i32 = arith.constant 1 : i32
    %0 = arith.subi %c1_i32, %arg0 : i32
    %1 = arith.muli %0, %arg1 : i32
    %c1_i32_0 = arith.constant 1 : i32
    %2 = arith.muli %arg0, %c1_i32_0 : i32
    %3 = arith.addi %1, %2 : i32
    %c0_i32 = arith.constant 0 : i32
    %c0_i32_1 = arith.constant 0 : i32
    %c0_i32_2 = arith.constant 0 : i32
    %c0_i32_3 = arith.constant 0 : i32
    return %3, %c0_i32, %c0_i32_1, %c0_i32_2 : i32, i32, i32, i32
  }
  func.func @transform_1(%arg0: i32, %arg1: i32) -> (i32, i32, i32, i32) {
    %0 = arith.muli %arg0, %arg1 : i32
    %c0_i32 = arith.constant 0 : i32
    %c0_i32_0 = arith.constant 0 : i32
    %c0_i32_1 = arith.constant 0 : i32
    %c0_i32_2 = arith.constant 0 : i32
    return %0, %c0_i32, %c0_i32_0, %c0_i32_1 : i32, i32, i32, i32
  }
  func.func @transform_2(%arg0: i32, %arg1: i32) -> (i32, i32) {
    %c0_i32 = arith.constant 0 : i32
    %c0_i32_0 = arith.constant 0 : i32
    %c0_i32_1 = arith.constant 0 : i32
    return %c0_i32, %c0_i32_0 : i32, i32
  }
  func.func @transform_3(%arg0: i32, %arg1: i32) -> (i32, i32) {
    %c0_i32 = arith.constant 0 : i32
    %c0_i32_0 = arith.constant 0 : i32
    %c0_i32_1 = arith.constant 0 : i32
    return %c0_i32, %c0_i32_0 : i32, i32
  }
  func.func @transform_4(%arg0: i32, %arg1: i32) -> (i32, i32) {
    %c0_i32 = arith.constant 0 : i32
    %c0_i32_0 = arith.constant 0 : i32
    %c0_i32_1 = arith.constant 0 : i32
    return %c0_i32, %c0_i32_0 : i32, i32
  }
  func.func @transform_5(%arg0: i32, %arg1: i32) -> i32 {
    %c0_i32 = arith.constant 0 : i32
    %c0_i32_0 = arith.constant 0 : i32
    return %c0_i32 : i32
  }
  func.func @transform_6(%arg0: i32, %arg1: i32) -> i32 {
    %c0_i32 = arith.constant 0 : i32
    %c0_i32_0 = arith.constant 0 : i32
    return %c0_i32 : i32
  }
  func.func @transform_7(%arg0: i32, %arg1: i32) -> (i32, i32, i32, i32) {
    %0 = arith.muli %arg0, %arg1 : i32
    %c0_i32 = arith.constant 0 : i32
    %c0_i32_0 = arith.constant 0 : i32
    %c0_i32_1 = arith.constant 0 : i32
    %c0_i32_2 = arith.constant 0 : i32
    return %0, %c0_i32, %c0_i32_0, %c0_i32_1 : i32, i32, i32, i32
  }
}

</mosaic_0001>

<bundles_post_ra>
// kernel: basic_block_forward.3
= control target key start
LH: loop header
LB: loop body
LE: loop exit
PB: predicated region body
PF: predicated region fallthrough
CT: control target
= control target key end

     0   :  { %s7975_s0 = inlined_call_operand.vmem [shape: bf16[2,16,16,128], index: 0, kind: input, shape index: {}]   ;;  %s7976_s1 = inlined_call_operand.vmem [shape: bf16[2,16,16,128], index: 1, kind: input, shape index: {}]   ;;  %s7977_s2 = inlined_call_operand.vmem [shape: bf16[1152,128], index: 2, kind: input, shape index: {}]   ;;  %s7978_s3 = inlined_call_operand.vmem [shape: f32[1,128], index: 3, kind: input, shape index: {}]   ;;  %s7979_s4 = inlined_call_operand.vmem [shape: f32[1,128], index: 4, kind: input, shape index: {}]   ;;  %s7980_s5 = inlined_call_operand.vmem [shape: f32[2], index: 5, kind: input, shape index: {}]   ;;  %s7981_s6 = inlined_call_operand.vmem [shape: f32[2], index: 6, kind: input, shape index: {}]   ;;  %s7982_s7 = inlined_call_operand.hbm [shape: bf16[2,16,16,128], index: 7, kind: output, shape index: {}]  }
   0x1   :  { %7992 = sst [smem:[#allocation28_spill]] %s7980_s5 }
   0x2   :  { %12 = vsyncpa [#allocation7], 0 }
   0x3   :  { %13 = vsyncpa [#allocation9], 0 }
   0x4   :  { %14 = vsyncpa [#allocation6], 0 }
   0x5   :  { %16 = vsyncpa [#allocation6 + $0x1], 0  ;;  %s6229_s24 = smov 0   ;;  %s6231_s25 = smov 0  }
   0x6   :  { %s6233_s26 = smov 0   ;;  %s6235_s27 = smov 0  }
   0x7   :  { %s6237_s28 = smov 0   ;;  %s6239_s29 = smov 0  }
   0x8   :  { %s6241_s30 = smov 0   ;;  %s6243_s8 = smov 0  }
   0x9 LB: > { %s4392_s9 = sadd.s32 4294967295, %s6181_s8   ;;  %s4393_s10 = sadd.s32 4294967294, %s6181_s8   ;;  %s6181_s8 = sphi %s6243_s8, %s22_s8   ;;  %s6177_s30 = sphi %s6241_s30, %s8071_s30   ;;  %s6173_s29 = sphi %s6239_s29, %s8070_s29   ;;  %s6169_s28 = sphi %s6237_s28, %s8069_s28   ;;  %s6165_s27 = sphi %s6235_s27, %s8068_s27   ;;  %s6161_s26 = sphi %s6233_s26, %s8067_s26   ;;  %s6157_s25 = sphi %s6231_s25, %s8066_s25   ;;  %s6153_s24 = sphi %s6229_s24, %s8065_s24  }
   0xa   : > { %s31_s11 = sadd.s32 1, %s6173_s29  ;;  %s34_s12 = sadd.s32 1, %s6177_s30 }
   0xb   : > { %p32_p0 = scmp.ge.s32.totalorder %s31_s11, 2  ;;  %s203_s13 = smul.u32 %s6173_s29, %s6177_s30 }
   0xc   : > { %s208_s14 = sadd.s32 1, %s6161_s26  ;;  %p218_p1 = scmp.ne.s32.totalorder %s6161_s26, %s6157_s25 }
   0xd   : > { %s8073_s11 = smov (%p32_p0, %s31_s11), 0  ;;  %s8075_s12 = smov (!%p32_p0, %s34_s12), %s6177_s30 }
   0xe   : > { %7993 = sst [smem:[#allocation14_spill]] %s8073_s11  ;;  %p219_p2 = scmp.eq.s32.totalorder %s4392_s9, 3 }
   0xf   : > { %p224_p3 = scmp.ne.s32.totalorder %s6157_s25, %s6153_s24  ;;  %p36_p4 = scmp.ge.s32.totalorder %s8075_s12, 2 }
  0x10   : > { %p225_p5 = scmp.eq.s32.totalorder %s4393_s10, 3  ;;  %p6283_p6 = por %p219_p2, %p218_p1 }
  0x11   : > { %p4394_p7 = scmp.ge.s32.totalorder %s6181_s8, 1  ;;  %s8077_s12 = smov (%p36_p4, %s8075_s12), 0 }
  0x12   : > { %s7994_s15 = scalar_select %p6283_p6, 1, 0 }
  0x13   : > { %7995 = sst [smem:[#allocation15_spill]] %s8077_s12  ;;  %p6290_p8 = por %p225_p5, %p224_p3 }
  0x14   : > { %p232_p9 = scmp.lt.s32.totalorder %s6181_s8, 5  ;;  %s204_s17 = smul.u32 %s8077_s12, %s8073_s11 }
  0x15   : > { %s7996_s16 = scalar_select %p6290_p8, 1, 0 }
  0x16   : > { %p6297_p10 = pnand %p4394_p7, %p232_p9  ;;  %p6301_p11 = scmp.eq.s32.totalorder %s4392_s9, 0 }
  0x17   : > { %s205_s20 = ssub.s32 %s203_s13, %s204_s17  ;;  %s7999_s5 = sld [smem:[#allocation28_spill]] }
  0x18   : > { %s7997_s18 = scalar_select %p6297_p10, 1, 0 }
  0x19   : > { %s7998_s19 = scalar_select %p6301_p11, 1, 0 }
  0x1a   : > { %p206_p12 = scmp.eq.s32.totalorder %s205_s20, 0  ;;  %p5746_p13 = pneg %p6297_p10 }
  0x1b   : > { %s265_s13 = sshll.u32 %s7981_s6, 4  ;;  %s266_s13 = int_to_ptr.vmem [resolvable:$true] %s265_s13 }
  0x1c   : > { %s6311_s10 = scalar_select %p206_p12, %s6161_s26, %s208_s14  }
  0x1d   : > { %s254_s23 = sshll.u32 %s7999_s5, 4  ;;  %p6315_p0 = pnand %p6301_p11, %p5746_p13  ;;  %s255_s23 = int_to_ptr.vmem [resolvable:$true] %s254_s23 }
  0x1e   : > { %s6051_s17 = scalar_lea.vmem %s255_s23, 16  ;;  %p6059_p5 = scmp.lt.s32.totalorder %s255_s23, %s255_s23 }
  0x1f   : > { %p6052_p1 = scmp.ne.s32.totalorder %s255_s23, %s6051_s17  ;;  %p6053_p2 = pneg %p6315_p0 }
  0x20   : > { %p6060_p7 = scmp.lt.s32.totalorder %s6051_s17, %s6051_s17 }
  0x21   : > { %p6054_p3 = pnand %p6053_p2, %p6052_p1 }
  0x22   : > { %p6061_p9 = por %p6060_p7, %p6059_p5 }
  0x23   : > { %p6055_p4 = pneg %p6054_p3 }
  0x25   : > { %p6062_p12 = pnand %p6061_p9, %p6055_p4 }
  0x27   : > { %6065 = shalt.err (!%p6062_p12)
}
  0x28   : > { %s6183_s14 = smov [#allocation5]   ;;  %s6066_s20 = scalar_lea.vmem %s266_s13, 16 }
  0x29   : > { %5749 = dma.vmem_to_smem (!%p6315_p0), %s255_s23, 16, %s6183_s14, [#allocation7]  }
  0x2a   : > { %p6067_p13 = scmp.ne.s32.totalorder %s266_s13, %s6066_s20  ;;  %p6074_p11 = scmp.lt.s32.totalorder %s266_s13, %s266_s13 }
  0x2b   : > { %p6075_p10 = scmp.lt.s32.totalorder %s6066_s20, %s6066_s20 }
  0x2c   : > { %p6069_p8 = pnand %p6067_p13, %p6053_p2 }
  0x2d   : > { %p6076_p1 = por %p6075_p10, %p6074_p11 }
  0x2e   : > { %p6070_p6 = pneg %p6069_p8 }
  0x30   : > { %p6077_p3 = pnand %p6076_p1, %p6070_p6 }
  0x32   : > { %6080 = shalt.err (!%p6077_p3)
}
  0x33   : > { %s6184_s11 = smov [#allocation8]   ;;  %p8001_p4 = scmp.ne.s32.totalorder %s7997_s18, 0 }
  0x34   : > { %5752 = dma.vmem_to_smem (!%p6315_p0), %s266_s13, 16, %s6184_s11, [#allocation9]  }
  0x35   : > { %302 = sbr.rel (%p8001_p4) target bundleno = 785 (0x311), region = 48  ;;  %p8002_p5 = scmp.ne.s32.totalorder (!%p8001_p4), %s7998_s19, 0 }
  0x3a   : > { %6140 = dma.done.wait (%p8002_p5), [#allocation7], 16  }
  0x3b   : > { %6142 = vsyncadd (%p8002_p5), [#allocation7], 4294967280 }
  0x3c   : > { %6144 = dma.done.wait (%p8002_p5), [#allocation9], 16  }
  0x3d   : > { %6146 = vsyncadd (%p8002_p5), [#allocation9], 4294967280 }
  0x3e   : > { %312 = sfence }
  0x3f   : > { %s7989_s12 = sand.u32 1, %s6157_s25   ;;  %s348_s18 = ssub.s32 1, %s6169_s28 }
  0x40   : > { %s4401_s21 = sshll.u32 %s7989_s12, 7  ;;  %s349_s22 = smul.u32 %s6165_s27, %s348_s18 }
  0x41   : > { %s6345_s23 = smul.u32 %s6165_s27, %s6169_s28  ;;  %p368_p6 = scmp.eq.s32.totalorder %s6169_s28, 0 }
  0x42   : > { %s350_s19 = sadd.s32 %s6169_s28, %s349_s22  ;;  %p369_p11 = scmp.eq.s32.totalorder %s6165_s27, 0 }
  0x43   : > { %p351_p8 = scmp.lt.s32.totalorder %s350_s19, 1  ;;  %p360_p10 = scmp.lt.s32.totalorder %s6345_s23, 1 }
  0x44   : > { %p370_p0 = pnand %p369_p11, %p368_p6  ;;  %s6362_s22 = scalar_lea.vmem [#allocation10], %s4401_s21 }
  0x45   : > { %s8079_s19 = smov (!%p351_p8, %s350_s19), 1 }
  0x46   : > { %s361_s9 = scalar_select %p360_p10, %s6345_s23, 1 }
  0x47   : > { %s4783_s13 = sshll.u32 %s8079_s19, 7  ;;  %373 = sbr.rel (%p370_p0) target bundleno = 113 (0x71), region = 60 }
  0x48   : > { %s6355_s20 = scalar_lea.vmem %s7975_s0, %s4783_s13  ;;  %s4784_s11 = sshll.u32 %s361_s9, 7 }
  0x49   : > { %s6360_s5 = scalar_lea.vmem %s7976_s1, %s4784_s11 }
  0x4c   : > { %v6185_v0 = vmov 0  }
  0x4d   : > { %374 = vst [vmem:[#allocation4] sm:$0xff] %v6185_v0  ;;  %375 = vst [vmem:[#allocation4 + $0x8] sm:$0xf] %v6185_v0 }
  0x4e   : > { %376 = vst [vmem:[#allocation4 + $0xc] sm:$0xff] %v6185_v0  ;;  %377 = vst [vmem:[#allocation4 + $0x14] sm:$0xf] %v6185_v0 }
  0x4f   : > { %378 = vst [vmem:[#allocation4 + $0x18] sm:$0xff] %v6185_v0  ;;  %379 = vst [vmem:[#allocation4 + $0x20] sm:$0xf] %v6185_v0 }
  0x50   : > { %380 = vst [vmem:[#allocation4 + $0x24] sm:$0xff] %v6185_v0  ;;  %381 = vst [vmem:[#allocation4 + $0x2c] sm:$0xf] %v6185_v0 }
  0x51   : > { %382 = vst [vmem:[#allocation4 + $0x30] sm:$0xff] %v6185_v0  ;;  %383 = vst [vmem:[#allocation4 + $0x38] sm:$0xf] %v6185_v0 }
  0x52   : > { %384 = vst [vmem:[#allocation4 + $0x3c] sm:$0xff] %v6185_v0  ;;  %385 = vst [vmem:[#allocation4 + $0x44] sm:$0xf] %v6185_v0 }
  0x53   : > { %386 = vst [vmem:[#allocation4 + $0x48] sm:$0xff] %v6185_v0  ;;  %387 = vst [vmem:[#allocation4 + $0x50] sm:$0xf] %v6185_v0 }
  0x54   : > { %388 = vst [vmem:[#allocation4 + $0x54] sm:$0xff] %v6185_v0  ;;  %389 = vst [vmem:[#allocation4 + $0x5c] sm:$0xf] %v6185_v0 }
  0x55   : > { %390 = vst [vmem:[#allocation4 + $0x60] sm:$0xff] %v6185_v0  ;;  %391 = vst [vmem:[#allocation4 + $0x68] sm:$0xf] %v6185_v0 }
  0x56   : > { %392 = vst [vmem:[#allocation4 + $0x6c] sm:$0xff] %v6185_v0  ;;  %393 = vst [vmem:[#allocation4 + $0x74] sm:$0xf] %v6185_v0 }
  0x57   : > { %394 = vst [vmem:[#allocation4 + $0x78] sm:$0xff] %v6185_v0  ;;  %395 = vst [vmem:[#allocation4 + $0x80] sm:$0xf] %v6185_v0 }
  0x58   : > { %396 = vst [vmem:[#allocation4 + $0x84] sm:$0xff] %v6185_v0  ;;  %397 = vst [vmem:[#allocation4 + $0x8c] sm:$0xf] %v6185_v0 }
  0x59   : > { %398 = vst [vmem:[#allocation4 + $0x90] sm:$0xff] %v6185_v0  ;;  %399 = vst [vmem:[#allocation4 + $0x98] sm:$0xf] %v6185_v0 }
  0x5a   : > { %400 = vst [vmem:[#allocation4 + $0x9c] sm:$0xff] %v6185_v0  ;;  %401 = vst [vmem:[#allocation4 + $0xa4] sm:$0xf] %v6185_v0 }
  0x5b   : > { %402 = vst [vmem:[#allocation4 + $0xa8] sm:$0xff] %v6185_v0  ;;  %403 = vst [vmem:[#allocation4 + $0xb0] sm:$0xf] %v6185_v0 }
  0x5c   : > { %404 = vst [vmem:[#allocation4 + $0xb4] sm:$0xff] %v6185_v0  ;;  %405 = vst [vmem:[#allocation4 + $0xbc] sm:$0xf] %v6185_v0 }
  0x5d   : > { %406 = vst [vmem:[#allocation4 + $0xc0] sm:$0xff] %v6185_v0  ;;  %407 = vst [vmem:[#allocation4 + $0xc8] sm:$0xf] %v6185_v0 }
  0x5e   : > { %408 = vst [vmem:[#allocation4 + $0xcc] sm:$0xff] %v6185_v0  ;;  %409 = vst [vmem:[#allocation4 + $0xd4] sm:$0xf] %v6185_v0 }
  0x5f   : > { %410 = vst [vmem:[#allocation4 + $0xd8] sm:$0xff] %v6185_v0  ;;  %411 = vst [vmem:[#allocation4 + $0xe0] sm:$0xf] %v6185_v0 }
  0x60   : > { %412 = vst [vmem:[#allocation4 + $0xe4] sm:$0xff] %v6185_v0  ;;  %413 = vst [vmem:[#allocation4 + $0xec] sm:$0xf] %v6185_v0 }
  0x61   : > { %414 = vst [vmem:[#allocation4 + $0xf0] sm:$0xff] %v6185_v0  ;;  %415 = vst [vmem:[#allocation4 + $0xf8] sm:$0xf] %v6185_v0 }
  0x62   : > { %416 = vst [vmem:[#allocation4 + $0xfc] sm:$0xff] %v6185_v0  ;;  %417 = vst [vmem:[#allocation4 + $0x104] sm:$0xf] %v6185_v0 }
  0x63   : > { %418 = vst [vmem:[#allocation4 + $0x108] sm:$0xff] %v6185_v0  ;;  %419 = vst [vmem:[#allocation4 + $0x110] sm:$0xf] %v6185_v0 }
  0x64   : > { %420 = vst [vmem:[#allocation4 + $0x114] sm:$0xff] %v6185_v0  ;;  %421 = vst [vmem:[#allocation4 + $0x11c] sm:$0xf] %v6185_v0 }
  0x65   : > { %422 = vst [vmem:[#allocation4 + $0x120] sm:$0xff] %v6185_v0  ;;  %423 = vst [vmem:[#allocation4 + $0x128] sm:$0xf] %v6185_v0 }
  0x66   : > { %424 = vst [vmem:[#allocation4 + $0x12c] sm:$0xff] %v6185_v0  ;;  %425 = vst [vmem:[#allocation4 + $0x134] sm:$0xf] %v6185_v0 }
  0x67   : > { %426 = vst [vmem:[#allocation4 + $0x138] sm:$0xff] %v6185_v0  ;;  %427 = vst [vmem:[#allocation4 + $0x140] sm:$0xf] %v6185_v0 }
  0x68   : > { %428 = vst [vmem:[#allocation4 + $0x144] sm:$0xff] %v6185_v0  ;;  %429 = vst [vmem:[#allocation4 + $0x14c] sm:$0xf] %v6185_v0 }
  0x69   : > { %430 = vst [vmem:[#allocation4 + $0x150] sm:$0xff] %v6185_v0  ;;  %431 = vst [vmem:[#allocation4 + $0x158] sm:$0xf] %v6185_v0 }
  0x6a   : > { %432 = vst [vmem:[#allocation4 + $0x15c] sm:$0xff] %v6185_v0  ;;  %433 = vst [vmem:[#allocation4 + $0x164] sm:$0xf] %v6185_v0 }
  0x6b   : > { %434 = vst [vmem:[#allocation4 + $0x168] sm:$0xff] %v6185_v0  ;;  %435 = vst [vmem:[#allocation4 + $0x170] sm:$0xf] %v6185_v0 }
  0x6c   : > { %436 = vst [vmem:[#allocation4 + $0x174] sm:$0xff] %v6185_v0  ;;  %437 = vst [vmem:[#allocation4 + $0x17c] sm:$0xf] %v6185_v0 }
  0x6d   : > { %438 = vst [vmem:[#allocation4 + $0x180] sm:$0xff] %v6185_v0  ;;  %439 = vst [vmem:[#allocation4 + $0x188] sm:$0xf] %v6185_v0 }
  0x6e   : > { %440 = vst [vmem:[#allocation4 + $0x18c] sm:$0xff] %v6185_v0  ;;  %441 = vst [vmem:[#allocation4 + $0x194] sm:$0xf] %v6185_v0 }
  0x6f   : > { %442 = vst [vmem:[#allocation4 + $0x198] sm:$0xff] %v6185_v0  ;;  %443 = vst [vmem:[#allocation4 + $0x1a0] sm:$0xf] %v6185_v0 }
  0x70   : > { %444 = vst [vmem:[#allocation4 + $0x1a4] sm:$0xff] %v6185_v0  ;;  %445 = vst [vmem:[#allocation4 + $0x1ac] sm:$0xf] %v6185_v0 }
  0x71 PF: > { %p4406_p2 = scmp.ne.s32.totalorder %s6169_s28, 0 }
  0x73   : > { %448 = sbr.rel (%p4406_p2) target bundleno = 659 (0x293), region = 64 }
  0x78   : > { %v5831_v1 = vld [vmem:[%s7977_s2 + $0x78] sm:$0xff]   ;;  %v5833_v3 = vld [vmem:[%s7977_s2 + $0x70] sm:$0xff]   ;;  %v5835_v5 = vld [vmem:[%s7977_s2 + $0x68] sm:$0xff]   ;;  %vm689_vm0 = vcmask 1040384   ;;  %vm690_vm1 = vsmask.f32 256 }
  0x79   : > { %v5832_v2 = vld [vmem:[%s7977_s2 + $0x38] sm:$0xff]   ;;  %5200 = vmatprep.subr.bf16.mxu0 %v5831_v1  ;;  %5720 = vmatprep.subr.bf16.mxu1 %v5831_v1  ;;  %v5834_v4 = vld [vmem:[%s7977_s2 + $0x30] sm:$0xff]   ;;  %v5836_v6 = vld [vmem:[%s7977_s2 + $0x28] sm:$0xff]   ;;  %vm934_vm3 = vsmask.f32 7424  ;;  %vm933_vm4 = vcmask 1047552  }
  0x7a   : > { %5201 = vmatpush3.bf16.msra.mxu0 %v5832_v2  ;;  %5728 = vmatpush3.bf16.msra.mxu1 %v5832_v2  ;;  %v5837_v7 = vld [vmem:[%s7977_s2 + $0x60] sm:$0xff]   ;;  %v5839_v9 = vld [vmem:[%s7977_s2 + $0x58] sm:$0xff]   ;;  %v5841_v11 = vld [vmem:[%s7977_s2 + $0x50] sm:$0xff]   ;;  %s4817_s11 = sshll.u32 %s6165_s27, 7  ;;  %s4703_s12 = sshll.u32 %s6165_s27, 1 }
  0x7b   : > { %5202 = vmatprep.subr.bf16.mxu0 %v5833_v3  ;;  %5721 = vmatprep.subr.bf16.mxu1 %v5833_v3  ;;  %v5838_v8 = vld [vmem:[%s7977_s2 + $0x20] sm:$0xff]   ;;  %v5840_v10 = vld [vmem:[%s7977_s2 + $0x18] sm:$0xff]   ;;  %v5849_v12 = vld [vmem:[#allocation4 + $0x4] ss:$12 sps:$4 sm:$0xff]   ;;  %s7373_s18 = scalar_lea.vmem [#allocation3], %s4817_s11  ;;  %s3549_s21 = scalar_lea.vmem [#allocation2], %s4703_s12 }
  0x7c   : > { %v471_v13 = vld [vmem:[%s6355_s20 + $0x58] sm:$0xf]  ;;  %v472_v14 = vld [vmem:[%s6355_s20 + $0x5c] sm:$0xf]  ;;  %v5842_v15 = vld [vmem:[%s7977_s2 + $0x10] sm:$0xff]   ;;  %2665 = vmatprep.mubr.bf16.mxu0 %v5849_v12 }
  0x7d   : > { %v6475_v16 = vcombine.low %v471_v13, %v472_v14  ;;  %875 = vst [vmem:[#allocation4 + $0x124] sm:$0xf] %v471_v13  ;;  %876 = vst [vmem:[#allocation4 + $0x130] sm:$0xf] %v472_v14  ;;  %v5843_v17 = vld [vmem:[%s7977_s2 + $0x48] sm:$0xff]   ;;  %v5845_v23 = vld [vmem:[%s7977_s2 + $0x40] sm:$0xff]  }
  0x7e   : > { %5203 = vmatpush3.bf16.msra.mxu0 %v5834_v4  ;;  %5729 = vmatpush3.bf16.msra.mxu1 %v5834_v4  ;;  %v5844_v20 = vld [vmem:[%s7977_s2 + $0x8] sm:$0xff]   ;;  %vm6488_vm2 = vmand %vm689_vm0, %vm690_vm1  ;;  %v449_v25 = vld [vmem:[%s6355_s20] sm:$0xf] }
  0x7f   : > { %5204 = vmatprep.subr.bf16.mxu0 %v5835_v5  ;;  %5722 = vmatprep.subr.bf16.mxu1 %v5835_v5  ;;  %v639_v18 = vshrl.u32 %v6475_v16, 16  ;;  %v642_v19 = vshll.u32 %v6475_v16, 16  ;;  %v450_v26 = vld [vmem:[%s6355_s20 + $0x4] sm:$0xf]  ;;  %853 = vst [vmem:[#allocation4 + $0x1c] sm:$0xf] %v449_v25  ;;  %vm6591_vm5 = vmand %vm933_vm4, %vm934_vm3 }
  0x80   : > { %v6499_v27 = vcombine.low %v449_v25, %v450_v26  ;;  %854 = vst [vmem:[#allocation4 + $0x28] sm:$0xf] %v450_v26  ;;  %v473_v28 = vld [vmem:[%s6355_s20 + $0x60] sm:$0xf]  ;;  %v474_v29 = vld [vmem:[%s6355_s20 + $0x64] sm:$0xf] }
  0x81   : > { %v641_v21 = vrot.slane %v639_v18, 7  ;;  %v5846_v30 = vld [vmem:[%s7977_s2] sm:$0xff]   ;;  %v6508_v32 = vcombine.low %v473_v28, %v474_v29  ;;  %877 = vst [vmem:[#allocation4 + $0x13c] sm:$0xf] %v473_v28  ;;  %878 = vst [vmem:[#allocation4 + $0x148] sm:$0xf] %v474_v29 }
  0x82   : > { %5205 = vmatpush3.bf16.msra.mxu0 %v5836_v6  ;;  %5730 = vmatpush3.bf16.msra.mxu1 %v5836_v6  ;;  %v5854_v35 = vld [vmem:[%s7977_s2 + $0xf8] sm:$0xff]   ;;  %v562_v37 = vshrl.u32 %v6499_v27, 16  ;;  %v565_v38 = vshll.u32 %v6499_v27, 16  ;;  %v5847_v39 = vld [vmem:[#allocation4] ss:$12 sps:$4 sm:$0xff]   ;;  %v5895_v29 = vld [vmem:[%s7977_s2 + $0x168] sm:$0xff]  }
  0x83   : > { %5206 = vmatprep.subr.bf16.mxu0 %v5837_v7  ;;  %5723 = vmatprep.subr.bf16.mxu1 %v5837_v7  ;;  %v644_v24 = vor.u32 %v642_v19, %v641_v21  ;;  %v5855_v36 = vld [vmem:[%s7977_s2 + $0x178] sm:$0xff]   ;;  %v646_v40 = vshrl.u32 %v6508_v32, 16  ;;  %v649_v41 = vshll.u32 %v6508_v32, 16  ;;  %v5871_v46 = vld [vmem:[%s7977_s2 + $0x170] sm:$0xff]   ;;  %v451_v48 = vld [vmem:[%s6355_s20 + $0x8] sm:$0xf] }
  0x84   : > { %v564_v42 = vrot.slane %v562_v37, 7  ;;  %v5857_v43 = vld [vmem:[%s7977_s2 + $0x138] sm:$0xff]   ;;  %v452_v49 = vld [vmem:[%s6355_s20 + $0xc] sm:$0xf]  ;;  %v475_v50 = vld [vmem:[%s6355_s20 + $0x68] sm:$0xf] }
  0x85   : > { %v703_v31 = vsel %vm6488_vm2, 0, %v644_v24  ;;  %v648_v44 = vrot.slane %v646_v40, 7  ;;  %v6537_v52 = vcombine.low %v451_v48, %v452_v49  ;;  %855 = vst [vmem:[#allocation4 + $0x34] sm:$0xf] %v451_v48  ;;  %856 = vst [vmem:[#allocation4 + $0x40] sm:$0xf] %v452_v49 }
  0x86   : > { %5207 = vmatpush3.bf16.msra.mxu0 %v5838_v8  ;;  %5731 = vmatpush3.bf16.msra.mxu1 %v5838_v8  ;;  %v4445_v33 = vcombine.low %v703_v31, %v703_v31  ;;  %v4446_v34 = vcombine.high %v703_v31, %v703_v31  ;;  %v567_v45 = vor.u32 %v565_v38, %v564_v42  ;;  %v476_v53 = vld [vmem:[%s6355_s20 + $0x6c] sm:$0xf]  ;;  %v5873_v57 = vld [vmem:[%s7977_s2 + $0x130] sm:$0xff]   ;;  %v5856_v59 = vld [vmem:[%s7977_s2 + $0xb8] sm:$0xff]   ;;  %v885_v5 = vrot.slane %v565_v38, 1 }
  0x87   : > { %5208 = vmatprep.subr.bf16.mxu0 %v5839_v9  ;;  %5724 = vmatprep.subr.bf16.mxu1 %v5839_v9  ;;  %v651_v47 = vor.u32 %v649_v41, %v648_v44  ;;  %879 = vst [vmem:[#allocation4 + $0x154] sm:$0xf] %v475_v50  ;;  %v6545_v58 = vcombine.low %v475_v50, %v476_v53  ;;  %880 = vst [vmem:[#allocation4 + $0x160] sm:$0xf] %v476_v53  ;;  %v569_v62 = vshrl.u32 %v6537_v52, 16  ;;  %v5858_v6 = vld [vmem:[%s7977_s2 + $0xf0] sm:$0xff]  }
  0x88   : > { %843 = vst [vmem:[#allocation4 + $0x120] sm:$0xf] %v4445_v33  ;;  %844 = vst [vmem:[#allocation4 + $0x12c] sm:$0xf] %v4446_v34  ;;  %v692_v51 = vsel %vm6488_vm2, 0, %v567_v45  ;;  %v572_v63 = vshll.u32 %v6537_v52, 16 }
  0x89   : > { %v4423_v54 = vcombine.low %v692_v51, %v692_v51  ;;  %v4424_v55 = vcombine.high %v692_v51, %v692_v51  ;;  %v704_v56 = vsel %vm6488_vm2, 0, %v651_v47  ;;  %v653_v1 = vshrl.u32 %v6545_v58, 16  ;;  %v5853_v3 = vld [vmem:[#allocation4 + $0x124] ss:$12 sps:$4 sm:$0xff]   ;;  %v477_v12 = vld [vmem:[%s6355_s20 + $0x70] sm:$0xf] }
  0x8a   : > { %5209 = vmatpush3.bf16.msra.mxu0 %v5840_v10  ;;  %5732 = vmatpush3.bf16.msra.mxu1 %v5840_v10  ;;  %v4447_v60 = vcombine.low %v704_v56, %v704_v56  ;;  %v4448_v61 = vcombine.high %v704_v56, %v704_v56  ;;  %v656_v2 = vshll.u32 %v6545_v58, 16  ;;  %v571_v4 = vrot.slane %v569_v62, 7  ;;  %v5859_v8 = vld [vmem:[%s7977_s2 + $0xb0] sm:$0xff]   ;;  %881 = vst [vmem:[#allocation4 + $0x16c] sm:$0xf] %v477_v12  ;;  %v5869_v31 = vld [vmem:[%s7977_s2 + $0xa8] sm:$0xff]  }
  0x8b   : > { %5210 = vmatprep.subr.bf16.mxu0 %v5841_v11  ;;  %5725 = vmatprep.subr.bf16.mxu1 %v5841_v11  ;;  %821 = vst [vmem:[#allocation4 + $0x18] sm:$0xf] %v4423_v54  ;;  %822 = vst [vmem:[#allocation4 + $0x24] sm:$0xf] %v4424_v55  ;;  %v655_v7 = vrot.slane %v653_v1, 7  ;;  %v5870_v38 = vld [vmem:[%s7977_s2 + $0xe0] sm:$0xff]  }
  0x8c   : > { %845 = vst [vmem:[#allocation4 + $0x138] sm:$0xf] %v4447_v60  ;;  %846 = vst [vmem:[#allocation4 + $0x144] sm:$0xf] %v4448_v61  ;;  %2761 = vmatprep.mubr.bf16.mxu1 %v5853_v3  ;;  %v574_v9 = vor.u32 %v572_v63, %v571_v4  ;;  %v453_v10 = vld [vmem:[%s6355_s20 + $0x10] sm:$0xf] }
  0x8d   : > { %v454_v11 = vld [vmem:[%s6355_s20 + $0x14] sm:$0xf]  ;;  %v658_v13 = vor.u32 %v656_v2, %v655_v7  ;;  %857 = vst [vmem:[#allocation4 + $0x4c] sm:$0xf] %v453_v10  ;;  %v5861_v27 = vld [vmem:[#allocation4 + $0x1c] ss:$12 sps:$4 sm:$0xff]  }
  0x8e   : > { %5211 = vmatpush3.bf16.msra.mxu0 %v5842_v15  ;;  %5733 = vmatpush3.bf16.msra.mxu1 %v5842_v15  ;;  %v6571_v14 = vcombine.low %v453_v10, %v454_v11  ;;  %858 = vst [vmem:[#allocation4 + $0x58] sm:$0xf] %v454_v11  ;;  %v478_v15 = vld [vmem:[%s6355_s20 + $0x74] sm:$0xf]  ;;  %v5872_v54 = vld [vmem:[%s7977_s2 + $0xa0] sm:$0xff]   ;;  %v907_v61 = vrot.slane %v642_v19, 1 }
  0x8f   : > { %5212 = vmatprep.subr.bf16.mxu0 %v5843_v17  ;;  %5726 = vmatprep.subr.bf16.mxu1 %v5843_v17  ;;  %v5851_v0 = vld [vmem:[#allocation4 + $0x120] ss:$12 sps:$4 sm:$0xff]   ;;  %v5868_v17 = vld [vmem:[%s7977_s2 + $0xe8] sm:$0xff]   ;;  %v6579_v21 = vcombine.low %v477_v12, %v478_v15  ;;  %882 = vst [vmem:[#allocation4 + $0x178] sm:$0xf] %v478_v15  ;;  %v705_v26 = vsel %vm6488_vm2, 0, %v658_v13 }
  0x90   : > { %v576_v28 = vshrl.u32 %v6571_v14, 16  ;;  %v4449_v33 = vcombine.low %v705_v26, %v705_v26  ;;  %v4450_v34 = vcombine.high %v705_v26, %v705_v26  ;;  %v456_v60 = vld [vmem:[%s6355_s20 + $0x1c] sm:$0xf]  ;;  %v887_v19 = vrot.slane %v572_v63, 1  ;;  %v5885_v52 = vld [vmem:[%s7977_s2 + $0x90] sm:$0xff]   ;;  %v5990_v22 = vld [vmem:[%s7977_s2 + $0x220] sm:$0xff]  }
  0x91   : > { %v663_v42 = vshll.u32 %v6579_v21, 16  ;;  %860 = vst [vmem:[#allocation4 + $0x70] sm:$0xf] %v456_v60  ;;  %v5883_v7 = vld [vmem:[%s7977_s2 + $0x98] sm:$0xff]   ;;  %v458_v26 = vld [vmem:[%s6355_s20 + $0x24] sm:$0xf] }
  0x92   : > { %5213 = vmatpush3.bf16.msra.mxu0 %v5844_v20  ;;  %5734 = vmatpush3.bf16.msra.mxu1 %v5844_v20  ;;  %v693_v20 = vsel %vm6488_vm2, 0, %v574_v9  ;;  %847 = vst [vmem:[#allocation4 + $0x150] sm:$0xf] %v4449_v33  ;;  %848 = vst [vmem:[#allocation4 + $0x15c] sm:$0xf] %v4450_v34  ;;  %v888_v15 = vor.u32 %v887_v19, %v569_v62  ;;  %v5894_v62 = vld [vmem:[%s7977_s2 + $0xc8] sm:$0xff]  }
  0x93   : > { %5214 = vmatprep.subr.bf16.mxu0 %v5845_v23  ;;  %5727 = vmatprep.subr.bf16.mxu1 %v5845_v23  ;;  %v886_v23 = vor.u32 %v885_v5, %v562_v37  ;;  %v4425_v24 = vcombine.low %v693_v20, %v693_v20  ;;  %v4426_v25 = vcombine.high %v693_v20, %v693_v20  ;;  %v5864_v37 = vld [vmem:[#allocation4 + $0x13c] ss:$12 sps:$4 sm:$0xff]   ;;  %v5867_v44 = vld [vmem:[#allocation4 + $0x138] ss:$12 sps:$4 sm:$0xff]   ;;  %v5878_v9 = vld [vmem:[#allocation4 + $0x154] ss:$12 sps:$4 sm:$0xff]  }
  0x94   : > { %v937_v16 = vsel %vm6591_vm5, %v888_v15, 0  ;;  %862 = vst [vmem:[#allocation4 + $0x88] sm:$0xf] %v458_v26  ;;  %v5906_v15 = vld [vmem:[%s7977_s2 + $0x1b8] sm:$0xff]  }
  0x95   : > { %823 = vst [vmem:[#allocation4 + $0x30] sm:$0xf] %v4425_v24  ;;  %824 = vst [vmem:[#allocation4 + $0x3c] sm:$0xf] %v4426_v25  ;;  %v936_v49 = vsel %vm6591_vm5, %v886_v23, 0  ;;  %v908_v23 = vor.u32 %v907_v61, %v639_v18  ;;  %v5907_v24 = vld [vmem:[%s7977_s2 + $0x160] sm:$0xff]  }
  0x96   : > { %5215 = vmatpush3.bf16.msra.mxu0 %v5846_v30  ;;  %5735 = vmatpush3.bf16.msra.mxu1 %v5846_v30  ;;  %v4455_v51 = vcombine.low %v936_v49, %v936_v49  ;;  %v4456_v53 = vcombine.high %v936_v49, %v936_v49  ;;  %v5908_v18 = vld [vmem:[%s7977_s2 + $0x120] sm:$0xff]   ;;  %v5919_v61 = vld [vmem:[%s7977_s2 + $0x158] sm:$0xff]  }
  0x97   : > { %5312 = vmatprep.subr.bf16.mxu1 %v5854_v35  ;;  %5424 = vmatprep.subr.bf16.mxu0 %v5855_v36  ;;  %v579_v35 = vshll.u32 %v6571_v14, 16  ;;  %v660_v36 = vshrl.u32 %v6579_v21, 16  ;;  %v457_v25 = vld [vmem:[%s6355_s20 + $0x20] sm:$0xf]  ;;  %v6001_v30 = vld [vmem:[%s7977_s2 + $0x218] sm:$0xff]  }
  0x98   : > { %1064 = vst [vmem:[#allocation4 + $0x20] sm:$0xf] %v4455_v51  ;;  %1065 = vst [vmem:[#allocation4 + $0x2c] sm:$0xf] %v4456_v53  ;;  %v6673_v34 = vcombine.low %v457_v25, %v458_v26 }
  0x99   : > { %2666 = vmatmul.mubr.bf16.vlgmr.msra.gmra.mxu0 %v5847_v39  ;;  %2762 = vmatmul.mubr.bf16.vlgmr.msra.gmra.mxu1 %v5851_v0  ;;  %v578_v39 = vrot.slane %v576_v28, 7  ;;  %v662_v45 = vrot.slane %v660_v36, 7  ;;  %v5882_v0 = vld [vmem:[%s7977_s2 + $0xd8] sm:$0xff]   ;;  %v5881_v13 = vld [vmem:[#allocation4 + $0x150] ss:$12 sps:$4 sm:$0xff]  }
  0x9a   : > { %5425 = vmatpush3.bf16.msra.mxu0 %v5857_v43  ;;  %5313 = vmatpush3.bf16.msra.mxu1 %v5856_v59  ;;  %v6606_v43 = vld [vmem:[#allocation4 + $0x18] ss:$12 sps:$4 sm:$0xff]   ;;  %v455_v59 = vld [vmem:[%s6355_s20 + $0x18] sm:$0xf]  ;;  %861 = vst [vmem:[#allocation4 + $0x7c] sm:$0xf] %v457_v25 }
  0x9b   : > { %5426 = vmatprep.subr.bf16.mxu0 %v5871_v46  ;;  %5314 = vmatprep.subr.bf16.mxu1 %v5858_v6  ;;  %v5897_v46 = vld [vmem:[%s7977_s2 + $0x128] sm:$0xff]   ;;  %v581_v47 = vor.u32 %v579_v35, %v578_v39  ;;  %v665_v48 = vor.u32 %v663_v42, %v662_v45  ;;  %v6632_v5 = vcombine.low %v455_v59, %v456_v60  ;;  %v5875_v6 = vld [vmem:[#allocation4 + $0x34] ss:$12 sps:$4 sm:$0xff]   ;;  %v593_v51 = vshll.u32 %v6673_v34, 16  ;;  %v462_v25 = vld [vmem:[%s6355_s20 + $0x34] sm:$0xf] }
  0x9c   : > { %2673 = vmatprep.mubr.bf16.mxu0 %v5861_v27  ;;  %2769 = vmatprep.mubr.bf16.mxu1 %v5864_v37  ;;  %859 = vst [vmem:[#allocation4 + $0x64] sm:$0xf] %v455_v59  ;;  %v6641_v12 = vld [vmem:[#allocation4 + $0x30] ss:$12 sps:$4 sm:$0xff]   ;;  %v5896_v39 = vld [vmem:[%s7977_s2 + $0x88] sm:$0xff]  }
  0x9d   : > { %v694_v50 = vsel %vm6488_vm2, 0, %v581_v47  ;;  %v583_v10 = vshrl.u32 %v6632_v5, 16  ;;  %v586_v11 = vshll.u32 %v6632_v5, 16  ;;  %v947_v47 = vsel %vm6591_vm5, %v908_v23, 0  ;;  %v459_v59 = vld [vmem:[%s6355_s20 + $0x28] sm:$0xf] }
  0x9e   : > { %5427 = vmatpush3.bf16.msra.mxu0 %v5873_v57  ;;  %5315 = vmatpush3.bf16.msra.mxu1 %v5859_v8  ;;  %v4427_v55 = vcombine.low %v694_v50, %v694_v50  ;;  %v4428_v56 = vcombine.high %v694_v50, %v694_v50  ;;  %v706_v57 = vsel %vm6488_vm2, 0, %v665_v48  ;;  %v889_v8 = vrot.slane %v579_v35, 1  ;;  %v460_v60 = vld [vmem:[%s6355_s20 + $0x2c] sm:$0xf]  ;;  %863 = vst [vmem:[#allocation4 + $0x94] sm:$0xf] %v459_v59 }
  0x9f   : > { %5428 = vmatprep.subr.bf16.mxu0 %v5895_v29  ;;  %5316 = vmatprep.subr.bf16.mxu1 %v5868_v17  ;;  %v4451_v3 = vcombine.low %v706_v57, %v706_v57  ;;  %v4452_v4 = vcombine.high %v706_v57, %v706_v57  ;;  %v5884_v17 = vld [vmem:[%s7977_s2 + $0xd0] sm:$0xff]   ;;  %v585_v20 = vrot.slane %v583_v10, 7  ;;  %v4458_v29 = vcombine.high %v937_v16, %v937_v16 }
  0xa0   : > { %825 = vst [vmem:[#allocation4 + $0x48] sm:$0xf] %v4427_v55  ;;  %826 = vst [vmem:[#allocation4 + $0x54] sm:$0xf] %v4428_v56  ;;  %v890_v63 = vor.u32 %v889_v8, %v576_v28  ;;  %v4457_v28 = vcombine.low %v937_v16, %v937_v16  ;;  %v590_v50 = vshrl.u32 %v6673_v34, 16  ;;  %v4477_v53 = vcombine.low %v947_v47, %v947_v47  ;;  %v5898_v55 = vld [vmem:[%s7977_s2 + $0xc0] sm:$0xff]  }
  0xa1   : > { %2674 = vmatmul.mubr.bf16.gmra.mxu0 %v6606_v43  ;;  %2770 = vmatmul.mubr.bf16.gmra.mxu1 %v5867_v44  ;;  %849 = vst [vmem:[#allocation4 + $0x168] sm:$0xf] %v4451_v3  ;;  %850 = vst [vmem:[#allocation4 + $0x174] sm:$0xf] %v4452_v4  ;;  %v588_v14 = vor.u32 %v586_v11, %v585_v20  ;;  %v5899_v3 = vld [vmem:[%s7977_s2 + $0x80] sm:$0xff]   ;;  %v5921_v8 = vld [vmem:[%s7977_s2 + $0x118] sm:$0xff]  }
  0xa2   : > { %5429 = vmatpush3.bf16.msra.mxu0 %v5897_v46  ;;  %5317 = vmatpush3.bf16.msra.mxu1 %v5869_v31  ;;  %v938_v27 = vsel %vm6591_vm5, %v890_v63, 0  ;;  %v5887_v31 = vld [vmem:[#allocation4 + $0x4c] ss:$12 sps:$4 sm:$0xff]   ;;  %1066 = vst [vmem:[#allocation4 + $0x38] sm:$0xf] %v4457_v28  ;;  %v891_v46 = vrot.slane %v586_v11, 1 }
  0xa3   : > { %5318 = vmatprep.subr.bf16.mxu1 %v5870_v38  ;;  %2681 = vmatprep.mubr.bf16.mxu0 %v5875_v6  ;;  %v695_v33 = vsel %vm6488_vm2, 0, %v588_v14  ;;  %v4459_v35 = vcombine.low %v938_v27, %v938_v27  ;;  %v4460_v37 = vcombine.high %v938_v27, %v938_v27  ;;  %v5890_v38 = vld [vmem:[#allocation4 + $0x16c] ss:$12 sps:$4 sm:$0xff]   ;;  %1067 = vst [vmem:[#allocation4 + $0x44] sm:$0xf] %v4458_v29  ;;  %v592_v57 = vrot.slane %v590_v50, 7 }
  0xa4   : > { %2777 = vmatprep.mubr.bf16.mxu1 %v5878_v9  ;;  %5430 = vmatprep.subr.bf16.mxu0 %v5907_v24  ;;  %v4429_v44 = vcombine.low %v695_v33, %v695_v33  ;;  %v4430_v45 = vcombine.high %v695_v33, %v695_v33  ;;  %v892_v56 = vor.u32 %v891_v46, %v583_v10  ;;  %v5905_v6 = vld [vmem:[%s7977_s2 + $0x1f8] sm:$0xff]   ;;  %v5929_v23 = vld [vmem:[%s7977_s2 + $0x110] sm:$0xff]   ;;  %v893_v14 = vrot.slane %v593_v51, 1 }
  0xa5   : > { %1068 = vst [vmem:[#allocation4 + $0x50] sm:$0xf] %v4459_v35  ;;  %1069 = vst [vmem:[#allocation4 + $0x5c] sm:$0xf] %v4460_v37  ;;  %v595_v4 = vor.u32 %v593_v51, %v592_v57  ;;  %v5904_v11 = vld [vmem:[#allocation4 + $0x8] ss:$12 sps:$4 sm:$0xff]  }
  0xa6   : > { %5319 = vmatpush3.bf16.msra.mxu1 %v5872_v54  ;;  %5431 = vmatpush3.bf16.msra.mxu0 %v5908_v18  ;;  %v4478_v54 = vcombine.high %v947_v47, %v947_v47  ;;  %827 = vst [vmem:[#allocation4 + $0x60] sm:$0xf] %v4429_v44  ;;  %828 = vst [vmem:[#allocation4 + $0x6c] sm:$0xf] %v4430_v45  ;;  %v939_v5 = vsel %vm6591_vm5, %v892_v56, 0  ;;  %v5922_v28 = vld [vmem:[%s7977_s2 + $0x1b0] sm:$0xff]   ;;  %v894_v46 = vor.u32 %v893_v14, %v590_v50 }
  0xa7   : > { %5320 = vmatprep.subr.bf16.mxu1 %v5882_v0  ;;  %v6680_v48 = vld [vmem:[#allocation4 + $0x48] ss:$12 sps:$4 sm:$0xff]   ;;  %1086 = vst [vmem:[#allocation4 + $0x128] sm:$0xf] %v4477_v53  ;;  %v6695_v0 = vcombine.low %v459_v59, %v460_v60  ;;  %864 = vst [vmem:[#allocation4 + $0xa0] sm:$0xf] %v460_v60  ;;  %5432 = vmatprep.subr.bf16.mxu0 %v5919_v61  ;;  %v4461_v9 = vcombine.low %v939_v5, %v939_v5 }
  0xa8   : > { %v5893_v49 = vld [vmem:[#allocation4 + $0x168] ss:$12 sps:$4 sm:$0xff]   ;;  %1087 = vst [vmem:[#allocation4 + $0x134] sm:$0xf] %v4478_v54  ;;  %v4462_v10 = vcombine.high %v939_v5, %v939_v5  ;;  %v461_v18 = vld [vmem:[%s6355_s20 + $0x30] sm:$0xf] }
  0xa9   : > { %2682 = vmatmul.mubr.bf16.gmra.mxu0 %v6641_v12  ;;  %2778 = vmatmul.mubr.bf16.gmra.mxu1 %v5881_v13  ;;  %v600_v19 = vshll.u32 %v6695_v0, 16  ;;  %v696_v13 = vsel %vm6488_vm2, 0, %v595_v4  ;;  %1070 = vst [vmem:[#allocation4 + $0x68] sm:$0xf] %v4461_v9  ;;  %865 = vst [vmem:[#allocation4 + $0xac] sm:$0xf] %v461_v18  ;;  %v6738_v29 = vcombine.low %v461_v18, %v462_v25 }
  0xaa   : > { %5321 = vmatpush3.bf16.msra.mxu1 %v5883_v7  ;;  %2689 = vmatprep.mubr.bf16.mxu0 %v5887_v31  ;;  %v597_v7 = vshrl.u32 %v6695_v0, 16  ;;  %v4431_v63 = vcombine.low %v696_v13, %v696_v13  ;;  %1071 = vst [vmem:[#allocation4 + $0x74] sm:$0xf] %v4462_v10  ;;  %866 = vst [vmem:[#allocation4 + $0xb8] sm:$0xf] %v462_v25  ;;  %v940_v60 = vsel %vm6591_vm5, %v894_v46, 0 }
  0xab   : > { %5322 = vmatprep.subr.bf16.mxu1 %v5884_v17  ;;  %2785 = vmatprep.mubr.bf16.mxu1 %v5890_v38  ;;  %v4432_v17 = vcombine.high %v696_v13, %v696_v13  ;;  %v895_v27 = vrot.slane %v600_v19, 1  ;;  %v604_v35 = vshrl.u32 %v6738_v29, 16  ;;  %v607_v37 = vshll.u32 %v6738_v29, 16  ;;  %v463_v38 = vld [vmem:[%s6355_s20 + $0x38] sm:$0xf]  ;;  %v5942_v5 = vld [vmem:[%s7977_s2 + $0x148] sm:$0xff]  }
  0xac   : > { %v599_v20 = vrot.slane %v597_v7, 7  ;;  %5433 = vmatpush3.bf16.msra.mxu0 %v5921_v8  ;;  %829 = vst [vmem:[#allocation4 + $0x78] sm:$0xf] %v4431_v63  ;;  %v5913_v44 = vld [vmem:[#allocation4 + $0x20] ss:$12 sps:$4 sm:$0xff]   ;;  %v4464_v4 = vcombine.high %v940_v60, %v940_v60  ;;  %v5943_v8 = vld [vmem:[%s7977_s2 + $0x108] sm:$0xff]  }
  0xad   : > { %v6727_v24 = vld [vmem:[#allocation4 + $0x60] ss:$12 sps:$4 sm:$0xff]   ;;  %830 = vst [vmem:[#allocation4 + $0x84] sm:$0xf] %v4432_v17  ;;  %867 = vst [vmem:[#allocation4 + $0xc4] sm:$0xf] %v463_v38 }
  0xae   : > { %5323 = vmatpush3.bf16.msra.mxu1 %v5885_v52  ;;  %v6722_v52 = vld [vmem:[#allocation4 + $0x64] ss:$12 sps:$4 sm:$0xff]   ;;  %v602_v16 = vor.u32 %v600_v19, %v599_v20  ;;  %v606_v47 = vrot.slane %v604_v35, 7  ;;  %v6757_v51 = vld [vmem:[#allocation4 + $0x7c] ss:$12 sps:$4 sm:$0xff]  }
  0xaf   : > { %5324 = vmatprep.subr.bf16.mxu1 %v5894_v62  ;;  %v5920_v62 = vld [vmem:[%s7977_s2 + $0x1f0] sm:$0xff]   ;;  %v465_v57 = vld [vmem:[%s6355_s20 + $0x40] sm:$0xf]  ;;  %v466_v59 = vld [vmem:[%s6355_s20 + $0x44] sm:$0xf] }
  0xb0   : > { %v697_v26 = vsel %vm6488_vm2, 0, %v602_v16  ;;  %v609_v34 = vor.u32 %v607_v37, %v606_v47  ;;  %v6775_v0 = vcombine.low %v465_v57, %v466_v59  ;;  %869 = vst [vmem:[#allocation4 + $0xdc] sm:$0xf] %v465_v57  ;;  %870 = vst [vmem:[#allocation4 + $0xe8] sm:$0xf] %v466_v59  ;;  %v5950_v25 = vld [vmem:[%s7977_s2 + $0x1a0] sm:$0xff]  }
  0xb1   : > { %2690 = vmatmul.mubr.bf16.gmra.mxu0 %v6680_v48  ;;  %2786 = vmatmul.mubr.bf16.gmra.mxu1 %v5893_v49  ;;  %v4433_v31 = vcombine.low %v697_v26, %v697_v26  ;;  %v4434_v33 = vcombine.high %v697_v26, %v697_v26  ;;  %v5936_v49 = vld [vmem:[%s7977_s2 + $0x1a8] sm:$0xff]   ;;  %v6787_v10 = vld [vmem:[#allocation4 + $0x94] ss:$12 sps:$4 sm:$0xff]   ;;  %1073 = vst [vmem:[#allocation4 + $0x8c] sm:$0xf] %v4464_v4 }
  0xb2   : > { %5325 = vmatpush3.bf16.msra.mxu1 %v5896_v39  ;;  %2826 = vmatprep.mubr.bf16.mxu1 %v6606_v43  ;;  %v5928_v43 = vld [vmem:[%s7977_s2 + $0x150] sm:$0xff]   ;;  %v464_v39 = vld [vmem:[%s6355_s20 + $0x3c] sm:$0xf]  ;;  %v698_v61 = vsel %vm6488_vm2, 0, %v609_v34  ;;  %v621_v13 = vshll.u32 %v6775_v0, 16 }
  0xb3   : > { %5326 = vmatprep.subr.bf16.mxu1 %v5898_v55  ;;  %5434 = vmatprep.subr.bf16.mxu0 %v5928_v43  ;;  %831 = vst [vmem:[#allocation4 + $0x90] sm:$0xf] %v4433_v31  ;;  %832 = vst [vmem:[#allocation4 + $0x9c] sm:$0xf] %v4434_v33  ;;  %v6745_v45 = vcombine.low %v463_v38, %v464_v39  ;;  %v896_v55 = vor.u32 %v895_v27, %v597_v7  ;;  %v5918_v17 = vld [vmem:[#allocation4 + $0x38] ss:$12 sps:$4 sm:$0xff]  }
  0xb4   : > { %2697 = vmatprep.mubr.bf16.mxu0 %v6722_v52  ;;  %5435 = vmatpush3.bf16.msra.mxu0 %v5929_v23  ;;  %868 = vst [vmem:[#allocation4 + $0xd0] sm:$0xf] %v464_v39  ;;  %v6761_v56 = vld [vmem:[#allocation4 + $0x78] ss:$12 sps:$4 sm:$0xff]   ;;  %v4436_v7 = vcombine.high %v698_v61, %v698_v61  ;;  %v5949_v23 = vld [vmem:[%s7977_s2 + $0x1e0] sm:$0xff]   ;;  %v897_v31 = vrot.slane %v607_v37, 1 }
  0xb5   : > { %v611_v53 = vshrl.u32 %v6745_v45, 16  ;;  %v614_v54 = vshll.u32 %v6745_v45, 16  ;;  %v941_v9 = vsel %vm6591_vm5, %v896_v55, 0  ;;  %5436 = vmatprep.subr.bf16.mxu0 %v5942_v5  ;;  %v468_v18 = vld [vmem:[%s6355_s20 + $0x4c] sm:$0xf]  ;;  %v5951_v27 = vld [vmem:[%s7977_s2 + $0x140] sm:$0xff]  }
  0xb6   : > { %5327 = vmatpush3.bf16.msra.mxu1 %v5899_v3  ;;  %v4463_v3 = vcombine.low %v940_v60, %v940_v60  ;;  %v4465_v43 = vcombine.low %v941_v9, %v941_v9  ;;  %834 = vst [vmem:[#allocation4 + $0xb4] sm:$0xf] %v4436_v7  ;;  %872 = vst [vmem:[#allocation4 + $0x100] sm:$0xf] %v468_v18  ;;  %v470_v46 = vld [vmem:[%s6355_s20 + $0x54] sm:$0xf]  ;;  %v898_v47 = vor.u32 %v897_v31, %v604_v35 }
  0xb7   : > { %5536 = vmatprep.subr.bf16.mxu1 %v5905_v6  ;;  %v613_v50 = vrot.slane %v611_v53, 7  ;;  %v4435_v6 = vcombine.low %v698_v61, %v698_v61  ;;  %874 = vst [vmem:[#allocation4 + $0x118] sm:$0xf] %v470_v46  ;;  %v6830_v34 = vld [vmem:[#allocation4 + $0xac] ss:$12 sps:$4 sm:$0xff]   ;;  %v899_v5 = vrot.slane %v614_v54, 1 }
  0xb8   : > { %1072 = vst [vmem:[#allocation4 + $0x80] sm:$0xf] %v4463_v3  ;;  %5437 = vmatpush3.bf16.msra.mxu0 %v5943_v8  ;;  %1074 = vst [vmem:[#allocation4 + $0x98] sm:$0xf] %v4465_v43  ;;  %v942_v57 = vsel %vm6591_vm5, %v898_v47, 0 }
  0xb9   : > { %2698 = vmatmul.mubr.bf16.gmra.mxu0 %v6727_v24  ;;  %2827 = vmatmul.mubr.bf16.vlgmr.msra.gmra.mxu1 %v5904_v11  ;;  %v616_v19 = vor.u32 %v614_v54, %v613_v50  ;;  %v618_v11 = vshrl.u32 %v6775_v0, 16  ;;  %833 = vst [vmem:[#allocation4 + $0xa8] sm:$0xf] %v4435_v6  ;;  %v5927_v29 = vld [vmem:[#allocation4 + $0x50] ss:$12 sps:$4 sm:$0xff]   ;;  %v4467_v35 = vcombine.low %v942_v57, %v942_v57  ;;  %v901_v6 = vrot.slane %v621_v13, 1 }
  0xba   : > { %5537 = vmatpush3.bf16.msra.mxu1 %v5906_v15  ;;  %2834 = vmatprep.mubr.bf16.mxu1 %v6641_v12  ;;  %v5935_v12 = vld [vmem:[%s7977_s2 + $0x1e8] sm:$0xff]   ;;  %v4466_v15 = vcombine.high %v941_v9, %v941_v9  ;;  %v6792_v63 = vld [vmem:[#allocation4 + $0x90] ss:$12 sps:$4 sm:$0xff]   ;;  %v4468_v59 = vcombine.high %v942_v57, %v942_v57  ;;  %v900_v43 = vor.u32 %v899_v5, %v611_v53  ;;  %v5960_v54 = vld [vmem:[%s7977_s2 + $0x1d8] sm:$0xff]  }
  0xbb   : > { %5538 = vmatprep.subr.bf16.mxu1 %v5920_v62  ;;  %2705 = vmatprep.mubr.bf16.mxu0 %v6757_v51  ;;  %v699_v20 = vsel %vm6488_vm2, 0, %v616_v19  ;;  %v620_v16 = vrot.slane %v618_v11, 7  ;;  %v6842_v4 = vld [vmem:[#allocation4 + $0xc4] ss:$12 sps:$4 sm:$0xff]   ;;  %1076 = vst [vmem:[#allocation4 + $0xb0] sm:$0xf] %v4467_v35 }
  0xbc   : > { %v4437_v62 = vcombine.low %v699_v20, %v699_v20  ;;  %v4438_v14 = vcombine.high %v699_v20, %v699_v20  ;;  %1075 = vst [vmem:[#allocation4 + $0xa4] sm:$0xf] %v4466_v15  ;;  %5438 = vmatprep.subr.bf16.mxu0 %v5951_v27  ;;  %1077 = vst [vmem:[#allocation4 + $0xbc] sm:$0xf] %v4468_v59  ;;  %v902_v15 = vor.u32 %v901_v6, %v618_v11  ;;  %v6864_v53 = vld [vmem:[%s7977_s2 + $0x238] sm:$0xff]   ;;  %v5978_v6 = vld [vmem:[%s7977_s2 + $0x1c8] sm:$0xff]  }
  0xbd   : > { %v943_v45 = vsel %vm6591_vm5, %v900_v43, 0  ;;  %v6879_v27 = vld [vmem:[#allocation4 + $0xdc] ss:$12 sps:$4 sm:$0xff]  }
  0xbe   : > { %5539 = vmatpush3.bf16.msra.mxu1 %v5922_v28  ;;  %835 = vst [vmem:[#allocation4 + $0xc0] sm:$0xf] %v4437_v62  ;;  %836 = vst [vmem:[#allocation4 + $0xcc] sm:$0xf] %v4438_v14  ;;  %v623_v28 = vor.u32 %v621_v13, %v620_v16  ;;  %v4469_v11 = vcombine.low %v943_v45, %v943_v45  ;;  %v4470_v20 = vcombine.high %v943_v45, %v943_v45  ;;  %v5962_v16 = vld [vmem:[%s7977_s2 + $0x198] sm:$0xff]   ;;  %v5991_v43 = vld [vmem:[%s7977_s2 + $0x180] sm:$0xff]  }
  0xbf   : > { %5540 = vmatprep.subr.bf16.mxu1 %v5935_v12  ;;  %v469_v12 = vld [vmem:[%s6355_s20 + $0x50] sm:$0xf] }
  0xc0   : > { %v700_v39 = vsel %vm6488_vm2, 0, %v623_v28  ;;  %v6828_v55 = vcombine.low %v469_v12, %v470_v46  ;;  %873 = vst [vmem:[#allocation4 + $0x10c] sm:$0xf] %v469_v12  ;;  %v6838_v60 = vld [vmem:[#allocation4 + $0xa8] ss:$12 sps:$4 sm:$0xff]   ;;  %v911_v12 = vrot.slane %v656_v2, 1 }
  0xc1   : > { %2706 = vmatmul.mubr.bf16.gmra.mxu0 %v6761_v56  ;;  %2835 = vmatmul.mubr.bf16.gmra.mxu1 %v5913_v44  ;;  %v5952_v44 = vld [vmem:[%s7977_s2 + $0x100] sm:$0xff]   ;;  %v4439_v37 = vcombine.low %v700_v39, %v700_v39  ;;  %1078 = vst [vmem:[#allocation4 + $0xc8] sm:$0xf] %v4469_v11  ;;  %1079 = vst [vmem:[#allocation4 + $0xd4] sm:$0xf] %v4470_v20  ;;  %v5969_v46 = vld [vmem:[%s7977_s2 + $0x190] sm:$0xff]  }
  0xc2   : > { %2842 = vmatprep.mubr.bf16.mxu1 %v6680_v48  ;;  %5541 = vmatpush3.bf16.msra.mxu1 %v5936_v49  ;;  %v467_v48 = vld [vmem:[%s6355_s20 + $0x48] sm:$0xf]  ;;  %v4440_v49 = vcombine.high %v700_v39, %v700_v39  ;;  %v632_v3 = vshrl.u32 %v6828_v55, 16  ;;  %v5968_v20 = vld [vmem:[%s7977_s2 + $0x230] sm:$0xff]  }
  0xc3   : > { %2713 = vmatprep.mubr.bf16.mxu0 %v6787_v10  ;;  %871 = vst [vmem:[#allocation4 + $0xf4] sm:$0xf] %v467_v48  ;;  %v6807_v26 = vcombine.low %v467_v48, %v468_v18  ;;  %5542 = vmatprep.subr.bf16.mxu1 %v5949_v23  ;;  %837 = vst [vmem:[#allocation4 + $0xd8] sm:$0xf] %v4439_v37  ;;  %v944_v48 = vsel %vm6591_vm5, %v902_v15, 0 }
  0xc4   : > { %5439 = vmatpush3.bf16.msra.mxu0 %v5952_v44  ;;  %838 = vst [vmem:[#allocation4 + $0xe4] sm:$0xf] %v4440_v49  ;;  %v634_v19 = vrot.slane %v632_v3, 7  ;;  %v5934_v23 = vld [vmem:[#allocation4 + $0x68] ss:$12 sps:$4 sm:$0xff]   ;;  %v4471_v18 = vcombine.low %v944_v48, %v944_v48 }
  0xc5   : > { %v625_v33 = vshrl.u32 %v6807_v26, 16  ;;  %v628_v38 = vshll.u32 %v6807_v26, 16  ;;  %5672 = vmatprep.subr.bf16.mxu0 %v6864_v53  ;;  %v5941_v49 = vld [vmem:[#allocation4 + $0x80] ss:$12 sps:$4 sm:$0xff]   ;;  %v479_v15 = vld [vmem:[%s6355_s20 + $0x78] sm:$0xf] }
  0xc6   : > { %5543 = vmatpush3.bf16.msra.mxu1 %v5950_v25  ;;  %v6875_v25 = vld [vmem:[#allocation4 + $0xc0] ss:$12 sps:$4 sm:$0xff]   ;;  %1080 = vst [vmem:[#allocation4 + $0xe0] sm:$0xf] %v4471_v18  ;;  %883 = vst [vmem:[#allocation4 + $0x184] sm:$0xf] %v479_v15 }
  0xc7   : > { %v627_v50 = vrot.slane %v625_v33, 7  ;;  %v903_v13 = vrot.slane %v628_v38, 1  ;;  %5544 = vmatprep.subr.bf16.mxu1 %v5960_v54  ;;  %v6921_v5 = vld [vmem:[#allocation4 + $0x10c] ss:$12 sps:$4 sm:$0xff]  }
  0xc8   : > { %v5963_v11 = vld [vmem:[#allocation4 + $0x38] ss:$12 sps:$4 sm:$0xff]  }
  0xc9   : > { %2714 = vmatmul.mubr.bf16.gmra.mxu0 %v6792_v63  ;;  %2843 = vmatmul.mubr.bf16.gmra.mxu1 %v5918_v17  ;;  %v630_v61 = vor.u32 %v628_v38, %v627_v50  ;;  %v904_v28 = vor.u32 %v903_v13, %v625_v33  ;;  %v5967_v38 = vld [vmem:[%s7977_s2 + $0x1d0] sm:$0xff]   ;;  %v909_v33 = vrot.slane %v649_v41, 1  ;;  %v913_v41 = vrot.slane %v663_v42, 1 }
  0xca   : > { %2850 = vmatprep.mubr.bf16.mxu1 %v6727_v24  ;;  %2721 = vmatprep.mubr.bf16.mxu0 %v6830_v34  ;;  %v635_v24 = vshll.u32 %v6828_v55, 16  ;;  %v912_v55 = vor.u32 %v911_v12, %v653_v1 }
  0xcb   : > { %v701_v7 = vsel %vm6488_vm2, 0, %v630_v61  ;;  %5545 = vmatpush3.bf16.msra.mxu1 %v5962_v16  ;;  %v945_v31 = vsel %vm6591_vm5, %v904_v28, 0  ;;  %v910_v37 = vor.u32 %v909_v33, %v646_v40  ;;  %v6902_v50 = vld [vmem:[#allocation4 + $0xd8] ss:$12 sps:$4 sm:$0xff]   ;;  %v914_v32 = vor.u32 %v913_v41, %v660_v36  ;;  %v6910_v40 = vld [vmem:[#allocation4 + $0xf4] ss:$12 sps:$4 sm:$0xff]  }
  0xcc   : > { %v4441_v8 = vcombine.low %v701_v7, %v701_v7  ;;  %v4442_v9 = vcombine.high %v701_v7, %v701_v7  ;;  %v637_v17 = vor.u32 %v635_v24, %v634_v19  ;;  %v4473_v39 = vcombine.low %v945_v31, %v945_v31  ;;  %5546 = vmatprep.subr.bf16.mxu1 %v5967_v38  ;;  %v5980_v7 = vld [vmem:[%s7977_s2 + $0x188] sm:$0xff]   ;;  %v5965_v28 = vld [vmem:[#allocation4 + $0x50] ss:$12 sps:$4 sm:$0xff]   ;;  %v6047_v33 = vld [vmem:[#allocation4 + $0x34] ss:$12 sps:$4 sm:$0xff]  }
  0xcd   : > { %v4474_v44 = vcombine.high %v945_v31, %v945_v31  ;;  %v905_v26 = vrot.slane %v635_v24, 1  ;;  %v949_v58 = vsel %vm6591_vm5, %v912_v55, 0  ;;  %v950_v1 = vsel %vm6591_vm5, %v914_v32, 0  ;;  %v5948_v24 = vld [vmem:[#allocation4 + $0x98] ss:$12 sps:$4 sm:$0xff]   ;;  %v6025_v32 = vld [vmem:[%s7977_s2 + $0x200] sm:$0xff]  }
  0xce   : > { %839 = vst [vmem:[#allocation4 + $0xf0] sm:$0xf] %v4441_v8  ;;  %840 = vst [vmem:[#allocation4 + $0xfc] sm:$0xf] %v4442_v9  ;;  %v702_v0 = vsel %vm6488_vm2, 0, %v637_v17  ;;  %v4481_v59 = vcombine.low %v949_v58, %v949_v58  ;;  %v4482_v61 = vcombine.high %v949_v58, %v949_v58  ;;  %v4483_v21 = vcombine.low %v950_v1, %v950_v1  ;;  %v5989_v9 = vld [vmem:[%s7977_s2 + $0x1c0] sm:$0xff]  }
  0xcf   : > { %v4443_v62 = vcombine.low %v702_v0, %v702_v0  ;;  %v4444_v14 = vcombine.high %v702_v0, %v702_v0  ;;  %1082 = vst [vmem:[#allocation4 + $0xf8] sm:$0xf] %v4473_v39  ;;  %1083 = vst [vmem:[#allocation4 + $0x104] sm:$0xf] %v4474_v44  ;;  %v906_v47 = vor.u32 %v905_v26, %v632_v3  ;;  %5547 = vmatpush3.bf16.msra.mxu1 %v5969_v46  ;;  %v5957_v8 = vld [vmem:[#allocation4 + $0xb0] ss:$12 sps:$4 sm:$0xff]  }
  0xd0   : > { %v4484_v36 = vcombine.high %v950_v1, %v950_v1  ;;  %1090 = vst [vmem:[#allocation4 + $0x158] sm:$0xf] %v4481_v59  ;;  %1091 = vst [vmem:[#allocation4 + $0x164] sm:$0xf] %v4482_v61  ;;  %5548 = vmatprep.subr.bf16.mxu1 %v5978_v6  ;;  %v480_v17 = vld [vmem:[%s6355_s20 + $0x7c] sm:$0xf] }
  0xd1   : > { %2722 = vmatmul.mubr.bf16.gmra.mxu0 %v6838_v60  ;;  %2851 = vmatmul.mubr.bf16.gmra.mxu1 %v5927_v29  ;;  %841 = vst [vmem:[#allocation4 + $0x108] sm:$0xf] %v4443_v62  ;;  %842 = vst [vmem:[#allocation4 + $0x114] sm:$0xf] %v4444_v14  ;;  %v946_v2 = vsel %vm6591_vm5, %v906_v47, 0  ;;  %v4422_v54 = vcombine.low %v479_v15, %v480_v17  ;;  %v5979_v16 = vld [vmem:[%s7977_s2 + $0x228] sm:$0xff]  }
  0xd2   : > { %2729 = vmatprep.mubr.bf16.mxu0 %v6842_v4  ;;  %2858 = vmatprep.mubr.bf16.mxu1 %v6761_v56  ;;  %v4472_v56 = vcombine.high %v944_v48, %v944_v48  ;;  %v4475_v57 = vcombine.low %v946_v2, %v946_v2  ;;  %v4476_v42 = vcombine.high %v946_v2, %v946_v2  ;;  %v5959_v0 = vld [vmem:[#allocation4 + $0xc8] ss:$12 sps:$4 sm:$0xff]   ;;  %v6963_v47 = vld [vmem:[#allocation4 + $0x120] ss:$12 sps:$4 sm:$0xff]   ;;  %v5987_v58 = vld [vmem:[#allocation4 + $0xb0] ss:$12 sps:$4 sm:$0xff]  }
  0xd3   : > { %1092 = vst [vmem:[#allocation4 + $0x170] sm:$0xf] %v4483_v21  ;;  %1093 = vst [vmem:[#allocation4 + $0x17c] sm:$0xf] %v4484_v36  ;;  %5549 = vmatpush3.bf16.msra.mxu1 %v5980_v7  ;;  %v667_v13 = vshrl.u32 %v4422_v54, 16  ;;  %v670_v45 = vshll.u32 %v4422_v54, 16 }
  0xd4   : > { %1081 = vst [vmem:[#allocation4 + $0xec] sm:$0xf] %v4472_v56  ;;  %1084 = vst [vmem:[#allocation4 + $0x110] sm:$0xf] %v4475_v57  ;;  %5550 = vmatprep.subr.bf16.mxu1 %v5989_v9  ;;  %v5972_v46 = vld [vmem:[#allocation4 + $0x68] ss:$12 sps:$4 sm:$0xff]  }
  0xd5   : > { %1085 = vst [vmem:[#allocation4 + $0x11c] sm:$0xf] %v4476_v42  ;;  %v6919_v3 = vld [vmem:[#allocation4 + $0xf0] ss:$12 sps:$4 sm:$0xff]   ;;  %884 = vst [vmem:[#allocation4 + $0x190] sm:$0xf] %v480_v17 }
  0xd6   : > { %v669_v48 = vrot.slane %v667_v13, 7  ;;  %v915_v14 = vrot.slane %v670_v45, 1  ;;  %v5966_v12 = vld [vmem:[#allocation4 + $0xf8] ss:$12 sps:$4 sm:$0xff]   ;;  %v5976_v55 = vld [vmem:[#allocation4 + $0x80] ss:$12 sps:$4 sm:$0xff]  }
  0xd7   : > { %5551 = vmatpush3.bf16.msra.mxu1 %v5991_v43  ;;  %v6048_v41 = vld [vmem:[#allocation4 + $0x4c] ss:$12 sps:$4 sm:$0xff]   ;;  %v5977_v57 = vld [vmem:[#allocation4 + $0x128] ss:$12 sps:$4 sm:$0xff]   ;;  %v1204_v15 = vld [vmem:[#allocation4 + $0x120] sm:$0xff] }
  0xd8   : > { %v6932_v19 = vld [vmem:[#allocation4 + $0x108] ss:$12 sps:$4 sm:$0xff]   ;;  %v672_v62 = vor.u32 %v670_v45, %v669_v48  ;;  %v916_v56 = vor.u32 %v915_v14, %v667_v13  ;;  %v5983_v42 = vld [vmem:[#allocation4 + $0x98] ss:$12 sps:$4 sm:$0xff]   ;;  %v1206_v17 = vld [vmem:[#allocation4 + $0x12c] sm:$0xff] }
  0xd9   : > { %2730 = vmatmul.mubr.bf16.gmra.mxu0 %v6875_v25  ;;  %2859 = vmatmul.mubr.bf16.gmra.mxu1 %v5934_v23  ;;  %v6046_v23 = vld [vmem:[#allocation4 + $0x1c] ss:$12 sps:$4 sm:$0xff]   ;;  %v5988_v1 = vld [vmem:[#allocation4 + $0x158] ss:$12 sps:$4 sm:$0xff]   ;;  %v6000_v36 = vld [vmem:[#allocation4 + $0x34] ss:$12 sps:$4 sm:$0xff]   ;;  %v6995_v54 = vcombine.high %v1204_v15, %v1206_v17 }
  0xda   : > { %2737 = vmatprep.mubr.bf16.mxu0 %v6879_v27  ;;  %2866 = vmatprep.mubr.bf16.mxu1 %v6792_v63  ;;  %v948_v63 = vsel %vm6591_vm5, %v910_v37, 0  ;;  %v707_v18 = vsel %vm6488_vm2, 0, %v672_v62  ;;  %v6010_v37 = vld [vmem:[%s7977_s2 + $0x210] sm:$0xff]   ;;  %v5995_v59 = vld [vmem:[#allocation4 + $0xc8] ss:$12 sps:$4 sm:$0xff]  }
  0xdb   : > { %v4479_v29 = vcombine.low %v948_v63, %v948_v63  ;;  %v4480_v35 = vcombine.high %v948_v63, %v948_v63  ;;  %v4453_v31 = vcombine.low %v707_v18, %v707_v18  ;;  %v4454_v38 = vcombine.high %v707_v18, %v707_v18  ;;  %v5964_v39 = vld [vmem:[#allocation4 + $0xe0] ss:$12 sps:$4 sm:$0xff]   ;;  %v6972_v63 = vld [vmem:[#allocation4 + $0x138] ss:$12 sps:$4 sm:$0xff]   ;;  %v6011_v9 = vld [vmem:[#allocation4 + $0x128] ss:$12 sps:$4 sm:$0xff]  }
  0xdc   : > { %v5973_v2 = vld [vmem:[#allocation4 + $0x110] ss:$12 sps:$4 sm:$0xff]   ;;  %v5997_v21 = vld [vmem:[#allocation4 + $0xe0] ss:$12 sps:$4 sm:$0xff]   ;;  %v6014_v13 = vld [vmem:[#allocation4 + $0x78] ss:$12 sps:$4 sm:$0xff]  }
  0xdd   : > { %1088 = vst [vmem:[#allocation4 + $0x140] sm:$0xf] %v4479_v29  ;;  %1089 = vst [vmem:[#allocation4 + $0x14c] sm:$0xf] %v4480_v35  ;;  %v6979_v29 = vld [vmem:[#allocation4 + $0x150] ss:$12 sps:$4 sm:$0xff]  }
  0xde   : > { %851 = vst [vmem:[#allocation4 + $0x180] sm:$0xf] %v4453_v31  ;;  %852 = vst [vmem:[#allocation4 + $0x18c] sm:$0xf] %v4454_v38  ;;  %v6003_v6 = vld [vmem:[#allocation4 + $0x4c] ss:$12 sps:$4 sm:$0xff]  }
  0xdf   : > { %v6006_v7 = vld [vmem:[#allocation4 + $0x110] ss:$12 sps:$4 sm:$0xff]  }
  0xe0   : > { %v6012_v43 = vld [vmem:[#allocation4 + $0x7c] ss:$12 sps:$4 sm:$0xff]   ;;  %v1212_v31 = vld [vmem:[#allocation4 + $0x150] sm:$0xff] }
  0xe1   : > { %2738 = vmatmul.mubr.bf16.gmra.mxu0 %v6902_v50  ;;  %2867 = vmatmul.mubr.bf16.gmra.mxu1 %v5941_v49  ;;  %v6019_v49 = vld [vmem:[%s7977_s2 + $0x208] sm:$0xff]   ;;  %v6018_v62 = vld [vmem:[#allocation4 + $0x90] ss:$12 sps:$4 sm:$0xff]  }
  0xe2   : > { %2745 = vmatprep.mubr.bf16.mxu0 %v6910_v40  ;;  %2874 = vmatprep.mubr.bf16.mxu1 %v6838_v60  ;;  %v5958_v60 = vld [vmem:[#allocation4 + $0x20] ss:$12 sps:$4 sm:$0xff]  }
  0xe3   : > { %v1214_v38 = vld [vmem:[#allocation4 + $0x15c] sm:$0xff] }
  0xe4   : > { %v5984_v35 = vld [vmem:[#allocation4 + $0x140] ss:$12 sps:$4 sm:$0xff]  }
  0xe5   : > { %v6987_v61 = vld [vmem:[#allocation4 + $0x180] ss:$12 sps:$4 sm:$0xff]  }
  0xe6   : > { %v6015_v45 = vld [vmem:[#allocation4 + $0x140] ss:$12 sps:$4 sm:$0xff]  }
  0xe9   : > { %2746 = vmatmul.mubr.bf16.gmra.mxu0 %v6919_v3  ;;  %2875 = vmatmul.mubr.bf16.gmra.mxu1 %v5948_v24  ;;  %v6002_v24 = vld [vmem:[#allocation4 + $0xf8] ss:$12 sps:$4 sm:$0xff]  }
  0xea   : > { %2753 = vmatprep.mubr.bf16.mxu0 %v6921_v5  ;;  %2882 = vmatprep.mubr.bf16.mxu1 %v6875_v25 }
  0xf1   : > { %2754 = vmatmul.mubr.bf16.gmra.mxu0 %v6932_v19  ;;  %2883 = vmatmul.mubr.bf16.gmra.mxu1 %v5957_v8  ;;  %v6009_v8 = vld [vmem:[#allocation4 + $0x60] ss:$12 sps:$4 sm:$0xff]  }
  0xf2   : > { %2987 = vmatprep.mubr.bf16.mxu0 %v5958_v60  ;;  %2890 = vmatprep.mubr.bf16.mxu1 %v6902_v50  ;;  %v6007_v60 = vld [vmem:[#allocation4 + $0x64] ss:$12 sps:$4 sm:$0xff]  }
  0xf9   : > { %2988 = vmatmul.mubr.bf16.vlgmr.msra.gmra.mxu0 %v6046_v23  ;;  %2891 = vmatmul.mubr.bf16.gmra.mxu1 %v5959_v0  ;;  %v6016_v0 = vld [vmem:[#allocation4 + $0x94] ss:$12 sps:$4 sm:$0xff]  }
  0xfa   : > { %5673 = vmatpush3.bf16.msra.mxu0 %v6864_v53  ;;  %2898 = vmatprep.mubr.bf16.mxu1 %v6919_v3  ;;  %v951_v53 = vsel %vm6591_vm5, %v916_v56, 0  ;;  %v6021_v56 = vld [vmem:[#allocation4 + $0xac] ss:$12 sps:$4 sm:$0xff]  }
  0xfb   : > { %2995 = vmatprep.mubr.bf16.mxu0 %v5963_v11  ;;  %5674 = vmatprep.subr.bf16.mxu0 %v5968_v20  ;;  %v4485_v44 = vcombine.low %v951_v53, %v951_v53  ;;  %v4486_v26 = vcombine.high %v951_v53, %v951_v53  ;;  %v1208_v11 = vld [vmem:[#allocation4 + $0x138] sm:$0xff] }
  0xfd   : > { %1094 = vst [vmem:[#allocation4 + $0x188] sm:$0xf] %v4485_v44  ;;  %1095 = vst [vmem:[#allocation4 + $0x194] sm:$0xf] %v4486_v26 }
  0xfe   : > { %5675 = vmatpush3.bf16.msra.mxu0 %v5968_v20  ;;  %v1210_v20 = vld [vmem:[#allocation4 + $0x144] sm:$0xff] }
  0xff   : > { %5676 = vmatprep.subr.bf16.mxu0 %v5979_v16  ;;  %v6998_v23 = vcombine.high %v1208_v11, %v1210_v20 }
 0x101   : > { %2996 = vmatmul.mubr.bf16.gmra.mxu0 %v6047_v33  ;;  %2899 = vmatmul.mubr.bf16.gmra.mxu1 %v5964_v39  ;;  %v7007_v33 = vcombine.high %v1212_v31, %v1214_v38  ;;  %v6028_v38 = vld [vmem:[#allocation4 + $0x50] ss:$12 sps:$4 sm:$0xff]  }
 0x102   : > { %3003 = vmatprep.mubr.bf16.mxu0 %v5965_v28  ;;  %2906 = vmatprep.mubr.bf16.mxu1 %v6932_v19 }
 0x103   : > { %5677 = vmatpush3.bf16.msra.mxu0 %v5979_v16  ;;  %v6020_v16 = vld [vmem:[#allocation4 + $0x158] ss:$12 sps:$4 sm:$0xff]  }
 0x104   : > { %5678 = vmatprep.subr.bf16.mxu0 %v5990_v22 }
 0x107   : > { %5679 = vmatpush3.bf16.msra.mxu0 %v5990_v22 }
 0x108   : > { %5680 = vmatprep.subr.bf16.mxu0 %v6001_v30 }
 0x109   : > { %3004 = vmatmul.mubr.bf16.gmra.mxu0 %v6048_v41  ;;  %2907 = vmatmul.mubr.bf16.gmra.mxu1 %v5966_v12  ;;  %v6023_v12 = vld [vmem:[#allocation4 + $0xa8] ss:$12 sps:$4 sm:$0xff]  }
 0x10a   : > { %3011 = vmatprep.mubr.bf16.mxu0 %v5972_v46  ;;  %2914 = vmatprep.mubr.bf16.mxu1 %v6963_v47  ;;  %v6024_v46 = vld [vmem:[#allocation4 + $0x170] ss:$12 sps:$4 sm:$0xff]  }
 0x10b   : > { %5681 = vmatpush3.bf16.msra.mxu0 %v6001_v30 }
 0x10c   : > { %5682 = vmatprep.subr.bf16.mxu0 %v6010_v37 }
 0x10f   : > { %5683 = vmatpush3.bf16.msra.mxu0 %v6010_v37 }
 0x110   : > { %5684 = vmatprep.subr.bf16.mxu0 %v6019_v49 }
 0x111   : > { %3012 = vmatmul.mubr.bf16.gmra.mxu0 %v6722_v52  ;;  %2915 = vmatmul.mubr.bf16.gmra.mxu1 %v5973_v2  ;;  %v6983_v52 = vld [vmem:[#allocation4 + $0x168] ss:$12 sps:$4 sm:$0xff]  }
 0x112   : > { %3019 = vmatprep.mubr.bf16.mxu0 %v5976_v55  ;;  %2922 = vmatprep.mubr.bf16.mxu1 %v6972_v63  ;;  %v1216_v55 = vld [vmem:[#allocation4 + $0x168] sm:$0xff]  ;;  %v1218_v2 = vld [vmem:[#allocation4 + $0x174] sm:$0xff] }
 0x113   : > { %5685 = vmatpush3.bf16.msra.mxu0 %v6019_v49 }
 0x114   : > { %5686 = vmatprep.subr.bf16.mxu0 %v6025_v32 }
 0x117   : > { %5687 = vmatpush3.bf16.msra.mxu0 %v6025_v32 }
 0x119   : > { %3020 = vmatmul.mubr.bf16.gmra.mxu0 %v6757_v51  ;;  %2923 = vmatmul.mubr.bf16.gmra.mxu1 %v5977_v57  ;;  %v5996_v51 = vld [vmem:[#allocation4 + $0x170] ss:$12 sps:$4 sm:$0xff]  }
 0x11a   : > { %3027 = vmatprep.mubr.bf16.mxu0 %v5983_v42  ;;  %2930 = vmatprep.mubr.bf16.mxu1 %v6979_v29 }
 0x121   : > { %3028 = vmatmul.mubr.bf16.gmra.mxu0 %v6787_v10  ;;  %2931 = vmatmul.mubr.bf16.gmra.mxu1 %v5984_v35  ;;  %v5998_v10 = vld [vmem:[#allocation4 + $0x30] ss:$12 sps:$4 sm:$0xff]  }
 0x122   : > { %3035 = vmatprep.mubr.bf16.mxu0 %v5987_v58  ;;  %2938 = vmatprep.mubr.bf16.mxu1 %v6983_v52 }
 0x129   : > { %3036 = vmatmul.mubr.bf16.gmra.mxu0 %v6830_v34  ;;  %2939 = vmatmul.mubr.bf16.gmra.mxu1 %v5988_v1  ;;  %v6005_v34 = vld [vmem:[#allocation4 + $0x48] ss:$12 sps:$4 sm:$0xff]  }
 0x12a   : > { %3043 = vmatprep.mubr.bf16.mxu0 %v5995_v59  ;;  %2946 = vmatprep.mubr.bf16.mxu1 %v6987_v61  ;;  %v7017_v59 = vcombine.high %v1216_v55, %v1218_v2 }
 0x131   : > { %3044 = vmatmul.mubr.bf16.gmra.mxu0 %v6842_v4  ;;  %2947 = vmatmul.mubr.bf16.gmra.mxu1 %v5996_v51 }
 0x132   : > { %3051 = vmatprep.mubr.bf16.mxu0 %v5997_v21  ;;  %3148 = vmatprep.mubr.bf16.mxu1 %v6000_v36  ;;  %v6026_v21 = vld [vmem:[#allocation4 + $0x188] ss:$12 sps:$4 sm:$0xff]  }
 0x139   : > { %3052 = vmatmul.mubr.bf16.gmra.mxu0 %v6879_v27  ;;  %3149 = vmatmul.mubr.bf16.vlgmr.msra.gmra.mxu1 %v5998_v10 }
 0x13a   : > { %3059 = vmatprep.mubr.bf16.mxu0 %v6002_v24  ;;  %3156 = vmatprep.mubr.bf16.mxu1 %v6003_v6 }
 0x141   : > { %3060 = vmatmul.mubr.bf16.gmra.mxu0 %v6910_v40  ;;  %3157 = vmatmul.mubr.bf16.gmra.mxu1 %v6005_v34 }
 0x142   : > { %3067 = vmatprep.mubr.bf16.mxu0 %v6006_v7  ;;  %3164 = vmatprep.mubr.bf16.mxu1 %v6007_v60  ;;  %v1222_v7 = vld [vmem:[#allocation4 + $0x18c] sm:$0xff] }
 0x149   : > { %3068 = vmatmul.mubr.bf16.gmra.mxu0 %v6921_v5  ;;  %3165 = vmatmul.mubr.bf16.gmra.mxu1 %v6009_v8 }
 0x14a   : > { %3075 = vmatprep.mubr.bf16.mxu0 %v6011_v9  ;;  %3172 = vmatprep.mubr.bf16.mxu1 %v6012_v43 }
 0x151   : > { %3076 = vmatmul.mubr.bf16.gmra.mxu0 %v6995_v54  ;;  %3173 = vmatmul.mubr.bf16.gmra.mxu1 %v6014_v13 }
 0x152   : > { %3083 = vmatprep.mubr.bf16.mxu0 %v6015_v45  ;;  %3180 = vmatprep.mubr.bf16.mxu1 %v6016_v0  ;;  %v6027_v0 = vld [vmem:[#allocation4 + $0x38] ss:$12 sps:$4 sm:$0xff]  }
 0x159   : > { %v5216_v48 = vpop.f32.mrf.mxu0  ;;  %3084 = vmatmul.mubr.bf16.gmra.mxu0 %v6998_v23  ;;  %v5288_v39 = vpop.f32.mrf.mxu1  ;;  %3181 = vmatmul.mubr.bf16.gmra.mxu1 %v6018_v62 }
 0x15a   : > { %3091 = vmatprep.mubr.bf16.mxu0 %v6020_v16  ;;  %3188 = vmatprep.mubr.bf16.mxu1 %v6021_v56 }
 0x15b   : > { %v5217_v14 = vpop.f32.mrf.mxu0  ;;  %v5289_v26 = vpop.f32.mrf.mxu1 }
 0x15c   : > { %v7000_v18 = vadd.f32 %v5217_v14, %v5216_v48  ;;  %v7005_v22 = vadd.f32 %v5289_v26, %v5288_v39 }
 0x15d   : > { %v5219_v28 = vpop.f32.mrf.mxu0  ;;  %v5291_v30 = vpop.f32.mrf.mxu1 }
 0x15f   : > { %v5220_v53 = vpop.f32.mrf.mxu0  ;;  %v5292_v37 = vpop.f32.mrf.mxu1 }
 0x160   : > { %v7003_v44 = vadd.f32 %v5220_v53, %v5219_v28  ;;  %v7009_v41 = vadd.f32 %v5292_v37, %v5291_v30  ;;  %v6029_v53 = vld [vmem:[#allocation4 + $0x68] ss:$12 sps:$4 sm:$0xff]  }
 0x161   : > { %v5222_v49 = vpop.f32.mrf.mxu0  ;;  %3092 = vmatmul.mubr.bf16.gmra.mxu0 %v7007_v33  ;;  %v5294_v32 = vpop.f32.mrf.mxu1  ;;  %3189 = vmatmul.mubr.bf16.gmra.mxu1 %v6023_v12 }
 0x162   : > { %3099 = vmatprep.mubr.bf16.mxu0 %v6024_v46  ;;  %3196 = vmatprep.mubr.bf16.mxu1 %v6842_v4  ;;  %v1220_v4 = vld [vmem:[#allocation4 + $0x180] sm:$0xff] }
 0x163   : > { %v5223_v57 = vpop.f32.mrf.mxu0  ;;  %v5295_v35 = vpop.f32.mrf.mxu1  ;;  %v7030_v13 = vcombine.high %v1220_v4, %v1222_v7 }
 0x164   : > { %v7013_v42 = vadd.f32 %v5223_v57, %v5222_v49  ;;  %v7015_v58 = vadd.f32 %v5295_v35, %v5294_v32  ;;  %v6030_v57 = vld [vmem:[#allocation4 + $0x80] ss:$12 sps:$4 sm:$0xff]  }
 0x165   : > { %v5225_v1 = vpop.f32.mrf.mxu0  ;;  %v5297_v51 = vpop.f32.mrf.mxu1 }
 0x167   : > { %v5226_v36 = vpop.f32.mrf.mxu0  ;;  %v5298_v24 = vpop.f32.mrf.mxu1 }
 0x168   : > { %v7019_v10 = vadd.f32 %v5226_v36, %v5225_v1  ;;  %v7021_v6 = vadd.f32 %v5298_v24, %v5297_v51  ;;  %v6031_v1 = vld [vmem:[#allocation4 + $0x98] ss:$12 sps:$4 sm:$0xff]  }
 0x169   : > { %v5228_v34 = vpop.f32.mrf.mxu0  ;;  %3100 = vmatmul.mubr.bf16.gmra.mxu0 %v7017_v59  ;;  %v5300_v60 = vpop.f32.mrf.mxu1  ;;  %3197 = vmatmul.mubr.bf16.gmra.mxu1 %v6875_v25 }
 0x16a   : > { %3107 = vmatprep.mubr.bf16.mxu0 %v6026_v21  ;;  %3204 = vmatprep.mubr.bf16.mxu1 %v6879_v27 }
 0x16b   : > { %v5229_v8 = vpop.f32.mrf.mxu0  ;;  %v5301_v43 = vpop.f32.mrf.mxu1 }
 0x16c   : > { %v7026_v9 = vadd.f32 %v5229_v8, %v5228_v34  ;;  %v7028_v15 = vadd.f32 %v5301_v43, %v5300_v60 }
 0x16d   : > { %v5231_v17 = vpop.f32.mrf.mxu0  ;;  %v5303_v45 = vpop.f32.mrf.mxu1 }
 0x16f   : > { %v5232_v11 = vpop.f32.mrf.mxu0  ;;  %v5304_v48 = vpop.f32.mrf.mxu1 }
 0x170   : > { %v7032_v20 = vadd.f32 %v5232_v11, %v5231_v17  ;;  %v7034_v62 = vadd.f32 %v5304_v48, %v5303_v45  ;;  %v6032_v17 = vld [vmem:[#allocation4 + $0xb0] ss:$12 sps:$4 sm:$0xff]  }
 0x171   : > { %v5234_v25 = vpop.f32.mrf.mxu0  ;;  %3108 = vmatmul.mubr.bf16.gmra.mxu0 %v7030_v13  ;;  %v5306_v27 = vpop.f32.mrf.mxu1  ;;  %3205 = vmatmul.mubr.bf16.gmra.mxu1 %v6902_v50 }
 0x172   : > { %5688 = vmatprep.mubr.bf16.mxu0 %v6027_v0  ;;  %3212 = vmatprep.mubr.bf16.mxu1 %v6910_v40  ;;  %v6033_v0 = vld [vmem:[#allocation4 + $0xc8] ss:$12 sps:$4 sm:$0xff]  }
 0x173   : > { %v5235_v14 = vpop.f32.mrf.mxu0  ;;  %v5307_v56 = vpop.f32.mrf.mxu1 }
 0x174   : > { %v7039_v16 = vadd.f32 %v5235_v14, %v5234_v25  ;;  %v7041_v28 = vadd.f32 %v5307_v56, %v5306_v27 }
 0x175   : > { %v5237_v31 = vpop.f32.mrf.mxu0  ;;  %v5309_v39 = vpop.f32.mrf.mxu1 }
 0x177   : > { %v5238_v26 = vpop.f32.mrf.mxu0  ;;  %v5310_v12 = vpop.f32.mrf.mxu1 }
 0x178   : > { %v7043_v30 = vadd.f32 %v5238_v26, %v5237_v31  ;;  %v7045_v46 = vadd.f32 %v5310_v12, %v5309_v39  ;;  %v6035_v12 = vld [vmem:[#allocation4 + $0xf8] ss:$12 sps:$4 sm:$0xff]  }
 0x179   : > { %v5240_v50 = vpop.f32.mrf.mxu0  ;;  %5689 = vmatmul.mubr.bf16.vlgmr.msra.gmra.mxu0 %v6028_v38  ;;  %v5328_v37 = vpop.f32.mrf.mxu1  ;;  %3213 = vmatmul.mubr.bf16.gmra.mxu1 %v6919_v3 }
 0x17a   : > { %5692 = vmatprep.mubr.bf16.mxu0 %v6029_v53  ;;  %3220 = vmatprep.mubr.bf16.mxu1 %v6921_v5  ;;  %v6034_v53 = vld [vmem:[#allocation4 + $0xe0] ss:$12 sps:$4 sm:$0xff]  }
 0x17b   : > { %v5241_v40 = vpop.f32.mrf.mxu0  ;;  %v5329_v55 = vpop.f32.mrf.mxu1 }
 0x17c   : > { %v7049_v49 = vadd.f32 %v5241_v40, %v5240_v50  ;;  %v5330_v2 = vadd.f32 %v5329_v55, %v5328_v37 }
 0x17d   : > { %v5243_v32 = vpop.f32.mrf.mxu0  ;;  %v5331_v35 = vpop.f32.mrf.mxu1 }
 0x17e   : > { %v7052_v51 = vadd.f32 %v5330_v2, %v7000_v18 }
 0x17f   : > { %v5244_v21 = vpop.f32.mrf.mxu0  ;;  %v5332_v24 = vpop.f32.mrf.mxu1 }
 0x180   : > { %v7054_v36 = vadd.f32 %v5244_v21, %v5243_v32  ;;  %v5333_v3 = vadd.f32 %v5332_v24, %v5331_v35  ;;  %v6036_v21 = vld [vmem:[#allocation4 + $0x110] ss:$12 sps:$4 sm:$0xff]  }
 0x181   : > { %v5246_v34 = vpop.f32.mrf.mxu0  ;;  %5693 = vmatmul.mubr.bf16.gmra.mxu0 %v6030_v57  ;;  %v5334_v4 = vpop.f32.mrf.mxu1  ;;  %3221 = vmatmul.mubr.bf16.gmra.mxu1 %v6932_v19 }
 0x182   : > { %5696 = vmatprep.mubr.bf16.mxu0 %v6031_v1  ;;  %v7058_v5 = vadd.f32 %v5333_v3, %v7003_v44  ;;  %3228 = vmatprep.mubr.bf16.mxu1 %v6995_v54  ;;  %v6037_v3 = vld [vmem:[#allocation4 + $0x128] ss:$12 sps:$4 sm:$0xff]  }
 0x183   : > { %v5247_v7 = vpop.f32.mrf.mxu0  ;;  %v5335_v18 = vpop.f32.mrf.mxu1 }
 0x184   : > { %v7061_v60 = vadd.f32 %v5247_v7, %v5246_v34  ;;  %v5336_v8 = vadd.f32 %v5335_v18, %v5334_v4 }
 0x185   : > { %v5249_v43 = vpop.f32.mrf.mxu0  ;;  %v5337_v45 = vpop.f32.mrf.mxu1 }
 0x186   : > { %v7064_v11 = vadd.f32 %v5336_v8, %v7013_v42 }
 0x187   : > { %v5250_v48 = vpop.f32.mrf.mxu0  ;;  %v5338_v25 = vpop.f32.mrf.mxu1 }
 0x188   : > { %v7066_v19 = vadd.f32 %v5250_v48, %v5249_v43  ;;  %v5339_v44 = vadd.f32 %v5338_v25, %v5337_v45  ;;  %v6038_v48 = vld [vmem:[#allocation4 + $0x140] ss:$12 sps:$4 sm:$0xff]  }
 0x189   : > { %v5252_v27 = vpop.f32.mrf.mxu0  ;;  %5697 = vmatmul.mubr.bf16.gmra.mxu0 %v6032_v17  ;;  %v5340_v14 = vpop.f32.mrf.mxu1  ;;  %3229 = vmatmul.mubr.bf16.gmra.mxu1 %v6963_v47 }
 0x18a   : > { %5700 = vmatprep.mubr.bf16.mxu0 %v6033_v0  ;;  %v7070_v54 = vadd.f32 %v5339_v44, %v7019_v10  ;;  %3236 = vmatprep.mubr.bf16.mxu1 %v6998_v23  ;;  %v6039_v44 = vld [vmem:[#allocation4 + $0x158] ss:$12 sps:$4 sm:$0xff]  }
 0x18b   : > { %v5253_v56 = vpop.f32.mrf.mxu0  ;;  %v5341_v42 = vpop.f32.mrf.mxu1 }
 0x18c   : > { %v7073_v31 = vadd.f32 %v5253_v56, %v5252_v27  ;;  %v5342_v38 = vadd.f32 %v5341_v42, %v5340_v14 }
 0x18d   : > { %v5255_v39 = vpop.f32.mrf.mxu0  ;;  %v5343_v26 = vpop.f32.mrf.mxu1 }
 0x18e   : > { %v7076_v50 = vadd.f32 %v5342_v38, %v7026_v9 }
 0x18f   : > { %v5256_v37 = vpop.f32.mrf.mxu0  ;;  %v5344_v40 = vpop.f32.mrf.mxu1 }
 0x190   : > { %v7078_v47 = vadd.f32 %v5256_v37, %v5255_v39  ;;  %v5345_v10 = vadd.f32 %v5344_v40, %v5343_v26  ;;  %v6040_v37 = vld [vmem:[#allocation4 + $0x170] ss:$12 sps:$4 sm:$0xff]  }
 0x191   : > { %v5258_v55 = vpop.f32.mrf.mxu0  ;;  %5701 = vmatmul.mubr.bf16.gmra.mxu0 %v6034_v53  ;;  %v5346_v2 = vpop.f32.mrf.mxu1  ;;  %3237 = vmatmul.mubr.bf16.gmra.mxu1 %v6972_v63 }
 0x192   : > { %5704 = vmatprep.mubr.bf16.mxu0 %v6035_v12  ;;  %v7082_v23 = vadd.f32 %v5345_v10, %v7032_v20  ;;  %3244 = vmatprep.mubr.bf16.mxu1 %v7007_v33  ;;  %v6044_v10 = vld [vmem:[#allocation4 + $0x188] ss:$12 sps:$4 sm:$0xff]  }
 0x193   : > { %v5259_v32 = vpop.f32.mrf.mxu0  ;;  %v5347_v9 = vpop.f32.mrf.mxu1 }
 0x194   : > { %v7085_v57 = vadd.f32 %v5259_v32, %v5258_v55  ;;  %v5348_v35 = vadd.f32 %v5347_v9, %v5346_v2 }
 0x195   : > { %v5261_v1 = vpop.f32.mrf.mxu0  ;;  %v5349_v24 = vpop.f32.mrf.mxu1 }
 0x196   : > { %v7088_v34 = vadd.f32 %v5348_v35, %v7039_v16 }
 0x197   : > { %v5262_v4 = vpop.f32.mrf.mxu0  ;;  %v5350_v7 = vpop.f32.mrf.mxu1 }
 0x198   : > { %v7090_v63 = vadd.f32 %v5262_v4, %v5261_v1  ;;  %v5351_v20 = vadd.f32 %v5350_v7, %v5349_v24  ;;  %v6045_v7 = vld [vmem:[#allocation4 + $0x1a0] ss:$12 sps:$4 sm:$0xff]  }
 0x199   : > { %v5264_v18 = vpop.f32.mrf.mxu0  ;;  %5705 = vmatmul.mubr.bf16.gmra.mxu0 %v6036_v21  ;;  %v5352_v8 = vpop.f32.mrf.mxu1  ;;  %3245 = vmatmul.mubr.bf16.gmra.mxu1 %v6979_v29 }
 0x19a   : > { %5708 = vmatprep.mubr.bf16.mxu0 %v6037_v3  ;;  %v7094_v33 = vadd.f32 %v5351_v20, %v7043_v30  ;;  %3252 = vmatprep.mubr.bf16.mxu1 %v7017_v59 }
 0x19b   : > { %v5265_v43 = vpop.f32.mrf.mxu0  ;;  %v5353_v16 = vpop.f32.mrf.mxu1 }
 0x19c   : > { %v7097_v17 = vadd.f32 %v5265_v43, %v5264_v18  ;;  %v5354_v45 = vadd.f32 %v5353_v16, %v5352_v8  ;;  %v6041_v18 = vld [vmem:[#allocation4 + $0x198] ss:$12 sps:$4 sm:$0xff]  }
 0x19d   : > { %v5267_v0 = vpop.f32.mrf.mxu0  ;;  %v5355_v25 = vpop.f32.mrf.mxu1 }
 0x19e   : > { %v7100_v27 = vadd.f32 %v5354_v45, %v7049_v49 }
 0x19f   : > { %v5268_v14 = vpop.f32.mrf.mxu0  ;;  %v5356_v56 = vpop.f32.mrf.mxu1 }
 0x1a0   : > { %v7102_v29 = vadd.f32 %v5268_v14, %v5267_v0  ;;  %v5357_v30 = vadd.f32 %v5356_v56, %v5355_v25 }
 0x1a1   : > { %v5270_v42 = vpop.f32.mrf.mxu0  ;;  %5709 = vmatmul.mubr.bf16.gmra.mxu0 %v6038_v48  ;;  %v5358_v38 = vpop.f32.mrf.mxu1  ;;  %3253 = vmatmul.mubr.bf16.gmra.mxu1 %v6983_v52  ;;  %v6043_v52 = vld [vmem:[#allocation4 + $0x19c] ss:$12 sps:$4 sm:$0xff]  }
 0x1a2   : > { %5712 = vmatprep.mubr.bf16.mxu0 %v6039_v44  ;;  %v7106_v59 = vadd.f32 %v5357_v30, %v7054_v36  ;;  %3260 = vmatprep.mubr.bf16.mxu1 %v7030_v13 }
 0x1a3   : > { %v5271_v39 = vpop.f32.mrf.mxu0  ;;  %v5359_v49 = vpop.f32.mrf.mxu1 }
 0x1a4   : > { %v7109_v53 = vadd.f32 %v5271_v39, %v5270_v42  ;;  %v5360_v26 = vadd.f32 %v5359_v49, %v5358_v38 }
 0x1a5   : > { %v5273_v12 = vpop.f32.mrf.mxu0  ;;  %v5361_v40 = vpop.f32.mrf.mxu1 }
 0x1a6   : > { %v7112_v55 = vadd.f32 %v5360_v26, %v7061_v60 }
 0x1a7   : > { %v5274_v2 = vpop.f32.mrf.mxu0  ;;  %v5362_v36 = vpop.f32.mrf.mxu1 }
 0x1a8   : > { %v7114_v32 = vadd.f32 %v5274_v2, %v5273_v12  ;;  %v5363_v9 = vadd.f32 %v5362_v36, %v5361_v40 }
 0x1a9   : > { %v5276_v35 = vpop.f32.mrf.mxu0  ;;  %5713 = vmatmul.mubr.bf16.gmra.mxu0 %v6040_v37  ;;  %v5364_v13 = vpop.f32.mrf.mxu1  ;;  %3261 = vmatmul.mubr.bf16.gmra.mxu1 %v6987_v61 }
 0x1aa   : > { %5716 = vmatprep.mubr.bf16.mxu0 %v6044_v10  ;;  %v7118_v1 = vadd.f32 %v5363_v9, %v7066_v19  ;;  %3268 = vmatprep.mubr.bf16.mxu1 %v6043_v52 }
 0x1ab   : > { %v5277_v21 = vpop.f32.mrf.mxu0  ;;  %v5365_v60 = vpop.f32.mrf.mxu1 }
 0x1ac   : > { %v7120_v24 = vadd.f32 %v5277_v21, %v5276_v35  ;;  %v5366_v3 = vadd.f32 %v5365_v60, %v5364_v13 }
 0x1ad   : > { %v5279_v4 = vpop.f32.mrf.mxu0  ;;  %v5367_v20 = vpop.f32.mrf.mxu1 }
 0x1ae   : > { %v7123_v8 = vadd.f32 %v5366_v3, %v7073_v31 }
 0x1af   : > { %v5280_v43 = vpop.f32.mrf.mxu0  ;;  %v5368_v61 = vpop.f32.mrf.mxu1 }
 0x1b0   : > { %v7125_v16 = vadd.f32 %v5280_v43, %v5279_v4  ;;  %v5369_v45 = vadd.f32 %v5368_v61, %v5367_v20 }
 0x1b1   : > { %v5282_v19 = vpop.f32.mrf.mxu0  ;;  %5717 = vmatmul.mubr.bf16.gmra.mxu0 %v6045_v7  ;;  %v5370_v0 = vpop.f32.mrf.mxu1  ;;  %3269 = vmatmul.mubr.bf16.gmra.mxu1 %v6041_v18 }
 0x1b2   : > { %v7128_v48 = vadd.f32 %v5369_v45, %v7078_v47 }
 0x1b3   : > { %v5283_v25 = vpop.f32.mrf.mxu0  ;;  %v5371_v14 = vpop.f32.mrf.mxu1 }
 0x1b4   : > { %v7130_v44 = vadd.f32 %v5283_v25, %v5282_v19  ;;  %v5372_v56 = vadd.f32 %v5371_v14, %v5370_v0 }
 0x1b5   : > { %v5285_v30 = vpop.f32.mrf.mxu0  ;;  %v5373_v31 = vpop.f32.mrf.mxu1 }
 0x1b6   : > { %v7133_v42 = vadd.f32 %v5372_v56, %v7085_v57 }
 0x1b7   : > { %v5286_v38 = vpop.f32.mrf.mxu0  ;;  %v5374_v49 = vpop.f32.mrf.mxu1 }
 0x1b8   : > { %v7135_v39 = vadd.f32 %v5286_v38, %v5285_v30  ;;  %v5375_v26 = vadd.f32 %v5374_v49, %v5373_v31 }
 0x1b9   : > { %v5440_v12 = vpop.f32.mrf.mxu0  ;;  %v5376_v37 = vpop.f32.mrf.mxu1 }
 0x1ba   : > { %v7138_v47 = vadd.f32 %v5375_v26, %v7090_v63 }
 0x1bb   : > { %v5441_v40 = vpop.f32.mrf.mxu0  ;;  %v5377_v10 = vpop.f32.mrf.mxu1 }
 0x1bc   : > { %v5442_v2 = vadd.f32 %v5441_v40, %v5440_v12  ;;  %v5378_v52 = vadd.f32 %v5377_v10, %v5376_v37 }
 0x1bd   : > { %v5443_v36 = vpop.f32.mrf.mxu0  ;;  %v5379_v57 = vpop.f32.mrf.mxu1 }
 0x1be   : > { %v7141_v9 = vadd.f32 %v5442_v2, %v7052_v51  ;;  %v7144_v35 = vadd.f32 %v5378_v52, %v7097_v17 }
 0x1bf   : > { %v5444_v13 = vpop.f32.mrf.mxu0  ;;  %v5380_v21 = vpop.f32.mrf.mxu1 }
 0x1c0   : > { %v5445_v60 = vadd.f32 %v5444_v13, %v5443_v36  ;;  %v5381_v3 = vadd.f32 %v5380_v21, %v5379_v57 }
 0x1c1   : > { %v5446_v4 = vpop.f32.mrf.mxu0  ;;  %v5382_v7 = vpop.f32.mrf.mxu1 }
 0x1c2   : > { %v7147_v63 = vadd.f32 %v5445_v60, %v7058_v5  ;;  %v7150_v20 = vadd.f32 %v5381_v3, %v7102_v29 }
 0x1c3   : > { %v5447_v18 = vpop.f32.mrf.mxu0  ;;  %v5383_v43 = vpop.f32.mrf.mxu1 }
 0x1c4   : > { %v5448_v51 = vadd.f32 %v5447_v18, %v5446_v4  ;;  %v5384_v61 = vadd.f32 %v5383_v43, %v5382_v7 }
 0x1c5   : > { %v5449_v45 = vpop.f32.mrf.mxu0  ;;  %v5385_v19 = vpop.f32.mrf.mxu1 }
 0x1c6   : > { %v7153_v17 = vadd.f32 %v5448_v51, %v7064_v11  ;;  %v7156_v0 = vadd.f32 %v5384_v61, %v7109_v53 }
 0x1c7   : > { %v5450_v25 = vpop.f32.mrf.mxu0  ;;  %v5386_v14 = vpop.f32.mrf.mxu1 }
 0x1c8   : > { %v5451_v5 = vadd.f32 %v5450_v25, %v5449_v45  ;;  %v5387_v56 = vadd.f32 %v5386_v14, %v5385_v19 }
 0x1c9   : > { %v5452_v30 = vpop.f32.mrf.mxu0  ;;  %v5388_v31 = vpop.f32.mrf.mxu1 }
 0x1ca   : > { %v7159_v29 = vadd.f32 %v5451_v5, %v7070_v54  ;;  %v7162_v38 = vadd.f32 %v5387_v56, %v7114_v32 }
 0x1cb   : > { %v5453_v49 = vpop.f32.mrf.mxu0  ;;  %v5389_v26 = vpop.f32.mrf.mxu1 }
 0x1cc   : > { %v5454_v11 = vadd.f32 %v5453_v49, %v5452_v30  ;;  %v5390_v12 = vadd.f32 %v5389_v26, %v5388_v31 }
 0x1cd   : > { %v5455_v37 = vpop.f32.mrf.mxu0  ;;  %v5391_v40 = vpop.f32.mrf.mxu1 }
 0x1ce   : > { %v7165_v53 = vadd.f32 %v5454_v11, %v7076_v50  ;;  %v7168_v10 = vadd.f32 %v5390_v12, %v7120_v24 }
 0x1cf   : > { %v5456_v2 = vpop.f32.mrf.mxu0  ;;  %v5392_v52 = vpop.f32.mrf.mxu1 }
 0x1d0   : > { %v5457_v54 = vadd.f32 %v5456_v2, %v5455_v37  ;;  %v5393_v36 = vadd.f32 %v5392_v52, %v5391_v40 }
 0x1d1   : > { %v5458_v57 = vpop.f32.mrf.mxu0  ;;  %v5394_v13 = vpop.f32.mrf.mxu1 }
 0x1d2   : > { %v7171_v32 = vadd.f32 %v5457_v54, %v7082_v23  ;;  %v7174_v21 = vadd.f32 %v5393_v36, %v7125_v16 }
 0x1d3   : > { %v5459_v60 = vpop.f32.mrf.mxu0  ;;  %v5395_v3 = vpop.f32.mrf.mxu1 }
 0x1d4   : > { %v5460_v50 = vadd.f32 %v5459_v60, %v5458_v57  ;;  %v5396_v4 = vadd.f32 %v5395_v3, %v5394_v13 }
 0x1d5   : > { %v5461_v7 = vpop.f32.mrf.mxu0  ;;  %v5397_v18 = vpop.f32.mrf.mxu1 }
 0x1d6   : > { %v7177_v24 = vadd.f32 %v5460_v50, %v7088_v34  ;;  %v7180_v43 = vadd.f32 %v5396_v4, %v7130_v44 }
 0x1d7   : > { %v5462_v51 = vpop.f32.mrf.mxu0  ;;  %v5398_v61 = vpop.f32.mrf.mxu1 }
 0x1d8   : > { %v5463_v23 = vadd.f32 %v5462_v51, %v5461_v7  ;;  %v5399_v45 = vadd.f32 %v5398_v61, %v5397_v18 }
 0x1d9   : > { %v5464_v19 = vpop.f32.mrf.mxu0  ;;  %v5400_v25 = vpop.f32.mrf.mxu1 }
 0x1da   : > { %v7183_v16 = vadd.f32 %v5463_v23, %v7094_v33  ;;  %v7186_v14 = vadd.f32 %v5399_v45, %v7135_v39 }
 0x1db   : > { %v5465_v5 = vpop.f32.mrf.mxu0  ;;  %v5401_v56 = vpop.f32.mrf.mxu1 }
 0x1dc   : > { %v5466_v34 = vadd.f32 %v5465_v5, %v5464_v19  ;;  %v5402_v30 = vadd.f32 %v5401_v56, %v5400_v25 }
 0x1dd   : > { %v5467_v31 = vpop.f32.mrf.mxu0  ;;  %v5403_v49 = vpop.f32.mrf.mxu1 }
 0x1de   : > { %v7189_v44 = vadd.f32 %v5466_v34, %v7100_v27  ;;  %v7192_v26 = vadd.f32 %v5402_v30, %v7005_v22 }
 0x1df   : > { %v5468_v11 = vpop.f32.mrf.mxu0  ;;  %v5404_v12 = vpop.f32.mrf.mxu1 }
 0x1e0   : > { %v5469_v33 = vadd.f32 %v5468_v11, %v5467_v31  ;;  %v5405_v37 = vadd.f32 %v5404_v12, %v5403_v49 }
 0x1e1   : > { %v5470_v40 = vpop.f32.mrf.mxu0  ;;  %v5406_v2 = vpop.f32.mrf.mxu1 }
 0x1e2   : > { %v7195_v39 = vadd.f32 %v5469_v33, %v7106_v59  ;;  %v7198_v52 = vadd.f32 %v5405_v37, %v7009_v41 }
 0x1e3   : > { %v5471_v54 = vpop.f32.mrf.mxu0  ;;  %v5407_v36 = vpop.f32.mrf.mxu1 }
 0x1e4   : > { %v5472_v27 = vadd.f32 %v5471_v54, %v5470_v40  ;;  %v5408_v57 = vadd.f32 %v5407_v36, %v5406_v2 }
 0x1e5   : > { %v5473_v13 = vpop.f32.mrf.mxu0  ;;  %v5409_v60 = vpop.f32.mrf.mxu1 }
 0x1e6   : > { %v7201_v22 = vadd.f32 %v5472_v27, %v7112_v55  ;;  %v7204_v3 = vadd.f32 %v5408_v57, %v7015_v58 }
 0x1e7   : > { %v5474_v50 = vpop.f32.mrf.mxu0  ;;  %v5410_v4 = vpop.f32.mrf.mxu1 }
 0x1e8   : > { %v5475_v59 = vadd.f32 %v5474_v50, %v5473_v13  ;;  %v5411_v7 = vadd.f32 %v5410_v4, %v5409_v60 }
 0x1e9   : > { %v5476_v18 = vpop.f32.mrf.mxu0  ;;  %v5412_v51 = vpop.f32.mrf.mxu1 }
 0x1ea   : > { %v7207_v41 = vadd.f32 %v5475_v59, %v7118_v1  ;;  %v7210_v61 = vadd.f32 %v5411_v7, %v7021_v6 }
 0x1eb   : > { %v5477_v23 = vpop.f32.mrf.mxu0  ;;  %v5413_v45 = vpop.f32.mrf.mxu1 }
 0x1ec   : > { %v5478_v55 = vadd.f32 %v5477_v23, %v5476_v18  ;;  %v5414_v19 = vadd.f32 %v5413_v45, %v5412_v51 }
 0x1ed   : > { %v5479_v25 = vpop.f32.mrf.mxu0  ;;  %v5415_v5 = vpop.f32.mrf.mxu1 }
 0x1ee   : > { %v7213_v58 = vadd.f32 %v5478_v55, %v7123_v8  ;;  %v7216_v56 = vadd.f32 %v5414_v19, %v7028_v15 }
 0x1ef   : > { %v5480_v34 = vpop.f32.mrf.mxu0  ;;  %v5416_v30 = vpop.f32.mrf.mxu1 }
 0x1f0   : > { %v5481_v1 = vadd.f32 %v5480_v34, %v5479_v25  ;;  %v5417_v31 = vadd.f32 %v5416_v30, %v5415_v5 }
 0x1f1   : > { %v5482_v49 = vpop.f32.mrf.mxu0  ;;  %v5418_v11 = vpop.f32.mrf.mxu1 }
 0x1f2   : > { %v7219_v6 = vadd.f32 %v5481_v1, %v7128_v48  ;;  %v7222_v12 = vadd.f32 %v5417_v31, %v7034_v62 }
 0x1f3   : > { %v5483_v33 = vpop.f32.mrf.mxu0  ;;  %v5419_v37 = vpop.f32.mrf.mxu1 }
 0x1f4   : > { %v5484_v8 = vadd.f32 %v5483_v33, %v5482_v49  ;;  %v5420_v40 = vadd.f32 %v5419_v37, %v5418_v11 }
 0x1f5   : > { %v5485_v2 = vpop.f32.mrf.mxu0  ;;  %v5421_v54 = vpop.f32.mrf.mxu1 }
 0x1f6   : > { %v7225_v15 = vadd.f32 %v5484_v8, %v7133_v42  ;;  %v7228_v36 = vadd.f32 %v5420_v40, %v7041_v28 }
 0x1f7   : > { %v5486_v27 = vpop.f32.mrf.mxu0  ;;  %v5422_v57 = vpop.f32.mrf.mxu1 }
 0x1f8   : > { %v5487_v48 = vadd.f32 %v5486_v27, %v5485_v2  ;;  %v5423_v13 = vadd.f32 %v5422_v57, %v5421_v54 }
 0x1f9   : > { %v5488_v60 = vpop.f32.mrf.mxu0  ;;  %v5552_v50 = vpop.f32.mrf.mxu1 }
 0x1fa   : > { %v7231_v62 = vadd.f32 %v5487_v48, %v7138_v47  ;;  %v7234_v4 = vadd.f32 %v5423_v13, %v7045_v46 }
 0x1fb   : > { %v5489_v59 = vpop.f32.mrf.mxu0  ;;  %v5553_v42 = vpop.f32.mrf.mxu1 }
 0x1fc   : > { %v5490_v7 = vadd.f32 %v5489_v59, %v5488_v60  ;;  %v5554_v18 = vadd.f32 %v5553_v42, %v5552_v50 }
 0x1fd   : > { %v5491_v51 = vpop.f32.mrf.mxu0  ;;  %v7239_v23 = vpop.f32.mrf.mxu1 }
 0x1fe   : > { %v7237_v28 = vadd.f32 %v5490_v7, %v7144_v35  ;;  %v7242_v55 = vadd.f32 %v5554_v18, %v7141_v9 }
 0x1ff   : > { %v5492_v45 = vpop.f32.mrf.mxu0  ;;  %v7244_v19 = vpop.f32.mrf.mxu1 }
 0x200   : > { %v5493_v47 = vadd.f32 %v5492_v45, %v5491_v51 }
 0x201   : > { %v5494_v25 = vpop.f32.mrf.mxu0  ;;  %v7249_v5 = vpop.f32.mrf.mxu1 }
 0x202   : > { %v7247_v46 = vadd.f32 %v5493_v47, %v7150_v20 }
 0x203   : > { %v5495_v34 = vpop.f32.mrf.mxu0  ;;  %v7251_v1 = vpop.f32.mrf.mxu1 }
 0x204   : > { %v5496_v30 = vadd.f32 %v5495_v34, %v5494_v25 }
 0x205   : > { %v5497_v35 = vpop.f32.mrf.mxu0  ;;  %v7256_v49 = vpop.f32.mrf.mxu1 }
 0x206   : > { %v7254_v31 = vadd.f32 %v5496_v30, %v7156_v0 }
 0x207   : > { %v5498_v9 = vpop.f32.mrf.mxu0  ;;  %v7258_v33 = vpop.f32.mrf.mxu1 }
 0x208   : > { %v5499_v11 = vadd.f32 %v5498_v9, %v5497_v35 }
 0x209   : > { %v5500_v37 = vpop.f32.mrf.mxu0  ;;  %v7263_v8 = vpop.f32.mrf.mxu1 }
 0x20a   : > { %v7261_v20 = vadd.f32 %v5499_v11, %v7162_v38 }
 0x20b   : > { %v5501_v40 = vpop.f32.mrf.mxu0  ;;  %v7265_v54 = vpop.f32.mrf.mxu1 }
 0x20c   : > { %v5502_v2 = vadd.f32 %v5501_v40, %v5500_v37 }
 0x20d   : > { %v5503_v27 = vpop.f32.mrf.mxu0  ;;  %v7270_v57 = vpop.f32.mrf.mxu1 }
 0x20e   : > { %v7268_v0 = vadd.f32 %v5502_v2, %v7168_v10 }
 0x20f   : > { %v5504_v48 = vpop.f32.mrf.mxu0  ;;  %v7272_v60 = vpop.f32.mrf.mxu1 }
 0x210   : > { %v5505_v13 = vadd.f32 %v5504_v48, %v5503_v27 }
 0x211   : > { %v5506_v50 = vpop.f32.mrf.mxu0  ;;  %v7277_v59 = vpop.f32.mrf.mxu1 }
 0x212   : > { %v7275_v38 = vadd.f32 %v5505_v13, %v7174_v21 }
 0x213   : > { %v5507_v7 = vpop.f32.mrf.mxu0  ;;  %v7279_v18 = vpop.f32.mrf.mxu1 }
 0x214   : > { %8007 = vst [vmem:[#allocation16_spill] sm:$0xff] %v7275_v38  ;;  %v5508_v42 = vadd.f32 %v5507_v7, %v5506_v50 }
 0x215   : > { %v5509_v51 = vpop.f32.mrf.mxu0  ;;  %v7284_v45 = vpop.f32.mrf.mxu1 }
 0x216   : > { %v7282_v10 = vadd.f32 %v5508_v42, %v7180_v43 }
 0x217   : > { %v5510_v47 = vpop.f32.mrf.mxu0  ;;  %v7286_v34 = vpop.f32.mrf.mxu1 }
 0x218   : > { %8008 = vst [vmem:[#allocation17_spill] sm:$0xff] %v7282_v10  ;;  %v5511_v25 = vadd.f32 %v5510_v47, %v5509_v51 }
 0x219   : > { %v5512_v30 = vpop.f32.mrf.mxu0  ;;  %v7291_v35 = vpop.f32.mrf.mxu1 }
 0x21a   : > { %v7289_v21 = vadd.f32 %v5511_v25, %v7186_v14 }
 0x21b   : > { %v5513_v9 = vpop.f32.mrf.mxu0  ;;  %v7293_v37 = vpop.f32.mrf.mxu1 }
 0x21c   : > { %8009 = vst [vmem:[#allocation18_spill] sm:$0xff] %v7289_v21  ;;  %v5514_v11 = vadd.f32 %v5513_v9, %v5512_v30 }
 0x21d   : > { %v5515_v40 = vpop.f32.mrf.mxu0  ;;  %v7298_v2 = vpop.f32.mrf.mxu1 }
 0x21e   : > { %v7296_v43 = vadd.f32 %v5514_v11, %v7192_v26 }
 0x21f   : > { %v5516_v27 = vpop.f32.mrf.mxu0  ;;  %v7300_v13 = vpop.f32.mrf.mxu1 }
 0x220   : > { %8010 = vst [vmem:[#allocation19_spill] sm:$0xff] %v7296_v43  ;;  %v5517_v48 = vadd.f32 %v5516_v27, %v5515_v40 }
 0x221   : > { %v5518_v50 = vpop.f32.mrf.mxu0  ;;  %v7305_v7 = vpop.f32.mrf.mxu1 }
 0x222   : > { %v7303_v14 = vadd.f32 %v5517_v48, %v7198_v52 }
 0x223   : > { %v5519_v42 = vpop.f32.mrf.mxu0  ;;  %v7307_v47 = vpop.f32.mrf.mxu1 }
 0x224   : > { %8011 = vst [vmem:[#allocation20_spill] sm:$0xff] %v7303_v14  ;;  %v5520_v51 = vadd.f32 %v5519_v42, %v5518_v50 }
 0x225   : > { %v5521_v25 = vpop.f32.mrf.mxu0  ;;  %v7312_v30 = vpop.f32.mrf.mxu1 }
 0x226   : > { %v7310_v26 = vadd.f32 %v5520_v51, %v7204_v3 }
 0x227   : > { %v5522_v9 = vpop.f32.mrf.mxu0  ;;  %v7314_v40 = vpop.f32.mrf.mxu1 }
 0x228   : > { %8012 = vst [vmem:[#allocation21_spill] sm:$0xff] %v7310_v26  ;;  %v5523_v11 = vadd.f32 %v5522_v9, %v5521_v25 }
 0x229   : > { %v5524_v27 = vpop.f32.mrf.mxu0  ;;  %v7319_v48 = vpop.f32.mrf.mxu1 }
 0x22a   : > { %v7317_v52 = vadd.f32 %v5523_v11, %v7210_v61 }
 0x22b   : > { %v5525_v14 = vpop.f32.mrf.mxu0  ;;  %v7321_v42 = vpop.f32.mrf.mxu1 }
 0x22c   : > { %8013 = vst [vmem:[#allocation22_spill] sm:$0xff] %v7317_v52  ;;  %v5526_v50 = vadd.f32 %v5525_v14, %v5524_v27 }
 0x22d   : > { %v5527_v43 = vpop.f32.mrf.mxu0  ;;  %v7326_v51 = vpop.f32.mrf.mxu1 }
 0x22e   : > { %v7324_v3 = vadd.f32 %v5526_v50, %v7216_v56 }
 0x22f   : > { %v5528_v26 = vpop.f32.mrf.mxu0  ;;  %v7328_v9 = vpop.f32.mrf.mxu1 }
 0x230   : > { %8014 = vst [vmem:[#allocation23_spill] sm:$0xff] %v7324_v3  ;;  %v5529_v25 = vadd.f32 %v5528_v26, %v5527_v43  ;;  %v5560_v26 = vadd.f32 %v7251_v1, %v7249_v5  ;;  %v5566_v1 = vadd.f32 %v7265_v54, %v7263_v8 }
 0x231   : > { %v5530_v38 = vpop.f32.mrf.mxu0  ;;  %v7333_v11 = vpop.f32.mrf.mxu1 }
 0x232   : > { %v7331_v61 = vadd.f32 %v5529_v25, %v7222_v12  ;;  %v5563_v12 = vadd.f32 %v7258_v33, %v7256_v49 }
 0x233   : > { %v5531_v52 = vpop.f32.mrf.mxu0  ;;  %v7335_v27 = vpop.f32.mrf.mxu1 }
 0x234   : > { %8015 = vst [vmem:[#allocation24_spill] sm:$0xff] %v7331_v61  ;;  %v5532_v14 = vadd.f32 %v5531_v52, %v5530_v38  ;;  %v5557_v52 = vadd.f32 %v7244_v19, %v7239_v23  ;;  %v3162_v5 = vadd.f32 %v5563_v12, %v7159_v29 }
 0x235   : > { %v5533_v21 = vpop.f32.mrf.mxu0  ;;  %v7340_v50 = vpop.f32.mrf.mxu1 }
 0x236   : > { %v7338_v56 = vadd.f32 %v5532_v14, %v7228_v36 }
 0x237   : > { %v5534_v43 = vpop.f32.mrf.mxu0  ;;  %v7346_v61 = vpop.f32.mrf.mxu1 }
 0x238   : > { %8016 = vst [vmem:[#allocation25_spill] sm:$0xff] %v7338_v56  ;;  %v5535_v25 = vadd.f32 %v5534_v43, %v5533_v21  ;;  %v3159_v56 = vadd.f32 %v5560_v26, %v7153_v17  ;;  %v3154_v21 = vadd.f32 %v5557_v52, %v7147_v63  ;;  %v5572_v17 = vadd.f32 %v7279_v18, %v7277_v59 }
 0x239   : > { %v5690_v38 = vpop.f32.mrf.mxu0  ;;  %v7353_v36 = vpop.f32.mrf.mxu1  ;;  %v5575_v43 = vadd.f32 %v7286_v34, %v7284_v45  ;;  %v5569_v45 = vadd.f32 %v7272_v60, %v7270_v57  ;;  %v5587_v60 = vadd.f32 %v7314_v40, %v7312_v30 }
 0x23a   : > { %v7351_v3 = vadd.f32 %v5535_v25, %v7234_v4  ;;  %v3320_v33 = vadd.f32 %v5690_v38, %v3159_v56  ;;  %v3167_v56 = vadd.f32 %v5566_v1, %v7165_v53  ;;  %v3175_v34 = vadd.f32 %v5572_v17, %v7177_v24 }
 0x23b   : > { %v3311_v14 = vpop.f32.mrf.mxu0  ;;  %v7356_v10 = vpop.f32.mrf.mxu1  ;;  %v3178_v52 = vadd.f32 %v5575_v43, %v7183_v16  ;;  %v5578_v24 = vadd.f32 %v7293_v37, %v7291_v35  ;;  %v5584_v16 = vadd.f32 %v7307_v47, %v7305_v7  ;;  %v5581_v35 = vadd.f32 %v7300_v13, %v7298_v2 }
 0x23c   : > { %8017 = vst [vmem:[#allocation26_spill] sm:$0xff] %v7351_v3  ;;  %v3312_v23 = vadd.f32 %v3311_v14, %v7242_v55  ;;  %v3478_v53 = vmul.f32 %v3320_v33, %v3320_v33 }
 0x23d   : > { %v5691_v49 = vpop.f32.mrf.mxu0  ;;  %v7363_v19 = vpop.f32.mrf.mxu1  ;;  %v3183_v40 = vadd.f32 %v5578_v24, %v7189_v44  ;;  %v5590_v44 = vadd.f32 %v7321_v42, %v7319_v48  ;;  %v5599_v24 = vadd.f32 %v7346_v61, %v7340_v50  ;;  %v5593_v48 = vadd.f32 %v7328_v9, %v7326_v51 }
 0x23e   : > { %v3323_v4 = vadd.f32 %v5691_v49, %v3162_v5  ;;  %v3476_v55 = vmul.f32 %v3312_v23, %v3312_v23 }
 0x23f   : > { %v3314_v29 = vpop.f32.mrf.mxu0  ;;  %v7370_v12 = vpop.f32.mrf.mxu1  ;;  %v3199_v61 = vadd.f32 %v5590_v44, %v7213_v58  ;;  %v5602_v58 = vadd.f32 %v7356_v10, %v7353_v36 }
 0x240   : > { %v4860_v26 = vpack.c.bf16 %v3323_v4, %v3320_v33  ;;  %v3315_v8 = vadd.f32 %v3314_v29, %v3154_v21  ;;  %v3479_v21 = vmul.f32 %v3323_v4, %v3323_v4  ;;  %v5605_v10 = vadd.f32 %v7370_v12, %v7363_v19 }
 0x241   : > { %v5694_v54 = vpop.f32.mrf.mxu0  ;;  %v7376_v18 = vpop.f32.mrf.mxu1 }
 0x242   : > { %5140 = vst [vmem:[%s7373_s18 + $0x8] sm:$0xff] %v4860_v26   ;;  %v3438_v63 = vadd.f32 %v3315_v8, %v3312_v23  ;;  %v3477_v25 = vmul.f32 %v3315_v8, %v3315_v8  ;;  %v4855_v59 = vpack.c.bf16 %v3315_v8, %v3312_v23  ;;  %v3336_v26 = vadd.f32 %v5694_v54, %v3175_v34 }
 0x243   : > { %v3327_v38 = vpop.f32.mrf.mxu0  ;;  %v7383_v1 = vpop.f32.mrf.mxu1 }
 0x244   : > { %v3439_v14 = vadd.f32 %v3438_v63, %v3320_v33  ;;  %v3508_v5 = vadd.f32 %v3477_v25, %v3476_v55  ;;  %4856 = vst [vmem:[%s7373_s18] sm:$0xff] %v4855_v59   ;;  %v3328_v49 = vadd.f32 %v3327_v38, %v3167_v56  ;;  %v3170_v33 = vadd.f32 %v5569_v45, %v7171_v32 }
 0x245   : > { %v5695_v29 = vpop.f32.mrf.mxu0  ;;  %v7385_v3 = vpop.f32.mrf.mxu1  ;;  %v3191_v45 = vadd.f32 %v5584_v16, %v7201_v22  ;;  %v3194_v38 = vadd.f32 %v5587_v60, %v7207_v41 }
 0x246   : > { %v3509_v23 = vadd.f32 %v3508_v5, %v3478_v53  ;;  %v3440_v8 = vadd.f32 %v3439_v14, %v3323_v4  ;;  %v3339_v57 = vadd.f32 %v5695_v29, %v3178_v52  ;;  %v3480_v56 = vmul.f32 %v3328_v49, %v3328_v49 }
 0x247   : > { %v3330_v17 = vpop.f32.mrf.mxu0  ;;  %v7394_v55 = vpop.f32.mrf.mxu1  ;;  %v3482_v52 = vmul.f32 %v3336_v26, %v3336_v26 }
 0x248   : > { %v3441_v43 = vadd.f32 %v3440_v8, %v3328_v49  ;;  %v3510_v54 = vadd.f32 %v3509_v23, %v3479_v21  ;;  %v4870_v4 = vpack.c.bf16 %v3339_v57, %v3336_v26  ;;  %v3331_v63 = vadd.f32 %v3330_v17, %v3170_v33 }
 0x249   : > { %v5698_v25 = vpop.f32.mrf.mxu0  ;;  %v7399_v7 = vpop.f32.mrf.mxu1  ;;  %v3483_v22 = vmul.f32 %v3339_v57, %v3339_v57 }
 0x24a   : > { %v3511_v37 = vadd.f32 %v3510_v54, %v3480_v56  ;;  %5142 = vst [vmem:[%s7373_s18 + $0x18] sm:$0xff] %v4870_v4   ;;  %v3442_v47 = vadd.f32 %v3441_v43, %v3331_v63  ;;  %v3481_v30 = vmul.f32 %v3331_v63, %v3331_v63  ;;  %v4865_v32 = vpack.c.bf16 %v3331_v63, %v3328_v49 }
 0x24b   : > { %v3343_v59 = vpop.f32.mrf.mxu0  ;;  %v7403_v34 = vpop.f32.mrf.mxu1  ;;  %v3352_v5 = vadd.f32 %v5698_v25, %v3191_v45  ;;  %v3186_v49 = vadd.f32 %v5581_v35, %v7195_v39  ;;  %v3210_v25 = vadd.f32 %v5599_v24, %v7231_v62  ;;  %v5608_v62 = vadd.f32 %v7383_v1, %v7376_v18 }
 0x24c   : > { %v3443_v53 = vadd.f32 %v3442_v47, %v3336_v26  ;;  %v3512_v14 = vadd.f32 %v3511_v37, %v3481_v30  ;;  %5141 = vst [vmem:[%s7373_s18 + $0x10] sm:$0xff] %v4865_v32   ;;  %v3344_v2 = vadd.f32 %v3343_v59, %v3183_v40  ;;  %v5596_v26 = vadd.f32 %v7335_v27, %v7333_v11 }
 0x24d   : > { %v5699_v13 = vpop.f32.mrf.mxu0  ;;  %v7407_v21 = vpop.f32.mrf.mxu1  ;;  %v3486_v35 = vmul.f32 %v3352_v5, %v3352_v5  ;;  %v3202_v59 = vadd.f32 %v5593_v48, %v7219_v6  ;;  %v3215_v1 = vadd.f32 %v5602_v58, %v7237_v28  ;;  %v5614_v28 = vadd.f32 %v7403_v34, %v7399_v7 }
 0x24e   : > { %v3355_v29 = vadd.f32 %v5699_v13, %v3194_v38  ;;  %v3513_v23 = vadd.f32 %v3512_v14, %v3482_v52  ;;  %v3444_v8 = vadd.f32 %v3443_v53, %v3339_v57  ;;  %v3484_v17 = vmul.f32 %v3344_v2, %v3344_v2 }
 0x24f   : > { %v3346_v41 = vpop.f32.mrf.mxu0  ;;  %v7416_v60 = vpop.f32.mrf.mxu1  ;;  %v3207_v4 = vadd.f32 %v5596_v26, %v7225_v15  ;;  %v5611_v53 = vadd.f32 %v7394_v55, %v7385_v3  ;;  %v3223_v55 = vadd.f32 %v5608_v62, %v7254_v31 }
 0x250   : > { %v4880_v16 = vpack.c.bf16 %v3355_v29, %v3352_v5  ;;  %v3347_v33 = vadd.f32 %v3346_v41, %v3186_v49  ;;  %v3445_v39 = vadd.f32 %v3444_v8, %v3344_v2  ;;  %v3514_v43 = vadd.f32 %v3513_v23, %v3483_v22 }
 0x251   : > { %v5702_v56 = vpop.f32.mrf.mxu0  ;;  %v5618_v54 = vpop.f32.mrf.mxu1  ;;  %v3487_v45 = vmul.f32 %v3355_v29, %v3355_v29  ;;  %v3226_v41 = vadd.f32 %v5611_v53, %v7261_v20  ;;  %v8020_v53 = vld [vmem:[#allocation16_spill] sm:$0xff] }
 0x252   : > { %5144 = vst [vmem:[%s7373_s18 + $0x28] sm:$0xff] %v4880_v16   ;;  %v3485_v42 = vmul.f32 %v3347_v33, %v3347_v33  ;;  %v4875_v57 = vpack.c.bf16 %v3347_v33, %v3344_v2  ;;  %v3515_v11 = vadd.f32 %v3514_v43, %v3484_v17  ;;  %v3446_v27 = vadd.f32 %v3445_v39, %v3347_v33 }
 0x253   : > { %v3359_v50 = vpop.f32.mrf.mxu0  ;;  %v5619_v63 = vpop.f32.mrf.mxu1  ;;  %v3368_v9 = vadd.f32 %v5702_v56, %v3207_v4  ;;  %v3218_v43 = vadd.f32 %v5605_v10, %v7247_v46  ;;  %v5617_v46 = vadd.f32 %v7416_v60, %v7407_v21 }
 0x254   : > { %5143 = vst [vmem:[%s7373_s18 + $0x20] sm:$0xff] %v4875_v57   ;;  %v3447_v37 = vadd.f32 %v3446_v27, %v3352_v5  ;;  %v3516_v47 = vadd.f32 %v3515_v11, %v3485_v42  ;;  %v3360_v30 = vadd.f32 %v3359_v50, %v3199_v61  ;;  %v5620_v57 = vadd.f32 %v5619_v63, %v5618_v54 }
 0x255   : > { %v5703_v51 = vpop.f32.mrf.mxu0  ;;  %v5621_v32 = vpop.f32.mrf.mxu1  ;;  %v3490_v26 = vmul.f32 %v3368_v9, %v3368_v9  ;;  %v3231_v54 = vadd.f32 %v5614_v28, %v7268_v0  ;;  %v8023_v28 = vld [vmem:[#allocation22_spill] sm:$0xff] }
 0x256   : > { %v3371_v40 = vadd.f32 %v5703_v51, %v3210_v25  ;;  %v3517_v38 = vadd.f32 %v3516_v47, %v3486_v35  ;;  %v3448_v15 = vadd.f32 %v3447_v37, %v3355_v29  ;;  %v3488_v6 = vmul.f32 %v3360_v30, %v3360_v30  ;;  %v8018_v51 = vld [vmem:[#allocation17_spill] sm:$0xff] }
 0x257   : > { %v3362_v52 = vpop.f32.mrf.mxu0  ;;  %v5622_v2 = vpop.f32.mrf.mxu1 }
 0x258   : > { %v4890_v14 = vpack.c.bf16 %v3371_v40, %v3368_v9  ;;  %v3363_v13 = vadd.f32 %v3362_v52, %v3202_v59  ;;  %v3449_v5 = vadd.f32 %v3448_v15, %v3360_v30  ;;  %v3518_v49 = vadd.f32 %v3517_v38, %v3487_v45 }
 0x259   : > { %v5706_v44 = vpop.f32.mrf.mxu0  ;;  %v5624_v22 = vpop.f32.mrf.mxu1  ;;  %v3491_v56 = vmul.f32 %v3371_v40, %v3371_v40  ;;  %v5623_v20 = vadd.f32 %v5622_v2, %v5621_v32 }
 0x25a   : > { %5146 = vst [vmem:[%s7373_s18 + $0x38] sm:$0xff] %v4890_v14   ;;  %v3489_v36 = vmul.f32 %v3363_v13, %v3363_v13  ;;  %v4885_v29 = vpack.c.bf16 %v3363_v13, %v3360_v30  ;;  %v3519_v23 = vadd.f32 %v3518_v49, %v3488_v6  ;;  %v3450_v18 = vadd.f32 %v3449_v5, %v3363_v13 }
 0x25b   : > { %v3375_v3 = vpop.f32.mrf.mxu0  ;;  %v5625_v8 = vpop.f32.mrf.mxu1  ;;  %v3384_v12 = vadd.f32 %v5706_v44, %v3223_v55  ;;  %v3234_v14 = vadd.f32 %v5617_v46, %v8020_v53 }
 0x25c   : > { %5145 = vst [vmem:[%s7373_s18 + $0x30] sm:$0xff] %v4885_v29   ;;  %v3451_v24 = vadd.f32 %v3450_v18, %v3368_v9  ;;  %v3520_v16 = vadd.f32 %v3519_v23, %v3489_v36  ;;  %v3376_v33 = vadd.f32 %v3375_v3, %v3215_v1  ;;  %v3239_v9 = vadd.f32 %v5620_v57, %v8018_v51 }
 0x25d   : > { %v5707_v19 = vpop.f32.mrf.mxu0  ;;  %v5627_v39 = vpop.f32.mrf.mxu1  ;;  %v3494_v58 = vmul.f32 %v3384_v12, %v3384_v12  ;;  %v5626_v2 = vadd.f32 %v5625_v8, %v5624_v22 }
 0x25e   : > { %v3387_v17 = vadd.f32 %v5707_v19, %v3226_v41  ;;  %v3521_v48 = vadd.f32 %v3520_v16, %v3490_v26  ;;  %v3452_v31 = vadd.f32 %v3451_v24, %v3371_v40  ;;  %v3492_v4 = vmul.f32 %v3376_v33, %v3376_v33  ;;  %v8019_v40 = vld [vmem:[#allocation18_spill] sm:$0xff]  ;;  %v8021_v16 = vld [vmem:[#allocation19_spill] sm:$0xff] }
 0x25f   : > { %v3378_v42 = vpop.f32.mrf.mxu0  ;;  %v5628_v27 = vpop.f32.mrf.mxu1  ;;  %v3242_v59 = vadd.f32 %v5623_v20, %v8019_v40 }
 0x260   : > { %v4900_v11 = vpack.c.bf16 %v3387_v17, %v3384_v12  ;;  %v3379_v61 = vadd.f32 %v3378_v42, %v3218_v43  ;;  %v3453_v50 = vadd.f32 %v3452_v31, %v3376_v33  ;;  %v3522_v25 = vadd.f32 %v3521_v48, %v3491_v56 }
 0x261   : > { %v5710_v35 = vpop.f32.mrf.mxu0  ;;  %v5630_v34 = vpop.f32.mrf.mxu1  ;;  %v3495_v0 = vmul.f32 %v3387_v17, %v3387_v17  ;;  %v5629_v55 = vadd.f32 %v5628_v27, %v5627_v39 }
 0x262   : > { %5148 = vst [vmem:[%s7373_s18 + $0x48] sm:$0xff] %v4900_v11   ;;  %v3493_v37 = vmul.f32 %v3379_v61, %v3379_v61  ;;  %v4895_v7 = vpack.c.bf16 %v3379_v61, %v3376_v33  ;;  %v3523_v47 = vadd.f32 %v3522_v25, %v3492_v4  ;;  %v3454_v30 = vadd.f32 %v3453_v50, %v3379_v61  ;;  %v8024_v50 = vld [vmem:[#allocation20_spill] sm:$0xff] }
 0x263   : > { %v3391_v63 = vpop.f32.mrf.mxu0  ;;  %v5631_v32 = vpop.f32.mrf.mxu1  ;;  %v3400_v60 = vadd.f32 %v5710_v35, %v3239_v9  ;;  %v3247_v33 = vadd.f32 %v5626_v2, %v8021_v16  ;;  %v3250_v4 = vadd.f32 %v5629_v55, %v8024_v50 }
 0x264   : > { %5147 = vst [vmem:[%s7373_s18 + $0x40] sm:$0xff] %v4895_v7   ;;  %v3455_v45 = vadd.f32 %v3454_v30, %v3384_v12  ;;  %v3524_v38 = vadd.f32 %v3523_v47, %v3493_v37  ;;  %v3392_v15 = vadd.f32 %v3391_v63, %v3231_v54  ;;  %v5632_v49 = vadd.f32 %v5631_v32, %v5630_v34  ;;  %v8022_v12 = vld [vmem:[#allocation21_spill] sm:$0xff] }
 0x265   : > { %v5711_v21 = vpop.f32.mrf.mxu0  ;;  %v5633_v52 = vpop.f32.mrf.mxu1  ;;  %v3498_v48 = vmul.f32 %v3400_v60, %v3400_v60 }
 0x266   : > { %v3403_v62 = vadd.f32 %v5711_v21, %v3242_v59  ;;  %v3525_v13 = vadd.f32 %v3524_v38, %v3494_v58  ;;  %v3456_v5 = vadd.f32 %v3455_v45, %v3387_v17  ;;  %v3496_v23 = vmul.f32 %v3392_v15, %v3392_v15  ;;  %v8025_v58 = vld [vmem:[#allocation23_spill] sm:$0xff] }
 0x267   : > { %v3394_v6 = vpop.f32.mrf.mxu0  ;;  %v5634_v10 = vpop.f32.mrf.mxu1  ;;  %v3255_v17 = vadd.f32 %v5632_v49, %v8022_v12 }
 0x268   : > { %v4910_v44 = vpack.c.bf16 %v3403_v62, %v3400_v60  ;;  %v3395_v36 = vadd.f32 %v3394_v6, %v3234_v14  ;;  %v3457_v29 = vadd.f32 %v3456_v5, %v3392_v15  ;;  %v3526_v18 = vadd.f32 %v3525_v13, %v3495_v0  ;;  %v8026_v5 = vld [vmem:[#allocation24_spill] sm:$0xff] }
 0x269   : > { %v5635_v1 = vadd.f32 %v5634_v10, %v5633_v52  ;;  %v5714_v3 = vpop.f32.mrf.mxu0  ;;  %v5636_v24 = vpop.f32.mrf.mxu1  ;;  %v3499_v25 = vmul.f32 %v3403_v62, %v3403_v62  ;;  %v8027_v10 = vld [vmem:[#allocation25_spill] sm:$0xff] }
 0x26a   : > { %5150 = vst [vmem:[%s7373_s18 + $0x58] sm:$0xff] %v4910_v44   ;;  %v3497_v41 = vmul.f32 %v3395_v36, %v3395_v36  ;;  %v4905_v26 = vpack.c.bf16 %v3395_v36, %v3392_v15  ;;  %v3527_v22 = vadd.f32 %v3526_v18, %v3496_v23  ;;  %v3458_v8 = vadd.f32 %v3457_v29, %v3395_v36 }
 0x26b   : > { %v3407_v19 = vpop.f32.mrf.mxu0  ;;  %v5637_v43 = vpop.f32.mrf.mxu1  ;;  %v3258_v56 = vadd.f32 %v5635_v1, %v8023_v28  ;;  %v3416_v20 = vadd.f32 %v5714_v3, %v3255_v17 }
 0x26c   : > { %5149 = vst [vmem:[%s7373_s18 + $0x50] sm:$0xff] %v4905_v26   ;;  %v3459_v31 = vadd.f32 %v3458_v8, %v3400_v60  ;;  %v3528_v42 = vadd.f32 %v3527_v22, %v3497_v41  ;;  %v3408_v57 = vadd.f32 %v3407_v19, %v3247_v33  ;;  %v5638_v11 = vadd.f32 %v5637_v43, %v5636_v24  ;;  %v8028_v33 = vld [vmem:[#allocation26_spill] sm:$0xff] }
 0x26d   : > { %v5715_v39 = vpop.f32.mrf.mxu0  ;;  %v5639_v27 = vpop.f32.mrf.mxu1 }
 0x26e   : > { %v3419_v61 = vadd.f32 %v5715_v39, %v3258_v56  ;;  %v3529_v35 = vadd.f32 %v3528_v42, %v3498_v48  ;;  %v3460_v46 = vadd.f32 %v3459_v31, %v3403_v62  ;;  %v3500_v54 = vmul.f32 %v3408_v57, %v3408_v57 }
 0x26f   : > { %v3410_v37 = vpop.f32.mrf.mxu0  ;;  %v5640_v34 = vpop.f32.mrf.mxu1  ;;  %v3263_v45 = vadd.f32 %v5638_v11, %v8025_v58  ;;  %v3502_v62 = vmul.f32 %v3416_v20, %v3416_v20 }
 0x270   : > { %v4920_v7 = vpack.c.bf16 %v3419_v61, %v3416_v20  ;;  %v3411_v47 = vadd.f32 %v3410_v37, %v3250_v4  ;;  %v3461_v30 = vadd.f32 %v3460_v46, %v3408_v57  ;;  %v3530_v63 = vadd.f32 %v3529_v35, %v3499_v25 }
 0x271   : > { %v5718_v51 = vpop.f32.mrf.mxu0  ;;  %v5641_v9 = vadd.f32 %v5640_v34, %v5639_v27  ;;  %v5642_v59 = vpop.f32.mrf.mxu1  ;;  %v3503_v49 = vmul.f32 %v3419_v61, %v3419_v61 }
 0x272   : > { %5152 = vst [vmem:[%s7373_s18 + $0x68] sm:$0xff] %v4920_v7   ;;  %v3501_v32 = vmul.f32 %v3411_v47, %v3411_v47  ;;  %v4915_v40 = vpack.c.bf16 %v3411_v47, %v3408_v57  ;;  %v3531_v38 = vadd.f32 %v3530_v63, %v3500_v54  ;;  %v3462_v15 = vadd.f32 %v3461_v30, %v3411_v47 }
 0x273   : > { %v3423_v21 = vpop.f32.mrf.mxu0  ;;  %v5643_v60 = vpop.f32.mrf.mxu1  ;;  %v3266_v6 = vadd.f32 %v5641_v9, %v8026_v5 }
 0x274   : > { %5151 = vst [vmem:[%s7373_s18 + $0x60] sm:$0xff] %v4915_v40   ;;  %v3424_v52 = vadd.f32 %v3423_v21, %v3263_v45  ;;  %v3463_v53 = vadd.f32 %v3462_v15, %v3416_v20  ;;  %v3532_v14 = vadd.f32 %v3531_v38, %v3501_v32  ;;  %v5644_v2 = vadd.f32 %v5643_v60, %v5642_v59 }
 0x275   : > { %v5719_v0 = vpop.f32.mrf.mxu0  ;;  %v5645_v13 = vpop.f32.mrf.mxu1 }
 0x276   : > { %v3533_v44 = vadd.f32 %v3532_v14, %v3502_v62  ;;  %v3271_v36 = vadd.f32 %v5644_v2, %v8027_v10  ;;  %v3464_v29 = vadd.f32 %v3463_v53, %v3419_v61  ;;  %v3504_v18 = vmul.f32 %v3424_v52, %v3424_v52 }
 0x277   : > { %v3426_v23 = vpop.f32.mrf.mxu0  ;;  %v5646_v1 = vpop.f32.mrf.mxu1 }
 0x278   : > { %v3427_v3 = vadd.f32 %v3426_v23, %v3266_v6  ;;  %v3432_v55 = vadd.f32 %v5718_v51, %v3271_v36  ;;  %v3465_v41 = vadd.f32 %v3464_v29, %v3424_v52  ;;  %v3534_v26 = vadd.f32 %v3533_v44, %v3503_v49 }
 0x279   : > { %v5647_v24 = vadd.f32 %v5646_v1, %v5645_v13 }
 0x27a   : > { %v3505_v22 = vmul.f32 %v3427_v3, %v3427_v3  ;;  %v4925_v8 = vpack.c.bf16 %v3427_v3, %v3424_v52  ;;  %v3535_v16 = vadd.f32 %v3534_v26, %v3504_v18  ;;  %v3466_v12 = vadd.f32 %v3465_v41, %v3427_v3 }
 0x27b   : > { %v3274_v19 = vadd.f32 %v5647_v24, %v8028_v33  ;;  %v3506_v17 = vmul.f32 %v3432_v55, %v3432_v55 }
 0x27c   : > { %5153 = vst [vmem:[%s7373_s18 + $0x70] sm:$0xff] %v4925_v8   ;;  %v3467_v28 = vadd.f32 %v3466_v12, %v3432_v55  ;;  %v3536_v56 = vadd.f32 %v3535_v16, %v3505_v22 }
 0x27d   : > { %v3435_v43 = vadd.f32 %v5719_v0, %v3274_v19 }
 0x27e   : > { %v3537_v57 = vadd.f32 %v3536_v56, %v3506_v17 }
 0x27f   : > { %v3507_v48 = vmul.f32 %v3435_v43, %v3435_v43  ;;  %v4930_v31 = vpack.c.bf16 %v3435_v43, %v3432_v55  ;;  %v3468_v42 = vadd.f32 %v3467_v28, %v3435_v43 }
 0x281   : > { %5154 = vst [vmem:[%s7373_s18 + $0x78] sm:$0xff] %v4930_v31   ;;  %v3469_v39 = vrot.slane %v3468_v42, 4  ;;  %v3538_v20 = vadd.f32 %v3537_v57, %v3507_v48 }
 0x283   : > { %v3470_v11 = vadd.f32 %v3469_v39, %v3468_v42  ;;  %v3539_v27 = vrot.slane %v3538_v20, 4 }
 0x285   : > { %v3471_v61 = vrot.slane %v3470_v11, 2  ;;  %v3540_v50 = vadd.f32 %v3539_v27, %v3538_v20 }
 0x287   : > { %v3472_v4 = vadd.f32 %v3471_v61, %v3470_v11  ;;  %v3541_v25 = vrot.slane %v3540_v50, 2 }
 0x289   : > { %v3473_v35 = vrot.slane %v3472_v4, 1  ;;  %v3542_v46 = vadd.f32 %v3541_v25, %v3540_v50 }
 0x28b   : > { %v3474_v37 = vadd.f32 %v3473_v35, %v3472_v4  ;;  %v3543_v7 = vrot.slane %v3542_v46, 1 }
 0x28d   : > { %v3544_v34 = vadd.f32 %v3543_v7, %v3542_v46  ;;  %v3475_v47 = vmul.f32 0.00390625, %v3474_v37 }
 0x28f   : > { %v3545_v30 = vmul.f32 0.00390625, %v3544_v34 }
 0x291   : > { %v3547_v54 = vsel %vm689_vm0, %v3475_v47, %v3545_v30 }
 0x292   : > { %3550 = vst [vmem:[%s3549_s21] sm:$0x3] %v3547_v54 }
 0x293 PF: > { %p4738_p7 = scmp.ne.s32.totalorder %s6169_s28, 1 }
 0x295   : > { %3717 = sbr.rel (%p4738_p7) target bundleno = 759 (0x2f7), region = 68 }
 0x29a   : > { %s4818_s19 = sshll.u32 %s6165_s27, 7  ;;  %s4741_s9 = sshll.u32 %s6165_s27, 1  ;;  %v3788_v63 = vld [vmem:[#allocation2] sm:$0x3]  ;;  %v3789_v51 = vld [vmem:[#allocation2 + $0x2] sm:$0x3]  ;;  %v3822_v9 = vlaneseq }
 0x29b   : > { %vm3790_vm6 = vcmask 1041408   ;;  %s3786_s13 = scalar_lea.vmem [#allocation2], %s4741_s9  ;;  %s3808_s17 = sld [smem:[#allocation5]]  ;;  %v7479_v52 = vld [vmem:[%s6360_s5] sm:$0xff]   ;;  %v7492_v36 = vld [vmem:[%s6360_s5 + $0x8] sm:$0xff]   ;;  %v7502_v22 = vld [vmem:[%s6360_s5 + $0x10] sm:$0xff]  }
 0x29c   : > { %v3787_v32 = vld [vmem:[%s3786_s13] sm:$0x3]  ;;  %v3791_v40 = vsel %vm3790_vm6, %v3788_v63, 0.0  ;;  %v3792_v59 = vsel %vm3790_vm6, %v3789_v51, 0.0  ;;  %s4742_s20 = sld [smem:[#allocation5 + $0x1]]  ;;  %v7469_v38 = vshrl.u32 %v3822_v9, 7  ;;  %v4998_v5 = vunpack.c.l.bf16 %v7479_v52 }
 0x29d   : > { %v3793_v58 = vadd.f32 %v3792_v59, %v3791_v40  ;;  %v3796_v45 = vmul.f32 %v3787_v32, %v3787_v32  ;;  %s7471_s28 = scalar_lea.vmem [#allocation3], %s4818_s19  ;;  %s7476_s27 = sld [smem:[#allocation8]]  ;;  %v4999_v1 = vunpack.c.h.bf16 %v7479_v52  ;;  %v5002_v33 = vunpack.c.l.bf16 %v7492_v36  ;;  %v7510_v17 = vld [vmem:[%s6360_s5 + $0x18] sm:$0xff]   ;;  %v7515_v42 = vld [vmem:[%s6360_s5 + $0x20] sm:$0xff]   ;;  %v7521_v61 = vld [vmem:[%s6360_s5 + $0x28] sm:$0xff]  }
 0x29e   : > { %v7474_v15 = vld [vmem:[%s7471_s28] sm:$0xff]   ;;  %s7481_s14 = sld [smem:[#allocation8 + $0x1]]  ;;  %v7484_v14 = vld [vmem:[%s7471_s28 + $0x8] sm:$0xff]   ;;  %v3824_v13 = vsub.s32 0, %v7469_v38  ;;  %v3862_v10 = vsub.s32 1, %v7469_v38  ;;  %v7495_v29 = vld [vmem:[%s7471_s28 + $0x10] sm:$0xff]  }
 0x29f   : > { %v3795_v21 = vmul.f32 0.5, %v3793_v58  ;;  %v3798_v60 = vrot.slane %v3796_v45, 7  ;;  %v4934_v2 = vunpack.c.l.bf16 %v7474_v15  ;;  %v4935_v0 = vunpack.c.h.bf16 %v7474_v15  ;;  %v5157_v8 = vld [vmem:[%s7471_s28 + $0x18] sm:$0xff]   ;;  %v5158_v43 = vld [vmem:[%s7471_s28 + $0x20] sm:$0xff]   ;;  %v5159_v57 = vld [vmem:[%s7471_s28 + $0x28] sm:$0xff]  }
 0x2a0   : > { %v4938_v3 = vunpack.c.l.bf16 %v7484_v14  ;;  %v4939_v24 = vunpack.c.h.bf16 %v7484_v14  ;;  %v4942_v12 = vunpack.c.l.bf16 %v7495_v29  ;;  %v4943_v31 = vunpack.c.h.bf16 %v7495_v29  ;;  %v5160_v46 = vld [vmem:[%s7471_s28 + $0x30] sm:$0xff]   ;;  %v5161_v54 = vld [vmem:[%s7471_s28 + $0x38] sm:$0xff]   ;;  %v5162_v59 = vld [vmem:[%s7471_s28 + $0x40] sm:$0xff]  }
 0x2a1   : > { %v3800_v62 = vsub.f32 %v3787_v32, %v3798_v60  ;;  %v3802_v53 = vmul.f32 %v3795_v21, %v3795_v21  ;;  %v3809_v44 = vstv %s3808_s17  ;;  %v4946_v11 = vunpack.c.l.bf16 %v5157_v8  ;;  %v7527_v37 = vld [vmem:[%s6360_s5 + $0x30] sm:$0xff]   ;;  %v7536_v40 = vld [vmem:[%s6360_s5 + $0x38] sm:$0xff]   ;;  %v7636_v14 = vld [vmem:[%s6360_s5 + $0x60] sm:$0xff]  }
 0x2a2   : > { %v3810_v23 = vmul.f32 %v3809_v44, %v3787_v32  ;;  %v3812_v18 = vstv %s4742_s20  ;;  %v4947_v27 = vunpack.c.h.bf16 %v5157_v8  ;;  %v4950_v35 = vunpack.c.l.bf16 %v5158_v43  ;;  %v5164_v15 = vld [vmem:[%s7471_s28 + $0x50] sm:$0xff]   ;;  %v5169_v60 = vld [vmem:[%s7471_s28 + $0x78] sm:$0xff]  }
 0x2a3   : > { %v3801_v6 = vmax.f32 %v3800_v62, 0.0  ;;  %v3804_v49 = vrot.slane %v3802_v53, 7  ;;  %v3813_v41 = vmul.f32 %v3812_v18, %v3795_v21  ;;  %v3816_v26 = vstv %s7476_s27  ;;  %v7542_v62 = vld [vmem:[%s6360_s5 + $0x40] sm:$0xff]   ;;  %v7651_v47 = vld [vmem:[%s6360_s5 + $0x70] sm:$0xff]  }
 0x2a4   : > { %v3819_v16 = vstv %s7481_s14  ;;  %v4951_v7 = vunpack.c.h.bf16 %v5158_v43  ;;  %v4954_v30 = vunpack.c.l.bf16 %v5159_v57  ;;  %v4955_v9 = vunpack.c.h.bf16 %v5159_v57  ;;  %v7591_v57 = vld [vmem:[%s6360_s5 + $0x48] sm:$0xff]  }
 0x2a5   : > { %v3806_v55 = vsub.f32 %v3795_v21, %v3804_v49  ;;  %v3814_v56 = vadd.f32 %v3813_v41, %v3810_v23  ;;  %v3817_v48 = vmul.f32 %v3816_v26, %v3801_v6  ;;  %v4958_v45 = vunpack.c.l.bf16 %v5160_v46  ;;  %v5163_v26 = vld [vmem:[%s7471_s28 + $0x48] sm:$0xff]  }
 0x2a6   : > { %v4959_v21 = vunpack.c.h.bf16 %v5160_v46  ;;  %v4963_v6 = vunpack.c.h.bf16 %v5161_v54  ;;  %v4966_v29 = vunpack.c.l.bf16 %v5162_v59  ;;  %v4967_v23 = vunpack.c.h.bf16 %v5162_v59  ;;  %v5166_v59 = vld [vmem:[%s7471_s28 + $0x60] sm:$0xff]  }
 0x2a7   : > { %v3807_v28 = vmax.f32 %v3806_v55, 0.0  ;;  %v7532_v51 = vrot.slane %v3814_v56, %v3824_v13  ;;  %v4962_v13 = vunpack.c.l.bf16 %v5161_v54  ;;  %v4974_v46 = vunpack.c.l.bf16 %v5164_v15 }
 0x2a8   : > { %v4982_v44 = vunpack.c.l.bf16 %v5166_v59  ;;  %v4983_v49 = vunpack.c.h.bf16 %v5166_v59  ;;  %v4995_v25 = vunpack.c.h.bf16 %v5169_v60 }
 0x2a9   : > { %v3820_v50 = vmul.f32 %v3819_v16, %v3807_v28  ;;  %v7550_v18 = vsub.f32 %v4934_v2, %v7532_v51  ;;  %v7555_v55 = vsub.f32 %v4935_v0, %v7532_v51  ;;  %v7560_v8 = vsub.f32 %v4938_v3, %v7532_v51 }
 0x2aa   : > { %v7563_v16 = vsub.f32 %v4939_v24, %v7532_v51  ;;  %v7566_v2 = vsub.f32 %v4942_v12, %v7532_v51  ;;  %v7569_v43 = vsub.f32 %v4943_v31, %v7532_v51  ;;  %v7573_v0 = vsub.f32 %v4946_v11, %v7532_v51  ;;  %v5165_v11 = vld [vmem:[%s7471_s28 + $0x58] sm:$0xff]  }
 0x2ab   : > { %v3821_v63 = vadd.f32 %v3820_v50, %v3817_v48  ;;  %v7576_v28 = vsub.f32 %v4947_v27, %v7532_v51  ;;  %v7579_v3 = vsub.f32 %v4950_v35, %v7532_v51  ;;  %v7582_v24 = vsub.f32 %v4951_v7, %v7532_v51  ;;  %v7604_v7 = vld [vmem:[%s6360_s5 + $0x50] sm:$0xff]  }
 0x2ac   : > { %v7585_v12 = vsub.f32 %v4954_v30, %v7532_v51  ;;  %v7588_v56 = vsub.f32 %v4955_v9, %v7532_v51  ;;  %v4970_v48 = vunpack.c.l.bf16 %v5163_v26  ;;  %v4971_v31 = vunpack.c.h.bf16 %v5163_v26  ;;  %v7620_v26 = vld [vmem:[%s6360_s5 + $0x58] sm:$0xff]  }
 0x2ad   : > { %v3858_v53 = vadd.f32 1e-05, %v3821_v63  ;;  %v7595_v27 = vsub.f32 %v4958_v45, %v7532_v51  ;;  %v7598_v50 = vsub.f32 %v4959_v21, %v7532_v51  ;;  %v7601_v35 = vsub.f32 %v4962_v13, %v7532_v51  ;;  %v5168_v45 = vld [vmem:[%s7471_s28 + $0x70] sm:$0xff]  }
 0x2ae   : > { %v7607_v30 = vsub.f32 %v4963_v6, %v7532_v51  ;;  %v7610_v54 = vsub.f32 %v4966_v29, %v7532_v51  ;;  %v7613_v63 = vsub.f32 %v4967_v23, %v7532_v51  ;;  %v4975_v9 = vunpack.c.h.bf16 %v5164_v15  ;;  %v5167_v6 = vld [vmem:[%s7471_s28 + $0x68] sm:$0xff]  }
 0x2af   : > { %6049 = vrsqrt.f32 %v3858_v53  ;;  %v4978_v13 = vunpack.c.l.bf16 %v5165_v11  ;;  %v7624_v29 = vsub.f32 %v4970_v48, %v7532_v51  ;;  %v7627_v23 = vsub.f32 %v4971_v31, %v7532_v51  ;;  %v7644_v15 = vld [vmem:[%s6360_s5 + $0x68] sm:$0xff]  }
 0x2b0   : > { %v4979_v41 = vunpack.c.h.bf16 %v5165_v11  ;;  %v7632_v21 = vsub.f32 %v4974_v46, %v7532_v51  ;;  %v7640_v48 = vsub.f32 %v4975_v9, %v7532_v51  ;;  %v4986_v58 = vunpack.c.l.bf16 %v5167_v6 }
 0x2b1   : > { %v4987_v11 = vunpack.c.h.bf16 %v5167_v6  ;;  %v7647_v46 = vsub.f32 %v4978_v13, %v7532_v51  ;;  %v4990_v32 = vunpack.c.l.bf16 %v5168_v45  ;;  %v4991_v59 = vunpack.c.h.bf16 %v5168_v45  ;;  %v7666_v45 = vld [vmem:[%s6360_s5 + $0x78] sm:$0xff]  }
 0x2b2   : > { %v7654_v34 = vsub.f32 %v4979_v41, %v7532_v51  ;;  %v4994_v31 = vunpack.c.l.bf16 %v5169_v60  ;;  %v7658_v6 = vsub.f32 %v4982_v44, %v7532_v51  ;;  %v7661_v4 = vsub.f32 %v4983_v49, %v7532_v51  ;;  %8029 = vst [vmem:[#allocation27_spill] sm:$0xff] %v7666_v45 }
 0x2b3   : > { %v7669_v41 = vsub.f32 %v4986_v58, %v7532_v51  ;;  %v7672_v9 = vsub.f32 %v4987_v11, %v7532_v51  ;;  %v7681_v13 = vsub.f32 %v4990_v32, %v7532_v51  ;;  %v7684_v53 = vsub.f32 %v4991_v59, %v7532_v51  ;;  %v7690_v11 = vld [vmem:[%s7978_s3] ss:$0 sm:$0xff] }
 0x2b4   : > { %v7693_v60 = vsub.f32 %v4994_v31, %v7532_v51  ;;  %v7696_v38 = vsub.f32 %v4995_v25, %v7532_v51  ;;  %v7711_v25 = vld [vmem:[%s7979_s4] ss:$0 sm:$0xff] }
 0x2bc   : > { %v6050_v20 = vpop.eup %6049 }
 0x2bd   : > { %v7678_v49 = vrot.slane %v6050_v20, %v3862_v10 }
 0x2bf   : > { %v3864_v32 = vmul.f32 %v7678_v49, %v7550_v18  ;;  %v3865_v59 = vmul.f32 %v7678_v49, %v7555_v55  ;;  %v3866_v58 = vmul.f32 %v7678_v49, %v7560_v8  ;;  %v3867_v31 = vmul.f32 %v7678_v49, %v7563_v16 }
 0x2c0   : > { %v3868_v51 = vmul.f32 %v7678_v49, %v7566_v2  ;;  %v3869_v18 = vmul.f32 %v7678_v49, %v7569_v43  ;;  %v3870_v55 = vmul.f32 %v7678_v49, %v7573_v0  ;;  %v3871_v8 = vmul.f32 %v7678_v49, %v7576_v28 }
 0x2c1   : > { %v3903_v20 = vmul.f32 %v7690_v11, %v3864_v32  ;;  %v3904_v16 = vmul.f32 %v7690_v11, %v3865_v59  ;;  %v3905_v10 = vmul.f32 %v7690_v11, %v3866_v58  ;;  %v3906_v44 = vmul.f32 %v7690_v11, %v3867_v31 }
 0x2c2   : > { %v3907_v39 = vmul.f32 %v7690_v11, %v3868_v51  ;;  %v3908_v2 = vmul.f32 %v7690_v11, %v3869_v18  ;;  %v3909_v43 = vmul.f32 %v7690_v11, %v3870_v55  ;;  %v3910_v19 = vmul.f32 %v7690_v11, %v3871_v8 }
 0x2c3   : > { %v3942_v0 = vadd.f32 %v7711_v25, %v3903_v20  ;;  %v3943_v28 = vadd.f32 %v7711_v25, %v3904_v16  ;;  %v3944_v32 = vadd.f32 %v7711_v25, %v3905_v10  ;;  %v3945_v59 = vadd.f32 %v7711_v25, %v3906_v44 }
 0x2c4   : > { %v3946_v58 = vadd.f32 %v7711_v25, %v3907_v39  ;;  %v3947_v31 = vadd.f32 %v7711_v25, %v3908_v2  ;;  %v3948_v51 = vadd.f32 %v7711_v25, %v3909_v43  ;;  %v3949_v18 = vadd.f32 %v7711_v25, %v3910_v19 }
 0x2c5   : > { %v4038_v55 = vadd.f32 %v4998_v5, %v3942_v0  ;;  %v4039_v20 = vadd.f32 %v4999_v1, %v3943_v28  ;;  %v4040_v8 = vadd.f32 %v5002_v33, %v3944_v32  ;;  %v8030_v10 = vunpack.c.h.bf16 %v7492_v36 }
 0x2c6   : > { %v8031_v39 = vunpack.c.l.bf16 %v7502_v22  ;;  %v8032_v2 = vunpack.c.h.bf16 %v7502_v22  ;;  %v8033_v19 = vunpack.c.l.bf16 %v7510_v17  ;;  %v8034_v5 = vunpack.c.h.bf16 %v7510_v17 }
 0x2c7   : > { %v4041_v44 = vadd.f32 %v8030_v10, %v3945_v59  ;;  %v4070_v52 = vmax.f32 %v4038_v55, 0.0  ;;  %v4071_v1 = vmax.f32 %v4039_v20, 0.0  ;;  %v4072_v33 = vmax.f32 %v4040_v8, 0.0 }
 0x2c8   : > { %v4042_v16 = vadd.f32 %v8031_v39, %v3946_v58  ;;  %v4043_v43 = vadd.f32 %v8032_v2, %v3947_v31  ;;  %v4044_v45 = vadd.f32 %v8033_v19, %v3948_v51  ;;  %v4045_v0 = vadd.f32 %v8034_v5, %v3949_v18 }
 0x2c9   : > { %v4073_v28 = vmax.f32 %v4041_v44, 0.0  ;;  %v5063_v22 = vpack.c.bf16 %v4071_v1, %v4070_v52  ;;  %v3872_v51 = vmul.f32 %v7678_v49, %v7579_v3  ;;  %v3873_v17 = vmul.f32 %v7678_v49, %v7582_v24 }
 0x2ca   : > { %v4074_v36 = vmax.f32 %v4042_v16, 0.0  ;;  %v4075_v32 = vmax.f32 %v4043_v43, 0.0  ;;  %v4076_v59 = vmax.f32 %v4044_v45, 0.0  ;;  %v4077_v58 = vmax.f32 %v4045_v0, 0.0 }
 0x2cb   : > { %v5068_v31 = vpack.c.bf16 %v4073_v28, %v4072_v33  ;;  %v3874_v20 = vmul.f32 %v7678_v49, %v7585_v12  ;;  %v3875_v8 = vmul.f32 %v7678_v49, %v7588_v56  ;;  %5064 = vst [vmem:[%s6362_s22] sm:$0xff] %v5063_v22   ;;  %v3911_v45 = vmul.f32 %v7690_v11, %v3872_v51 }
 0x2cc   : > { %v5073_v18 = vpack.c.bf16 %v4075_v32, %v4074_v36  ;;  %v5078_v55 = vpack.c.bf16 %v4077_v58, %v4076_v59  ;;  %v3912_v10 = vmul.f32 %v7690_v11, %v3873_v17  ;;  %v3876_v3 = vmul.f32 %v7678_v49, %v7595_v27 }
 0x2cd   : > { %5185 = vst [vmem:[%s6362_s22 + $0x8] sm:$0xff] %v5068_v31   ;;  %v3877_v24 = vmul.f32 %v7678_v49, %v7598_v50  ;;  %v3913_v44 = vmul.f32 %v7690_v11, %v3874_v20  ;;  %v3914_v12 = vmul.f32 %v7690_v11, %v3875_v8  ;;  %v3878_v56 = vmul.f32 %v7678_v49, %v7601_v35 }
 0x2ce   : > { %5186 = vst [vmem:[%s6362_s22 + $0x10] sm:$0xff] %v5073_v18   ;;  %5187 = vst [vmem:[%s6362_s22 + $0x18] sm:$0xff] %v5078_v55   ;;  %v3879_v39 = vmul.f32 %v7678_v49, %v7607_v30  ;;  %v3950_v16 = vadd.f32 %v7711_v25, %v3911_v45  ;;  %v3951_v2 = vadd.f32 %v7711_v25, %v3912_v10  ;;  %v8035_v35 = vunpack.c.l.bf16 %v7515_v42 }
 0x2cf   : > { %v3915_v27 = vmul.f32 %v7690_v11, %v3876_v3  ;;  %v3916_v50 = vmul.f32 %v7690_v11, %v3877_v24  ;;  %v3952_v43 = vadd.f32 %v7711_v25, %v3913_v44  ;;  %v3953_v19 = vadd.f32 %v7711_v25, %v3914_v12 }
 0x2d0   : > { %v3917_v5 = vmul.f32 %v7690_v11, %v3878_v56  ;;  %v3918_v0 = vmul.f32 %v7690_v11, %v3879_v39  ;;  %v4046_v52 = vadd.f32 %v8035_v35, %v3950_v16  ;;  %v8036_v30 = vunpack.c.h.bf16 %v7515_v42 }
 0x2d1   : > { %v3954_v33 = vadd.f32 %v7711_v25, %v3915_v27  ;;  %v3955_v28 = vadd.f32 %v7711_v25, %v3916_v50  ;;  %v8037_v36 = vunpack.c.l.bf16 %v7521_v61  ;;  %v8038_v59 = vunpack.c.h.bf16 %v7521_v61 }
 0x2d2   : > { %v4047_v1 = vadd.f32 %v8036_v30, %v3951_v2  ;;  %v3956_v22 = vadd.f32 %v7711_v25, %v3917_v5  ;;  %v3957_v31 = vadd.f32 %v7711_v25, %v3918_v0  ;;  %v4078_v51 = vmax.f32 %v4046_v52, 0.0 }
 0x2d3   : > { %v4048_v32 = vadd.f32 %v8037_v36, %v3952_v43  ;;  %v4049_v58 = vadd.f32 %v8038_v59, %v3953_v19  ;;  %v8039_v42 = vunpack.c.l.bf16 %v7527_v37  ;;  %v8040_v55 = vunpack.c.h.bf16 %v7527_v37 }
 0x2d4   : > { %v4079_v17 = vmax.f32 %v4047_v1, 0.0  ;;  %v8041_v10 = vunpack.c.l.bf16 %v7536_v40  ;;  %v8042_v3 = vunpack.c.h.bf16 %v7536_v40  ;;  %v3880_v39 = vmul.f32 %v7678_v49, %v7610_v54 }
 0x2d5   : > { %v4050_v18 = vadd.f32 %v8039_v42, %v3954_v33  ;;  %v4051_v20 = vadd.f32 %v8040_v55, %v3955_v28  ;;  %v4080_v8 = vmax.f32 %v4048_v32, 0.0  ;;  %v4081_v45 = vmax.f32 %v4049_v58, 0.0 }
 0x2d6   : > { %v4052_v61 = vadd.f32 %v8041_v10, %v3956_v22  ;;  %v4053_v24 = vadd.f32 %v8042_v3, %v3957_v31  ;;  %v5083_v44 = vpack.c.bf16 %v4079_v17, %v4078_v51  ;;  %v3881_v27 = vmul.f32 %v7678_v49, %v7613_v63 }
 0x2d7   : > { %v4082_v12 = vmax.f32 %v4050_v18, 0.0  ;;  %v4083_v56 = vmax.f32 %v4051_v20, 0.0  ;;  %v5088_v16 = vpack.c.bf16 %v4081_v45, %v4080_v8  ;;  %v3919_v43 = vmul.f32 %v7690_v11, %v3880_v39 }
 0x2d8   : > { %v4084_v2 = vmax.f32 %v4052_v61, 0.0  ;;  %v4085_v37 = vmax.f32 %v4053_v24, 0.0  ;;  %5188 = vst [vmem:[%s6362_s22 + $0x20] sm:$0xff] %v5083_v44   ;;  %v3882_v40 = vmul.f32 %v7678_v49, %v7624_v29  ;;  %v3883_v19 = vmul.f32 %v7678_v49, %v7627_v23 }
 0x2d9   : > { %v5093_v50 = vpack.c.bf16 %v4083_v56, %v4082_v12  ;;  %5189 = vst [vmem:[%s6362_s22 + $0x28] sm:$0xff] %v5088_v16   ;;  %v3920_v54 = vmul.f32 %v7690_v11, %v3881_v27  ;;  %v3884_v0 = vmul.f32 %v7678_v49, %v7632_v21  ;;  %v3885_v63 = vmul.f32 %v7678_v49, %v7640_v48 }
 0x2da   : > { %v5098_v5 = vpack.c.bf16 %v4085_v37, %v4084_v2  ;;  %v3958_v35 = vadd.f32 %v7711_v25, %v3919_v43  ;;  %v3921_v52 = vmul.f32 %v7690_v11, %v3882_v40  ;;  %v3922_v29 = vmul.f32 %v7690_v11, %v3883_v19 }
 0x2db   : > { %5190 = vst [vmem:[%s6362_s22 + $0x30] sm:$0xff] %v5093_v50   ;;  %v3886_v23 = vmul.f32 %v7678_v49, %v7647_v46  ;;  %v3959_v30 = vadd.f32 %v7711_v25, %v3920_v54  ;;  %v3923_v1 = vmul.f32 %v7690_v11, %v3884_v0  ;;  %v3924_v21 = vmul.f32 %v7690_v11, %v3885_v63 }
 0x2dc   : > { %5191 = vst [vmem:[%s6362_s22 + $0x38] sm:$0xff] %v5098_v5   ;;  %v3887_v48 = vmul.f32 %v7678_v49, %v7654_v34  ;;  %v8043_v33 = vunpack.c.l.bf16 %v7542_v62  ;;  %v3960_v36 = vadd.f32 %v7711_v25, %v3921_v52  ;;  %v3961_v32 = vadd.f32 %v7711_v25, %v3922_v29 }
 0x2dd   : > { %v3925_v59 = vmul.f32 %v7690_v11, %v3886_v23  ;;  %v8044_v46 = vunpack.c.h.bf16 %v7542_v62  ;;  %v3962_v22 = vadd.f32 %v7711_v25, %v3923_v1  ;;  %v3963_v31 = vadd.f32 %v7711_v25, %v3924_v21 }
 0x2de   : > { %v4054_v28 = vadd.f32 %v8043_v33, %v3958_v35  ;;  %v3926_v51 = vmul.f32 %v7690_v11, %v3887_v48  ;;  %v8045_v34 = vunpack.c.l.bf16 %v7591_v57  ;;  %v8046_v18 = vunpack.c.h.bf16 %v7591_v57 }
 0x2df   : > { %v4055_v58 = vadd.f32 %v8044_v46, %v3959_v30  ;;  %v3964_v20 = vadd.f32 %v7711_v25, %v3925_v59  ;;  %v8047_v45 = vunpack.c.l.bf16 %v7604_v7  ;;  %v8048_v10 = vunpack.c.h.bf16 %v7604_v7 }
 0x2e0   : > { %v4086_v17 = vmax.f32 %v4054_v28, 0.0  ;;  %v4056_v42 = vadd.f32 %v8045_v34, %v3960_v36  ;;  %v4057_v55 = vadd.f32 %v8046_v18, %v3961_v32  ;;  %v3965_v3 = vadd.f32 %v7711_v25, %v3926_v51 }
 0x2e1   : > { %v4087_v8 = vmax.f32 %v4055_v58, 0.0  ;;  %v4058_v62 = vadd.f32 %v8047_v45, %v3962_v22  ;;  %v4059_v61 = vadd.f32 %v8048_v10, %v3963_v31  ;;  %v8049_v12 = vunpack.c.l.bf16 %v7620_v26 }
 0x2e2   : > { %v4088_v24 = vmax.f32 %v4056_v42, 0.0  ;;  %v4089_v44 = vmax.f32 %v4057_v55, 0.0  ;;  %v3888_v57 = vmul.f32 %v7678_v49, %v7658_v6  ;;  %v8050_v37 = vunpack.c.h.bf16 %v7620_v26 }
 0x2e3   : > { %v4060_v56 = vadd.f32 %v8049_v12, %v3964_v20  ;;  %v5103_v39 = vpack.c.bf16 %v4087_v8, %v4086_v17  ;;  %v4090_v16 = vmax.f32 %v4058_v62, 0.0  ;;  %v4091_v2 = vmax.f32 %v4059_v61, 0.0  ;;  %v8057_v20 = vld [vmem:[#allocation27_spill] sm:$0xff] }
 0x2e4   : > { %v4061_v27 = vadd.f32 %v8050_v37, %v3965_v3  ;;  %v5108_v7 = vpack.c.bf16 %v4089_v44, %v4088_v24  ;;  %v3889_v43 = vmul.f32 %v7678_v49, %v7661_v4  ;;  %v3927_v40 = vmul.f32 %v7690_v11, %v3888_v57 }
 0x2e5   : > { %v4092_v50 = vmax.f32 %v4060_v56, 0.0  ;;  %5192 = vst [vmem:[%s6362_s22 + $0x40] sm:$0xff] %v5103_v39   ;;  %v5113_v19 = vpack.c.bf16 %v4091_v2, %v4090_v16  ;;  %v3890_v6 = vmul.f32 %v7678_v49, %v7669_v41  ;;  %v3891_v54 = vmul.f32 %v7678_v49, %v7672_v9 }
 0x2e6   : > { %v4093_v5 = vmax.f32 %v4061_v27, 0.0  ;;  %5193 = vst [vmem:[%s6362_s22 + $0x48] sm:$0xff] %v5108_v7   ;;  %v3928_v26 = vmul.f32 %v7690_v11, %v3889_v43  ;;  %v3966_v0 = vadd.f32 %v7711_v25, %v3927_v40  ;;  %v3892_v4 = vmul.f32 %v7678_v49, %v7681_v13 }
 0x2e7   : > { %v3893_v63 = vmul.f32 %v7678_v49, %v7684_v53  ;;  %5194 = vst [vmem:[%s6362_s22 + $0x50] sm:$0xff] %v5113_v19   ;;  %v3929_v52 = vmul.f32 %v7690_v11, %v3890_v6  ;;  %v3930_v41 = vmul.f32 %v7690_v11, %v3891_v54  ;;  %v3894_v9 = vmul.f32 %v7678_v49, %v7693_v60 }
 0x2e8   : > { %v5118_v35 = vpack.c.bf16 %v4093_v5, %v4092_v50  ;;  %v3967_v29 = vadd.f32 %v7711_v25, %v3928_v26  ;;  %v8051_v23 = vunpack.c.l.bf16 %v7636_v14  ;;  %v3931_v1 = vmul.f32 %v7690_v11, %v3892_v4 }
 0x2e9   : > { %v3932_v13 = vmul.f32 %v7690_v11, %v3893_v63  ;;  %v3968_v53 = vadd.f32 %v7711_v25, %v3929_v52  ;;  %v3969_v21 = vadd.f32 %v7711_v25, %v3930_v41  ;;  %v3895_v48 = vmul.f32 %v7678_v49, %v7696_v38 }
 0x2ea   : > { %v4062_v30 = vadd.f32 %v8051_v23, %v3966_v0  ;;  %5195 = vst [vmem:[%s6362_s22 + $0x58] sm:$0xff] %v5118_v35   ;;  %v3933_v33 = vmul.f32 %v7690_v11, %v3894_v9  ;;  %v8052_v60 = vunpack.c.h.bf16 %v7636_v14  ;;  %v3970_v32 = vadd.f32 %v7711_v25, %v3931_v1 }
 0x2eb   : > { %v3971_v59 = vadd.f32 %v7711_v25, %v3932_v13  ;;  %v8053_v46 = vunpack.c.l.bf16 %v7644_v15  ;;  %v8054_v22 = vunpack.c.h.bf16 %v7644_v15  ;;  %v3934_v51 = vmul.f32 %v7690_v11, %v3895_v48 }
 0x2ec   : > { %v4063_v28 = vadd.f32 %v8052_v60, %v3967_v29  ;;  %v4094_v36 = vmax.f32 %v4062_v30, 0.0  ;;  %v3972_v49 = vadd.f32 %v7711_v25, %v3933_v33  ;;  %v8055_v14 = vunpack.c.l.bf16 %v7651_v47 }
 0x2ed   : > { %v4064_v58 = vadd.f32 %v8053_v46, %v3968_v53  ;;  %v4065_v31 = vadd.f32 %v8054_v22, %v3969_v21  ;;  %v8056_v34 = vunpack.c.h.bf16 %v7651_v47  ;;  %v3973_v15 = vadd.f32 %v7711_v25, %v3934_v51 }
 0x2ee   : > { %v4095_v38 = vmax.f32 %v4063_v28, 0.0  ;;  %v4066_v17 = vadd.f32 %v8055_v14, %v3970_v32  ;;  %v8058_v8 = vunpack.c.l.bf16 %v8057_v20  ;;  %v8059_v3 = vunpack.c.h.bf16 %v8057_v20 }
 0x2ef   : > { %v4067_v42 = vadd.f32 %v8056_v34, %v3971_v59  ;;  %v4096_v18 = vmax.f32 %v4064_v58, 0.0  ;;  %v4097_v55 = vmax.f32 %v4065_v31, 0.0 }
 0x2f0   : > { %v4068_v45 = vadd.f32 %v8058_v8, %v3972_v49  ;;  %v5123_v11 = vpack.c.bf16 %v4095_v38, %v4094_v36  ;;  %v4098_v62 = vmax.f32 %v4066_v17, 0.0  ;;  %v4069_v24 = vadd.f32 %v8059_v3, %v3973_v15 }
 0x2f1   : > { %v4099_v10 = vmax.f32 %v4067_v42, 0.0  ;;  %v5128_v61 = vpack.c.bf16 %v4097_v55, %v4096_v18 }
 0x2f2   : > { %v4100_v44 = vmax.f32 %v4068_v45, 0.0  ;;  %5196 = vst [vmem:[%s6362_s22 + $0x60] sm:$0xff] %v5123_v11   ;;  %v4101_v12 = vmax.f32 %v4069_v24, 0.0 }
 0x2f3   : > { %v5133_v47 = vpack.c.bf16 %v4099_v10, %v4098_v62  ;;  %5197 = vst [vmem:[%s6362_s22 + $0x68] sm:$0xff] %v5128_v61  }
 0x2f4   : > { %v5138_v56 = vpack.c.bf16 %v4101_v12, %v4100_v44 }
 0x2f5   : > { %5198 = vst [vmem:[%s6362_s22 + $0x70] sm:$0xff] %v5133_v47  }
 0x2f6   : > { %5199 = vst [vmem:[%s6362_s22 + $0x78] sm:$0xff] %v5138_v56  }
 0x2f7 PF: > { %s4851_s21 = sshll.u32 %s6345_s23, 11  ;;  %s4277_s17 = sshll.u32 %s6362_s22, 4  ;;  %s7920_s17 = int_to_ptr.vmem [resolvable:$true] %s4277_s17 }
 0x2f8   : > { %s7917_s13 = scalar_lea.hbm %s7982_s7, %s4851_s21  ;;  %s8060_s20 = sand.u32 1, %s6157_s25  }
 0x2f9   : > { %s7924_s28 = scalar_lea.sflag [#allocation6], %s8060_s20  ;;  %s6081_s27 = scalar_lea.vmem %s7920_s17, 2048 }
 0x2fa   : > { %p6082_p9 = scmp.ne.s32.totalorder %s7920_s17, %s6081_s27  ;;  %p8061_p12 = scmp.ne.s32.totalorder %s7994_s15, 0 }
 0x2fb   : > { %s6186_s23 = smov [#allocation10]  }
 0x2fc   : > { %p6083_p13 = pnand %p6082_p9, %p8061_p12  ;;  %s6085_s14 = sshll.u32 %s6186_s23, 4  ;;  %s6086_s14 = int_to_ptr.vmem [resolvable:$false] %s6085_s14 }
 0x2fd   : > { %s6087_s5 = scalar_lea.vmem %s6086_s14, 4096  ;;  %p6088_p3 = scmp.lt.s32.totalorder %s7920_s17, %s6086_s14 }
 0x2fe   : > { %p6084_p1 = pneg %p6083_p13  ;;  %p6089_p4 = scmp.lt.s32.totalorder %s6087_s5, %s6081_s27 }
 0x300   : > { %p6090_p5 = por %p6089_p4, %p6088_p3 }
 0x302   : > { %p6091_p6 = pnand %p6090_p5, %p6084_p1 }
 0x304   : > { %6094 = shalt.err (!%p6091_p6)
}
 0x305   : > { %s6095_s22 = scalar_lea.hbm %s7917_s13, 2048  ;;  %s6099_s12 = scalar_lea.hbm %s7982_s7, 4096 }
 0x306   : > { %p6096_p8 = scmp.ne.s32.totalorder %s7917_s13, %s6095_s22  ;;  %p6100_p0 = scmp.lt.s32.totalorder %s7917_s13, %s7982_s7 }
 0x307   : > { %p6101_p2 = scmp.lt.s32.totalorder %s6099_s12, %s6095_s22 }
 0x308   : > { %p6097_p10 = pnand %p6096_p8, %p8061_p12 }
 0x309   : > { %p6102_p7 = por %p6101_p2, %p6100_p0 }
 0x30a   : > { %p6098_p11 = pneg %p6097_p10 }
 0x30c   : > { %p6103_p9 = pnand %p6102_p7, %p6098_p11 }
 0x30e   : > { %6106 = shalt.err (!%p6103_p9)
}
 0x30f   : > { %s6187_s9 = smov 64   ;;  %s6188_s20 = smov 4  }
 0x310   : > { %5744 = dma.vmem_to_hbm [thread:$0]  (%p8061_p12), %s7920_s17, 2048, %s7917_s13, %s7924_s28, %s6187_s9, %s6187_s9, %s6188_s20  }
 0x311 PF: > { %p5761_p13 = scmp.ge.s32.totalorder %s6181_s8, 2  ;;  %s4292_s27 = sand.u32 1, %s6153_s24  }
 0x312   : > { %p8062_p1 = scmp.ne.s32.totalorder %s7996_s16, 0  ;;  %s4293_s23 = scalar_lea.sflag [#allocation6], %s4292_s27 }
 0x314   : > { %p5754_p3 = pnand %p5761_p13, %p8062_p1 }
 0x316   : > { %p5755_p4 = pneg %p5754_p3 }
 0x318   : > { %6148 = dma.done.wait (%p5755_p4), %s4293_s23, 2048  }
 0x319   : > { %6150 = vsyncadd (%p5755_p4), %s4293_s23, 4294965248  ;;  %s22_s8 = sadd.s32 1, %s6181_s8   ;;  %s8063_s15 = sld [smem:[#allocation14_spill]] }
 0x31a   : > { %p19_p5 = scmp.ge.s32.totalorder %s22_s8, 6   ;;  %s8064_s13 = sld [smem:[#allocation15_spill]] }
 0x31b   : > { %s8065_s24 = smov %s6157_s25  ;;  %s8066_s25 = smov %s6161_s26 }
 0x31c   : > { %s8067_s26 = smov %s6311_s10  ;;  %s8068_s27 = smov %s6173_s29 }
 0x31d   : > { %s8069_s28 = smov %s6177_s30  ;;  %21 = sbr.rel (!%p19_p5) target bundleno = 9 (0x9), region = 113 }
 0x31f   : > { %s8070_s29 = smov %s8063_s15 }
 0x320   : > { %s8071_s30 = smov %s8064_s13 }
 0x322   :  { %4298 = vsyncpa [#allocation6], 1 }
 0x323   :  { %4300 = vsyncpa [#allocation6 + $0x1], 1 }
 0x324   :  { %4301 = vsyncpa [#allocation7], 1 }
 0x325   :  { %4303 = vsyncpa [#allocation7 + $0x1], 1 }
 0x326   :  { %4304 = vsyncpa [#allocation9], 1 }

// kernel: basic_block_forward.2
= control target key start
LH: loop header
LB: loop body
LE: loop exit
PB: predicated region body
PF: predicated region fallthrough
CT: control target
= control target key end

     0   :  { %11 = vsyncpa [#allocation6], 0  ;;  %s7298_s0 = inlined_call_operand.vmem [shape: bf16[2,16,16,128], index: 0, kind: input, shape index: {}]   ;;  %s7299_s1 = inlined_call_operand.vmem [shape: bf16[1152,128], index: 1, kind: input, shape index: {}]   ;;  %s7300_s2 = inlined_call_operand.vmem [shape: f32[1,128], index: 2, kind: input, shape index: {}]   ;;  %s7301_s3 = inlined_call_operand.vmem [shape: f32[1,128], index: 3, kind: input, shape index: {}]   ;;  %s7302_s4 = inlined_call_operand.vmem [shape: f32[2], index: 4, kind: input, shape index: {}]   ;;  %s7303_s5 = inlined_call_operand.vmem [shape: f32[2], index: 5, kind: input, shape index: {}]   ;;  %s7304_s6 = inlined_call_operand.vmem [shape: bf16[2,16,16,128], index: 6, kind: output, shape index: {}]  }
   0x1   :  { %12 = vsyncpa [#allocation8], 0  ;;  %s5874_s21 = smov 0   ;;  %s5876_s22 = smov 0  }
   0x2   :  { %s5878_s23 = smov 0   ;;  %s5880_s24 = smov 0  }
   0x3   :  { %s5882_s25 = smov 0  }
   0x4 LB: > { %s4216_s26 = sadd.s32 4294967295, %s5834_s25   ;;  %s27_s27 = sadd.s32 1, %s5826_s23  ;;  %s5834_s25 = sphi %s5882_s25, %s18_s25   ;;  %s5830_s24 = sphi %s5880_s24, %s7342_s24   ;;  %s5826_s23 = sphi %s5878_s23, %s7341_s23   ;;  %s5822_s22 = sphi %s5876_s22, %s7340_s22   ;;  %s5818_s21 = sphi %s5874_s21, %s7339_s21  }
   0x5   : > { %p28_p0 = scmp.ge.s32.totalorder %s27_s27, 2  ;;  %s30_s28 = sadd.s32 1, %s5830_s24 }
   0x6   : > { %p4218_p1 = scmp.ge.s32.totalorder %s5834_s25, 1  ;;  %p200_p2 = scmp.lt.s32.totalorder %s5834_s25, 5 }
   0x7   : > { %s7344_s27 = smov (%p28_p0, %s27_s27), 0  ;;  %s7346_s28 = smov (!%p28_p0, %s30_s28), %s5830_s24 }
   0x8   : > { %p5907_p3 = pnand %p4218_p1, %p200_p2  ;;  %p32_p4 = scmp.ge.s32.totalorder %s7346_s28, 2 }
   0x9   : > { %p5911_p5 = scmp.eq.s32.totalorder %s4216_s26, 0  ;;  %s222_s9 = sshll.u32 %s7302_s4, 4  ;;  %s223_s9 = int_to_ptr.vmem [resolvable:$true] %s222_s9 }
   0xa   : > { %s7308_s29 = scalar_select %p5907_p3, 1, 0 }
   0xb   : > { %s7309_s30 = scalar_select %p5911_p5, 1, 0 }
   0xc   : > { %p5484_p6 = pneg %p5907_p3  ;;  %s7348_s28 = smov (%p32_p4, %s7346_s28), 0 }
   0xd   : > { %s233_s13 = sshll.u32 %s7303_s5, 4  ;;  %s5758_s14 = scalar_lea.vmem %s223_s9, 16  ;;  %s234_s13 = int_to_ptr.vmem [resolvable:$true] %s233_s13 }
   0xe   : > { %p5924_p7 = pnand %p5911_p5, %p5484_p6  ;;  %p5759_p8 = scmp.ne.s32.totalorder %s223_s9, %s5758_s14 }
   0xf   : > { %p5766_p12 = scmp.lt.s32.totalorder %s223_s9, %s223_s9  ;;  %p5767_p13 = scmp.lt.s32.totalorder %s5758_s14, %s5758_s14 }
  0x10   : > { %p5760_p9 = pneg %p5924_p7 }
  0x11   : > { %p5768_p0 = por %p5767_p13, %p5766_p12 }
  0x12   : > { %p5761_p10 = pnand %p5760_p9, %p5759_p8 }
  0x14   : > { %p5762_p11 = pneg %p5761_p10 }
  0x16   : > { %p5769_p1 = pnand %p5768_p0, %p5762_p11 }
  0x18   : > { %5772 = shalt.err (!%p5769_p1)
}
  0x19   : > { %s5836_s15 = smov [#allocation5]   ;;  %s5773_s16 = scalar_lea.vmem %s234_s13, 16 }
  0x1a   : > { %5487 = dma.vmem_to_smem (!%p5924_p7), %s223_s9, 16, %s5836_s15, [#allocation6]  }
  0x1b   : > { %p5774_p2 = scmp.ne.s32.totalorder %s234_s13, %s5773_s16  ;;  %p5781_p5 = scmp.lt.s32.totalorder %s234_s13, %s234_s13 }
  0x1c   : > { %p5782_p3 = scmp.lt.s32.totalorder %s5773_s16, %s5773_s16 }
  0x1d   : > { %p5776_p4 = pnand %p5774_p2, %p5760_p9 }
  0x1e   : > { %p5783_p8 = por %p5782_p3, %p5781_p5 }
  0x1f   : > { %p5777_p6 = pneg %p5776_p4 }
  0x21   : > { %p5784_p10 = pnand %p5783_p8, %p5777_p6 }
  0x23   : > { %5787 = shalt.err (!%p5784_p10)
}
  0x24   : > { %s5837_s17 = smov [#allocation7]   ;;  %p7311_p11 = scmp.ne.s32.totalorder %s7308_s29, 0 }
  0x25   : > { %5490 = dma.vmem_to_smem (!%p5924_p7), %s234_s13, 16, %s5837_s17, [#allocation8]  }
  0x26   : > { %260 = sbr.rel (%p7311_p11) target bundleno = 730 (0x2da), region = 44  ;;  %p7312_p12 = scmp.ne.s32.totalorder (!%p7311_p11), %s7309_s30, 0 }
  0x2b   : > { %5809 = dma.done.wait (%p7312_p12), [#allocation6], 16  }
  0x2c   : > { %5811 = vsyncadd (%p7312_p12), [#allocation6], 4294967280 }
  0x2d   : > { %5813 = dma.done.wait (%p7312_p12), [#allocation8], 16  }
  0x2e   : > { %5815 = vsyncadd (%p7312_p12), [#allocation8], 4294967280 }
  0x2f   : > { %270 = sfence }
  0x30   : > { %s299_s18 = ssub.s32 1, %s5822_s22  ;;  %s310_s19 = smul.u32 %s5818_s21, %s5822_s22 }
  0x31   : > { %s300_s20 = smul.u32 %s5818_s21, %s299_s18  ;;  %p318_p3 = scmp.eq.s32.totalorder %s5822_s22, 0 }
  0x32   : > { %p311_p5 = scmp.lt.s32.totalorder %s310_s19, 1  ;;  %p319_p7 = scmp.eq.s32.totalorder %s5818_s21, 0 }
  0x33   : > { %s301_s26 = sadd.s32 %s5822_s22, %s300_s20 }
  0x34   : > { %p302_p9 = scmp.lt.s32.totalorder %s301_s26, 1  ;;  %p320_p13 = pnand %p319_p7, %p318_p3 }
  0x35   : > { %s7350_s19 = smov (!%p311_p5, %s310_s19), 1 }
  0x36   : > { %s7352_s26 = smov (!%p302_p9, %s301_s26), 1  ;;  %s4604_s29 = sshll.u32 %s7350_s19, 7 }
  0x37   : > { %s4603_s30 = sshll.u32 %s7352_s26, 7  ;;  %s5957_s9 = scalar_lea.vmem %s7304_s6, %s4604_s29 }
  0x38   : > { %s5962_s12 = scalar_lea.vmem %s7298_s0, %s4603_s30  ;;  %323 = sbr.rel (%p320_p13) target bundleno = 98 (0x62), region = 56 }
  0x3d   : > { %v5838_v0 = vmov 0  }
  0x3e   : > { %324 = vst [vmem:[#allocation4] sm:$0xff] %v5838_v0  ;;  %325 = vst [vmem:[#allocation4 + $0x8] sm:$0xf] %v5838_v0 }
  0x3f   : > { %326 = vst [vmem:[#allocation4 + $0xc] sm:$0xff] %v5838_v0  ;;  %327 = vst [vmem:[#allocation4 + $0x14] sm:$0xf] %v5838_v0 }
  0x40   : > { %328 = vst [vmem:[#allocation4 + $0x18] sm:$0xff] %v5838_v0  ;;  %329 = vst [vmem:[#allocation4 + $0x20] sm:$0xf] %v5838_v0 }
  0x41   : > { %330 = vst [vmem:[#allocation4 + $0x24] sm:$0xff] %v5838_v0  ;;  %331 = vst [vmem:[#allocation4 + $0x2c] sm:$0xf] %v5838_v0 }
  0x42   : > { %332 = vst [vmem:[#allocation4 + $0x30] sm:$0xff] %v5838_v0  ;;  %333 = vst [vmem:[#allocation4 + $0x38] sm:$0xf] %v5838_v0 }
  0x43   : > { %334 = vst [vmem:[#allocation4 + $0x3c] sm:$0xff] %v5838_v0  ;;  %335 = vst [vmem:[#allocation4 + $0x44] sm:$0xf] %v5838_v0 }
  0x44   : > { %336 = vst [vmem:[#allocation4 + $0x48] sm:$0xff] %v5838_v0  ;;  %337 = vst [vmem:[#allocation4 + $0x50] sm:$0xf] %v5838_v0 }
  0x45   : > { %338 = vst [vmem:[#allocation4 + $0x54] sm:$0xff] %v5838_v0  ;;  %339 = vst [vmem:[#allocation4 + $0x5c] sm:$0xf] %v5838_v0 }
  0x46   : > { %340 = vst [vmem:[#allocation4 + $0x60] sm:$0xff] %v5838_v0  ;;  %341 = vst [vmem:[#allocation4 + $0x68] sm:$0xf] %v5838_v0 }
  0x47   : > { %342 = vst [vmem:[#allocation4 + $0x6c] sm:$0xff] %v5838_v0  ;;  %343 = vst [vmem:[#allocation4 + $0x74] sm:$0xf] %v5838_v0 }
  0x48   : > { %344 = vst [vmem:[#allocation4 + $0x78] sm:$0xff] %v5838_v0  ;;  %345 = vst [vmem:[#allocation4 + $0x80] sm:$0xf] %v5838_v0 }
  0x49   : > { %346 = vst [vmem:[#allocation4 + $0x84] sm:$0xff] %v5838_v0  ;;  %347 = vst [vmem:[#allocation4 + $0x8c] sm:$0xf] %v5838_v0 }
  0x4a   : > { %348 = vst [vmem:[#allocation4 + $0x90] sm:$0xff] %v5838_v0  ;;  %349 = vst [vmem:[#allocation4 + $0x98] sm:$0xf] %v5838_v0 }
  0x4b   : > { %350 = vst [vmem:[#allocation4 + $0x9c] sm:$0xff] %v5838_v0  ;;  %351 = vst [vmem:[#allocation4 + $0xa4] sm:$0xf] %v5838_v0 }
  0x4c   : > { %352 = vst [vmem:[#allocation4 + $0xa8] sm:$0xff] %v5838_v0  ;;  %353 = vst [vmem:[#allocation4 + $0xb0] sm:$0xf] %v5838_v0 }
  0x4d   : > { %354 = vst [vmem:[#allocation4 + $0xb4] sm:$0xff] %v5838_v0  ;;  %355 = vst [vmem:[#allocation4 + $0xbc] sm:$0xf] %v5838_v0 }
  0x4e   : > { %356 = vst [vmem:[#allocation4 + $0xc0] sm:$0xff] %v5838_v0  ;;  %357 = vst [vmem:[#allocation4 + $0xc8] sm:$0xf] %v5838_v0 }
  0x4f   : > { %358 = vst [vmem:[#allocation4 + $0xcc] sm:$0xff] %v5838_v0  ;;  %359 = vst [vmem:[#allocation4 + $0xd4] sm:$0xf] %v5838_v0 }
  0x50   : > { %360 = vst [vmem:[#allocation4 + $0xd8] sm:$0xff] %v5838_v0  ;;  %361 = vst [vmem:[#allocation4 + $0xe0] sm:$0xf] %v5838_v0 }
  0x51   : > { %362 = vst [vmem:[#allocation4 + $0xe4] sm:$0xff] %v5838_v0  ;;  %363 = vst [vmem:[#allocation4 + $0xec] sm:$0xf] %v5838_v0 }
  0x52   : > { %364 = vst [vmem:[#allocation4 + $0xf0] sm:$0xff] %v5838_v0  ;;  %365 = vst [vmem:[#allocation4 + $0xf8] sm:$0xf] %v5838_v0 }
  0x53   : > { %366 = vst [vmem:[#allocation4 + $0xfc] sm:$0xff] %v5838_v0  ;;  %367 = vst [vmem:[#allocation4 + $0x104] sm:$0xf] %v5838_v0 }
  0x54   : > { %368 = vst [vmem:[#allocation4 + $0x108] sm:$0xff] %v5838_v0  ;;  %369 = vst [vmem:[#allocation4 + $0x110] sm:$0xf] %v5838_v0 }
  0x55   : > { %370 = vst [vmem:[#allocation4 + $0x114] sm:$0xff] %v5838_v0  ;;  %371 = vst [vmem:[#allocation4 + $0x11c] sm:$0xf] %v5838_v0 }
  0x56   : > { %372 = vst [vmem:[#allocation4 + $0x120] sm:$0xff] %v5838_v0  ;;  %373 = vst [vmem:[#allocation4 + $0x128] sm:$0xf] %v5838_v0 }
  0x57   : > { %374 = vst [vmem:[#allocation4 + $0x12c] sm:$0xff] %v5838_v0  ;;  %375 = vst [vmem:[#allocation4 + $0x134] sm:$0xf] %v5838_v0 }
  0x58   : > { %376 = vst [vmem:[#allocation4 + $0x138] sm:$0xff] %v5838_v0  ;;  %377 = vst [vmem:[#allocation4 + $0x140] sm:$0xf] %v5838_v0 }
  0x59   : > { %378 = vst [vmem:[#allocation4 + $0x144] sm:$0xff] %v5838_v0  ;;  %379 = vst [vmem:[#allocation4 + $0x14c] sm:$0xf] %v5838_v0 }
  0x5a   : > { %380 = vst [vmem:[#allocation4 + $0x150] sm:$0xff] %v5838_v0  ;;  %381 = vst [vmem:[#allocation4 + $0x158] sm:$0xf] %v5838_v0 }
  0x5b   : > { %382 = vst [vmem:[#allocation4 + $0x15c] sm:$0xff] %v5838_v0  ;;  %383 = vst [vmem:[#allocation4 + $0x164] sm:$0xf] %v5838_v0 }
  0x5c   : > { %384 = vst [vmem:[#allocation4 + $0x168] sm:$0xff] %v5838_v0  ;;  %385 = vst [vmem:[#allocation4 + $0x170] sm:$0xf] %v5838_v0 }
  0x5d   : > { %386 = vst [vmem:[#allocation4 + $0x174] sm:$0xff] %v5838_v0  ;;  %387 = vst [vmem:[#allocation4 + $0x17c] sm:$0xf] %v5838_v0 }
  0x5e   : > { %388 = vst [vmem:[#allocation4 + $0x180] sm:$0xff] %v5838_v0  ;;  %389 = vst [vmem:[#allocation4 + $0x188] sm:$0xf] %v5838_v0 }
  0x5f   : > { %390 = vst [vmem:[#allocation4 + $0x18c] sm:$0xff] %v5838_v0  ;;  %391 = vst [vmem:[#allocation4 + $0x194] sm:$0xf] %v5838_v0 }
  0x60   : > { %392 = vst [vmem:[#allocation4 + $0x198] sm:$0xff] %v5838_v0  ;;  %393 = vst [vmem:[#allocation4 + $0x1a0] sm:$0xf] %v5838_v0 }
  0x61   : > { %394 = vst [vmem:[#allocation4 + $0x1a4] sm:$0xff] %v5838_v0  ;;  %395 = vst [vmem:[#allocation4 + $0x1ac] sm:$0xf] %v5838_v0 }
  0x62 PF: > { %p4229_p0 = scmp.ne.s32.totalorder %s5822_s22, 0 }
  0x64   : > { %398 = sbr.rel (%p4229_p0) target bundleno = 644 (0x284), region = 60 }
  0x69   : > { %v5538_v1 = vld [vmem:[%s7299_s1 + $0x78] sm:$0xff]   ;;  %v5540_v3 = vld [vmem:[%s7299_s1 + $0x70] sm:$0xff]   ;;  %v5542_v5 = vld [vmem:[%s7299_s1 + $0x68] sm:$0xff]   ;;  %vm639_vm0 = vcmask 1040384   ;;  %vm640_vm1 = vsmask.f32 256 }
  0x6a   : > { %v5539_v2 = vld [vmem:[%s7299_s1 + $0x38] sm:$0xff]   ;;  %4940 = vmatprep.subr.bf16.mxu0 %v5538_v1  ;;  %5460 = vmatprep.subr.bf16.mxu1 %v5538_v1  ;;  %v5541_v4 = vld [vmem:[%s7299_s1 + $0x30] sm:$0xff]   ;;  %v5543_v6 = vld [vmem:[%s7299_s1 + $0x28] sm:$0xff]   ;;  %vm884_vm3 = vsmask.f32 7424  ;;  %vm883_vm4 = vcmask 1047552  }
  0x6b   : > { %4941 = vmatpush3.bf16.msra.mxu0 %v5539_v2  ;;  %5468 = vmatpush3.bf16.msra.mxu1 %v5539_v2  ;;  %v5544_v7 = vld [vmem:[%s7299_s1 + $0x60] sm:$0xff]   ;;  %v5546_v9 = vld [vmem:[%s7299_s1 + $0x58] sm:$0xff]   ;;  %v5548_v11 = vld [vmem:[%s7299_s1 + $0x50] sm:$0xff]   ;;  %s4637_s26 = sshll.u32 %s5818_s21, 7  ;;  %s4526_s30 = sshll.u32 %s5818_s21, 1 }
  0x6c   : > { %4942 = vmatprep.subr.bf16.mxu0 %v5540_v3  ;;  %5461 = vmatprep.subr.bf16.mxu1 %v5540_v3  ;;  %v5545_v8 = vld [vmem:[%s7299_s1 + $0x20] sm:$0xff]   ;;  %v5547_v10 = vld [vmem:[%s7299_s1 + $0x18] sm:$0xff]   ;;  %v5556_v12 = vld [vmem:[#allocation4 + $0x4] ss:$12 sps:$4 sm:$0xff]   ;;  %s6973_s29 = scalar_lea.vmem [#allocation3], %s4637_s26  ;;  %s3499_s7 = scalar_lea.vmem [#allocation2], %s4526_s30 }
  0x6d   : > { %v421_v13 = vld [vmem:[%s5962_s12 + $0x58] sm:$0xf]  ;;  %v422_v14 = vld [vmem:[%s5962_s12 + $0x5c] sm:$0xf]  ;;  %v5549_v15 = vld [vmem:[%s7299_s1 + $0x10] sm:$0xff]   ;;  %2615 = vmatprep.mubr.bf16.mxu0 %v5556_v12 }
  0x6e   : > { %v6075_v16 = vcombine.low %v421_v13, %v422_v14  ;;  %825 = vst [vmem:[#allocation4 + $0x124] sm:$0xf] %v421_v13  ;;  %826 = vst [vmem:[#allocation4 + $0x130] sm:$0xf] %v422_v14  ;;  %v5550_v17 = vld [vmem:[%s7299_s1 + $0x48] sm:$0xff]   ;;  %v5552_v23 = vld [vmem:[%s7299_s1 + $0x40] sm:$0xff]  }
  0x6f   : > { %4943 = vmatpush3.bf16.msra.mxu0 %v5541_v4  ;;  %5469 = vmatpush3.bf16.msra.mxu1 %v5541_v4  ;;  %v5551_v20 = vld [vmem:[%s7299_s1 + $0x8] sm:$0xff]   ;;  %vm6088_vm2 = vmand %vm639_vm0, %vm640_vm1  ;;  %v399_v25 = vld [vmem:[%s5962_s12] sm:$0xf] }
  0x70   : > { %4944 = vmatprep.subr.bf16.mxu0 %v5542_v5  ;;  %5462 = vmatprep.subr.bf16.mxu1 %v5542_v5  ;;  %v589_v18 = vshrl.u32 %v6075_v16, 16  ;;  %v592_v19 = vshll.u32 %v6075_v16, 16  ;;  %v400_v26 = vld [vmem:[%s5962_s12 + $0x4] sm:$0xf]  ;;  %803 = vst [vmem:[#allocation4 + $0x1c] sm:$0xf] %v399_v25  ;;  %vm6191_vm5 = vmand %vm883_vm4, %vm884_vm3 }
  0x71   : > { %v6099_v27 = vcombine.low %v399_v25, %v400_v26  ;;  %804 = vst [vmem:[#allocation4 + $0x28] sm:$0xf] %v400_v26  ;;  %v423_v28 = vld [vmem:[%s5962_s12 + $0x60] sm:$0xf]  ;;  %v424_v29 = vld [vmem:[%s5962_s12 + $0x64] sm:$0xf] }
  0x72   : > { %v591_v21 = vrot.slane %v589_v18, 7  ;;  %v5553_v30 = vld [vmem:[%s7299_s1] sm:$0xff]   ;;  %v6108_v32 = vcombine.low %v423_v28, %v424_v29  ;;  %827 = vst [vmem:[#allocation4 + $0x13c] sm:$0xf] %v423_v28  ;;  %828 = vst [vmem:[#allocation4 + $0x148] sm:$0xf] %v424_v29 }
  0x73   : > { %4945 = vmatpush3.bf16.msra.mxu0 %v5543_v6  ;;  %5470 = vmatpush3.bf16.msra.mxu1 %v5543_v6  ;;  %v5561_v35 = vld [vmem:[%s7299_s1 + $0xf8] sm:$0xff]   ;;  %v512_v37 = vshrl.u32 %v6099_v27, 16  ;;  %v515_v38 = vshll.u32 %v6099_v27, 16  ;;  %v5554_v39 = vld [vmem:[#allocation4] ss:$12 sps:$4 sm:$0xff]   ;;  %v5602_v29 = vld [vmem:[%s7299_s1 + $0x168] sm:$0xff]  }
  0x74   : > { %4946 = vmatprep.subr.bf16.mxu0 %v5544_v7  ;;  %5463 = vmatprep.subr.bf16.mxu1 %v5544_v7  ;;  %v594_v24 = vor.u32 %v592_v19, %v591_v21  ;;  %v5562_v36 = vld [vmem:[%s7299_s1 + $0x178] sm:$0xff]   ;;  %v596_v40 = vshrl.u32 %v6108_v32, 16  ;;  %v599_v41 = vshll.u32 %v6108_v32, 16  ;;  %v5578_v46 = vld [vmem:[%s7299_s1 + $0x170] sm:$0xff]   ;;  %v401_v48 = vld [vmem:[%s5962_s12 + $0x8] sm:$0xf] }
  0x75   : > { %v514_v42 = vrot.slane %v512_v37, 7  ;;  %v5564_v43 = vld [vmem:[%s7299_s1 + $0x138] sm:$0xff]   ;;  %v402_v49 = vld [vmem:[%s5962_s12 + $0xc] sm:$0xf]  ;;  %v425_v50 = vld [vmem:[%s5962_s12 + $0x68] sm:$0xf] }
  0x76   : > { %v653_v31 = vsel %vm6088_vm2, 0, %v594_v24  ;;  %v598_v44 = vrot.slane %v596_v40, 7  ;;  %v6137_v52 = vcombine.low %v401_v48, %v402_v49  ;;  %805 = vst [vmem:[#allocation4 + $0x34] sm:$0xf] %v401_v48  ;;  %806 = vst [vmem:[#allocation4 + $0x40] sm:$0xf] %v402_v49 }
  0x77   : > { %4947 = vmatpush3.bf16.msra.mxu0 %v5545_v8  ;;  %5471 = vmatpush3.bf16.msra.mxu1 %v5545_v8  ;;  %v4268_v33 = vcombine.low %v653_v31, %v653_v31  ;;  %v4269_v34 = vcombine.high %v653_v31, %v653_v31  ;;  %v517_v45 = vor.u32 %v515_v38, %v514_v42  ;;  %v426_v53 = vld [vmem:[%s5962_s12 + $0x6c] sm:$0xf]  ;;  %v5580_v57 = vld [vmem:[%s7299_s1 + $0x130] sm:$0xff]   ;;  %v5563_v59 = vld [vmem:[%s7299_s1 + $0xb8] sm:$0xff]   ;;  %v835_v5 = vrot.slane %v515_v38, 1 }
  0x78   : > { %4948 = vmatprep.subr.bf16.mxu0 %v5546_v9  ;;  %5464 = vmatprep.subr.bf16.mxu1 %v5546_v9  ;;  %v601_v47 = vor.u32 %v599_v41, %v598_v44  ;;  %829 = vst [vmem:[#allocation4 + $0x154] sm:$0xf] %v425_v50  ;;  %v6145_v58 = vcombine.low %v425_v50, %v426_v53  ;;  %830 = vst [vmem:[#allocation4 + $0x160] sm:$0xf] %v426_v53  ;;  %v519_v62 = vshrl.u32 %v6137_v52, 16  ;;  %v5565_v6 = vld [vmem:[%s7299_s1 + $0xf0] sm:$0xff]  }
  0x79   : > { %793 = vst [vmem:[#allocation4 + $0x120] sm:$0xf] %v4268_v33  ;;  %794 = vst [vmem:[#allocation4 + $0x12c] sm:$0xf] %v4269_v34  ;;  %v642_v51 = vsel %vm6088_vm2, 0, %v517_v45  ;;  %v522_v63 = vshll.u32 %v6137_v52, 16 }
  0x7a   : > { %v4246_v54 = vcombine.low %v642_v51, %v642_v51  ;;  %v4247_v55 = vcombine.high %v642_v51, %v642_v51  ;;  %v654_v56 = vsel %vm6088_vm2, 0, %v601_v47  ;;  %v603_v1 = vshrl.u32 %v6145_v58, 16  ;;  %v5560_v3 = vld [vmem:[#allocation4 + $0x124] ss:$12 sps:$4 sm:$0xff]   ;;  %v427_v12 = vld [vmem:[%s5962_s12 + $0x70] sm:$0xf] }
  0x7b   : > { %4949 = vmatpush3.bf16.msra.mxu0 %v5547_v10  ;;  %5472 = vmatpush3.bf16.msra.mxu1 %v5547_v10  ;;  %v4270_v60 = vcombine.low %v654_v56, %v654_v56  ;;  %v4271_v61 = vcombine.high %v654_v56, %v654_v56  ;;  %v606_v2 = vshll.u32 %v6145_v58, 16  ;;  %v521_v4 = vrot.slane %v519_v62, 7  ;;  %v5566_v8 = vld [vmem:[%s7299_s1 + $0xb0] sm:$0xff]   ;;  %831 = vst [vmem:[#allocation4 + $0x16c] sm:$0xf] %v427_v12  ;;  %v5576_v31 = vld [vmem:[%s7299_s1 + $0xa8] sm:$0xff]  }
  0x7c   : > { %4950 = vmatprep.subr.bf16.mxu0 %v5548_v11  ;;  %5465 = vmatprep.subr.bf16.mxu1 %v5548_v11  ;;  %771 = vst [vmem:[#allocation4 + $0x18] sm:$0xf] %v4246_v54  ;;  %772 = vst [vmem:[#allocation4 + $0x24] sm:$0xf] %v4247_v55  ;;  %v605_v7 = vrot.slane %v603_v1, 7  ;;  %v5577_v38 = vld [vmem:[%s7299_s1 + $0xe0] sm:$0xff]  }
  0x7d   : > { %795 = vst [vmem:[#allocation4 + $0x138] sm:$0xf] %v4270_v60  ;;  %796 = vst [vmem:[#allocation4 + $0x144] sm:$0xf] %v4271_v61  ;;  %2711 = vmatprep.mubr.bf16.mxu1 %v5560_v3  ;;  %v524_v9 = vor.u32 %v522_v63, %v521_v4  ;;  %v403_v10 = vld [vmem:[%s5962_s12 + $0x10] sm:$0xf] }
  0x7e   : > { %v404_v11 = vld [vmem:[%s5962_s12 + $0x14] sm:$0xf]  ;;  %v608_v13 = vor.u32 %v606_v2, %v605_v7  ;;  %807 = vst [vmem:[#allocation4 + $0x4c] sm:$0xf] %v403_v10  ;;  %v5568_v27 = vld [vmem:[#allocation4 + $0x1c] ss:$12 sps:$4 sm:$0xff]  }
  0x7f   : > { %4951 = vmatpush3.bf16.msra.mxu0 %v5549_v15  ;;  %5473 = vmatpush3.bf16.msra.mxu1 %v5549_v15  ;;  %v6171_v14 = vcombine.low %v403_v10, %v404_v11  ;;  %808 = vst [vmem:[#allocation4 + $0x58] sm:$0xf] %v404_v11  ;;  %v428_v15 = vld [vmem:[%s5962_s12 + $0x74] sm:$0xf]  ;;  %v5579_v54 = vld [vmem:[%s7299_s1 + $0xa0] sm:$0xff]   ;;  %v857_v61 = vrot.slane %v592_v19, 1 }
  0x80   : > { %4952 = vmatprep.subr.bf16.mxu0 %v5550_v17  ;;  %5466 = vmatprep.subr.bf16.mxu1 %v5550_v17  ;;  %v5558_v0 = vld [vmem:[#allocation4 + $0x120] ss:$12 sps:$4 sm:$0xff]   ;;  %v5575_v17 = vld [vmem:[%s7299_s1 + $0xe8] sm:$0xff]   ;;  %v6179_v21 = vcombine.low %v427_v12, %v428_v15  ;;  %832 = vst [vmem:[#allocation4 + $0x178] sm:$0xf] %v428_v15  ;;  %v655_v26 = vsel %vm6088_vm2, 0, %v608_v13 }
  0x81   : > { %v526_v28 = vshrl.u32 %v6171_v14, 16  ;;  %v4272_v33 = vcombine.low %v655_v26, %v655_v26  ;;  %v4273_v34 = vcombine.high %v655_v26, %v655_v26  ;;  %v406_v60 = vld [vmem:[%s5962_s12 + $0x1c] sm:$0xf]  ;;  %v837_v19 = vrot.slane %v522_v63, 1  ;;  %v5592_v52 = vld [vmem:[%s7299_s1 + $0x90] sm:$0xff]   ;;  %v5697_v22 = vld [vmem:[%s7299_s1 + $0x220] sm:$0xff]  }
  0x82   : > { %v613_v42 = vshll.u32 %v6179_v21, 16  ;;  %810 = vst [vmem:[#allocation4 + $0x70] sm:$0xf] %v406_v60  ;;  %v5590_v7 = vld [vmem:[%s7299_s1 + $0x98] sm:$0xff]   ;;  %v408_v26 = vld [vmem:[%s5962_s12 + $0x24] sm:$0xf] }
  0x83   : > { %4953 = vmatpush3.bf16.msra.mxu0 %v5551_v20  ;;  %5474 = vmatpush3.bf16.msra.mxu1 %v5551_v20  ;;  %v643_v20 = vsel %vm6088_vm2, 0, %v524_v9  ;;  %797 = vst [vmem:[#allocation4 + $0x150] sm:$0xf] %v4272_v33  ;;  %798 = vst [vmem:[#allocation4 + $0x15c] sm:$0xf] %v4273_v34  ;;  %v838_v15 = vor.u32 %v837_v19, %v519_v62  ;;  %v5601_v62 = vld [vmem:[%s7299_s1 + $0xc8] sm:$0xff]  }
  0x84   : > { %4954 = vmatprep.subr.bf16.mxu0 %v5552_v23  ;;  %5467 = vmatprep.subr.bf16.mxu1 %v5552_v23  ;;  %v836_v23 = vor.u32 %v835_v5, %v512_v37  ;;  %v4248_v24 = vcombine.low %v643_v20, %v643_v20  ;;  %v4249_v25 = vcombine.high %v643_v20, %v643_v20  ;;  %v5571_v37 = vld [vmem:[#allocation4 + $0x13c] ss:$12 sps:$4 sm:$0xff]   ;;  %v5574_v44 = vld [vmem:[#allocation4 + $0x138] ss:$12 sps:$4 sm:$0xff]   ;;  %v5585_v9 = vld [vmem:[#allocation4 + $0x154] ss:$12 sps:$4 sm:$0xff]  }
  0x85   : > { %v887_v16 = vsel %vm6191_vm5, %v838_v15, 0  ;;  %812 = vst [vmem:[#allocation4 + $0x88] sm:$0xf] %v408_v26  ;;  %v5613_v15 = vld [vmem:[%s7299_s1 + $0x1b8] sm:$0xff]  }
  0x86   : > { %773 = vst [vmem:[#allocation4 + $0x30] sm:$0xf] %v4248_v24  ;;  %774 = vst [vmem:[#allocation4 + $0x3c] sm:$0xf] %v4249_v25  ;;  %v886_v49 = vsel %vm6191_vm5, %v836_v23, 0  ;;  %v858_v23 = vor.u32 %v857_v61, %v589_v18  ;;  %v5614_v24 = vld [vmem:[%s7299_s1 + $0x160] sm:$0xff]  }
  0x87   : > { %4955 = vmatpush3.bf16.msra.mxu0 %v5553_v30  ;;  %5475 = vmatpush3.bf16.msra.mxu1 %v5553_v30  ;;  %v4278_v51 = vcombine.low %v886_v49, %v886_v49  ;;  %v4279_v53 = vcombine.high %v886_v49, %v886_v49  ;;  %v5615_v18 = vld [vmem:[%s7299_s1 + $0x120] sm:$0xff]   ;;  %v5626_v61 = vld [vmem:[%s7299_s1 + $0x158] sm:$0xff]  }
  0x88   : > { %5052 = vmatprep.subr.bf16.mxu1 %v5561_v35  ;;  %5164 = vmatprep.subr.bf16.mxu0 %v5562_v36  ;;  %v529_v35 = vshll.u32 %v6171_v14, 16  ;;  %v610_v36 = vshrl.u32 %v6179_v21, 16  ;;  %v407_v25 = vld [vmem:[%s5962_s12 + $0x20] sm:$0xf]  ;;  %v5708_v30 = vld [vmem:[%s7299_s1 + $0x218] sm:$0xff]  }
  0x89   : > { %1014 = vst [vmem:[#allocation4 + $0x20] sm:$0xf] %v4278_v51  ;;  %1015 = vst [vmem:[#allocation4 + $0x2c] sm:$0xf] %v4279_v53  ;;  %v6273_v34 = vcombine.low %v407_v25, %v408_v26 }
  0x8a   : > { %2616 = vmatmul.mubr.bf16.vlgmr.msra.gmra.mxu0 %v5554_v39  ;;  %2712 = vmatmul.mubr.bf16.vlgmr.msra.gmra.mxu1 %v5558_v0  ;;  %v528_v39 = vrot.slane %v526_v28, 7  ;;  %v612_v45 = vrot.slane %v610_v36, 7  ;;  %v5589_v0 = vld [vmem:[%s7299_s1 + $0xd8] sm:$0xff]   ;;  %v5588_v13 = vld [vmem:[#allocation4 + $0x150] ss:$12 sps:$4 sm:$0xff]  }
  0x8b   : > { %5165 = vmatpush3.bf16.msra.mxu0 %v5564_v43  ;;  %5053 = vmatpush3.bf16.msra.mxu1 %v5563_v59  ;;  %v6206_v43 = vld [vmem:[#allocation4 + $0x18] ss:$12 sps:$4 sm:$0xff]   ;;  %v405_v59 = vld [vmem:[%s5962_s12 + $0x18] sm:$0xf]  ;;  %811 = vst [vmem:[#allocation4 + $0x7c] sm:$0xf] %v407_v25 }
  0x8c   : > { %5166 = vmatprep.subr.bf16.mxu0 %v5578_v46  ;;  %5054 = vmatprep.subr.bf16.mxu1 %v5565_v6  ;;  %v5604_v46 = vld [vmem:[%s7299_s1 + $0x128] sm:$0xff]   ;;  %v531_v47 = vor.u32 %v529_v35, %v528_v39  ;;  %v615_v48 = vor.u32 %v613_v42, %v612_v45  ;;  %v6232_v5 = vcombine.low %v405_v59, %v406_v60  ;;  %v5582_v6 = vld [vmem:[#allocation4 + $0x34] ss:$12 sps:$4 sm:$0xff]   ;;  %v543_v51 = vshll.u32 %v6273_v34, 16  ;;  %v412_v25 = vld [vmem:[%s5962_s12 + $0x34] sm:$0xf] }
  0x8d   : > { %2623 = vmatprep.mubr.bf16.mxu0 %v5568_v27  ;;  %2719 = vmatprep.mubr.bf16.mxu1 %v5571_v37  ;;  %809 = vst [vmem:[#allocation4 + $0x64] sm:$0xf] %v405_v59  ;;  %v6241_v12 = vld [vmem:[#allocation4 + $0x30] ss:$12 sps:$4 sm:$0xff]   ;;  %v5603_v39 = vld [vmem:[%s7299_s1 + $0x88] sm:$0xff]  }
  0x8e   : > { %v644_v50 = vsel %vm6088_vm2, 0, %v531_v47  ;;  %v533_v10 = vshrl.u32 %v6232_v5, 16  ;;  %v536_v11 = vshll.u32 %v6232_v5, 16  ;;  %v897_v47 = vsel %vm6191_vm5, %v858_v23, 0  ;;  %v409_v59 = vld [vmem:[%s5962_s12 + $0x28] sm:$0xf] }
  0x8f   : > { %5167 = vmatpush3.bf16.msra.mxu0 %v5580_v57  ;;  %5055 = vmatpush3.bf16.msra.mxu1 %v5566_v8  ;;  %v4250_v55 = vcombine.low %v644_v50, %v644_v50  ;;  %v4251_v56 = vcombine.high %v644_v50, %v644_v50  ;;  %v656_v57 = vsel %vm6088_vm2, 0, %v615_v48  ;;  %v839_v8 = vrot.slane %v529_v35, 1  ;;  %v410_v60 = vld [vmem:[%s5962_s12 + $0x2c] sm:$0xf]  ;;  %813 = vst [vmem:[#allocation4 + $0x94] sm:$0xf] %v409_v59 }
  0x90   : > { %5168 = vmatprep.subr.bf16.mxu0 %v5602_v29  ;;  %5056 = vmatprep.subr.bf16.mxu1 %v5575_v17  ;;  %v4274_v3 = vcombine.low %v656_v57, %v656_v57  ;;  %v4275_v4 = vcombine.high %v656_v57, %v656_v57  ;;  %v5591_v17 = vld [vmem:[%s7299_s1 + $0xd0] sm:$0xff]   ;;  %v535_v20 = vrot.slane %v533_v10, 7  ;;  %v4281_v29 = vcombine.high %v887_v16, %v887_v16 }
  0x91   : > { %775 = vst [vmem:[#allocation4 + $0x48] sm:$0xf] %v4250_v55  ;;  %776 = vst [vmem:[#allocation4 + $0x54] sm:$0xf] %v4251_v56  ;;  %v840_v63 = vor.u32 %v839_v8, %v526_v28  ;;  %v4280_v28 = vcombine.low %v887_v16, %v887_v16  ;;  %v540_v50 = vshrl.u32 %v6273_v34, 16  ;;  %v4300_v53 = vcombine.low %v897_v47, %v897_v47  ;;  %v5605_v55 = vld [vmem:[%s7299_s1 + $0xc0] sm:$0xff]  }
  0x92   : > { %2624 = vmatmul.mubr.bf16.gmra.mxu0 %v6206_v43  ;;  %2720 = vmatmul.mubr.bf16.gmra.mxu1 %v5574_v44  ;;  %799 = vst [vmem:[#allocation4 + $0x168] sm:$0xf] %v4274_v3  ;;  %800 = vst [vmem:[#allocation4 + $0x174] sm:$0xf] %v4275_v4  ;;  %v538_v14 = vor.u32 %v536_v11, %v535_v20  ;;  %v5606_v3 = vld [vmem:[%s7299_s1 + $0x80] sm:$0xff]   ;;  %v5628_v8 = vld [vmem:[%s7299_s1 + $0x118] sm:$0xff]  }
  0x93   : > { %5169 = vmatpush3.bf16.msra.mxu0 %v5604_v46  ;;  %5057 = vmatpush3.bf16.msra.mxu1 %v5576_v31  ;;  %v888_v27 = vsel %vm6191_vm5, %v840_v63, 0  ;;  %v5594_v31 = vld [vmem:[#allocation4 + $0x4c] ss:$12 sps:$4 sm:$0xff]   ;;  %1016 = vst [vmem:[#allocation4 + $0x38] sm:$0xf] %v4280_v28  ;;  %v841_v46 = vrot.slane %v536_v11, 1 }
  0x94   : > { %5058 = vmatprep.subr.bf16.mxu1 %v5577_v38  ;;  %2631 = vmatprep.mubr.bf16.mxu0 %v5582_v6  ;;  %v645_v33 = vsel %vm6088_vm2, 0, %v538_v14  ;;  %v4282_v35 = vcombine.low %v888_v27, %v888_v27  ;;  %v4283_v37 = vcombine.high %v888_v27, %v888_v27  ;;  %v5597_v38 = vld [vmem:[#allocation4 + $0x16c] ss:$12 sps:$4 sm:$0xff]   ;;  %1017 = vst [vmem:[#allocation4 + $0x44] sm:$0xf] %v4281_v29  ;;  %v542_v57 = vrot.slane %v540_v50, 7 }
  0x95   : > { %2727 = vmatprep.mubr.bf16.mxu1 %v5585_v9  ;;  %5170 = vmatprep.subr.bf16.mxu0 %v5614_v24  ;;  %v4252_v44 = vcombine.low %v645_v33, %v645_v33  ;;  %v4253_v45 = vcombine.high %v645_v33, %v645_v33  ;;  %v842_v56 = vor.u32 %v841_v46, %v533_v10  ;;  %v5612_v6 = vld [vmem:[%s7299_s1 + $0x1f8] sm:$0xff]   ;;  %v5636_v23 = vld [vmem:[%s7299_s1 + $0x110] sm:$0xff]   ;;  %v843_v14 = vrot.slane %v543_v51, 1 }
  0x96   : > { %1018 = vst [vmem:[#allocation4 + $0x50] sm:$0xf] %v4282_v35  ;;  %1019 = vst [vmem:[#allocation4 + $0x5c] sm:$0xf] %v4283_v37  ;;  %v545_v4 = vor.u32 %v543_v51, %v542_v57  ;;  %v5611_v11 = vld [vmem:[#allocation4 + $0x8] ss:$12 sps:$4 sm:$0xff]  }
  0x97   : > { %5059 = vmatpush3.bf16.msra.mxu1 %v5579_v54  ;;  %5171 = vmatpush3.bf16.msra.mxu0 %v5615_v18  ;;  %v4301_v54 = vcombine.high %v897_v47, %v897_v47  ;;  %777 = vst [vmem:[#allocation4 + $0x60] sm:$0xf] %v4252_v44  ;;  %778 = vst [vmem:[#allocation4 + $0x6c] sm:$0xf] %v4253_v45  ;;  %v889_v5 = vsel %vm6191_vm5, %v842_v56, 0  ;;  %v5629_v28 = vld [vmem:[%s7299_s1 + $0x1b0] sm:$0xff]   ;;  %v844_v46 = vor.u32 %v843_v14, %v540_v50 }
  0x98   : > { %5060 = vmatprep.subr.bf16.mxu1 %v5589_v0  ;;  %v6280_v48 = vld [vmem:[#allocation4 + $0x48] ss:$12 sps:$4 sm:$0xff]   ;;  %1036 = vst [vmem:[#allocation4 + $0x128] sm:$0xf] %v4300_v53  ;;  %v6295_v0 = vcombine.low %v409_v59, %v410_v60  ;;  %814 = vst [vmem:[#allocation4 + $0xa0] sm:$0xf] %v410_v60  ;;  %5172 = vmatprep.subr.bf16.mxu0 %v5626_v61  ;;  %v4284_v9 = vcombine.low %v889_v5, %v889_v5 }
  0x99   : > { %v5600_v49 = vld [vmem:[#allocation4 + $0x168] ss:$12 sps:$4 sm:$0xff]   ;;  %1037 = vst [vmem:[#allocation4 + $0x134] sm:$0xf] %v4301_v54  ;;  %v4285_v10 = vcombine.high %v889_v5, %v889_v5  ;;  %v411_v18 = vld [vmem:[%s5962_s12 + $0x30] sm:$0xf] }
  0x9a   : > { %2632 = vmatmul.mubr.bf16.gmra.mxu0 %v6241_v12  ;;  %2728 = vmatmul.mubr.bf16.gmra.mxu1 %v5588_v13  ;;  %v550_v19 = vshll.u32 %v6295_v0, 16  ;;  %v646_v13 = vsel %vm6088_vm2, 0, %v545_v4  ;;  %1020 = vst [vmem:[#allocation4 + $0x68] sm:$0xf] %v4284_v9  ;;  %815 = vst [vmem:[#allocation4 + $0xac] sm:$0xf] %v411_v18  ;;  %v6338_v29 = vcombine.low %v411_v18, %v412_v25 }
  0x9b   : > { %5061 = vmatpush3.bf16.msra.mxu1 %v5590_v7  ;;  %2639 = vmatprep.mubr.bf16.mxu0 %v5594_v31  ;;  %v547_v7 = vshrl.u32 %v6295_v0, 16  ;;  %v4254_v63 = vcombine.low %v646_v13, %v646_v13  ;;  %1021 = vst [vmem:[#allocation4 + $0x74] sm:$0xf] %v4285_v10  ;;  %816 = vst [vmem:[#allocation4 + $0xb8] sm:$0xf] %v412_v25  ;;  %v890_v60 = vsel %vm6191_vm5, %v844_v46, 0 }
  0x9c   : > { %5062 = vmatprep.subr.bf16.mxu1 %v5591_v17  ;;  %2735 = vmatprep.mubr.bf16.mxu1 %v5597_v38  ;;  %v4255_v17 = vcombine.high %v646_v13, %v646_v13  ;;  %v845_v27 = vrot.slane %v550_v19, 1  ;;  %v554_v35 = vshrl.u32 %v6338_v29, 16  ;;  %v557_v37 = vshll.u32 %v6338_v29, 16  ;;  %v413_v38 = vld [vmem:[%s5962_s12 + $0x38] sm:$0xf]  ;;  %v5649_v5 = vld [vmem:[%s7299_s1 + $0x148] sm:$0xff]  }
  0x9d   : > { %v549_v20 = vrot.slane %v547_v7, 7  ;;  %5173 = vmatpush3.bf16.msra.mxu0 %v5628_v8  ;;  %779 = vst [vmem:[#allocation4 + $0x78] sm:$0xf] %v4254_v63  ;;  %v5620_v44 = vld [vmem:[#allocation4 + $0x20] ss:$12 sps:$4 sm:$0xff]   ;;  %v4287_v4 = vcombine.high %v890_v60, %v890_v60  ;;  %v5650_v8 = vld [vmem:[%s7299_s1 + $0x108] sm:$0xff]  }
  0x9e   : > { %v6327_v24 = vld [vmem:[#allocation4 + $0x60] ss:$12 sps:$4 sm:$0xff]   ;;  %780 = vst [vmem:[#allocation4 + $0x84] sm:$0xf] %v4255_v17  ;;  %817 = vst [vmem:[#allocation4 + $0xc4] sm:$0xf] %v413_v38 }
  0x9f   : > { %5063 = vmatpush3.bf16.msra.mxu1 %v5592_v52  ;;  %v6322_v52 = vld [vmem:[#allocation4 + $0x64] ss:$12 sps:$4 sm:$0xff]   ;;  %v552_v16 = vor.u32 %v550_v19, %v549_v20  ;;  %v556_v47 = vrot.slane %v554_v35, 7  ;;  %v6357_v51 = vld [vmem:[#allocation4 + $0x7c] ss:$12 sps:$4 sm:$0xff]  }
  0xa0   : > { %5064 = vmatprep.subr.bf16.mxu1 %v5601_v62  ;;  %v5627_v62 = vld [vmem:[%s7299_s1 + $0x1f0] sm:$0xff]   ;;  %v415_v57 = vld [vmem:[%s5962_s12 + $0x40] sm:$0xf]  ;;  %v416_v59 = vld [vmem:[%s5962_s12 + $0x44] sm:$0xf] }
  0xa1   : > { %v647_v26 = vsel %vm6088_vm2, 0, %v552_v16  ;;  %v559_v34 = vor.u32 %v557_v37, %v556_v47  ;;  %v6375_v0 = vcombine.low %v415_v57, %v416_v59  ;;  %819 = vst [vmem:[#allocation4 + $0xdc] sm:$0xf] %v415_v57  ;;  %820 = vst [vmem:[#allocation4 + $0xe8] sm:$0xf] %v416_v59  ;;  %v5657_v25 = vld [vmem:[%s7299_s1 + $0x1a0] sm:$0xff]  }
  0xa2   : > { %2640 = vmatmul.mubr.bf16.gmra.mxu0 %v6280_v48  ;;  %2736 = vmatmul.mubr.bf16.gmra.mxu1 %v5600_v49  ;;  %v4256_v31 = vcombine.low %v647_v26, %v647_v26  ;;  %v4257_v33 = vcombine.high %v647_v26, %v647_v26  ;;  %v5643_v49 = vld [vmem:[%s7299_s1 + $0x1a8] sm:$0xff]   ;;  %v6387_v10 = vld [vmem:[#allocation4 + $0x94] ss:$12 sps:$4 sm:$0xff]   ;;  %1023 = vst [vmem:[#allocation4 + $0x8c] sm:$0xf] %v4287_v4 }
  0xa3   : > { %5065 = vmatpush3.bf16.msra.mxu1 %v5603_v39  ;;  %2776 = vmatprep.mubr.bf16.mxu1 %v6206_v43  ;;  %v5635_v43 = vld [vmem:[%s7299_s1 + $0x150] sm:$0xff]   ;;  %v414_v39 = vld [vmem:[%s5962_s12 + $0x3c] sm:$0xf]  ;;  %v648_v61 = vsel %vm6088_vm2, 0, %v559_v34  ;;  %v571_v13 = vshll.u32 %v6375_v0, 16 }
  0xa4   : > { %5066 = vmatprep.subr.bf16.mxu1 %v5605_v55  ;;  %5174 = vmatprep.subr.bf16.mxu0 %v5635_v43  ;;  %781 = vst [vmem:[#allocation4 + $0x90] sm:$0xf] %v4256_v31  ;;  %782 = vst [vmem:[#allocation4 + $0x9c] sm:$0xf] %v4257_v33  ;;  %v6345_v45 = vcombine.low %v413_v38, %v414_v39  ;;  %v846_v55 = vor.u32 %v845_v27, %v547_v7  ;;  %v5625_v17 = vld [vmem:[#allocation4 + $0x38] ss:$12 sps:$4 sm:$0xff]  }
  0xa5   : > { %2647 = vmatprep.mubr.bf16.mxu0 %v6322_v52  ;;  %5175 = vmatpush3.bf16.msra.mxu0 %v5636_v23  ;;  %818 = vst [vmem:[#allocation4 + $0xd0] sm:$0xf] %v414_v39  ;;  %v6361_v56 = vld [vmem:[#allocation4 + $0x78] ss:$12 sps:$4 sm:$0xff]   ;;  %v4259_v7 = vcombine.high %v648_v61, %v648_v61  ;;  %v5656_v23 = vld [vmem:[%s7299_s1 + $0x1e0] sm:$0xff]   ;;  %v847_v31 = vrot.slane %v557_v37, 1 }
  0xa6   : > { %v561_v53 = vshrl.u32 %v6345_v45, 16  ;;  %v564_v54 = vshll.u32 %v6345_v45, 16  ;;  %v891_v9 = vsel %vm6191_vm5, %v846_v55, 0  ;;  %5176 = vmatprep.subr.bf16.mxu0 %v5649_v5  ;;  %v418_v18 = vld [vmem:[%s5962_s12 + $0x4c] sm:$0xf]  ;;  %v5658_v27 = vld [vmem:[%s7299_s1 + $0x140] sm:$0xff]  }
  0xa7   : > { %5067 = vmatpush3.bf16.msra.mxu1 %v5606_v3  ;;  %v4286_v3 = vcombine.low %v890_v60, %v890_v60  ;;  %v4288_v43 = vcombine.low %v891_v9, %v891_v9  ;;  %784 = vst [vmem:[#allocation4 + $0xb4] sm:$0xf] %v4259_v7  ;;  %822 = vst [vmem:[#allocation4 + $0x100] sm:$0xf] %v418_v18  ;;  %v420_v46 = vld [vmem:[%s5962_s12 + $0x54] sm:$0xf]  ;;  %v848_v47 = vor.u32 %v847_v31, %v554_v35 }
  0xa8   : > { %5276 = vmatprep.subr.bf16.mxu1 %v5612_v6  ;;  %v563_v50 = vrot.slane %v561_v53, 7  ;;  %v4258_v6 = vcombine.low %v648_v61, %v648_v61  ;;  %824 = vst [vmem:[#allocation4 + $0x118] sm:$0xf] %v420_v46  ;;  %v6430_v34 = vld [vmem:[#allocation4 + $0xac] ss:$12 sps:$4 sm:$0xff]   ;;  %v849_v5 = vrot.slane %v564_v54, 1 }
  0xa9   : > { %1022 = vst [vmem:[#allocation4 + $0x80] sm:$0xf] %v4286_v3  ;;  %5177 = vmatpush3.bf16.msra.mxu0 %v5650_v8  ;;  %1024 = vst [vmem:[#allocation4 + $0x98] sm:$0xf] %v4288_v43  ;;  %v892_v57 = vsel %vm6191_vm5, %v848_v47, 0 }
  0xaa   : > { %2648 = vmatmul.mubr.bf16.gmra.mxu0 %v6327_v24  ;;  %2777 = vmatmul.mubr.bf16.vlgmr.msra.gmra.mxu1 %v5611_v11  ;;  %v566_v19 = vor.u32 %v564_v54, %v563_v50  ;;  %v568_v11 = vshrl.u32 %v6375_v0, 16  ;;  %783 = vst [vmem:[#allocation4 + $0xa8] sm:$0xf] %v4258_v6  ;;  %v5634_v29 = vld [vmem:[#allocation4 + $0x50] ss:$12 sps:$4 sm:$0xff]   ;;  %v4290_v35 = vcombine.low %v892_v57, %v892_v57  ;;  %v851_v6 = vrot.slane %v571_v13, 1 }
  0xab   : > { %5277 = vmatpush3.bf16.msra.mxu1 %v5613_v15  ;;  %2784 = vmatprep.mubr.bf16.mxu1 %v6241_v12  ;;  %v5642_v12 = vld [vmem:[%s7299_s1 + $0x1e8] sm:$0xff]   ;;  %v4289_v15 = vcombine.high %v891_v9, %v891_v9  ;;  %v6392_v63 = vld [vmem:[#allocation4 + $0x90] ss:$12 sps:$4 sm:$0xff]   ;;  %v4291_v59 = vcombine.high %v892_v57, %v892_v57  ;;  %v850_v43 = vor.u32 %v849_v5, %v561_v53  ;;  %v5667_v54 = vld [vmem:[%s7299_s1 + $0x1d8] sm:$0xff]  }
  0xac   : > { %5278 = vmatprep.subr.bf16.mxu1 %v5627_v62  ;;  %2655 = vmatprep.mubr.bf16.mxu0 %v6357_v51  ;;  %v649_v20 = vsel %vm6088_vm2, 0, %v566_v19  ;;  %v570_v16 = vrot.slane %v568_v11, 7  ;;  %v6442_v4 = vld [vmem:[#allocation4 + $0xc4] ss:$12 sps:$4 sm:$0xff]   ;;  %1026 = vst [vmem:[#allocation4 + $0xb0] sm:$0xf] %v4290_v35 }
  0xad   : > { %v4260_v62 = vcombine.low %v649_v20, %v649_v20  ;;  %v4261_v14 = vcombine.high %v649_v20, %v649_v20  ;;  %1025 = vst [vmem:[#allocation4 + $0xa4] sm:$0xf] %v4289_v15  ;;  %5178 = vmatprep.subr.bf16.mxu0 %v5658_v27  ;;  %1027 = vst [vmem:[#allocation4 + $0xbc] sm:$0xf] %v4291_v59  ;;  %v852_v15 = vor.u32 %v851_v6, %v568_v11  ;;  %v6464_v53 = vld [vmem:[%s7299_s1 + $0x238] sm:$0xff]   ;;  %v5685_v6 = vld [vmem:[%s7299_s1 + $0x1c8] sm:$0xff]  }
  0xae   : > { %v893_v45 = vsel %vm6191_vm5, %v850_v43, 0  ;;  %v6479_v27 = vld [vmem:[#allocation4 + $0xdc] ss:$12 sps:$4 sm:$0xff]  }
  0xaf   : > { %5279 = vmatpush3.bf16.msra.mxu1 %v5629_v28  ;;  %785 = vst [vmem:[#allocation4 + $0xc0] sm:$0xf] %v4260_v62  ;;  %786 = vst [vmem:[#allocation4 + $0xcc] sm:$0xf] %v4261_v14  ;;  %v573_v28 = vor.u32 %v571_v13, %v570_v16  ;;  %v4292_v11 = vcombine.low %v893_v45, %v893_v45  ;;  %v4293_v20 = vcombine.high %v893_v45, %v893_v45  ;;  %v5669_v16 = vld [vmem:[%s7299_s1 + $0x198] sm:$0xff]   ;;  %v5698_v43 = vld [vmem:[%s7299_s1 + $0x180] sm:$0xff]  }
  0xb0   : > { %5280 = vmatprep.subr.bf16.mxu1 %v5642_v12  ;;  %v419_v12 = vld [vmem:[%s5962_s12 + $0x50] sm:$0xf] }
  0xb1   : > { %v650_v39 = vsel %vm6088_vm2, 0, %v573_v28  ;;  %v6428_v55 = vcombine.low %v419_v12, %v420_v46  ;;  %823 = vst [vmem:[#allocation4 + $0x10c] sm:$0xf] %v419_v12  ;;  %v6438_v60 = vld [vmem:[#allocation4 + $0xa8] ss:$12 sps:$4 sm:$0xff]   ;;  %v861_v12 = vrot.slane %v606_v2, 1 }
  0xb2   : > { %2656 = vmatmul.mubr.bf16.gmra.mxu0 %v6361_v56  ;;  %2785 = vmatmul.mubr.bf16.gmra.mxu1 %v5620_v44  ;;  %v5659_v44 = vld [vmem:[%s7299_s1 + $0x100] sm:$0xff]   ;;  %v4262_v37 = vcombine.low %v650_v39, %v650_v39  ;;  %1028 = vst [vmem:[#allocation4 + $0xc8] sm:$0xf] %v4292_v11  ;;  %1029 = vst [vmem:[#allocation4 + $0xd4] sm:$0xf] %v4293_v20  ;;  %v5676_v46 = vld [vmem:[%s7299_s1 + $0x190] sm:$0xff]  }
  0xb3   : > { %2792 = vmatprep.mubr.bf16.mxu1 %v6280_v48  ;;  %5281 = vmatpush3.bf16.msra.mxu1 %v5643_v49  ;;  %v417_v48 = vld [vmem:[%s5962_s12 + $0x48] sm:$0xf]  ;;  %v4263_v49 = vcombine.high %v650_v39, %v650_v39  ;;  %v582_v3 = vshrl.u32 %v6428_v55, 16  ;;  %v5675_v20 = vld [vmem:[%s7299_s1 + $0x230] sm:$0xff]  }
  0xb4   : > { %2663 = vmatprep.mubr.bf16.mxu0 %v6387_v10  ;;  %821 = vst [vmem:[#allocation4 + $0xf4] sm:$0xf] %v417_v48  ;;  %v6407_v26 = vcombine.low %v417_v48, %v418_v18  ;;  %5282 = vmatprep.subr.bf16.mxu1 %v5656_v23  ;;  %787 = vst [vmem:[#allocation4 + $0xd8] sm:$0xf] %v4262_v37  ;;  %v894_v48 = vsel %vm6191_vm5, %v852_v15, 0 }
  0xb5   : > { %5179 = vmatpush3.bf16.msra.mxu0 %v5659_v44  ;;  %788 = vst [vmem:[#allocation4 + $0xe4] sm:$0xf] %v4263_v49  ;;  %v584_v19 = vrot.slane %v582_v3, 7  ;;  %v5641_v23 = vld [vmem:[#allocation4 + $0x68] ss:$12 sps:$4 sm:$0xff]   ;;  %v4294_v18 = vcombine.low %v894_v48, %v894_v48 }
  0xb6   : > { %v575_v33 = vshrl.u32 %v6407_v26, 16  ;;  %v578_v38 = vshll.u32 %v6407_v26, 16  ;;  %5412 = vmatprep.subr.bf16.mxu0 %v6464_v53  ;;  %v5648_v49 = vld [vmem:[#allocation4 + $0x80] ss:$12 sps:$4 sm:$0xff]   ;;  %v429_v15 = vld [vmem:[%s5962_s12 + $0x78] sm:$0xf] }
  0xb7   : > { %5283 = vmatpush3.bf16.msra.mxu1 %v5657_v25  ;;  %v6475_v25 = vld [vmem:[#allocation4 + $0xc0] ss:$12 sps:$4 sm:$0xff]   ;;  %1030 = vst [vmem:[#allocation4 + $0xe0] sm:$0xf] %v4294_v18  ;;  %833 = vst [vmem:[#allocation4 + $0x184] sm:$0xf] %v429_v15 }
  0xb8   : > { %v577_v50 = vrot.slane %v575_v33, 7  ;;  %v853_v13 = vrot.slane %v578_v38, 1  ;;  %5284 = vmatprep.subr.bf16.mxu1 %v5667_v54  ;;  %v6521_v5 = vld [vmem:[#allocation4 + $0x10c] ss:$12 sps:$4 sm:$0xff]  }
  0xb9   : > { %v5670_v11 = vld [vmem:[#allocation4 + $0x38] ss:$12 sps:$4 sm:$0xff]  }
  0xba   : > { %2664 = vmatmul.mubr.bf16.gmra.mxu0 %v6392_v63  ;;  %2793 = vmatmul.mubr.bf16.gmra.mxu1 %v5625_v17  ;;  %v580_v61 = vor.u32 %v578_v38, %v577_v50  ;;  %v854_v28 = vor.u32 %v853_v13, %v575_v33  ;;  %v5674_v38 = vld [vmem:[%s7299_s1 + $0x1d0] sm:$0xff]   ;;  %v859_v33 = vrot.slane %v599_v41, 1  ;;  %v863_v41 = vrot.slane %v613_v42, 1 }
  0xbb   : > { %2800 = vmatprep.mubr.bf16.mxu1 %v6327_v24  ;;  %2671 = vmatprep.mubr.bf16.mxu0 %v6430_v34  ;;  %v585_v24 = vshll.u32 %v6428_v55, 16  ;;  %v862_v55 = vor.u32 %v861_v12, %v603_v1 }
  0xbc   : > { %v651_v7 = vsel %vm6088_vm2, 0, %v580_v61  ;;  %5285 = vmatpush3.bf16.msra.mxu1 %v5669_v16  ;;  %v895_v31 = vsel %vm6191_vm5, %v854_v28, 0  ;;  %v860_v37 = vor.u32 %v859_v33, %v596_v40  ;;  %v6502_v50 = vld [vmem:[#allocation4 + $0xd8] ss:$12 sps:$4 sm:$0xff]   ;;  %v864_v32 = vor.u32 %v863_v41, %v610_v36  ;;  %v6510_v40 = vld [vmem:[#allocation4 + $0xf4] ss:$12 sps:$4 sm:$0xff]  }
  0xbd   : > { %v4264_v8 = vcombine.low %v651_v7, %v651_v7  ;;  %v4265_v9 = vcombine.high %v651_v7, %v651_v7  ;;  %v587_v17 = vor.u32 %v585_v24, %v584_v19  ;;  %v4296_v39 = vcombine.low %v895_v31, %v895_v31  ;;  %5286 = vmatprep.subr.bf16.mxu1 %v5674_v38  ;;  %v5687_v7 = vld [vmem:[%s7299_s1 + $0x188] sm:$0xff]   ;;  %v5672_v28 = vld [vmem:[#allocation4 + $0x50] ss:$12 sps:$4 sm:$0xff]   ;;  %v5754_v33 = vld [vmem:[#allocation4 + $0x34] ss:$12 sps:$4 sm:$0xff]  }
  0xbe   : > { %v4297_v44 = vcombine.high %v895_v31, %v895_v31  ;;  %v855_v26 = vrot.slane %v585_v24, 1  ;;  %v899_v58 = vsel %vm6191_vm5, %v862_v55, 0  ;;  %v900_v1 = vsel %vm6191_vm5, %v864_v32, 0  ;;  %v5655_v24 = vld [vmem:[#allocation4 + $0x98] ss:$12 sps:$4 sm:$0xff]   ;;  %v5732_v32 = vld [vmem:[%s7299_s1 + $0x200] sm:$0xff]  }
  0xbf   : > { %789 = vst [vmem:[#allocation4 + $0xf0] sm:$0xf] %v4264_v8  ;;  %790 = vst [vmem:[#allocation4 + $0xfc] sm:$0xf] %v4265_v9  ;;  %v652_v0 = vsel %vm6088_vm2, 0, %v587_v17  ;;  %v4304_v59 = vcombine.low %v899_v58, %v899_v58  ;;  %v4305_v61 = vcombine.high %v899_v58, %v899_v58  ;;  %v4306_v21 = vcombine.low %v900_v1, %v900_v1  ;;  %v5696_v9 = vld [vmem:[%s7299_s1 + $0x1c0] sm:$0xff]  }
  0xc0   : > { %v4266_v62 = vcombine.low %v652_v0, %v652_v0  ;;  %v4267_v14 = vcombine.high %v652_v0, %v652_v0  ;;  %1032 = vst [vmem:[#allocation4 + $0xf8] sm:$0xf] %v4296_v39  ;;  %1033 = vst [vmem:[#allocation4 + $0x104] sm:$0xf] %v4297_v44  ;;  %v856_v47 = vor.u32 %v855_v26, %v582_v3  ;;  %5287 = vmatpush3.bf16.msra.mxu1 %v5676_v46  ;;  %v5664_v8 = vld [vmem:[#allocation4 + $0xb0] ss:$12 sps:$4 sm:$0xff]  }
  0xc1   : > { %v4307_v36 = vcombine.high %v900_v1, %v900_v1  ;;  %1040 = vst [vmem:[#allocation4 + $0x158] sm:$0xf] %v4304_v59  ;;  %1041 = vst [vmem:[#allocation4 + $0x164] sm:$0xf] %v4305_v61  ;;  %5288 = vmatprep.subr.bf16.mxu1 %v5685_v6  ;;  %v430_v17 = vld [vmem:[%s5962_s12 + $0x7c] sm:$0xf] }
  0xc2   : > { %2672 = vmatmul.mubr.bf16.gmra.mxu0 %v6438_v60  ;;  %2801 = vmatmul.mubr.bf16.gmra.mxu1 %v5634_v29  ;;  %791 = vst [vmem:[#allocation4 + $0x108] sm:$0xf] %v4266_v62  ;;  %792 = vst [vmem:[#allocation4 + $0x114] sm:$0xf] %v4267_v14  ;;  %v896_v2 = vsel %vm6191_vm5, %v856_v47, 0  ;;  %v4245_v54 = vcombine.low %v429_v15, %v430_v17  ;;  %v5686_v16 = vld [vmem:[%s7299_s1 + $0x228] sm:$0xff]  }
  0xc3   : > { %2679 = vmatprep.mubr.bf16.mxu0 %v6442_v4  ;;  %2808 = vmatprep.mubr.bf16.mxu1 %v6361_v56  ;;  %v4295_v56 = vcombine.high %v894_v48, %v894_v48  ;;  %v4298_v57 = vcombine.low %v896_v2, %v896_v2  ;;  %v4299_v42 = vcombine.high %v896_v2, %v896_v2  ;;  %v5666_v0 = vld [vmem:[#allocation4 + $0xc8] ss:$12 sps:$4 sm:$0xff]   ;;  %v6563_v47 = vld [vmem:[#allocation4 + $0x120] ss:$12 sps:$4 sm:$0xff]   ;;  %v5694_v58 = vld [vmem:[#allocation4 + $0xb0] ss:$12 sps:$4 sm:$0xff]  }
  0xc4   : > { %1042 = vst [vmem:[#allocation4 + $0x170] sm:$0xf] %v4306_v21  ;;  %1043 = vst [vmem:[#allocation4 + $0x17c] sm:$0xf] %v4307_v36  ;;  %5289 = vmatpush3.bf16.msra.mxu1 %v5687_v7  ;;  %v617_v13 = vshrl.u32 %v4245_v54, 16  ;;  %v620_v45 = vshll.u32 %v4245_v54, 16 }
  0xc5   : > { %1031 = vst [vmem:[#allocation4 + $0xec] sm:$0xf] %v4295_v56  ;;  %1034 = vst [vmem:[#allocation4 + $0x110] sm:$0xf] %v4298_v57  ;;  %5290 = vmatprep.subr.bf16.mxu1 %v5696_v9  ;;  %v5679_v46 = vld [vmem:[#allocation4 + $0x68] ss:$12 sps:$4 sm:$0xff]  }
  0xc6   : > { %1035 = vst [vmem:[#allocation4 + $0x11c] sm:$0xf] %v4299_v42  ;;  %v6519_v3 = vld [vmem:[#allocation4 + $0xf0] ss:$12 sps:$4 sm:$0xff]   ;;  %834 = vst [vmem:[#allocation4 + $0x190] sm:$0xf] %v430_v17 }
  0xc7   : > { %v619_v48 = vrot.slane %v617_v13, 7  ;;  %v865_v14 = vrot.slane %v620_v45, 1  ;;  %v5673_v12 = vld [vmem:[#allocation4 + $0xf8] ss:$12 sps:$4 sm:$0xff]   ;;  %v5683_v55 = vld [vmem:[#allocation4 + $0x80] ss:$12 sps:$4 sm:$0xff]  }
  0xc8   : > { %5291 = vmatpush3.bf16.msra.mxu1 %v5698_v43  ;;  %v5755_v41 = vld [vmem:[#allocation4 + $0x4c] ss:$12 sps:$4 sm:$0xff]   ;;  %v5684_v57 = vld [vmem:[#allocation4 + $0x128] ss:$12 sps:$4 sm:$0xff]   ;;  %v1154_v15 = vld [vmem:[#allocation4 + $0x120] sm:$0xff] }
  0xc9   : > { %v6532_v19 = vld [vmem:[#allocation4 + $0x108] ss:$12 sps:$4 sm:$0xff]   ;;  %v622_v62 = vor.u32 %v620_v45, %v619_v48  ;;  %v866_v56 = vor.u32 %v865_v14, %v617_v13  ;;  %v5690_v42 = vld [vmem:[#allocation4 + $0x98] ss:$12 sps:$4 sm:$0xff]   ;;  %v1156_v17 = vld [vmem:[#allocation4 + $0x12c] sm:$0xff] }
  0xca   : > { %2680 = vmatmul.mubr.bf16.gmra.mxu0 %v6475_v25  ;;  %2809 = vmatmul.mubr.bf16.gmra.mxu1 %v5641_v23  ;;  %v5753_v23 = vld [vmem:[#allocation4 + $0x1c] ss:$12 sps:$4 sm:$0xff]   ;;  %v5695_v1 = vld [vmem:[#allocation4 + $0x158] ss:$12 sps:$4 sm:$0xff]   ;;  %v5707_v36 = vld [vmem:[#allocation4 + $0x34] ss:$12 sps:$4 sm:$0xff]   ;;  %v6595_v54 = vcombine.high %v1154_v15, %v1156_v17 }
  0xcb   : > { %2687 = vmatprep.mubr.bf16.mxu0 %v6479_v27  ;;  %2816 = vmatprep.mubr.bf16.mxu1 %v6392_v63  ;;  %v898_v63 = vsel %vm6191_vm5, %v860_v37, 0  ;;  %v657_v18 = vsel %vm6088_vm2, 0, %v622_v62  ;;  %v5717_v37 = vld [vmem:[%s7299_s1 + $0x210] sm:$0xff]   ;;  %v5702_v59 = vld [vmem:[#allocation4 + $0xc8] ss:$12 sps:$4 sm:$0xff]  }
  0xcc   : > { %v4302_v29 = vcombine.low %v898_v63, %v898_v63  ;;  %v4303_v35 = vcombine.high %v898_v63, %v898_v63  ;;  %v4276_v31 = vcombine.low %v657_v18, %v657_v18  ;;  %v4277_v38 = vcombine.high %v657_v18, %v657_v18  ;;  %v5671_v39 = vld [vmem:[#allocation4 + $0xe0] ss:$12 sps:$4 sm:$0xff]   ;;  %v6572_v63 = vld [vmem:[#allocation4 + $0x138] ss:$12 sps:$4 sm:$0xff]   ;;  %v5718_v9 = vld [vmem:[#allocation4 + $0x128] ss:$12 sps:$4 sm:$0xff]  }
  0xcd   : > { %v5680_v2 = vld [vmem:[#allocation4 + $0x110] ss:$12 sps:$4 sm:$0xff]   ;;  %v5704_v21 = vld [vmem:[#allocation4 + $0xe0] ss:$12 sps:$4 sm:$0xff]   ;;  %v5721_v13 = vld [vmem:[#allocation4 + $0x78] ss:$12 sps:$4 sm:$0xff]  }
  0xce   : > { %1038 = vst [vmem:[#allocation4 + $0x140] sm:$0xf] %v4302_v29  ;;  %1039 = vst [vmem:[#allocation4 + $0x14c] sm:$0xf] %v4303_v35  ;;  %v6579_v29 = vld [vmem:[#allocation4 + $0x150] ss:$12 sps:$4 sm:$0xff]  }
  0xcf   : > { %801 = vst [vmem:[#allocation4 + $0x180] sm:$0xf] %v4276_v31  ;;  %802 = vst [vmem:[#allocation4 + $0x18c] sm:$0xf] %v4277_v38  ;;  %v5710_v6 = vld [vmem:[#allocation4 + $0x4c] ss:$12 sps:$4 sm:$0xff]  }
  0xd0   : > { %v5713_v7 = vld [vmem:[#allocation4 + $0x110] ss:$12 sps:$4 sm:$0xff]  }
  0xd1   : > { %v5719_v43 = vld [vmem:[#allocation4 + $0x7c] ss:$12 sps:$4 sm:$0xff]   ;;  %v1162_v31 = vld [vmem:[#allocation4 + $0x150] sm:$0xff] }
  0xd2   : > { %2688 = vmatmul.mubr.bf16.gmra.mxu0 %v6502_v50  ;;  %2817 = vmatmul.mubr.bf16.gmra.mxu1 %v5648_v49  ;;  %v5726_v49 = vld [vmem:[%s7299_s1 + $0x208] sm:$0xff]   ;;  %v5725_v62 = vld [vmem:[#allocation4 + $0x90] ss:$12 sps:$4 sm:$0xff]  }
  0xd3   : > { %2695 = vmatprep.mubr.bf16.mxu0 %v6510_v40  ;;  %2824 = vmatprep.mubr.bf16.mxu1 %v6438_v60  ;;  %v5665_v60 = vld [vmem:[#allocation4 + $0x20] ss:$12 sps:$4 sm:$0xff]  }
  0xd4   : > { %v1164_v38 = vld [vmem:[#allocation4 + $0x15c] sm:$0xff] }
  0xd5   : > { %v5691_v35 = vld [vmem:[#allocation4 + $0x140] ss:$12 sps:$4 sm:$0xff]  }
  0xd6   : > { %v6587_v61 = vld [vmem:[#allocation4 + $0x180] ss:$12 sps:$4 sm:$0xff]  }
  0xd7   : > { %v5722_v45 = vld [vmem:[#allocation4 + $0x140] ss:$12 sps:$4 sm:$0xff]  }
  0xda   : > { %2696 = vmatmul.mubr.bf16.gmra.mxu0 %v6519_v3  ;;  %2825 = vmatmul.mubr.bf16.gmra.mxu1 %v5655_v24  ;;  %v5709_v24 = vld [vmem:[#allocation4 + $0xf8] ss:$12 sps:$4 sm:$0xff]  }
  0xdb   : > { %2703 = vmatprep.mubr.bf16.mxu0 %v6521_v5  ;;  %2832 = vmatprep.mubr.bf16.mxu1 %v6475_v25 }
  0xe2   : > { %2704 = vmatmul.mubr.bf16.gmra.mxu0 %v6532_v19  ;;  %2833 = vmatmul.mubr.bf16.gmra.mxu1 %v5664_v8  ;;  %v5716_v8 = vld [vmem:[#allocation4 + $0x60] ss:$12 sps:$4 sm:$0xff]  }
  0xe3   : > { %2937 = vmatprep.mubr.bf16.mxu0 %v5665_v60  ;;  %2840 = vmatprep.mubr.bf16.mxu1 %v6502_v50  ;;  %v5714_v60 = vld [vmem:[#allocation4 + $0x64] ss:$12 sps:$4 sm:$0xff]  }
  0xea   : > { %2938 = vmatmul.mubr.bf16.vlgmr.msra.gmra.mxu0 %v5753_v23  ;;  %2841 = vmatmul.mubr.bf16.gmra.mxu1 %v5666_v0  ;;  %v5723_v0 = vld [vmem:[#allocation4 + $0x94] ss:$12 sps:$4 sm:$0xff]  }
  0xeb   : > { %5413 = vmatpush3.bf16.msra.mxu0 %v6464_v53  ;;  %2848 = vmatprep.mubr.bf16.mxu1 %v6519_v3  ;;  %v901_v53 = vsel %vm6191_vm5, %v866_v56, 0  ;;  %v5728_v56 = vld [vmem:[#allocation4 + $0xac] ss:$12 sps:$4 sm:$0xff]  }
  0xec   : > { %2945 = vmatprep.mubr.bf16.mxu0 %v5670_v11  ;;  %5414 = vmatprep.subr.bf16.mxu0 %v5675_v20  ;;  %v4308_v44 = vcombine.low %v901_v53, %v901_v53  ;;  %v4309_v26 = vcombine.high %v901_v53, %v901_v53  ;;  %v1158_v11 = vld [vmem:[#allocation4 + $0x138] sm:$0xff] }
  0xee   : > { %1044 = vst [vmem:[#allocation4 + $0x188] sm:$0xf] %v4308_v44  ;;  %1045 = vst [vmem:[#allocation4 + $0x194] sm:$0xf] %v4309_v26 }
  0xef   : > { %5415 = vmatpush3.bf16.msra.mxu0 %v5675_v20  ;;  %v1160_v20 = vld [vmem:[#allocation4 + $0x144] sm:$0xff] }
  0xf0   : > { %5416 = vmatprep.subr.bf16.mxu0 %v5686_v16  ;;  %v6598_v23 = vcombine.high %v1158_v11, %v1160_v20 }
  0xf2   : > { %2946 = vmatmul.mubr.bf16.gmra.mxu0 %v5754_v33  ;;  %2849 = vmatmul.mubr.bf16.gmra.mxu1 %v5671_v39  ;;  %v6607_v33 = vcombine.high %v1162_v31, %v1164_v38  ;;  %v5735_v38 = vld [vmem:[#allocation4 + $0x50] ss:$12 sps:$4 sm:$0xff]  }
  0xf3   : > { %2953 = vmatprep.mubr.bf16.mxu0 %v5672_v28  ;;  %2856 = vmatprep.mubr.bf16.mxu1 %v6532_v19 }
  0xf4   : > { %5417 = vmatpush3.bf16.msra.mxu0 %v5686_v16  ;;  %v5727_v16 = vld [vmem:[#allocation4 + $0x158] ss:$12 sps:$4 sm:$0xff]  }
  0xf5   : > { %5418 = vmatprep.subr.bf16.mxu0 %v5697_v22 }
  0xf8   : > { %5419 = vmatpush3.bf16.msra.mxu0 %v5697_v22 }
  0xf9   : > { %5420 = vmatprep.subr.bf16.mxu0 %v5708_v30 }
  0xfa   : > { %2954 = vmatmul.mubr.bf16.gmra.mxu0 %v5755_v41  ;;  %2857 = vmatmul.mubr.bf16.gmra.mxu1 %v5673_v12  ;;  %v5730_v12 = vld [vmem:[#allocation4 + $0xa8] ss:$12 sps:$4 sm:$0xff]  }
  0xfb   : > { %2961 = vmatprep.mubr.bf16.mxu0 %v5679_v46  ;;  %2864 = vmatprep.mubr.bf16.mxu1 %v6563_v47  ;;  %v5731_v46 = vld [vmem:[#allocation4 + $0x170] ss:$12 sps:$4 sm:$0xff]  }
  0xfc   : > { %5421 = vmatpush3.bf16.msra.mxu0 %v5708_v30 }
  0xfd   : > { %5422 = vmatprep.subr.bf16.mxu0 %v5717_v37 }
 0x100   : > { %5423 = vmatpush3.bf16.msra.mxu0 %v5717_v37 }
 0x101   : > { %5424 = vmatprep.subr.bf16.mxu0 %v5726_v49 }
 0x102   : > { %2962 = vmatmul.mubr.bf16.gmra.mxu0 %v6322_v52  ;;  %2865 = vmatmul.mubr.bf16.gmra.mxu1 %v5680_v2  ;;  %v6583_v52 = vld [vmem:[#allocation4 + $0x168] ss:$12 sps:$4 sm:$0xff]  }
 0x103   : > { %2969 = vmatprep.mubr.bf16.mxu0 %v5683_v55  ;;  %2872 = vmatprep.mubr.bf16.mxu1 %v6572_v63  ;;  %v1166_v55 = vld [vmem:[#allocation4 + $0x168] sm:$0xff]  ;;  %v1168_v2 = vld [vmem:[#allocation4 + $0x174] sm:$0xff] }
 0x104   : > { %5425 = vmatpush3.bf16.msra.mxu0 %v5726_v49 }
 0x105   : > { %5426 = vmatprep.subr.bf16.mxu0 %v5732_v32 }
 0x108   : > { %5427 = vmatpush3.bf16.msra.mxu0 %v5732_v32 }
 0x10a   : > { %2970 = vmatmul.mubr.bf16.gmra.mxu0 %v6357_v51  ;;  %2873 = vmatmul.mubr.bf16.gmra.mxu1 %v5684_v57  ;;  %v5703_v51 = vld [vmem:[#allocation4 + $0x170] ss:$12 sps:$4 sm:$0xff]  }
 0x10b   : > { %2977 = vmatprep.mubr.bf16.mxu0 %v5690_v42  ;;  %2880 = vmatprep.mubr.bf16.mxu1 %v6579_v29 }
 0x112   : > { %2978 = vmatmul.mubr.bf16.gmra.mxu0 %v6387_v10  ;;  %2881 = vmatmul.mubr.bf16.gmra.mxu1 %v5691_v35  ;;  %v5705_v10 = vld [vmem:[#allocation4 + $0x30] ss:$12 sps:$4 sm:$0xff]  }
 0x113   : > { %2985 = vmatprep.mubr.bf16.mxu0 %v5694_v58  ;;  %2888 = vmatprep.mubr.bf16.mxu1 %v6583_v52 }
 0x11a   : > { %2986 = vmatmul.mubr.bf16.gmra.mxu0 %v6430_v34  ;;  %2889 = vmatmul.mubr.bf16.gmra.mxu1 %v5695_v1  ;;  %v5712_v34 = vld [vmem:[#allocation4 + $0x48] ss:$12 sps:$4 sm:$0xff]  }
 0x11b   : > { %2993 = vmatprep.mubr.bf16.mxu0 %v5702_v59  ;;  %2896 = vmatprep.mubr.bf16.mxu1 %v6587_v61  ;;  %v6617_v59 = vcombine.high %v1166_v55, %v1168_v2 }
 0x122   : > { %2994 = vmatmul.mubr.bf16.gmra.mxu0 %v6442_v4  ;;  %2897 = vmatmul.mubr.bf16.gmra.mxu1 %v5703_v51 }
 0x123   : > { %3001 = vmatprep.mubr.bf16.mxu0 %v5704_v21  ;;  %3098 = vmatprep.mubr.bf16.mxu1 %v5707_v36  ;;  %v5733_v21 = vld [vmem:[#allocation4 + $0x188] ss:$12 sps:$4 sm:$0xff]  }
 0x12a   : > { %3002 = vmatmul.mubr.bf16.gmra.mxu0 %v6479_v27  ;;  %3099 = vmatmul.mubr.bf16.vlgmr.msra.gmra.mxu1 %v5705_v10 }
 0x12b   : > { %3009 = vmatprep.mubr.bf16.mxu0 %v5709_v24  ;;  %3106 = vmatprep.mubr.bf16.mxu1 %v5710_v6 }
 0x132   : > { %3010 = vmatmul.mubr.bf16.gmra.mxu0 %v6510_v40  ;;  %3107 = vmatmul.mubr.bf16.gmra.mxu1 %v5712_v34 }
 0x133   : > { %3017 = vmatprep.mubr.bf16.mxu0 %v5713_v7  ;;  %3114 = vmatprep.mubr.bf16.mxu1 %v5714_v60  ;;  %v1172_v7 = vld [vmem:[#allocation4 + $0x18c] sm:$0xff] }
 0x13a   : > { %3018 = vmatmul.mubr.bf16.gmra.mxu0 %v6521_v5  ;;  %3115 = vmatmul.mubr.bf16.gmra.mxu1 %v5716_v8 }
 0x13b   : > { %3025 = vmatprep.mubr.bf16.mxu0 %v5718_v9  ;;  %3122 = vmatprep.mubr.bf16.mxu1 %v5719_v43 }
 0x142   : > { %3026 = vmatmul.mubr.bf16.gmra.mxu0 %v6595_v54  ;;  %3123 = vmatmul.mubr.bf16.gmra.mxu1 %v5721_v13 }
 0x143   : > { %3033 = vmatprep.mubr.bf16.mxu0 %v5722_v45  ;;  %3130 = vmatprep.mubr.bf16.mxu1 %v5723_v0  ;;  %v5734_v0 = vld [vmem:[#allocation4 + $0x38] ss:$12 sps:$4 sm:$0xff]  }
 0x14a   : > { %v4956_v48 = vpop.f32.mrf.mxu0  ;;  %3034 = vmatmul.mubr.bf16.gmra.mxu0 %v6598_v23  ;;  %v5028_v39 = vpop.f32.mrf.mxu1  ;;  %3131 = vmatmul.mubr.bf16.gmra.mxu1 %v5725_v62 }
 0x14b   : > { %3041 = vmatprep.mubr.bf16.mxu0 %v5727_v16  ;;  %3138 = vmatprep.mubr.bf16.mxu1 %v5728_v56 }
 0x14c   : > { %v4957_v14 = vpop.f32.mrf.mxu0  ;;  %v5029_v26 = vpop.f32.mrf.mxu1 }
 0x14d   : > { %v6600_v18 = vadd.f32 %v4957_v14, %v4956_v48  ;;  %v6605_v22 = vadd.f32 %v5029_v26, %v5028_v39 }
 0x14e   : > { %v4959_v28 = vpop.f32.mrf.mxu0  ;;  %v5031_v30 = vpop.f32.mrf.mxu1 }
 0x150   : > { %v4960_v53 = vpop.f32.mrf.mxu0  ;;  %v5032_v37 = vpop.f32.mrf.mxu1 }
 0x151   : > { %v6603_v44 = vadd.f32 %v4960_v53, %v4959_v28  ;;  %v6609_v41 = vadd.f32 %v5032_v37, %v5031_v30  ;;  %v5736_v53 = vld [vmem:[#allocation4 + $0x68] ss:$12 sps:$4 sm:$0xff]  }
 0x152   : > { %v4962_v49 = vpop.f32.mrf.mxu0  ;;  %3042 = vmatmul.mubr.bf16.gmra.mxu0 %v6607_v33  ;;  %v5034_v32 = vpop.f32.mrf.mxu1  ;;  %3139 = vmatmul.mubr.bf16.gmra.mxu1 %v5730_v12 }
 0x153   : > { %3049 = vmatprep.mubr.bf16.mxu0 %v5731_v46  ;;  %3146 = vmatprep.mubr.bf16.mxu1 %v6442_v4  ;;  %v1170_v4 = vld [vmem:[#allocation4 + $0x180] sm:$0xff] }
 0x154   : > { %v4963_v57 = vpop.f32.mrf.mxu0  ;;  %v5035_v35 = vpop.f32.mrf.mxu1  ;;  %v6630_v13 = vcombine.high %v1170_v4, %v1172_v7 }
 0x155   : > { %v6613_v42 = vadd.f32 %v4963_v57, %v4962_v49  ;;  %v6615_v58 = vadd.f32 %v5035_v35, %v5034_v32  ;;  %v5737_v57 = vld [vmem:[#allocation4 + $0x80] ss:$12 sps:$4 sm:$0xff]  }
 0x156   : > { %v4965_v1 = vpop.f32.mrf.mxu0  ;;  %v5037_v51 = vpop.f32.mrf.mxu1 }
 0x158   : > { %v4966_v36 = vpop.f32.mrf.mxu0  ;;  %v5038_v24 = vpop.f32.mrf.mxu1 }
 0x159   : > { %v6619_v10 = vadd.f32 %v4966_v36, %v4965_v1  ;;  %v6621_v6 = vadd.f32 %v5038_v24, %v5037_v51  ;;  %v5738_v1 = vld [vmem:[#allocation4 + $0x98] ss:$12 sps:$4 sm:$0xff]  }
 0x15a   : > { %v4968_v34 = vpop.f32.mrf.mxu0  ;;  %3050 = vmatmul.mubr.bf16.gmra.mxu0 %v6617_v59  ;;  %v5040_v60 = vpop.f32.mrf.mxu1  ;;  %3147 = vmatmul.mubr.bf16.gmra.mxu1 %v6475_v25 }
 0x15b   : > { %3057 = vmatprep.mubr.bf16.mxu0 %v5733_v21  ;;  %3154 = vmatprep.mubr.bf16.mxu1 %v6479_v27 }
 0x15c   : > { %v4969_v8 = vpop.f32.mrf.mxu0  ;;  %v5041_v43 = vpop.f32.mrf.mxu1 }
 0x15d   : > { %v6626_v9 = vadd.f32 %v4969_v8, %v4968_v34  ;;  %v6628_v15 = vadd.f32 %v5041_v43, %v5040_v60 }
 0x15e   : > { %v4971_v17 = vpop.f32.mrf.mxu0  ;;  %v5043_v45 = vpop.f32.mrf.mxu1 }
 0x160   : > { %v4972_v11 = vpop.f32.mrf.mxu0  ;;  %v5044_v48 = vpop.f32.mrf.mxu1 }
 0x161   : > { %v6632_v20 = vadd.f32 %v4972_v11, %v4971_v17  ;;  %v6634_v62 = vadd.f32 %v5044_v48, %v5043_v45  ;;  %v5739_v17 = vld [vmem:[#allocation4 + $0xb0] ss:$12 sps:$4 sm:$0xff]  }
 0x162   : > { %v4974_v25 = vpop.f32.mrf.mxu0  ;;  %3058 = vmatmul.mubr.bf16.gmra.mxu0 %v6630_v13  ;;  %v5046_v27 = vpop.f32.mrf.mxu1  ;;  %3155 = vmatmul.mubr.bf16.gmra.mxu1 %v6502_v50 }
 0x163   : > { %5428 = vmatprep.mubr.bf16.mxu0 %v5734_v0  ;;  %3162 = vmatprep.mubr.bf16.mxu1 %v6510_v40  ;;  %v5740_v0 = vld [vmem:[#allocation4 + $0xc8] ss:$12 sps:$4 sm:$0xff]  }
 0x164   : > { %v4975_v14 = vpop.f32.mrf.mxu0  ;;  %v5047_v56 = vpop.f32.mrf.mxu1 }
 0x165   : > { %v6639_v16 = vadd.f32 %v4975_v14, %v4974_v25  ;;  %v6641_v28 = vadd.f32 %v5047_v56, %v5046_v27 }
 0x166   : > { %v4977_v31 = vpop.f32.mrf.mxu0  ;;  %v5049_v39 = vpop.f32.mrf.mxu1 }
 0x168   : > { %v4978_v26 = vpop.f32.mrf.mxu0  ;;  %v5050_v12 = vpop.f32.mrf.mxu1 }
 0x169   : > { %v6643_v30 = vadd.f32 %v4978_v26, %v4977_v31  ;;  %v6645_v46 = vadd.f32 %v5050_v12, %v5049_v39  ;;  %v5742_v12 = vld [vmem:[#allocation4 + $0xf8] ss:$12 sps:$4 sm:$0xff]  }
 0x16a   : > { %v4980_v50 = vpop.f32.mrf.mxu0  ;;  %5429 = vmatmul.mubr.bf16.vlgmr.msra.gmra.mxu0 %v5735_v38  ;;  %v5068_v37 = vpop.f32.mrf.mxu1  ;;  %3163 = vmatmul.mubr.bf16.gmra.mxu1 %v6519_v3 }
 0x16b   : > { %5432 = vmatprep.mubr.bf16.mxu0 %v5736_v53  ;;  %3170 = vmatprep.mubr.bf16.mxu1 %v6521_v5  ;;  %v5741_v53 = vld [vmem:[#allocation4 + $0xe0] ss:$12 sps:$4 sm:$0xff]  }
 0x16c   : > { %v4981_v40 = vpop.f32.mrf.mxu0  ;;  %v5069_v55 = vpop.f32.mrf.mxu1 }
 0x16d   : > { %v6649_v49 = vadd.f32 %v4981_v40, %v4980_v50  ;;  %v5070_v2 = vadd.f32 %v5069_v55, %v5068_v37 }
 0x16e   : > { %v4983_v32 = vpop.f32.mrf.mxu0  ;;  %v5071_v35 = vpop.f32.mrf.mxu1 }
 0x16f   : > { %v6652_v51 = vadd.f32 %v5070_v2, %v6600_v18 }
 0x170   : > { %v4984_v21 = vpop.f32.mrf.mxu0  ;;  %v5072_v24 = vpop.f32.mrf.mxu1 }
 0x171   : > { %v6654_v36 = vadd.f32 %v4984_v21, %v4983_v32  ;;  %v5073_v3 = vadd.f32 %v5072_v24, %v5071_v35  ;;  %v5743_v21 = vld [vmem:[#allocation4 + $0x110] ss:$12 sps:$4 sm:$0xff]  }
 0x172   : > { %v4986_v34 = vpop.f32.mrf.mxu0  ;;  %5433 = vmatmul.mubr.bf16.gmra.mxu0 %v5737_v57  ;;  %v5074_v4 = vpop.f32.mrf.mxu1  ;;  %3171 = vmatmul.mubr.bf16.gmra.mxu1 %v6532_v19 }
 0x173   : > { %5436 = vmatprep.mubr.bf16.mxu0 %v5738_v1  ;;  %v6658_v5 = vadd.f32 %v5073_v3, %v6603_v44  ;;  %3178 = vmatprep.mubr.bf16.mxu1 %v6595_v54  ;;  %v5744_v3 = vld [vmem:[#allocation4 + $0x128] ss:$12 sps:$4 sm:$0xff]  }
 0x174   : > { %v4987_v7 = vpop.f32.mrf.mxu0  ;;  %v5075_v18 = vpop.f32.mrf.mxu1 }
 0x175   : > { %v6661_v60 = vadd.f32 %v4987_v7, %v4986_v34  ;;  %v5076_v8 = vadd.f32 %v5075_v18, %v5074_v4 }
 0x176   : > { %v4989_v43 = vpop.f32.mrf.mxu0  ;;  %v5077_v45 = vpop.f32.mrf.mxu1 }
 0x177   : > { %v6664_v11 = vadd.f32 %v5076_v8, %v6613_v42 }
 0x178   : > { %v4990_v48 = vpop.f32.mrf.mxu0  ;;  %v5078_v25 = vpop.f32.mrf.mxu1 }
 0x179   : > { %v6666_v19 = vadd.f32 %v4990_v48, %v4989_v43  ;;  %v5079_v44 = vadd.f32 %v5078_v25, %v5077_v45  ;;  %v5745_v48 = vld [vmem:[#allocation4 + $0x140] ss:$12 sps:$4 sm:$0xff]  }
 0x17a   : > { %v4992_v27 = vpop.f32.mrf.mxu0  ;;  %5437 = vmatmul.mubr.bf16.gmra.mxu0 %v5739_v17  ;;  %v5080_v14 = vpop.f32.mrf.mxu1  ;;  %3179 = vmatmul.mubr.bf16.gmra.mxu1 %v6563_v47 }
 0x17b   : > { %5440 = vmatprep.mubr.bf16.mxu0 %v5740_v0  ;;  %v6670_v54 = vadd.f32 %v5079_v44, %v6619_v10  ;;  %3186 = vmatprep.mubr.bf16.mxu1 %v6598_v23  ;;  %v5746_v44 = vld [vmem:[#allocation4 + $0x158] ss:$12 sps:$4 sm:$0xff]  }
 0x17c   : > { %v4993_v56 = vpop.f32.mrf.mxu0  ;;  %v5081_v42 = vpop.f32.mrf.mxu1 }
 0x17d   : > { %v6673_v31 = vadd.f32 %v4993_v56, %v4992_v27  ;;  %v5082_v38 = vadd.f32 %v5081_v42, %v5080_v14 }
 0x17e   : > { %v4995_v39 = vpop.f32.mrf.mxu0  ;;  %v5083_v26 = vpop.f32.mrf.mxu1 }
 0x17f   : > { %v6676_v50 = vadd.f32 %v5082_v38, %v6626_v9 }
 0x180   : > { %v4996_v37 = vpop.f32.mrf.mxu0  ;;  %v5084_v40 = vpop.f32.mrf.mxu1 }
 0x181   : > { %v6678_v47 = vadd.f32 %v4996_v37, %v4995_v39  ;;  %v5085_v10 = vadd.f32 %v5084_v40, %v5083_v26  ;;  %v5747_v37 = vld [vmem:[#allocation4 + $0x170] ss:$12 sps:$4 sm:$0xff]  }
 0x182   : > { %v4998_v55 = vpop.f32.mrf.mxu0  ;;  %5441 = vmatmul.mubr.bf16.gmra.mxu0 %v5741_v53  ;;  %v5086_v2 = vpop.f32.mrf.mxu1  ;;  %3187 = vmatmul.mubr.bf16.gmra.mxu1 %v6572_v63 }
 0x183   : > { %5444 = vmatprep.mubr.bf16.mxu0 %v5742_v12  ;;  %v6682_v23 = vadd.f32 %v5085_v10, %v6632_v20  ;;  %3194 = vmatprep.mubr.bf16.mxu1 %v6607_v33  ;;  %v5751_v10 = vld [vmem:[#allocation4 + $0x188] ss:$12 sps:$4 sm:$0xff]  }
 0x184   : > { %v4999_v32 = vpop.f32.mrf.mxu0  ;;  %v5087_v9 = vpop.f32.mrf.mxu1 }
 0x185   : > { %v6685_v57 = vadd.f32 %v4999_v32, %v4998_v55  ;;  %v5088_v35 = vadd.f32 %v5087_v9, %v5086_v2 }
 0x186   : > { %v5001_v1 = vpop.f32.mrf.mxu0  ;;  %v5089_v24 = vpop.f32.mrf.mxu1 }
 0x187   : > { %v6688_v34 = vadd.f32 %v5088_v35, %v6639_v16 }
 0x188   : > { %v5002_v4 = vpop.f32.mrf.mxu0  ;;  %v5090_v7 = vpop.f32.mrf.mxu1 }
 0x189   : > { %v6690_v63 = vadd.f32 %v5002_v4, %v5001_v1  ;;  %v5091_v20 = vadd.f32 %v5090_v7, %v5089_v24  ;;  %v5752_v7 = vld [vmem:[#allocation4 + $0x1a0] ss:$12 sps:$4 sm:$0xff]  }
 0x18a   : > { %v5004_v18 = vpop.f32.mrf.mxu0  ;;  %5445 = vmatmul.mubr.bf16.gmra.mxu0 %v5743_v21  ;;  %v5092_v8 = vpop.f32.mrf.mxu1  ;;  %3195 = vmatmul.mubr.bf16.gmra.mxu1 %v6579_v29 }
 0x18b   : > { %5448 = vmatprep.mubr.bf16.mxu0 %v5744_v3  ;;  %v6694_v33 = vadd.f32 %v5091_v20, %v6643_v30  ;;  %3202 = vmatprep.mubr.bf16.mxu1 %v6617_v59 }
 0x18c   : > { %v5005_v43 = vpop.f32.mrf.mxu0  ;;  %v5093_v16 = vpop.f32.mrf.mxu1 }
 0x18d   : > { %v6697_v17 = vadd.f32 %v5005_v43, %v5004_v18  ;;  %v5094_v45 = vadd.f32 %v5093_v16, %v5092_v8  ;;  %v5748_v18 = vld [vmem:[#allocation4 + $0x198] ss:$12 sps:$4 sm:$0xff]  }
 0x18e   : > { %v5007_v0 = vpop.f32.mrf.mxu0  ;;  %v5095_v25 = vpop.f32.mrf.mxu1 }
 0x18f   : > { %v6700_v27 = vadd.f32 %v5094_v45, %v6649_v49 }
 0x190   : > { %v5008_v14 = vpop.f32.mrf.mxu0  ;;  %v5096_v56 = vpop.f32.mrf.mxu1 }
 0x191   : > { %v6702_v29 = vadd.f32 %v5008_v14, %v5007_v0  ;;  %v5097_v30 = vadd.f32 %v5096_v56, %v5095_v25 }
 0x192   : > { %v5010_v42 = vpop.f32.mrf.mxu0  ;;  %5449 = vmatmul.mubr.bf16.gmra.mxu0 %v5745_v48  ;;  %v5098_v38 = vpop.f32.mrf.mxu1  ;;  %3203 = vmatmul.mubr.bf16.gmra.mxu1 %v6583_v52  ;;  %v5750_v52 = vld [vmem:[#allocation4 + $0x19c] ss:$12 sps:$4 sm:$0xff]  }
 0x193   : > { %5452 = vmatprep.mubr.bf16.mxu0 %v5746_v44  ;;  %v6706_v59 = vadd.f32 %v5097_v30, %v6654_v36  ;;  %3210 = vmatprep.mubr.bf16.mxu1 %v6630_v13 }
 0x194   : > { %v5011_v39 = vpop.f32.mrf.mxu0  ;;  %v5099_v49 = vpop.f32.mrf.mxu1 }
 0x195   : > { %v6709_v53 = vadd.f32 %v5011_v39, %v5010_v42  ;;  %v5100_v26 = vadd.f32 %v5099_v49, %v5098_v38 }
 0x196   : > { %v5013_v12 = vpop.f32.mrf.mxu0  ;;  %v5101_v40 = vpop.f32.mrf.mxu1 }
 0x197   : > { %v6712_v55 = vadd.f32 %v5100_v26, %v6661_v60 }
 0x198   : > { %v5014_v2 = vpop.f32.mrf.mxu0  ;;  %v5102_v36 = vpop.f32.mrf.mxu1 }
 0x199   : > { %v6714_v32 = vadd.f32 %v5014_v2, %v5013_v12  ;;  %v5103_v9 = vadd.f32 %v5102_v36, %v5101_v40 }
 0x19a   : > { %v5016_v35 = vpop.f32.mrf.mxu0  ;;  %5453 = vmatmul.mubr.bf16.gmra.mxu0 %v5747_v37  ;;  %v5104_v13 = vpop.f32.mrf.mxu1  ;;  %3211 = vmatmul.mubr.bf16.gmra.mxu1 %v6587_v61 }
 0x19b   : > { %5456 = vmatprep.mubr.bf16.mxu0 %v5751_v10  ;;  %v6718_v1 = vadd.f32 %v5103_v9, %v6666_v19  ;;  %3218 = vmatprep.mubr.bf16.mxu1 %v5750_v52 }
 0x19c   : > { %v5017_v21 = vpop.f32.mrf.mxu0  ;;  %v5105_v60 = vpop.f32.mrf.mxu1 }
 0x19d   : > { %v6720_v24 = vadd.f32 %v5017_v21, %v5016_v35  ;;  %v5106_v3 = vadd.f32 %v5105_v60, %v5104_v13 }
 0x19e   : > { %v5019_v4 = vpop.f32.mrf.mxu0  ;;  %v5107_v20 = vpop.f32.mrf.mxu1 }
 0x19f   : > { %v6723_v8 = vadd.f32 %v5106_v3, %v6673_v31 }
 0x1a0   : > { %v5020_v43 = vpop.f32.mrf.mxu0  ;;  %v5108_v61 = vpop.f32.mrf.mxu1 }
 0x1a1   : > { %v6725_v16 = vadd.f32 %v5020_v43, %v5019_v4  ;;  %v5109_v45 = vadd.f32 %v5108_v61, %v5107_v20 }
 0x1a2   : > { %v5022_v19 = vpop.f32.mrf.mxu0  ;;  %5457 = vmatmul.mubr.bf16.gmra.mxu0 %v5752_v7  ;;  %v5110_v0 = vpop.f32.mrf.mxu1  ;;  %3219 = vmatmul.mubr.bf16.gmra.mxu1 %v5748_v18 }
 0x1a3   : > { %v6728_v48 = vadd.f32 %v5109_v45, %v6678_v47 }
 0x1a4   : > { %v5023_v25 = vpop.f32.mrf.mxu0  ;;  %v5111_v14 = vpop.f32.mrf.mxu1 }
 0x1a5   : > { %v6730_v44 = vadd.f32 %v5023_v25, %v5022_v19  ;;  %v5112_v56 = vadd.f32 %v5111_v14, %v5110_v0 }
 0x1a6   : > { %v5025_v30 = vpop.f32.mrf.mxu0  ;;  %v5113_v31 = vpop.f32.mrf.mxu1 }
 0x1a7   : > { %v6733_v42 = vadd.f32 %v5112_v56, %v6685_v57 }
 0x1a8   : > { %v5026_v38 = vpop.f32.mrf.mxu0  ;;  %v5114_v49 = vpop.f32.mrf.mxu1 }
 0x1a9   : > { %v6735_v39 = vadd.f32 %v5026_v38, %v5025_v30  ;;  %v5115_v26 = vadd.f32 %v5114_v49, %v5113_v31 }
 0x1aa   : > { %v5180_v12 = vpop.f32.mrf.mxu0  ;;  %v5116_v37 = vpop.f32.mrf.mxu1 }
 0x1ab   : > { %v6738_v47 = vadd.f32 %v5115_v26, %v6690_v63 }
 0x1ac   : > { %v5181_v40 = vpop.f32.mrf.mxu0  ;;  %v5117_v10 = vpop.f32.mrf.mxu1 }
 0x1ad   : > { %v5182_v2 = vadd.f32 %v5181_v40, %v5180_v12  ;;  %v5118_v52 = vadd.f32 %v5117_v10, %v5116_v37 }
 0x1ae   : > { %v5183_v36 = vpop.f32.mrf.mxu0  ;;  %v5119_v57 = vpop.f32.mrf.mxu1 }
 0x1af   : > { %v6741_v9 = vadd.f32 %v5182_v2, %v6652_v51  ;;  %v6744_v35 = vadd.f32 %v5118_v52, %v6697_v17 }
 0x1b0   : > { %v5184_v13 = vpop.f32.mrf.mxu0  ;;  %v5120_v21 = vpop.f32.mrf.mxu1 }
 0x1b1   : > { %v5185_v60 = vadd.f32 %v5184_v13, %v5183_v36  ;;  %v5121_v3 = vadd.f32 %v5120_v21, %v5119_v57 }
 0x1b2   : > { %v5186_v4 = vpop.f32.mrf.mxu0  ;;  %v5122_v7 = vpop.f32.mrf.mxu1 }
 0x1b3   : > { %v6747_v63 = vadd.f32 %v5185_v60, %v6658_v5  ;;  %v6750_v20 = vadd.f32 %v5121_v3, %v6702_v29 }
 0x1b4   : > { %v5187_v18 = vpop.f32.mrf.mxu0  ;;  %v5123_v43 = vpop.f32.mrf.mxu1 }
 0x1b5   : > { %v5188_v51 = vadd.f32 %v5187_v18, %v5186_v4  ;;  %v5124_v61 = vadd.f32 %v5123_v43, %v5122_v7 }
 0x1b6   : > { %v5189_v45 = vpop.f32.mrf.mxu0  ;;  %v5125_v19 = vpop.f32.mrf.mxu1 }
 0x1b7   : > { %v6753_v17 = vadd.f32 %v5188_v51, %v6664_v11  ;;  %v6756_v0 = vadd.f32 %v5124_v61, %v6709_v53 }
 0x1b8   : > { %v5190_v25 = vpop.f32.mrf.mxu0  ;;  %v5126_v14 = vpop.f32.mrf.mxu1 }
 0x1b9   : > { %v5191_v5 = vadd.f32 %v5190_v25, %v5189_v45  ;;  %v5127_v56 = vadd.f32 %v5126_v14, %v5125_v19 }
 0x1ba   : > { %v5192_v30 = vpop.f32.mrf.mxu0  ;;  %v5128_v31 = vpop.f32.mrf.mxu1 }
 0x1bb   : > { %v6759_v29 = vadd.f32 %v5191_v5, %v6670_v54  ;;  %v6762_v38 = vadd.f32 %v5127_v56, %v6714_v32 }
 0x1bc   : > { %v5193_v49 = vpop.f32.mrf.mxu0  ;;  %v5129_v26 = vpop.f32.mrf.mxu1 }
 0x1bd   : > { %v5194_v11 = vadd.f32 %v5193_v49, %v5192_v30  ;;  %v5130_v12 = vadd.f32 %v5129_v26, %v5128_v31 }
 0x1be   : > { %v5195_v37 = vpop.f32.mrf.mxu0  ;;  %v5131_v40 = vpop.f32.mrf.mxu1 }
 0x1bf   : > { %v6765_v53 = vadd.f32 %v5194_v11, %v6676_v50  ;;  %v6768_v10 = vadd.f32 %v5130_v12, %v6720_v24 }
 0x1c0   : > { %v5196_v2 = vpop.f32.mrf.mxu0  ;;  %v5132_v52 = vpop.f32.mrf.mxu1 }
 0x1c1   : > { %v5197_v54 = vadd.f32 %v5196_v2, %v5195_v37  ;;  %v5133_v36 = vadd.f32 %v5132_v52, %v5131_v40 }
 0x1c2   : > { %v5198_v57 = vpop.f32.mrf.mxu0  ;;  %v5134_v13 = vpop.f32.mrf.mxu1 }
 0x1c3   : > { %v6771_v32 = vadd.f32 %v5197_v54, %v6682_v23  ;;  %v6774_v21 = vadd.f32 %v5133_v36, %v6725_v16 }
 0x1c4   : > { %v5199_v60 = vpop.f32.mrf.mxu0  ;;  %v5135_v3 = vpop.f32.mrf.mxu1 }
 0x1c5   : > { %v5200_v50 = vadd.f32 %v5199_v60, %v5198_v57  ;;  %v5136_v4 = vadd.f32 %v5135_v3, %v5134_v13 }
 0x1c6   : > { %v5201_v7 = vpop.f32.mrf.mxu0  ;;  %v5137_v18 = vpop.f32.mrf.mxu1 }
 0x1c7   : > { %v6777_v24 = vadd.f32 %v5200_v50, %v6688_v34  ;;  %v6780_v43 = vadd.f32 %v5136_v4, %v6730_v44 }
 0x1c8   : > { %v5202_v51 = vpop.f32.mrf.mxu0  ;;  %v5138_v61 = vpop.f32.mrf.mxu1 }
 0x1c9   : > { %v5203_v23 = vadd.f32 %v5202_v51, %v5201_v7  ;;  %v5139_v45 = vadd.f32 %v5138_v61, %v5137_v18 }
 0x1ca   : > { %v5204_v19 = vpop.f32.mrf.mxu0  ;;  %v5140_v25 = vpop.f32.mrf.mxu1 }
 0x1cb   : > { %v6783_v16 = vadd.f32 %v5203_v23, %v6694_v33  ;;  %v6786_v14 = vadd.f32 %v5139_v45, %v6735_v39 }
 0x1cc   : > { %v5205_v5 = vpop.f32.mrf.mxu0  ;;  %v5141_v56 = vpop.f32.mrf.mxu1 }
 0x1cd   : > { %v5206_v34 = vadd.f32 %v5205_v5, %v5204_v19  ;;  %v5142_v30 = vadd.f32 %v5141_v56, %v5140_v25 }
 0x1ce   : > { %v5207_v31 = vpop.f32.mrf.mxu0  ;;  %v5143_v49 = vpop.f32.mrf.mxu1 }
 0x1cf   : > { %v6789_v44 = vadd.f32 %v5206_v34, %v6700_v27  ;;  %v6792_v26 = vadd.f32 %v5142_v30, %v6605_v22 }
 0x1d0   : > { %v5208_v11 = vpop.f32.mrf.mxu0  ;;  %v5144_v12 = vpop.f32.mrf.mxu1 }
 0x1d1   : > { %v5209_v33 = vadd.f32 %v5208_v11, %v5207_v31  ;;  %v5145_v37 = vadd.f32 %v5144_v12, %v5143_v49 }
 0x1d2   : > { %v5210_v40 = vpop.f32.mrf.mxu0  ;;  %v5146_v2 = vpop.f32.mrf.mxu1 }
 0x1d3   : > { %v6795_v39 = vadd.f32 %v5209_v33, %v6706_v59  ;;  %v6798_v52 = vadd.f32 %v5145_v37, %v6609_v41 }
 0x1d4   : > { %v5211_v54 = vpop.f32.mrf.mxu0  ;;  %v5147_v36 = vpop.f32.mrf.mxu1 }
 0x1d5   : > { %v5212_v27 = vadd.f32 %v5211_v54, %v5210_v40  ;;  %v5148_v57 = vadd.f32 %v5147_v36, %v5146_v2 }
 0x1d6   : > { %v5213_v13 = vpop.f32.mrf.mxu0  ;;  %v5149_v60 = vpop.f32.mrf.mxu1 }
 0x1d7   : > { %v6801_v22 = vadd.f32 %v5212_v27, %v6712_v55  ;;  %v6804_v3 = vadd.f32 %v5148_v57, %v6615_v58 }
 0x1d8   : > { %v5214_v50 = vpop.f32.mrf.mxu0  ;;  %v5150_v4 = vpop.f32.mrf.mxu1 }
 0x1d9   : > { %v5215_v59 = vadd.f32 %v5214_v50, %v5213_v13  ;;  %v5151_v7 = vadd.f32 %v5150_v4, %v5149_v60 }
 0x1da   : > { %v5216_v18 = vpop.f32.mrf.mxu0  ;;  %v5152_v51 = vpop.f32.mrf.mxu1 }
 0x1db   : > { %v6807_v41 = vadd.f32 %v5215_v59, %v6718_v1  ;;  %v6810_v61 = vadd.f32 %v5151_v7, %v6621_v6 }
 0x1dc   : > { %v5217_v23 = vpop.f32.mrf.mxu0  ;;  %v5153_v45 = vpop.f32.mrf.mxu1 }
 0x1dd   : > { %v5218_v55 = vadd.f32 %v5217_v23, %v5216_v18  ;;  %v5154_v19 = vadd.f32 %v5153_v45, %v5152_v51 }
 0x1de   : > { %v5219_v25 = vpop.f32.mrf.mxu0  ;;  %v5155_v5 = vpop.f32.mrf.mxu1 }
 0x1df   : > { %v6813_v58 = vadd.f32 %v5218_v55, %v6723_v8  ;;  %v6816_v56 = vadd.f32 %v5154_v19, %v6628_v15 }
 0x1e0   : > { %v5220_v34 = vpop.f32.mrf.mxu0  ;;  %v5156_v30 = vpop.f32.mrf.mxu1 }
 0x1e1   : > { %v5221_v1 = vadd.f32 %v5220_v34, %v5219_v25  ;;  %v5157_v31 = vadd.f32 %v5156_v30, %v5155_v5 }
 0x1e2   : > { %v5222_v49 = vpop.f32.mrf.mxu0  ;;  %v5158_v11 = vpop.f32.mrf.mxu1 }
 0x1e3   : > { %v6819_v6 = vadd.f32 %v5221_v1, %v6728_v48  ;;  %v6822_v12 = vadd.f32 %v5157_v31, %v6634_v62 }
 0x1e4   : > { %v5223_v33 = vpop.f32.mrf.mxu0  ;;  %v5159_v37 = vpop.f32.mrf.mxu1 }
 0x1e5   : > { %v5224_v8 = vadd.f32 %v5223_v33, %v5222_v49  ;;  %v5160_v40 = vadd.f32 %v5159_v37, %v5158_v11 }
 0x1e6   : > { %v5225_v2 = vpop.f32.mrf.mxu0  ;;  %v5161_v54 = vpop.f32.mrf.mxu1 }
 0x1e7   : > { %v6825_v15 = vadd.f32 %v5224_v8, %v6733_v42  ;;  %v6828_v36 = vadd.f32 %v5160_v40, %v6641_v28 }
 0x1e8   : > { %v5226_v27 = vpop.f32.mrf.mxu0  ;;  %v5162_v57 = vpop.f32.mrf.mxu1 }
 0x1e9   : > { %v5227_v48 = vadd.f32 %v5226_v27, %v5225_v2  ;;  %v5163_v13 = vadd.f32 %v5162_v57, %v5161_v54 }
 0x1ea   : > { %v5228_v60 = vpop.f32.mrf.mxu0  ;;  %v5292_v50 = vpop.f32.mrf.mxu1 }
 0x1eb   : > { %v6831_v62 = vadd.f32 %v5227_v48, %v6738_v47  ;;  %v6834_v4 = vadd.f32 %v5163_v13, %v6645_v46 }
 0x1ec   : > { %v5229_v59 = vpop.f32.mrf.mxu0  ;;  %v5293_v42 = vpop.f32.mrf.mxu1 }
 0x1ed   : > { %v5230_v7 = vadd.f32 %v5229_v59, %v5228_v60  ;;  %v5294_v18 = vadd.f32 %v5293_v42, %v5292_v50 }
 0x1ee   : > { %v5231_v51 = vpop.f32.mrf.mxu0  ;;  %v6839_v23 = vpop.f32.mrf.mxu1 }
 0x1ef   : > { %v6837_v28 = vadd.f32 %v5230_v7, %v6744_v35  ;;  %v6842_v55 = vadd.f32 %v5294_v18, %v6741_v9 }
 0x1f0   : > { %v5232_v45 = vpop.f32.mrf.mxu0  ;;  %v6844_v19 = vpop.f32.mrf.mxu1 }
 0x1f1   : > { %v5233_v47 = vadd.f32 %v5232_v45, %v5231_v51 }
 0x1f2   : > { %v5234_v25 = vpop.f32.mrf.mxu0  ;;  %v6849_v5 = vpop.f32.mrf.mxu1 }
 0x1f3   : > { %v6847_v46 = vadd.f32 %v5233_v47, %v6750_v20 }
 0x1f4   : > { %v5235_v34 = vpop.f32.mrf.mxu0  ;;  %v6851_v1 = vpop.f32.mrf.mxu1 }
 0x1f5   : > { %v5236_v30 = vadd.f32 %v5235_v34, %v5234_v25 }
 0x1f6   : > { %v5237_v35 = vpop.f32.mrf.mxu0  ;;  %v6856_v49 = vpop.f32.mrf.mxu1 }
 0x1f7   : > { %v6854_v31 = vadd.f32 %v5236_v30, %v6756_v0 }
 0x1f8   : > { %v5238_v9 = vpop.f32.mrf.mxu0  ;;  %v6858_v33 = vpop.f32.mrf.mxu1 }
 0x1f9   : > { %v5239_v11 = vadd.f32 %v5238_v9, %v5237_v35 }
 0x1fa   : > { %v5240_v37 = vpop.f32.mrf.mxu0  ;;  %v6863_v8 = vpop.f32.mrf.mxu1 }
 0x1fb   : > { %v6861_v20 = vadd.f32 %v5239_v11, %v6762_v38 }
 0x1fc   : > { %v5241_v40 = vpop.f32.mrf.mxu0  ;;  %v6865_v54 = vpop.f32.mrf.mxu1 }
 0x1fd   : > { %v5242_v2 = vadd.f32 %v5241_v40, %v5240_v37 }
 0x1fe   : > { %v5243_v27 = vpop.f32.mrf.mxu0  ;;  %v6870_v57 = vpop.f32.mrf.mxu1 }
 0x1ff   : > { %v6868_v0 = vadd.f32 %v5242_v2, %v6768_v10 }
 0x200   : > { %v5244_v48 = vpop.f32.mrf.mxu0  ;;  %v6872_v60 = vpop.f32.mrf.mxu1 }
 0x201   : > { %v5245_v13 = vadd.f32 %v5244_v48, %v5243_v27 }
 0x202   : > { %v5246_v50 = vpop.f32.mrf.mxu0  ;;  %v6877_v59 = vpop.f32.mrf.mxu1 }
 0x203   : > { %v6875_v38 = vadd.f32 %v5245_v13, %v6774_v21 }
 0x204   : > { %v5247_v7 = vpop.f32.mrf.mxu0  ;;  %v6879_v18 = vpop.f32.mrf.mxu1 }
 0x205   : > { %7317 = vst [vmem:[#allocation11_spill] sm:$0xff] %v6875_v38  ;;  %v5248_v42 = vadd.f32 %v5247_v7, %v5246_v50 }
 0x206   : > { %v5249_v51 = vpop.f32.mrf.mxu0  ;;  %v6884_v45 = vpop.f32.mrf.mxu1 }
 0x207   : > { %v6882_v10 = vadd.f32 %v5248_v42, %v6780_v43 }
 0x208   : > { %v5250_v47 = vpop.f32.mrf.mxu0  ;;  %v6886_v34 = vpop.f32.mrf.mxu1 }
 0x209   : > { %7318 = vst [vmem:[#allocation12_spill] sm:$0xff] %v6882_v10  ;;  %v5251_v25 = vadd.f32 %v5250_v47, %v5249_v51 }
 0x20a   : > { %v5252_v30 = vpop.f32.mrf.mxu0  ;;  %v6891_v35 = vpop.f32.mrf.mxu1 }
 0x20b   : > { %v6889_v21 = vadd.f32 %v5251_v25, %v6786_v14 }
 0x20c   : > { %v5253_v9 = vpop.f32.mrf.mxu0  ;;  %v6893_v37 = vpop.f32.mrf.mxu1 }
 0x20d   : > { %7319 = vst [vmem:[#allocation13_spill] sm:$0xff] %v6889_v21  ;;  %v5254_v11 = vadd.f32 %v5253_v9, %v5252_v30 }
 0x20e   : > { %v5255_v40 = vpop.f32.mrf.mxu0  ;;  %v6898_v2 = vpop.f32.mrf.mxu1 }
 0x20f   : > { %v6896_v43 = vadd.f32 %v5254_v11, %v6792_v26 }
 0x210   : > { %v5256_v27 = vpop.f32.mrf.mxu0  ;;  %v6900_v13 = vpop.f32.mrf.mxu1 }
 0x211   : > { %7320 = vst [vmem:[#allocation14_spill] sm:$0xff] %v6896_v43  ;;  %v5257_v48 = vadd.f32 %v5256_v27, %v5255_v40 }
 0x212   : > { %v5258_v50 = vpop.f32.mrf.mxu0  ;;  %v6905_v7 = vpop.f32.mrf.mxu1 }
 0x213   : > { %v6903_v14 = vadd.f32 %v5257_v48, %v6798_v52 }
 0x214   : > { %v5259_v42 = vpop.f32.mrf.mxu0  ;;  %v6907_v47 = vpop.f32.mrf.mxu1 }
 0x215   : > { %7321 = vst [vmem:[#allocation15_spill] sm:$0xff] %v6903_v14  ;;  %v5260_v51 = vadd.f32 %v5259_v42, %v5258_v50 }
 0x216   : > { %v5261_v25 = vpop.f32.mrf.mxu0  ;;  %v6912_v30 = vpop.f32.mrf.mxu1 }
 0x217   : > { %v6910_v26 = vadd.f32 %v5260_v51, %v6804_v3 }
 0x218   : > { %v5262_v9 = vpop.f32.mrf.mxu0  ;;  %v6914_v40 = vpop.f32.mrf.mxu1 }
 0x219   : > { %7322 = vst [vmem:[#allocation16_spill] sm:$0xff] %v6910_v26  ;;  %v5263_v11 = vadd.f32 %v5262_v9, %v5261_v25 }
 0x21a   : > { %v5264_v27 = vpop.f32.mrf.mxu0  ;;  %v6919_v48 = vpop.f32.mrf.mxu1 }
 0x21b   : > { %v6917_v52 = vadd.f32 %v5263_v11, %v6810_v61 }
 0x21c   : > { %v5265_v14 = vpop.f32.mrf.mxu0  ;;  %v6921_v42 = vpop.f32.mrf.mxu1 }
 0x21d   : > { %7323 = vst [vmem:[#allocation17_spill] sm:$0xff] %v6917_v52  ;;  %v5266_v50 = vadd.f32 %v5265_v14, %v5264_v27 }
 0x21e   : > { %v5267_v43 = vpop.f32.mrf.mxu0  ;;  %v6926_v51 = vpop.f32.mrf.mxu1 }
 0x21f   : > { %v6924_v3 = vadd.f32 %v5266_v50, %v6816_v56 }
 0x220   : > { %v5268_v26 = vpop.f32.mrf.mxu0  ;;  %v6928_v9 = vpop.f32.mrf.mxu1 }
 0x221   : > { %7324 = vst [vmem:[#allocation18_spill] sm:$0xff] %v6924_v3  ;;  %v5269_v25 = vadd.f32 %v5268_v26, %v5267_v43  ;;  %v5300_v26 = vadd.f32 %v6851_v1, %v6849_v5  ;;  %v5306_v1 = vadd.f32 %v6865_v54, %v6863_v8 }
 0x222   : > { %v5270_v38 = vpop.f32.mrf.mxu0  ;;  %v6933_v11 = vpop.f32.mrf.mxu1 }
 0x223   : > { %v6931_v61 = vadd.f32 %v5269_v25, %v6822_v12  ;;  %v5303_v12 = vadd.f32 %v6858_v33, %v6856_v49 }
 0x224   : > { %v5271_v52 = vpop.f32.mrf.mxu0  ;;  %v6935_v27 = vpop.f32.mrf.mxu1 }
 0x225   : > { %7325 = vst [vmem:[#allocation19_spill] sm:$0xff] %v6931_v61  ;;  %v5272_v14 = vadd.f32 %v5271_v52, %v5270_v38  ;;  %v5297_v52 = vadd.f32 %v6844_v19, %v6839_v23  ;;  %v3112_v5 = vadd.f32 %v5303_v12, %v6759_v29 }
 0x226   : > { %v5273_v21 = vpop.f32.mrf.mxu0  ;;  %v6940_v50 = vpop.f32.mrf.mxu1 }
 0x227   : > { %v6938_v56 = vadd.f32 %v5272_v14, %v6828_v36 }
 0x228   : > { %v5274_v43 = vpop.f32.mrf.mxu0  ;;  %v6946_v61 = vpop.f32.mrf.mxu1 }
 0x229   : > { %7326 = vst [vmem:[#allocation20_spill] sm:$0xff] %v6938_v56  ;;  %v5275_v25 = vadd.f32 %v5274_v43, %v5273_v21  ;;  %v3109_v56 = vadd.f32 %v5300_v26, %v6753_v17  ;;  %v3104_v21 = vadd.f32 %v5297_v52, %v6747_v63  ;;  %v5312_v17 = vadd.f32 %v6879_v18, %v6877_v59 }
 0x22a   : > { %v5430_v38 = vpop.f32.mrf.mxu0  ;;  %v6953_v36 = vpop.f32.mrf.mxu1  ;;  %v5315_v43 = vadd.f32 %v6886_v34, %v6884_v45  ;;  %v5309_v45 = vadd.f32 %v6872_v60, %v6870_v57  ;;  %v5327_v60 = vadd.f32 %v6914_v40, %v6912_v30 }
 0x22b   : > { %v6951_v3 = vadd.f32 %v5275_v25, %v6834_v4  ;;  %v3270_v33 = vadd.f32 %v5430_v38, %v3109_v56  ;;  %v3117_v56 = vadd.f32 %v5306_v1, %v6765_v53  ;;  %v3125_v34 = vadd.f32 %v5312_v17, %v6777_v24 }
 0x22c   : > { %v3261_v14 = vpop.f32.mrf.mxu0  ;;  %v6956_v10 = vpop.f32.mrf.mxu1  ;;  %v3128_v52 = vadd.f32 %v5315_v43, %v6783_v16  ;;  %v5318_v24 = vadd.f32 %v6893_v37, %v6891_v35  ;;  %v5324_v16 = vadd.f32 %v6907_v47, %v6905_v7  ;;  %v5321_v35 = vadd.f32 %v6900_v13, %v6898_v2 }
 0x22d   : > { %7327 = vst [vmem:[#allocation21_spill] sm:$0xff] %v6951_v3  ;;  %v3262_v23 = vadd.f32 %v3261_v14, %v6842_v55  ;;  %v3428_v53 = vmul.f32 %v3270_v33, %v3270_v33 }
 0x22e   : > { %v5431_v49 = vpop.f32.mrf.mxu0  ;;  %v6963_v19 = vpop.f32.mrf.mxu1  ;;  %v3133_v40 = vadd.f32 %v5318_v24, %v6789_v44  ;;  %v5330_v44 = vadd.f32 %v6921_v42, %v6919_v48  ;;  %v5339_v24 = vadd.f32 %v6946_v61, %v6940_v50  ;;  %v5333_v48 = vadd.f32 %v6928_v9, %v6926_v51 }
 0x22f   : > { %v3273_v4 = vadd.f32 %v5431_v49, %v3112_v5  ;;  %v3426_v55 = vmul.f32 %v3262_v23, %v3262_v23 }
 0x230   : > { %v3264_v29 = vpop.f32.mrf.mxu0  ;;  %v6970_v12 = vpop.f32.mrf.mxu1  ;;  %v3149_v61 = vadd.f32 %v5330_v44, %v6813_v58  ;;  %v5342_v58 = vadd.f32 %v6956_v10, %v6953_v36 }
 0x231   : > { %v4679_v26 = vpack.c.bf16 %v3273_v4, %v3270_v33  ;;  %v3265_v8 = vadd.f32 %v3264_v29, %v3104_v21  ;;  %v3429_v21 = vmul.f32 %v3273_v4, %v3273_v4  ;;  %v5345_v10 = vadd.f32 %v6970_v12, %v6963_v19 }
 0x232   : > { %v5434_v54 = vpop.f32.mrf.mxu0  ;;  %v6976_v18 = vpop.f32.mrf.mxu1 }
 0x233   : > { %4895 = vst [vmem:[%s6973_s29 + $0x8] sm:$0xff] %v4679_v26   ;;  %v3388_v63 = vadd.f32 %v3265_v8, %v3262_v23  ;;  %v3427_v25 = vmul.f32 %v3265_v8, %v3265_v8  ;;  %v4674_v59 = vpack.c.bf16 %v3265_v8, %v3262_v23  ;;  %v3286_v26 = vadd.f32 %v5434_v54, %v3125_v34 }
 0x234   : > { %v3277_v38 = vpop.f32.mrf.mxu0  ;;  %v6983_v1 = vpop.f32.mrf.mxu1 }
 0x235   : > { %v3389_v14 = vadd.f32 %v3388_v63, %v3270_v33  ;;  %v3458_v5 = vadd.f32 %v3427_v25, %v3426_v55  ;;  %4675 = vst [vmem:[%s6973_s29] sm:$0xff] %v4674_v59   ;;  %v3278_v49 = vadd.f32 %v3277_v38, %v3117_v56  ;;  %v3120_v33 = vadd.f32 %v5309_v45, %v6771_v32 }
 0x236   : > { %v5435_v29 = vpop.f32.mrf.mxu0  ;;  %v6985_v3 = vpop.f32.mrf.mxu1  ;;  %v3141_v45 = vadd.f32 %v5324_v16, %v6801_v22  ;;  %v3144_v38 = vadd.f32 %v5327_v60, %v6807_v41 }
 0x237   : > { %v3459_v23 = vadd.f32 %v3458_v5, %v3428_v53  ;;  %v3390_v8 = vadd.f32 %v3389_v14, %v3273_v4  ;;  %v3289_v57 = vadd.f32 %v5435_v29, %v3128_v52  ;;  %v3430_v56 = vmul.f32 %v3278_v49, %v3278_v49 }
 0x238   : > { %v3280_v17 = vpop.f32.mrf.mxu0  ;;  %v6994_v55 = vpop.f32.mrf.mxu1  ;;  %v3432_v52 = vmul.f32 %v3286_v26, %v3286_v26 }
 0x239   : > { %v3391_v43 = vadd.f32 %v3390_v8, %v3278_v49  ;;  %v3460_v54 = vadd.f32 %v3459_v23, %v3429_v21  ;;  %v4689_v4 = vpack.c.bf16 %v3289_v57, %v3286_v26  ;;  %v3281_v63 = vadd.f32 %v3280_v17, %v3120_v33 }
 0x23a   : > { %v5438_v25 = vpop.f32.mrf.mxu0  ;;  %v6999_v7 = vpop.f32.mrf.mxu1  ;;  %v3433_v22 = vmul.f32 %v3289_v57, %v3289_v57 }
 0x23b   : > { %v3461_v37 = vadd.f32 %v3460_v54, %v3430_v56  ;;  %4897 = vst [vmem:[%s6973_s29 + $0x18] sm:$0xff] %v4689_v4   ;;  %v3392_v47 = vadd.f32 %v3391_v43, %v3281_v63  ;;  %v3431_v30 = vmul.f32 %v3281_v63, %v3281_v63  ;;  %v4684_v32 = vpack.c.bf16 %v3281_v63, %v3278_v49 }
 0x23c   : > { %v3293_v59 = vpop.f32.mrf.mxu0  ;;  %v7003_v34 = vpop.f32.mrf.mxu1  ;;  %v3302_v5 = vadd.f32 %v5438_v25, %v3141_v45  ;;  %v3136_v49 = vadd.f32 %v5321_v35, %v6795_v39  ;;  %v3160_v25 = vadd.f32 %v5339_v24, %v6831_v62  ;;  %v5348_v62 = vadd.f32 %v6983_v1, %v6976_v18 }
 0x23d   : > { %v3393_v53 = vadd.f32 %v3392_v47, %v3286_v26  ;;  %v3462_v14 = vadd.f32 %v3461_v37, %v3431_v30  ;;  %4896 = vst [vmem:[%s6973_s29 + $0x10] sm:$0xff] %v4684_v32   ;;  %v3294_v2 = vadd.f32 %v3293_v59, %v3133_v40  ;;  %v5336_v26 = vadd.f32 %v6935_v27, %v6933_v11 }
 0x23e   : > { %v5439_v13 = vpop.f32.mrf.mxu0  ;;  %v7007_v21 = vpop.f32.mrf.mxu1  ;;  %v3436_v35 = vmul.f32 %v3302_v5, %v3302_v5  ;;  %v3152_v59 = vadd.f32 %v5333_v48, %v6819_v6  ;;  %v3165_v1 = vadd.f32 %v5342_v58, %v6837_v28  ;;  %v5354_v28 = vadd.f32 %v7003_v34, %v6999_v7 }
 0x23f   : > { %v3305_v29 = vadd.f32 %v5439_v13, %v3144_v38  ;;  %v3463_v23 = vadd.f32 %v3462_v14, %v3432_v52  ;;  %v3394_v8 = vadd.f32 %v3393_v53, %v3289_v57  ;;  %v3434_v17 = vmul.f32 %v3294_v2, %v3294_v2 }
 0x240   : > { %v3296_v41 = vpop.f32.mrf.mxu0  ;;  %v7016_v60 = vpop.f32.mrf.mxu1  ;;  %v3157_v4 = vadd.f32 %v5336_v26, %v6825_v15  ;;  %v5351_v53 = vadd.f32 %v6994_v55, %v6985_v3  ;;  %v3173_v55 = vadd.f32 %v5348_v62, %v6854_v31 }
 0x241   : > { %v4699_v16 = vpack.c.bf16 %v3305_v29, %v3302_v5  ;;  %v3297_v33 = vadd.f32 %v3296_v41, %v3136_v49  ;;  %v3395_v39 = vadd.f32 %v3394_v8, %v3294_v2  ;;  %v3464_v43 = vadd.f32 %v3463_v23, %v3433_v22 }
 0x242   : > { %v5442_v56 = vpop.f32.mrf.mxu0  ;;  %v5358_v54 = vpop.f32.mrf.mxu1  ;;  %v3437_v45 = vmul.f32 %v3305_v29, %v3305_v29  ;;  %v3176_v41 = vadd.f32 %v5351_v53, %v6861_v20  ;;  %v7330_v53 = vld [vmem:[#allocation11_spill] sm:$0xff] }
 0x243   : > { %4899 = vst [vmem:[%s6973_s29 + $0x28] sm:$0xff] %v4699_v16   ;;  %v3435_v42 = vmul.f32 %v3297_v33, %v3297_v33  ;;  %v4694_v57 = vpack.c.bf16 %v3297_v33, %v3294_v2  ;;  %v3465_v11 = vadd.f32 %v3464_v43, %v3434_v17  ;;  %v3396_v27 = vadd.f32 %v3395_v39, %v3297_v33 }
 0x244   : > { %v3309_v50 = vpop.f32.mrf.mxu0  ;;  %v5359_v63 = vpop.f32.mrf.mxu1  ;;  %v3318_v9 = vadd.f32 %v5442_v56, %v3157_v4  ;;  %v3168_v43 = vadd.f32 %v5345_v10, %v6847_v46  ;;  %v5357_v46 = vadd.f32 %v7016_v60, %v7007_v21 }
 0x245   : > { %4898 = vst [vmem:[%s6973_s29 + $0x20] sm:$0xff] %v4694_v57   ;;  %v3397_v37 = vadd.f32 %v3396_v27, %v3302_v5  ;;  %v3466_v47 = vadd.f32 %v3465_v11, %v3435_v42  ;;  %v3310_v30 = vadd.f32 %v3309_v50, %v3149_v61  ;;  %v5360_v57 = vadd.f32 %v5359_v63, %v5358_v54 }
 0x246   : > { %v5443_v51 = vpop.f32.mrf.mxu0  ;;  %v5361_v32 = vpop.f32.mrf.mxu1  ;;  %v3440_v26 = vmul.f32 %v3318_v9, %v3318_v9  ;;  %v3181_v54 = vadd.f32 %v5354_v28, %v6868_v0  ;;  %v7333_v28 = vld [vmem:[#allocation17_spill] sm:$0xff] }
 0x247   : > { %v3321_v40 = vadd.f32 %v5443_v51, %v3160_v25  ;;  %v3467_v38 = vadd.f32 %v3466_v47, %v3436_v35  ;;  %v3398_v15 = vadd.f32 %v3397_v37, %v3305_v29  ;;  %v3438_v6 = vmul.f32 %v3310_v30, %v3310_v30  ;;  %v7328_v51 = vld [vmem:[#allocation12_spill] sm:$0xff] }
 0x248   : > { %v3312_v52 = vpop.f32.mrf.mxu0  ;;  %v5362_v2 = vpop.f32.mrf.mxu1 }
 0x249   : > { %v4709_v14 = vpack.c.bf16 %v3321_v40, %v3318_v9  ;;  %v3313_v13 = vadd.f32 %v3312_v52, %v3152_v59  ;;  %v3399_v5 = vadd.f32 %v3398_v15, %v3310_v30  ;;  %v3468_v49 = vadd.f32 %v3467_v38, %v3437_v45 }
 0x24a   : > { %v5446_v44 = vpop.f32.mrf.mxu0  ;;  %v5364_v22 = vpop.f32.mrf.mxu1  ;;  %v3441_v56 = vmul.f32 %v3321_v40, %v3321_v40  ;;  %v5363_v20 = vadd.f32 %v5362_v2, %v5361_v32 }
 0x24b   : > { %4901 = vst [vmem:[%s6973_s29 + $0x38] sm:$0xff] %v4709_v14   ;;  %v3439_v36 = vmul.f32 %v3313_v13, %v3313_v13  ;;  %v4704_v29 = vpack.c.bf16 %v3313_v13, %v3310_v30  ;;  %v3469_v23 = vadd.f32 %v3468_v49, %v3438_v6  ;;  %v3400_v18 = vadd.f32 %v3399_v5, %v3313_v13 }
 0x24c   : > { %v3325_v3 = vpop.f32.mrf.mxu0  ;;  %v5365_v8 = vpop.f32.mrf.mxu1  ;;  %v3334_v12 = vadd.f32 %v5446_v44, %v3173_v55  ;;  %v3184_v14 = vadd.f32 %v5357_v46, %v7330_v53 }
 0x24d   : > { %4900 = vst [vmem:[%s6973_s29 + $0x30] sm:$0xff] %v4704_v29   ;;  %v3401_v24 = vadd.f32 %v3400_v18, %v3318_v9  ;;  %v3470_v16 = vadd.f32 %v3469_v23, %v3439_v36  ;;  %v3326_v33 = vadd.f32 %v3325_v3, %v3165_v1  ;;  %v3189_v9 = vadd.f32 %v5360_v57, %v7328_v51 }
 0x24e   : > { %v5447_v19 = vpop.f32.mrf.mxu0  ;;  %v5367_v39 = vpop.f32.mrf.mxu1  ;;  %v3444_v58 = vmul.f32 %v3334_v12, %v3334_v12  ;;  %v5366_v2 = vadd.f32 %v5365_v8, %v5364_v22 }
 0x24f   : > { %v3337_v17 = vadd.f32 %v5447_v19, %v3176_v41  ;;  %v3471_v48 = vadd.f32 %v3470_v16, %v3440_v26  ;;  %v3402_v31 = vadd.f32 %v3401_v24, %v3321_v40  ;;  %v3442_v4 = vmul.f32 %v3326_v33, %v3326_v33  ;;  %v7329_v40 = vld [vmem:[#allocation13_spill] sm:$0xff]  ;;  %v7331_v16 = vld [vmem:[#allocation14_spill] sm:$0xff] }
 0x250   : > { %v3328_v42 = vpop.f32.mrf.mxu0  ;;  %v5368_v27 = vpop.f32.mrf.mxu1  ;;  %v3192_v59 = vadd.f32 %v5363_v20, %v7329_v40 }
 0x251   : > { %v4719_v11 = vpack.c.bf16 %v3337_v17, %v3334_v12  ;;  %v3329_v61 = vadd.f32 %v3328_v42, %v3168_v43  ;;  %v3403_v50 = vadd.f32 %v3402_v31, %v3326_v33  ;;  %v3472_v25 = vadd.f32 %v3471_v48, %v3441_v56 }
 0x252   : > { %v5450_v35 = vpop.f32.mrf.mxu0  ;;  %v5370_v34 = vpop.f32.mrf.mxu1  ;;  %v3445_v0 = vmul.f32 %v3337_v17, %v3337_v17  ;;  %v5369_v55 = vadd.f32 %v5368_v27, %v5367_v39 }
 0x253   : > { %4903 = vst [vmem:[%s6973_s29 + $0x48] sm:$0xff] %v4719_v11   ;;  %v3443_v37 = vmul.f32 %v3329_v61, %v3329_v61  ;;  %v4714_v7 = vpack.c.bf16 %v3329_v61, %v3326_v33  ;;  %v3473_v47 = vadd.f32 %v3472_v25, %v3442_v4  ;;  %v3404_v30 = vadd.f32 %v3403_v50, %v3329_v61  ;;  %v7334_v50 = vld [vmem:[#allocation15_spill] sm:$0xff] }
 0x254   : > { %v3341_v63 = vpop.f32.mrf.mxu0  ;;  %v5371_v32 = vpop.f32.mrf.mxu1  ;;  %v3350_v60 = vadd.f32 %v5450_v35, %v3189_v9  ;;  %v3197_v33 = vadd.f32 %v5366_v2, %v7331_v16  ;;  %v3200_v4 = vadd.f32 %v5369_v55, %v7334_v50 }
 0x255   : > { %4902 = vst [vmem:[%s6973_s29 + $0x40] sm:$0xff] %v4714_v7   ;;  %v3405_v45 = vadd.f32 %v3404_v30, %v3334_v12  ;;  %v3474_v38 = vadd.f32 %v3473_v47, %v3443_v37  ;;  %v3342_v15 = vadd.f32 %v3341_v63, %v3181_v54  ;;  %v5372_v49 = vadd.f32 %v5371_v32, %v5370_v34  ;;  %v7332_v12 = vld [vmem:[#allocation16_spill] sm:$0xff] }
 0x256   : > { %v5451_v21 = vpop.f32.mrf.mxu0  ;;  %v5373_v52 = vpop.f32.mrf.mxu1  ;;  %v3448_v48 = vmul.f32 %v3350_v60, %v3350_v60 }
 0x257   : > { %v3353_v62 = vadd.f32 %v5451_v21, %v3192_v59  ;;  %v3475_v13 = vadd.f32 %v3474_v38, %v3444_v58  ;;  %v3406_v5 = vadd.f32 %v3405_v45, %v3337_v17  ;;  %v3446_v23 = vmul.f32 %v3342_v15, %v3342_v15  ;;  %v7335_v58 = vld [vmem:[#allocation18_spill] sm:$0xff] }
 0x258   : > { %v3344_v6 = vpop.f32.mrf.mxu0  ;;  %v5374_v10 = vpop.f32.mrf.mxu1  ;;  %v3205_v17 = vadd.f32 %v5372_v49, %v7332_v12 }
 0x259   : > { %v4729_v44 = vpack.c.bf16 %v3353_v62, %v3350_v60  ;;  %v3345_v36 = vadd.f32 %v3344_v6, %v3184_v14  ;;  %v3407_v29 = vadd.f32 %v3406_v5, %v3342_v15  ;;  %v3476_v18 = vadd.f32 %v3475_v13, %v3445_v0  ;;  %v7336_v5 = vld [vmem:[#allocation19_spill] sm:$0xff] }
 0x25a   : > { %v5375_v1 = vadd.f32 %v5374_v10, %v5373_v52  ;;  %v5454_v3 = vpop.f32.mrf.mxu0  ;;  %v5376_v24 = vpop.f32.mrf.mxu1  ;;  %v3449_v25 = vmul.f32 %v3353_v62, %v3353_v62  ;;  %v7337_v10 = vld [vmem:[#allocation20_spill] sm:$0xff] }
 0x25b   : > { %4905 = vst [vmem:[%s6973_s29 + $0x58] sm:$0xff] %v4729_v44   ;;  %v3447_v41 = vmul.f32 %v3345_v36, %v3345_v36  ;;  %v4724_v26 = vpack.c.bf16 %v3345_v36, %v3342_v15  ;;  %v3477_v22 = vadd.f32 %v3476_v18, %v3446_v23  ;;  %v3408_v8 = vadd.f32 %v3407_v29, %v3345_v36 }
 0x25c   : > { %v3357_v19 = vpop.f32.mrf.mxu0  ;;  %v5377_v43 = vpop.f32.mrf.mxu1  ;;  %v3208_v56 = vadd.f32 %v5375_v1, %v7333_v28  ;;  %v3366_v20 = vadd.f32 %v5454_v3, %v3205_v17 }
 0x25d   : > { %4904 = vst [vmem:[%s6973_s29 + $0x50] sm:$0xff] %v4724_v26   ;;  %v3409_v31 = vadd.f32 %v3408_v8, %v3350_v60  ;;  %v3478_v42 = vadd.f32 %v3477_v22, %v3447_v41  ;;  %v3358_v57 = vadd.f32 %v3357_v19, %v3197_v33  ;;  %v5378_v11 = vadd.f32 %v5377_v43, %v5376_v24  ;;  %v7338_v33 = vld [vmem:[#allocation21_spill] sm:$0xff] }
 0x25e   : > { %v5455_v39 = vpop.f32.mrf.mxu0  ;;  %v5379_v27 = vpop.f32.mrf.mxu1 }
 0x25f   : > { %v3369_v61 = vadd.f32 %v5455_v39, %v3208_v56  ;;  %v3479_v35 = vadd.f32 %v3478_v42, %v3448_v48  ;;  %v3410_v46 = vadd.f32 %v3409_v31, %v3353_v62  ;;  %v3450_v54 = vmul.f32 %v3358_v57, %v3358_v57 }
 0x260   : > { %v3360_v37 = vpop.f32.mrf.mxu0  ;;  %v5380_v34 = vpop.f32.mrf.mxu1  ;;  %v3213_v45 = vadd.f32 %v5378_v11, %v7335_v58  ;;  %v3452_v62 = vmul.f32 %v3366_v20, %v3366_v20 }
 0x261   : > { %v4739_v7 = vpack.c.bf16 %v3369_v61, %v3366_v20  ;;  %v3361_v47 = vadd.f32 %v3360_v37, %v3200_v4  ;;  %v3411_v30 = vadd.f32 %v3410_v46, %v3358_v57  ;;  %v3480_v63 = vadd.f32 %v3479_v35, %v3449_v25 }
 0x262   : > { %v5458_v51 = vpop.f32.mrf.mxu0  ;;  %v5381_v9 = vadd.f32 %v5380_v34, %v5379_v27  ;;  %v5382_v59 = vpop.f32.mrf.mxu1  ;;  %v3453_v49 = vmul.f32 %v3369_v61, %v3369_v61 }
 0x263   : > { %4907 = vst [vmem:[%s6973_s29 + $0x68] sm:$0xff] %v4739_v7   ;;  %v3451_v32 = vmul.f32 %v3361_v47, %v3361_v47  ;;  %v4734_v40 = vpack.c.bf16 %v3361_v47, %v3358_v57  ;;  %v3481_v38 = vadd.f32 %v3480_v63, %v3450_v54  ;;  %v3412_v15 = vadd.f32 %v3411_v30, %v3361_v47 }
 0x264   : > { %v3373_v21 = vpop.f32.mrf.mxu0  ;;  %v5383_v60 = vpop.f32.mrf.mxu1  ;;  %v3216_v6 = vadd.f32 %v5381_v9, %v7336_v5 }
 0x265   : > { %4906 = vst [vmem:[%s6973_s29 + $0x60] sm:$0xff] %v4734_v40   ;;  %v3374_v52 = vadd.f32 %v3373_v21, %v3213_v45  ;;  %v3413_v53 = vadd.f32 %v3412_v15, %v3366_v20  ;;  %v3482_v14 = vadd.f32 %v3481_v38, %v3451_v32  ;;  %v5384_v2 = vadd.f32 %v5383_v60, %v5382_v59 }
 0x266   : > { %v5459_v0 = vpop.f32.mrf.mxu0  ;;  %v5385_v13 = vpop.f32.mrf.mxu1 }
 0x267   : > { %v3483_v44 = vadd.f32 %v3482_v14, %v3452_v62  ;;  %v3221_v36 = vadd.f32 %v5384_v2, %v7337_v10  ;;  %v3414_v29 = vadd.f32 %v3413_v53, %v3369_v61  ;;  %v3454_v18 = vmul.f32 %v3374_v52, %v3374_v52 }
 0x268   : > { %v3376_v23 = vpop.f32.mrf.mxu0  ;;  %v5386_v1 = vpop.f32.mrf.mxu1 }
 0x269   : > { %v3377_v3 = vadd.f32 %v3376_v23, %v3216_v6  ;;  %v3382_v55 = vadd.f32 %v5458_v51, %v3221_v36  ;;  %v3415_v41 = vadd.f32 %v3414_v29, %v3374_v52  ;;  %v3484_v26 = vadd.f32 %v3483_v44, %v3453_v49 }
 0x26a   : > { %v5387_v24 = vadd.f32 %v5386_v1, %v5385_v13 }
 0x26b   : > { %v3455_v22 = vmul.f32 %v3377_v3, %v3377_v3  ;;  %v4744_v8 = vpack.c.bf16 %v3377_v3, %v3374_v52  ;;  %v3485_v16 = vadd.f32 %v3484_v26, %v3454_v18  ;;  %v3416_v12 = vadd.f32 %v3415_v41, %v3377_v3 }
 0x26c   : > { %v3224_v19 = vadd.f32 %v5387_v24, %v7338_v33  ;;  %v3456_v17 = vmul.f32 %v3382_v55, %v3382_v55 }
 0x26d   : > { %4908 = vst [vmem:[%s6973_s29 + $0x70] sm:$0xff] %v4744_v8   ;;  %v3417_v28 = vadd.f32 %v3416_v12, %v3382_v55  ;;  %v3486_v56 = vadd.f32 %v3485_v16, %v3455_v22 }
 0x26e   : > { %v3385_v43 = vadd.f32 %v5459_v0, %v3224_v19 }
 0x26f   : > { %v3487_v57 = vadd.f32 %v3486_v56, %v3456_v17 }
 0x270   : > { %v3457_v48 = vmul.f32 %v3385_v43, %v3385_v43  ;;  %v4749_v31 = vpack.c.bf16 %v3385_v43, %v3382_v55  ;;  %v3418_v42 = vadd.f32 %v3417_v28, %v3385_v43 }
 0x272   : > { %4909 = vst [vmem:[%s6973_s29 + $0x78] sm:$0xff] %v4749_v31   ;;  %v3419_v39 = vrot.slane %v3418_v42, 4  ;;  %v3488_v20 = vadd.f32 %v3487_v57, %v3457_v48 }
 0x274   : > { %v3420_v11 = vadd.f32 %v3419_v39, %v3418_v42  ;;  %v3489_v27 = vrot.slane %v3488_v20, 4 }
 0x276   : > { %v3421_v61 = vrot.slane %v3420_v11, 2  ;;  %v3490_v50 = vadd.f32 %v3489_v27, %v3488_v20 }
 0x278   : > { %v3422_v4 = vadd.f32 %v3421_v61, %v3420_v11  ;;  %v3491_v25 = vrot.slane %v3490_v50, 2 }
 0x27a   : > { %v3423_v35 = vrot.slane %v3422_v4, 1  ;;  %v3492_v46 = vadd.f32 %v3491_v25, %v3490_v50 }
 0x27c   : > { %v3424_v37 = vadd.f32 %v3423_v35, %v3422_v4  ;;  %v3493_v7 = vrot.slane %v3492_v46, 1 }
 0x27e   : > { %v3494_v34 = vadd.f32 %v3493_v7, %v3492_v46  ;;  %v3425_v47 = vmul.f32 0.00390625, %v3424_v37 }
 0x280   : > { %v3495_v30 = vmul.f32 0.00390625, %v3494_v34 }
 0x282   : > { %v3497_v54 = vsel %vm639_vm0, %v3425_v47, %v3495_v30 }
 0x283   : > { %3500 = vst [vmem:[%s3499_s7] sm:$0x3] %v3497_v54 }
 0x284 PF: > { %p4561_p1 = scmp.ne.s32.totalorder %s5822_s22, 1 }
 0x285   : > { %s4564_s12 = sshll.u32 (!%p4561_p1), %s5818_s21, 1  ;;  %s3758_s10 = sld [smem:[#allocation5]] (!%p4561_p1) }
 0x286   : > { %3667 = sbr.rel (%p4561_p1) target bundleno = 730 (0x2da), region = 64  ;;  %s3736_s8 = scalar_lea.vmem (!%p4561_p1), [#allocation2], %s4564_s12 }
 0x287   : > { %s4565_s11 = sld [smem:[#allocation5 + $0x1]] (!%p4561_p1)  ;;  %s4638_s22 = sshll.u32 (!%p4561_p1), %s5818_s21, 7 }
 0x288   : > { %s3765_s13 = sld [smem:[#allocation7]] (!%p4561_p1)  ;;  %s7069_s15 = scalar_lea.vmem (!%p4561_p1), [#allocation3], %s4638_s22 }
 0x289   : > { %s4566_s14 = sld [smem:[#allocation7 + $0x1]] (!%p4561_p1) }
 0x28b   : > { %v3738_v63 = vld [vmem:[#allocation2] sm:$0x3]  ;;  %v3739_v51 = vld [vmem:[#allocation2 + $0x2] sm:$0x3]  ;;  %vm3740_vm6 = vcmask 1041408   ;;  %v3772_v2 = vlaneseq  ;;  %v3759_v13 = vstv %s3758_s10  ;;  %v4910_v18 = vld [vmem:[%s7069_s15 + $0x8] sm:$0xff]  }
 0x28c   : > { %v3737_v9 = vld [vmem:[%s3736_s8] sm:$0x3]  ;;  %v3741_v32 = vsel %vm3740_vm6, %v3738_v63, 0.0  ;;  %v3742_v40 = vsel %vm3740_vm6, %v3739_v51, 0.0  ;;  %v4911_v1 = vld [vmem:[%s7069_s15 + $0x10] sm:$0xff]   ;;  %v4912_v26 = vld [vmem:[%s7069_s15 + $0x18] sm:$0xff]   ;;  %v4757_v33 = vunpack.c.l.bf16 %v4910_v18  ;;  %v4758_v17 = vunpack.c.h.bf16 %v4910_v18 }
 0x28d   : > { %v3743_v59 = vadd.f32 %v3742_v40, %v3741_v32  ;;  %v3746_v58 = vmul.f32 %v3737_v9, %v3737_v9  ;;  %v3762_v5 = vstv %s4565_s11  ;;  %v4752_v44 = vld [vmem:[%s7069_s15] sm:$0xff]   ;;  %v3760_v10 = vmul.f32 %v3759_v13, %v3737_v9  ;;  %v4914_v19 = vld [vmem:[%s7069_s15 + $0x28] sm:$0xff]   ;;  %v4915_v12 = vld [vmem:[%s7069_s15 + $0x30] sm:$0xff]  }
 0x28e   : > { %v3766_v53 = vstv %s3765_s13  ;;  %v7072_v29 = vshrl.u32 %v3772_v2, 7  ;;  %v4753_v3 = vunpack.c.l.bf16 %v4752_v44  ;;  %v4754_v55 = vunpack.c.h.bf16 %v4752_v44  ;;  %v4913_v24 = vld [vmem:[%s7069_s15 + $0x20] sm:$0xff]   ;;  %v4916_v56 = vld [vmem:[%s7069_s15 + $0x38] sm:$0xff]   ;;  %v4918_v20 = vld [vmem:[%s7069_s15 + $0x48] sm:$0xff]  }
 0x28f   : > { %v3745_v45 = vmul.f32 0.5, %v3743_v59  ;;  %v3748_v38 = vrot.slane %v3746_v58, 7  ;;  %v3769_v14 = vstv %s4566_s14  ;;  %v4761_v43 = vunpack.c.l.bf16 %v4911_v1  ;;  %v4917_v48 = vld [vmem:[%s7069_s15 + $0x40] sm:$0xff]   ;;  %v4919_v11 = vld [vmem:[%s7069_s15 + $0x50] sm:$0xff]   ;;  %v4920_v25 = vld [vmem:[%s7069_s15 + $0x58] sm:$0xff]  }
 0x290   : > { %v3774_v8 = vsub.s32 0, %v7072_v29  ;;  %v3812_v16 = vsub.s32 1, %v7072_v29  ;;  %v4762_v28 = vunpack.c.h.bf16 %v4911_v1  ;;  %v4765_v31 = vunpack.c.l.bf16 %v4912_v26  ;;  %v4921_v35 = vld [vmem:[%s7069_s15 + $0x60] sm:$0xff]   ;;  %v4922_v47 = vld [vmem:[%s7069_s15 + $0x68] sm:$0xff]   ;;  %v4923_v30 = vld [vmem:[%s7069_s15 + $0x70] sm:$0xff]  }
 0x291   : > { %v3750_v15 = vsub.f32 %v3737_v9, %v3748_v38  ;;  %v3752_v21 = vmul.f32 %v3745_v45, %v3745_v45  ;;  %v3763_v36 = vmul.f32 %v3762_v5, %v3745_v45  ;;  %v4766_v42 = vunpack.c.h.bf16 %v4912_v26  ;;  %v4924_v32 = vld [vmem:[%s7069_s15 + $0x78] sm:$0xff]  }
 0x292   : > { %v4769_v57 = vunpack.c.l.bf16 %v4913_v24  ;;  %v4770_v39 = vunpack.c.h.bf16 %v4913_v24  ;;  %v4773_v27 = vunpack.c.l.bf16 %v4914_v19  ;;  %v4774_v61 = vunpack.c.h.bf16 %v4914_v19 }
 0x293   : > { %v3751_v60 = vmax.f32 %v3750_v15, 0.0  ;;  %v3754_v52 = vrot.slane %v3752_v21, 7  ;;  %v3764_v22 = vadd.f32 %v3763_v36, %v3760_v10  ;;  %v4777_v50 = vunpack.c.l.bf16 %v4915_v12 }
 0x294   : > { %v4778_v4 = vunpack.c.h.bf16 %v4915_v12  ;;  %v4781_v37 = vunpack.c.l.bf16 %v4916_v56  ;;  %v4782_v7 = vunpack.c.h.bf16 %v4916_v56  ;;  %v4785_v34 = vunpack.c.l.bf16 %v4917_v48 }
 0x295   : > { %v3756_v62 = vsub.f32 %v3745_v45, %v3754_v52  ;;  %v3767_v6 = vmul.f32 %v3766_v53, %v3751_v60  ;;  %v3775_v46 = vrot.slane %v3764_v22, %v3774_v8  ;;  %v4786_v54 = vunpack.c.h.bf16 %v4917_v48 }
 0x296   : > { %v4789_v63 = vunpack.c.l.bf16 %v4918_v20  ;;  %v4790_v51 = vunpack.c.h.bf16 %v4918_v20  ;;  %v4793_v9 = vunpack.c.l.bf16 %v4919_v11  ;;  %v4794_v40 = vunpack.c.h.bf16 %v4919_v11 }
 0x297   : > { %v3757_v0 = vmax.f32 %v3756_v62, 0.0  ;;  %v4797_v59 = vunpack.c.l.bf16 %v4920_v25  ;;  %v4798_v58 = vunpack.c.h.bf16 %v4920_v25  ;;  %v4801_v45 = vunpack.c.l.bf16 %v4921_v35 }
 0x298   : > { %v4802_v38 = vunpack.c.h.bf16 %v4921_v35  ;;  %v4805_v15 = vunpack.c.l.bf16 %v4922_v47  ;;  %v4806_v21 = vunpack.c.h.bf16 %v4922_v47  ;;  %v4809_v60 = vunpack.c.l.bf16 %v4923_v30 }
 0x299   : > { %v3770_v49 = vmul.f32 %v3769_v14, %v3757_v0  ;;  %v3776_v52 = vsub.f32 %v4753_v3, %v3775_v46  ;;  %v4810_v62 = vunpack.c.h.bf16 %v4923_v30  ;;  %v4813_v53 = vunpack.c.l.bf16 %v4924_v32 }
 0x29a   : > { %v4814_v14 = vunpack.c.h.bf16 %v4924_v32  ;;  %v3777_v2 = vsub.f32 %v4754_v55, %v3775_v46  ;;  %v3778_v0 = vsub.f32 %v4757_v33, %v3775_v46  ;;  %v3779_v13 = vsub.f32 %v4758_v17, %v3775_v46 }
 0x29b   : > { %v3771_v23 = vadd.f32 %v3770_v49, %v3767_v6  ;;  %v3780_v5 = vsub.f32 %v4761_v43, %v3775_v46  ;;  %v3781_v6 = vsub.f32 %v4762_v28, %v3775_v46  ;;  %v3782_v49 = vsub.f32 %v4765_v31, %v3775_v46 }
 0x29c   : > { %v3783_v44 = vsub.f32 %v4766_v42, %v3775_v46  ;;  %v3784_v10 = vsub.f32 %v4769_v57, %v3775_v46  ;;  %v3785_v36 = vsub.f32 %v4770_v39, %v3775_v46  ;;  %v7093_v18 = vsub.f32 %v4774_v61, %v3775_v46  ;;  %v7134_v57 = vld [vmem:[%s7300_s2] ss:$0 sm:$0xff] }
 0x29d   : > { %v3808_v41 = vadd.f32 1e-05, %v3771_v23  ;;  %v7091_v23 = vsub.f32 %v4773_v27, %v3775_v46  ;;  %v7095_v1 = vsub.f32 %v4777_v50, %v3775_v46  ;;  %v7099_v3 = vsub.f32 %v4781_v37, %v3775_v46 }
 0x29e   : > { %v7101_v26 = vsub.f32 %v4782_v7, %v3775_v46  ;;  %v7103_v55 = vsub.f32 %v4785_v34, %v3775_v46  ;;  %v7105_v24 = vsub.f32 %v4786_v54, %v3775_v46  ;;  %v7107_v22 = vsub.f32 %v4789_v63, %v3775_v46 }
 0x29f   : > { %5756 = vrsqrt.f32 %v3808_v41  ;;  %v7097_v41 = vsub.f32 %v4778_v4, %v3775_v46  ;;  %v7109_v8 = vsub.f32 %v4790_v51, %v3775_v46  ;;  %v7111_v33 = vsub.f32 %v4793_v9, %v3775_v46  ;;  %v7151_v4 = vld [vmem:[%s7301_s3] ss:$0 sm:$0xff] }
 0x2a0   : > { %v7113_v12 = vsub.f32 %v4794_v40, %v3775_v46  ;;  %v7115_v17 = vsub.f32 %v4797_v59, %v3775_v46  ;;  %v7117_v43 = vsub.f32 %v4798_v58, %v3775_v46  ;;  %v7119_v28 = vsub.f32 %v4801_v45, %v3775_v46 }
 0x2a1   : > { %v7125_v48 = vsub.f32 %v4802_v38, %v3775_v46  ;;  %v7127_v31 = vsub.f32 %v4805_v15, %v3775_v46  ;;  %v7129_v42 = vsub.f32 %v4806_v21, %v3775_v46  ;;  %v7136_v39 = vsub.f32 %v4809_v60, %v3775_v46 }
 0x2a2   : > { %v7138_v20 = vsub.f32 %v4810_v62, %v3775_v46  ;;  %v7140_v11 = vsub.f32 %v4813_v53, %v3775_v46  ;;  %v7142_v29 = vsub.f32 %v4814_v14, %v3775_v46 }
 0x2ac   : > { %v5757_v19 = vpop.eup %5756 }
 0x2ad   : > { %v7123_v56 = vrot.slane %v5757_v19, %v3812_v16 }
 0x2af   : > { %v3814_v16 = vmul.f32 %v7123_v56, %v3776_v52  ;;  %v3815_v27 = vmul.f32 %v7123_v56, %v3777_v2  ;;  %v3816_v61 = vmul.f32 %v7123_v56, %v3778_v0  ;;  %v3817_v50 = vmul.f32 %v7123_v56, %v3779_v13 }
 0x2b0   : > { %v3818_v25 = vmul.f32 %v7123_v56, %v3780_v5  ;;  %v3819_v35 = vmul.f32 %v7123_v56, %v3781_v6  ;;  %v3820_v46 = vmul.f32 %v7123_v56, %v3782_v49  ;;  %v3821_v37 = vmul.f32 %v7123_v56, %v3783_v44 }
 0x2b1   : > { %v3853_v7 = vmul.f32 %v7134_v57, %v3814_v16  ;;  %v3854_v34 = vmul.f32 %v7134_v57, %v3815_v27  ;;  %v3855_v47 = vmul.f32 %v7134_v57, %v3816_v61  ;;  %v3856_v30 = vmul.f32 %v7134_v57, %v3817_v50 }
 0x2b2   : > { %v3857_v54 = vmul.f32 %v7134_v57, %v3818_v25  ;;  %v3858_v63 = vmul.f32 %v7134_v57, %v3819_v35  ;;  %v3859_v51 = vmul.f32 %v7134_v57, %v3820_v46  ;;  %v3860_v9 = vmul.f32 %v7134_v57, %v3821_v37 }
 0x2b3   : > { %v3892_v32 = vadd.f32 %v7151_v4, %v3853_v7  ;;  %v3893_v40 = vadd.f32 %v7151_v4, %v3854_v34  ;;  %v3894_v59 = vadd.f32 %v7151_v4, %v3855_v47  ;;  %v3895_v58 = vadd.f32 %v7151_v4, %v3856_v30 }
 0x2b4   : > { %v3896_v45 = vadd.f32 %v7151_v4, %v3857_v54  ;;  %v3897_v38 = vadd.f32 %v7151_v4, %v3858_v63  ;;  %v3898_v15 = vadd.f32 %v7151_v4, %v3859_v51  ;;  %v3899_v21 = vadd.f32 %v7151_v4, %v3860_v9 }
 0x2b5   : > { %v3924_v60 = vmax.f32 %v3892_v32, 0.0  ;;  %v3925_v52 = vmax.f32 %v3893_v40, 0.0  ;;  %v3926_v62 = vmax.f32 %v3894_v59, 0.0  ;;  %v3927_v53 = vmax.f32 %v3895_v58, 0.0 }
 0x2b6   : > { %v3928_v14 = vmax.f32 %v3896_v45, 0.0  ;;  %v3929_v2 = vmax.f32 %v3897_v38, 0.0  ;;  %v3930_v0 = vmax.f32 %v3898_v15, 0.0  ;;  %v3931_v13 = vmax.f32 %v3899_v21, 0.0 }
 0x2b7   : > { %v4818_v5 = vpack.c.bf16 %v3925_v52, %v3924_v60  ;;  %v4823_v6 = vpack.c.bf16 %v3927_v53, %v3926_v62  ;;  %v3822_v49 = vmul.f32 %v7123_v56, %v3784_v10  ;;  %v3823_v44 = vmul.f32 %v7123_v56, %v3785_v36 }
 0x2b8   : > { %v4828_v19 = vpack.c.bf16 %v3929_v2, %v3928_v14  ;;  %v4833_v16 = vpack.c.bf16 %v3931_v13, %v3930_v0  ;;  %v3824_v27 = vmul.f32 %v7123_v56, %v7091_v23  ;;  %v3825_v61 = vmul.f32 %v7123_v56, %v7093_v18 }
 0x2b9   : > { %4819 = vst [vmem:[%s5957_s9] sm:$0xff] %v4818_v5   ;;  %4925 = vst [vmem:[%s5957_s9 + $0x8] sm:$0xff] %v4823_v6   ;;  %v3861_v50 = vmul.f32 %v7134_v57, %v3822_v49  ;;  %v3862_v25 = vmul.f32 %v7134_v57, %v3823_v44  ;;  %v3826_v35 = vmul.f32 %v7123_v56, %v7095_v1 }
 0x2ba   : > { %v3827_v10 = vmul.f32 %v7123_v56, %v7097_v41  ;;  %4926 = vst [vmem:[%s5957_s9 + $0x10] sm:$0xff] %v4828_v19   ;;  %4927 = vst [vmem:[%s5957_s9 + $0x18] sm:$0xff] %v4833_v16   ;;  %v3863_v36 = vmul.f32 %v7134_v57, %v3824_v27  ;;  %v3864_v23 = vmul.f32 %v7134_v57, %v3825_v61 }
 0x2bb   : > { %v3828_v18 = vmul.f32 %v7123_v56, %v7099_v3  ;;  %v3829_v46 = vmul.f32 %v7123_v56, %v7101_v26  ;;  %v3900_v37 = vadd.f32 %v7151_v4, %v3861_v50  ;;  %v3901_v7 = vadd.f32 %v7151_v4, %v3862_v25 }
 0x2bc   : > { %v3865_v1 = vmul.f32 %v7134_v57, %v3826_v35  ;;  %v3866_v41 = vmul.f32 %v7134_v57, %v3827_v10  ;;  %v3902_v34 = vadd.f32 %v7151_v4, %v3863_v36  ;;  %v3903_v47 = vadd.f32 %v7151_v4, %v3864_v23 }
 0x2bd   : > { %v3867_v30 = vmul.f32 %v7134_v57, %v3828_v18  ;;  %v3868_v54 = vmul.f32 %v7134_v57, %v3829_v46  ;;  %v3932_v3 = vmax.f32 %v3900_v37, 0.0  ;;  %v3933_v63 = vmax.f32 %v3901_v7, 0.0 }
 0x2be   : > { %v3904_v26 = vadd.f32 %v7151_v4, %v3865_v1  ;;  %v3905_v51 = vadd.f32 %v7151_v4, %v3866_v41  ;;  %v3934_v9 = vmax.f32 %v3902_v34, 0.0  ;;  %v3935_v32 = vmax.f32 %v3903_v47, 0.0 }
 0x2bf   : > { %v3906_v40 = vadd.f32 %v7151_v4, %v3867_v30  ;;  %v3907_v59 = vadd.f32 %v7151_v4, %v3868_v54  ;;  %v4838_v58 = vpack.c.bf16 %v3933_v63, %v3932_v3  ;;  %v3830_v15 = vmul.f32 %v7123_v56, %v7103_v55 }
 0x2c0   : > { %v3936_v45 = vmax.f32 %v3904_v26, 0.0  ;;  %v3937_v38 = vmax.f32 %v3905_v51, 0.0  ;;  %v4843_v21 = vpack.c.bf16 %v3935_v32, %v3934_v9  ;;  %v3831_v62 = vmul.f32 %v7123_v56, %v7105_v24 }
 0x2c1   : > { %v3938_v60 = vmax.f32 %v3906_v40, 0.0  ;;  %v3939_v52 = vmax.f32 %v3907_v59, 0.0  ;;  %4928 = vst [vmem:[%s5957_s9 + $0x20] sm:$0xff] %v4838_v58   ;;  %v3869_v14 = vmul.f32 %v7134_v57, %v3830_v15  ;;  %v3832_v2 = vmul.f32 %v7123_v56, %v7107_v22 }
 0x2c2   : > { %v4848_v53 = vpack.c.bf16 %v3937_v38, %v3936_v45  ;;  %v3833_v0 = vmul.f32 %v7123_v56, %v7109_v8  ;;  %4929 = vst [vmem:[%s5957_s9 + $0x28] sm:$0xff] %v4843_v21   ;;  %v3870_v55 = vmul.f32 %v7134_v57, %v3831_v62  ;;  %v3834_v5 = vmul.f32 %v7123_v56, %v7111_v33 }
 0x2c3   : > { %v4853_v13 = vpack.c.bf16 %v3939_v52, %v3938_v60  ;;  %v3835_v24 = vmul.f32 %v7123_v56, %v7113_v12  ;;  %v3908_v6 = vadd.f32 %v7151_v4, %v3869_v14  ;;  %v3871_v49 = vmul.f32 %v7134_v57, %v3832_v2 }
 0x2c4   : > { %4930 = vst [vmem:[%s5957_s9 + $0x30] sm:$0xff] %v4848_v53   ;;  %v3872_v22 = vmul.f32 %v7134_v57, %v3833_v0  ;;  %v3836_v8 = vmul.f32 %v7123_v56, %v7115_v17  ;;  %v3909_v44 = vadd.f32 %v7151_v4, %v3870_v55  ;;  %v3873_v19 = vmul.f32 %v7134_v57, %v3834_v5 }
 0x2c5   : > { %4931 = vst [vmem:[%s5957_s9 + $0x38] sm:$0xff] %v4853_v13   ;;  %v3874_v33 = vmul.f32 %v7134_v57, %v3835_v24  ;;  %v3837_v12 = vmul.f32 %v7123_v56, %v7117_v43  ;;  %v3940_v16 = vmax.f32 %v3908_v6, 0.0  ;;  %v3910_v27 = vadd.f32 %v7151_v4, %v3871_v49 }
 0x2c6   : > { %v3911_v61 = vadd.f32 %v7151_v4, %v3872_v22  ;;  %v3875_v50 = vmul.f32 %v7134_v57, %v3836_v8  ;;  %v3941_v25 = vmax.f32 %v3909_v44, 0.0  ;;  %v3912_v17 = vadd.f32 %v7151_v4, %v3873_v19 }
 0x2c7   : > { %v3913_v35 = vadd.f32 %v7151_v4, %v3874_v33  ;;  %v3876_v10 = vmul.f32 %v7134_v57, %v3837_v12  ;;  %v3942_v36 = vmax.f32 %v3910_v27, 0.0  ;;  %v3838_v18 = vmul.f32 %v7123_v56, %v7119_v28 }
 0x2c8   : > { %v3943_v23 = vmax.f32 %v3911_v61, 0.0  ;;  %v3914_v43 = vadd.f32 %v7151_v4, %v3875_v50  ;;  %v4858_v46 = vpack.c.bf16 %v3941_v25, %v3940_v16  ;;  %v3944_v37 = vmax.f32 %v3912_v17, 0.0 }
 0x2c9   : > { %v3945_v7 = vmax.f32 %v3913_v35, 0.0  ;;  %v3915_v1 = vadd.f32 %v7151_v4, %v3876_v10  ;;  %v3839_v47 = vmul.f32 %v7123_v56, %v7125_v48  ;;  %v3877_v30 = vmul.f32 %v7134_v57, %v3838_v18 }
 0x2ca   : > { %v4863_v41 = vpack.c.bf16 %v3943_v23, %v3942_v36  ;;  %v3946_v34 = vmax.f32 %v3914_v43, 0.0  ;;  %4932 = vst [vmem:[%s5957_s9 + $0x40] sm:$0xff] %v4858_v46   ;;  %v3840_v63 = vmul.f32 %v7123_v56, %v7127_v31  ;;  %v3841_v28 = vmul.f32 %v7123_v56, %v7129_v42 }
 0x2cb   : > { %v4868_v54 = vpack.c.bf16 %v3945_v7, %v3944_v37  ;;  %v3947_v3 = vmax.f32 %v3915_v1, 0.0  ;;  %v3878_v26 = vmul.f32 %v7134_v57, %v3839_v47  ;;  %v3916_v51 = vadd.f32 %v7151_v4, %v3877_v30 }
 0x2cc   : > { %4933 = vst [vmem:[%s5957_s9 + $0x48] sm:$0xff] %v4863_v41   ;;  %v3842_v48 = vmul.f32 %v7123_v56, %v7136_v39  ;;  %v3843_v9 = vmul.f32 %v7123_v56, %v7138_v20  ;;  %v3879_v40 = vmul.f32 %v7134_v57, %v3840_v63  ;;  %v3880_v31 = vmul.f32 %v7134_v57, %v3841_v28 }
 0x2cd   : > { %4934 = vst [vmem:[%s5957_s9 + $0x50] sm:$0xff] %v4868_v54   ;;  %v4873_v32 = vpack.c.bf16 %v3947_v3, %v3946_v34  ;;  %v3844_v42 = vmul.f32 %v7123_v56, %v7140_v11  ;;  %v3917_v59 = vadd.f32 %v7151_v4, %v3878_v26  ;;  %v3948_v58 = vmax.f32 %v3916_v51, 0.0 }
 0x2ce   : > { %v3881_v45 = vmul.f32 %v7134_v57, %v3842_v48  ;;  %v3882_v38 = vmul.f32 %v7134_v57, %v3843_v9  ;;  %v3918_v39 = vadd.f32 %v7151_v4, %v3879_v40  ;;  %v3919_v20 = vadd.f32 %v7151_v4, %v3880_v31 }
 0x2cf   : > { %4935 = vst [vmem:[%s5957_s9 + $0x58] sm:$0xff] %v4873_v32   ;;  %v3845_v15 = vmul.f32 %v7123_v56, %v7142_v29  ;;  %v3883_v21 = vmul.f32 %v7134_v57, %v3844_v42  ;;  %v3949_v11 = vmax.f32 %v3917_v59, 0.0 }
 0x2d0   : > { %v3920_v60 = vadd.f32 %v7151_v4, %v3881_v45  ;;  %v3921_v52 = vadd.f32 %v7151_v4, %v3882_v38  ;;  %v3950_v62 = vmax.f32 %v3918_v39, 0.0  ;;  %v3951_v53 = vmax.f32 %v3919_v20, 0.0 }
 0x2d1   : > { %v3884_v14 = vmul.f32 %v7134_v57, %v3845_v15  ;;  %v3922_v2 = vadd.f32 %v7151_v4, %v3883_v21  ;;  %v4878_v0 = vpack.c.bf16 %v3949_v11, %v3948_v58 }
 0x2d2   : > { %v3952_v13 = vmax.f32 %v3920_v60, 0.0  ;;  %v3953_v55 = vmax.f32 %v3921_v52, 0.0  ;;  %v4883_v56 = vpack.c.bf16 %v3951_v53, %v3950_v62 }
 0x2d3   : > { %v3923_v29 = vadd.f32 %v7151_v4, %v3884_v14  ;;  %v3954_v5 = vmax.f32 %v3922_v2, 0.0  ;;  %4936 = vst [vmem:[%s5957_s9 + $0x60] sm:$0xff] %v4878_v0  }
 0x2d4   : > { %v4888_v24 = vpack.c.bf16 %v3953_v55, %v3952_v13  ;;  %4937 = vst [vmem:[%s5957_s9 + $0x68] sm:$0xff] %v4883_v56  }
 0x2d5   : > { %v3955_v6 = vmax.f32 %v3923_v29, 0.0 }
 0x2d6   : > { %4938 = vst [vmem:[%s5957_s9 + $0x70] sm:$0xff] %v4888_v24  }
 0x2d7   : > { %v4893_v49 = vpack.c.bf16 %v3955_v6, %v3954_v5 }
 0x2d9   : > { %4939 = vst [vmem:[%s5957_s9 + $0x78] sm:$0xff] %v4893_v49  }
 0x2da PF: > { %s18_s25 = sadd.s32 1, %s5834_s25   ;;  %s7339_s21 = smov %s5826_s23 }
 0x2db   : > { %p15_p2 = scmp.ge.s32.totalorder %s18_s25, 6   ;;  %s7340_s22 = smov %s5830_s24 }
 0x2dc   : > { %s7341_s23 = smov %s7344_s27  ;;  %s7342_s24 = smov %s7348_s28 }
 0x2dd   :  { %17 = sbr.rel (!%p15_p2) target bundleno = 4 (0x4), region = 101 }
 0x2e2   :  { %4140 = vsyncpa [#allocation6], 1 }
 0x2e3   :  { %4142 = vsyncpa [#allocation6 + $0x1], 1 }
 0x2e4   :  { %4143 = vsyncpa [#allocation8], 1 }

</bundles_post_ra>
